<compile_context>
chip_gen: v7x
topology: tpu7x:2x2x1
jax: 0.10.0
libtpu: 0.0.40
codegen_flags: <defaults>
</compile_context>

<pallas_src>
import functools

import jax
import jax.numpy as jnp
from jax.experimental import pallas as pl
from jax.experimental.pallas import tpu as pltpu

KH = KW = 3
CP = 128  # padded channel width == TPU lane width


def _round_up(x, m):
    return (x + m - 1) // m * m


# ----------------------------------------------------------------------------
# Fused Pallas kernel: stem conv -> block conv1 -> block conv2 (+residual)
# -> global average pool.  One grid step == one image; everything stays in
# VMEM between layers.
# ----------------------------------------------------------------------------
def _fused_resnet_kernel(x_ref, w1_ref, s1_ref, b1_ref,
                         w2_ref, s2_ref, b2_ref,
                         w3_ref, s3_ref, b3_ref,
                         mask_ref, o_ref,
                         f1_ref, fh_ref, acc_ref,
                         *, wp, hw, guard, rimg):
    # Tap row-shifts in the flat (padded-pixel, channel) layout.
    shifts = [(dh - 1) * wp + (dw - 1) for dh in range(KH) for dw in range(KW)]
    # Interior mask, broadcast to full lane width once (hoisted).
    maskb = jnp.broadcast_to(mask_ref[...], (rimg, CP))

    def conv_bn_relu(load_tap, w_ref, s_ref, b_ref, residual=None):
        # 9 shifted bf16 MXU dots accumulated into an f32 VMEM accumulator.
        acc_ref[...] = jnp.zeros_like(acc_ref)
        for t, sh in enumerate(shifts):
            acc_ref[...] += jnp.dot(load_tap(guard + sh), w_ref[t],
                                    preferred_element_type=jnp.float32)
        y = acc_ref[...] * s_ref[...] + b_ref[...]      # folded BN
        if residual is not None:
            y = y + residual
        y = jnp.maximum(y, 0.0)                          # ReLU
        return y * maskb                                 # zero halo rows

    # Halo/guard rows of the resident feature maps must be zero.
    f1_ref[...] = jnp.zeros_like(f1_ref)
    fh_ref[...] = jnp.zeros_like(fh_ref)

    # --- stem: conv3x3 + BN + ReLU -------------------------------------------
    def load_x(a):
        return x_ref[0, pl.ds(a, rimg), :].astype(jnp.bfloat16)

    f1 = conv_bn_relu(load_x, w1_ref, s1_ref, b1_ref)
    f1_ref[pl.ds(guard, rimg), :] = f1

    # --- residual block, conv1: conv3x3 + BN + ReLU ---------------------------
    def load_f1(a):
        return f1_ref[pl.ds(a, rimg), :].astype(jnp.bfloat16)

    h = conv_bn_relu(load_f1, w2_ref, s2_ref, b2_ref)
    fh_ref[pl.ds(guard, rimg), :] = h

    # --- residual block, conv2: conv3x3 + BN + identity skip + ReLU ----------
    def load_fh(a):
        return fh_ref[pl.ds(a, rimg), :].astype(jnp.bfloat16)

    res = f1_ref[pl.ds(guard, rimg), :]
    f2 = conv_bn_relu(load_fh, w3_ref, s3_ref, b3_ref, residual=res)

    # --- fused global average pool (halo rows are zero, so plain row-sum) ----
    pooled = jnp.sum(f2, axis=0, keepdims=True) * (1.0 / hw)   # (1, CP)
    o_ref[0] = pooled.astype(o_ref.dtype)


# ----------------------------------------------------------------------------
# Wrapper: layout prep + pallas_call
# ----------------------------------------------------------------------------
def _prep_conv_weight(w_oihw):
    """PyTorch (Cout, Cin, 3, 3) -> per-tap (9, CP, CP) bf16, zero-padded."""
    cout, cin = w_oihw.shape[:2]
    wt = jnp.transpose(w_oihw, (2, 3, 1, 0)).reshape(KH * KW, cin, cout)
    wt = jnp.pad(wt, ((0, 0), (0, CP - cin), (0, CP - cout)))
    return wt.astype(jnp.bfloat16)


def _prep_affine(scale, bias):
    c = scale.shape[0]
    s = jnp.pad(scale.astype(jnp.float32), (0, CP - c)).reshape(1, CP)
    b = jnp.pad(bias.astype(jnp.float32), (0, CP - c)).reshape(1, CP)
    return s, b


def modified_resnet_pooled(params, x_nchw):
    """Returns the third backbone output (global-avg-pooled features), (N, C)."""
    x = jnp.transpose(x_nchw, (0, 2, 3, 1)).astype(jnp.float32)  # NHWC
    n, hgt, wid, cin = x.shape
    cout = params["stem_w"].shape[0]
    assert cin <= CP and cout <= CP

    hp, wp = hgt + 2, wid + 2                 # spatially padded extents
    rimg = _round_up(hp * wp, 8)              # conv rows per image (8-aligned)
    guard = _round_up(wp + 1, 4)              # halo rows above/below (>= wp+1)
    rg = rimg + 2 * guard                     # rows per image incl. guards

    # Spatial halo + flatten + channel pad: (N, rg, CP) f32, zeros elsewhere.
    xp = jnp.pad(x, ((0, 0), (1, 1), (1, 1), (0, 0)))
    xp = xp.reshape(n, hp * wp, cin)
    xp = jnp.pad(xp, ((0, 0), (guard, rg - guard - hp * wp), (0, CP - cin)))

    # Interior mask over the rimg conv rows (1 = real HxW pixel, 0 = halo/pad).
    rows = jnp.arange(rimg)
    ph, pw = rows // wp, rows % wp
    interior = ((rows < hp * wp) & (ph >= 1) & (ph <= hgt)
                & (pw >= 1) & (pw <= wid))
    mask = interior.astype(jnp.float32).reshape(rimg, 1)

    w1 = _prep_conv_weight(params["stem_w"])
    s1, b1 = _prep_affine(params["stem_scale"], params["stem_bias"])
    w2 = _prep_conv_weight(params["b1_w"])
    s2, b2 = _prep_affine(params["b1_scale"], params["b1_bias"])
    w3 = _prep_conv_weight(params["b2_w"])
    s3, b3 = _prep_affine(params["b2_scale"], params["b2_bias"])

    kernel = functools.partial(_fused_resnet_kernel, wp=wp, hw=hgt * wid,
                               guard=guard, rimg=rimg)

    wmap = lambda i: (0, 0, 0)   # weights: same block every grid step (no re-DMA)
    vmap = lambda i: (0, 0)      # scale / bias / mask

    pooled = pl.pallas_call(
        kernel,
        out_shape=jax.ShapeDtypeStruct((n, 1, CP), jnp.float32),
        grid=(n,),
        in_specs=[
            pl.BlockSpec((1, rg, CP), lambda i: (i, 0, 0)),       # input image
            pl.BlockSpec((KH * KW, CP, CP), wmap),                # stem w
            pl.BlockSpec((1, CP), vmap), pl.BlockSpec((1, CP), vmap),
            pl.BlockSpec((KH * KW, CP, CP), wmap),                # block conv1 w
            pl.BlockSpec((1, CP), vmap), pl.BlockSpec((1, CP), vmap),
            pl.BlockSpec((KH * KW, CP, CP), wmap),                # block conv2 w
            pl.BlockSpec((1, CP), vmap), pl.BlockSpec((1, CP), vmap),
            pl.BlockSpec((rimg, 1), vmap),                        # interior mask
        ],
        out_specs=pl.BlockSpec((1, 1, CP), lambda i: (i, 0, 0)),
        scratch_shapes=[
            pltpu.VMEM((rg, CP), jnp.float32),     # f1 (kept for residual)
            pltpu.VMEM((rg, CP), jnp.float32),     # h
            pltpu.VMEM((rimg, CP), jnp.float32),   # matmul accumulator
        ],
        compiler_params=pltpu.CompilerParams(
            dimension_semantics=("parallel",),
            vmem_limit_bytes=32 * 1024 * 1024),
    )(xp, w1, s1, b1, w2, s2, b2, w3, s3, b3, mask)

    return pooled.reshape(n, CP)[:, :cout]


def simclr_ds_forward(params, x_nchw):
    x = modified_resnet_pooled(params, x_nchw)   # third backbone output
    feature = x.reshape(x.shape[0], -1)          # torch.flatten(x, start_dim=1)
    return feature


# ----------------------------------------------------------------------------
# Parameters (deterministic, folded BN) and a pure-JAX reference
# ----------------------------------------------------------------------------
def init_params(key, in_ch=3, width=8):
    ks = jax.random.split(key, 3)

    def conv_w(k, cout, cin):
        return 0.1 * jax.random.normal(k, (cout, cin, 3, 3), jnp.float32)

    def bn(cout, seed):
        gamma = 1.0 + 0.01 * jnp.arange(cout, dtype=jnp.float32)
        beta = 0.01 * jnp.arange(cout, dtype=jnp.float32) - 0.02 * seed
        mean = 0.05 * jnp.arange(cout, dtype=jnp.float32)
        var = 1.0 + 0.1 * jnp.arange(cout, dtype=jnp.float32)
        scale = gamma / jnp.sqrt(var + 1e-5)
        return scale, beta - mean * scale

    p = {}
    p["stem_w"] = conv_w(ks[0], width, in_ch)
    p["stem_scale"], p["stem_bias"] = bn(width, 0)
    p["b1_w"] = conv_w(ks[1], width, width)
    p["b1_scale"], p["b1_bias"] = bn(width, 1)
    p["b2_w"] = conv_w(ks[2], width, width)
    p["b2_scale"], p["b2_bias"] = bn(width, 2)
    return p


def _reference_forward(params, x_nchw):
    x = jnp.transpose(x_nchw, (0, 2, 3, 1)).astype(jnp.float32)

    def conv_bn(x, w, s, b):
        y = jax.lax.conv_general_dilated(
            x, jnp.transpose(w, (2, 3, 1, 0)), (1, 1), "SAME",
            dimension_numbers=("NHWC", "HWIO", "NHWC"))
        return y * s + b

    f1 = jax.nn.relu(conv_bn(x, params["stem_w"],
                             params["stem_scale"], params["stem_bias"]))
    h = jax.nn.relu(conv_bn(f1, params["b1_w"],
                            params["b1_scale"], params["b1_bias"]))
    f2 = jax.nn.relu(conv_bn(h, params["b2_w"],
                             params["b2_scale"], params["b2_bias"]) + f1)
    pooled = jnp.mean(f2, axis=(1, 2))
    return pooled.reshape(pooled.shape[0], -1)


# ----------------------------------------------------------------------------
if __name__ == "__main__":
    key = jax.random.PRNGKey(0)
    k_param, k_x = jax.random.split(key)

    B, C, H, W = 2, 3, 16, 16
    x = jax.random.normal(k_x, (B, C, H, W), jnp.float32)
    params = init_params(k_param, in_ch=C, width=8)

    feat = jax.jit(simclr_ds_forward)(params, x)
    feat = jax.block_until_ready(feat)

    ref = _reference_forward(params, x)

    assert feat.shape == (B, 8), feat.shape
    assert bool(jnp.all(jnp.isfinite(feat)))
    # bf16 MXU inputs with f32 accumulation -> loose-but-meaningful tolerance.
    assert bool(jnp.allclose(feat, ref, rtol=5e-2, atol=5e-2)), (
        float(jnp.max(jnp.abs(feat - ref))))
    print("KERNEL_OK")
</pallas_src>

<mosaic_0001>
module attributes {stable_mosaic.version = 11 : i64} {
  func.func @_fused_resnet_kernel(%arg0: i32, %arg1: memref<1x368x128xf32, #tpu.memory_space<vmem>>, %arg2: memref<9x128x128xbf16, #tpu.memory_space<vmem>>, %arg3: memref<1x128xf32, #tpu.memory_space<vmem>>, %arg4: memref<1x128xf32, #tpu.memory_space<vmem>>, %arg5: memref<9x128x128xbf16, #tpu.memory_space<vmem>>, %arg6: memref<1x128xf32, #tpu.memory_space<vmem>>, %arg7: memref<1x128xf32, #tpu.memory_space<vmem>>, %arg8: memref<9x128x128xbf16, #tpu.memory_space<vmem>>, %arg9: memref<1x128xf32, #tpu.memory_space<vmem>>, %arg10: memref<1x128xf32, #tpu.memory_space<vmem>>, %arg11: memref<328x1xf32, #tpu.memory_space<vmem>>, %arg12: memref<1x1x128xf32, #tpu.memory_space<vmem>>, %arg13: memref<368x128xf32, #tpu.memory_space<vmem>>, %arg14: memref<368x128xf32, #tpu.memory_space<vmem>>, %arg15: memref<328x128xf32, #tpu.memory_space<vmem>>) attributes {dimension_semantics = [#tpu.dimension_semantics<parallel>], iteration_bounds = array<i64: 2>, scalar_prefetch = 0 : i64, scratch_operands = 3 : i64, tpu.core_type = #tpu.core_type<tc>, window_params = [{transform_indices = @transform_0, window_bounds = array<i64: 1, 368, 128>}, {pipeline_mode = #tpu.pipeline_mode<synchronous>, transform_indices = @transform_1, window_bounds = array<i64: 9, 128, 128>}, {pipeline_mode = #tpu.pipeline_mode<synchronous>, transform_indices = @transform_2, window_bounds = array<i64: 1, 128>}, {pipeline_mode = #tpu.pipeline_mode<synchronous>, transform_indices = @transform_3, window_bounds = array<i64: 1, 128>}, {pipeline_mode = #tpu.pipeline_mode<synchronous>, transform_indices = @transform_4, window_bounds = array<i64: 9, 128, 128>}, {pipeline_mode = #tpu.pipeline_mode<synchronous>, transform_indices = @transform_5, window_bounds = array<i64: 1, 128>}, {pipeline_mode = #tpu.pipeline_mode<synchronous>, transform_indices = @transform_6, window_bounds = array<i64: 1, 128>}, {pipeline_mode = #tpu.pipeline_mode<synchronous>, transform_indices = @transform_7, window_bounds = array<i64: 9, 128, 128>}, {pipeline_mode = #tpu.pipeline_mode<synchronous>, transform_indices = @transform_8, window_bounds = array<i64: 1, 128>}, {pipeline_mode = #tpu.pipeline_mode<synchronous>, transform_indices = @transform_9, window_bounds = array<i64: 1, 128>}, {pipeline_mode = #tpu.pipeline_mode<synchronous>, transform_indices = @transform_10, window_bounds = array<i64: 328, 1>}, {transform_indices = @transform_11, window_bounds = array<i64: 1, 1, 128>}]} {
    %c0 = arith.constant 0 : index
    %c0_0 = arith.constant 0 : index
    %0 = vector.load %arg11[%c0, %c0_0] : memref<328x1xf32, #tpu.memory_space<vmem>>, vector<328x1xf32>
    %1 = vector.shape_cast %0 : vector<328x1xf32> to vector<328x1xf32>
    %2 = vector.broadcast %1 : vector<328x1xf32> to vector<328x128xf32>
    %cst = arith.constant 0.000000e+00 : f32
    %3 = vector.broadcast %cst : f32 to vector<368x128xf32>
    %c0_1 = arith.constant 0 : index
    %c0_2 = arith.constant 0 : index
    %4 = vector.load %arg13[%c0_1, %c0_2] : memref<368x128xf32, #tpu.memory_space<vmem>>, vector<368x128xf32>
    tpu.vector_store %arg13[%c0_1, %c0_2], %3 {strides = array<i32>} : memref<368x128xf32, #tpu.memory_space<vmem>>, vector<368x128xf32>,
    %cst_3 = arith.constant 0.000000e+00 : f32
    %5 = vector.broadcast %cst_3 : f32 to vector<368x128xf32>
    %c0_4 = arith.constant 0 : index
    %c0_5 = arith.constant 0 : index
    %6 = vector.load %arg14[%c0_4, %c0_5] : memref<368x128xf32, #tpu.memory_space<vmem>>, vector<368x128xf32>
    tpu.vector_store %arg14[%c0_4, %c0_5], %5 {strides = array<i32>} : memref<368x128xf32, #tpu.memory_space<vmem>>, vector<368x128xf32>,
    %cst_6 = arith.constant 0.000000e+00 : f32
    %7 = vector.broadcast %cst_6 : f32 to vector<328x128xf32>
    %c0_7 = arith.constant 0 : index
    %c0_8 = arith.constant 0 : index
    %8 = vector.load %arg15[%c0_7, %c0_8] : memref<328x128xf32, #tpu.memory_space<vmem>>, vector<328x128xf32>
    tpu.vector_store %arg15[%c0_7, %c0_8], %7 {strides = array<i32>} : memref<328x128xf32, #tpu.memory_space<vmem>>, vector<328x128xf32>,
    %c0_9 = arith.constant 0 : index
    %c0_10 = arith.constant 0 : index
    %9 = vector.load %arg15[%c0_9, %c0_10] : memref<328x128xf32, #tpu.memory_space<vmem>>, vector<328x128xf32>
    %c0_11 = arith.constant 0 : index
    %c1 = arith.constant 1 : index
    %c0_12 = arith.constant 0 : index
    %10 = vector.load %arg1[%c0_11, %c1, %c0_12] : memref<1x368x128xf32, #tpu.memory_space<vmem>>, vector<1x328x128xf32>
    %11 = vector.shape_cast %10 : vector<1x328x128xf32> to vector<328x128xf32>
    %12 = arith.truncf %11 : vector<328x128xf32> to vector<328x128xbf16>
    %c0_13 = arith.constant 0 : index
    %c0_14 = arith.constant 0 : index
    %c0_15 = arith.constant 0 : index
    %13 = vector.load %arg2[%c0_13, %c0_14, %c0_15] : memref<9x128x128xbf16, #tpu.memory_space<vmem>>, vector<1x128x128xbf16>
    %14 = vector.shape_cast %13 : vector<1x128x128xbf16> to vector<128x128xbf16>
    %cst_16 = arith.constant dense<0.000000e+00> : vector<328x128xf32>
    %15 = tpu.matmul %12, %14, %cst_16 {dimension_numbers = #tpu.dot_dimension_numbers<[1], [0], [0], [1], [0, 0, 1, 1], [], []>} : vector<328x128xbf16>, vector<128x128xbf16>, vector<328x128xf32> -> vector<328x128xf32>
    %16 = arith.addf %9, %15 : vector<328x128xf32>
    %c0_17 = arith.constant 0 : index
    %c0_18 = arith.constant 0 : index
    %17 = vector.load %arg15[%c0_17, %c0_18] : memref<328x128xf32, #tpu.memory_space<vmem>>, vector<328x128xf32>
    tpu.vector_store %arg15[%c0_17, %c0_18], %16 {strides = array<i32>} : memref<328x128xf32, #tpu.memory_space<vmem>>, vector<328x128xf32>,
    %c0_19 = arith.constant 0 : index
    %c0_20 = arith.constant 0 : index
    %18 = vector.load %arg15[%c0_19, %c0_20] : memref<328x128xf32, #tpu.memory_space<vmem>>, vector<328x128xf32>
    %c0_21 = arith.constant 0 : index
    %c2 = arith.constant 2 : index
    %c0_22 = arith.constant 0 : index
    %19 = vector.load %arg1[%c0_21, %c2, %c0_22] : memref<1x368x128xf32, #tpu.memory_space<vmem>>, vector<1x328x128xf32>
    %20 = vector.shape_cast %19 : vector<1x328x128xf32> to vector<328x128xf32>
    %21 = arith.truncf %20 : vector<328x128xf32> to vector<328x128xbf16>
    %c1_23 = arith.constant 1 : index
    %c0_24 = arith.constant 0 : index
    %c0_25 = arith.constant 0 : index
    %22 = vector.load %arg2[%c1_23, %c0_24, %c0_25] : memref<9x128x128xbf16, #tpu.memory_space<vmem>>, vector<1x128x128xbf16>
    %23 = vector.shape_cast %22 : vector<1x128x128xbf16> to vector<128x128xbf16>
    %cst_26 = arith.constant dense<0.000000e+00> : vector<328x128xf32>
    %24 = tpu.matmul %21, %23, %cst_26 {dimension_numbers = #tpu.dot_dimension_numbers<[1], [0], [0], [1], [0, 0, 1, 1], [], []>} : vector<328x128xbf16>, vector<128x128xbf16>, vector<328x128xf32> -> vector<328x128xf32>
    %25 = arith.addf %18, %24 : vector<328x128xf32>
    %c0_27 = arith.constant 0 : index
    %c0_28 = arith.constant 0 : index
    %26 = vector.load %arg15[%c0_27, %c0_28] : memref<328x128xf32, #tpu.memory_space<vmem>>, vector<328x128xf32>
    tpu.vector_store %arg15[%c0_27, %c0_28], %25 {strides = array<i32>} : memref<328x128xf32, #tpu.memory_space<vmem>>, vector<328x128xf32>,
    %c0_29 = arith.constant 0 : index
    %c0_30 = arith.constant 0 : index
    %27 = vector.load %arg15[%c0_29, %c0_30] : memref<328x128xf32, #tpu.memory_space<vmem>>, vector<328x128xf32>
    %c0_31 = arith.constant 0 : index
    %c3 = arith.constant 3 : index
    %c0_32 = arith.constant 0 : index
    %28 = vector.load %arg1[%c0_31, %c3, %c0_32] : memref<1x368x128xf32, #tpu.memory_space<vmem>>, vector<1x328x128xf32>
    %29 = vector.shape_cast %28 : vector<1x328x128xf32> to vector<328x128xf32>
    %30 = arith.truncf %29 : vector<328x128xf32> to vector<328x128xbf16>
    %c2_33 = arith.constant 2 : index
    %c0_34 = arith.constant 0 : index
    %c0_35 = arith.constant 0 : index
    %31 = vector.load %arg2[%c2_33, %c0_34, %c0_35] : memref<9x128x128xbf16, #tpu.memory_space<vmem>>, vector<1x128x128xbf16>
    %32 = vector.shape_cast %31 : vector<1x128x128xbf16> to vector<128x128xbf16>
    %cst_36 = arith.constant dense<0.000000e+00> : vector<328x128xf32>
    %33 = tpu.matmul %30, %32, %cst_36 {dimension_numbers = #tpu.dot_dimension_numbers<[1], [0], [0], [1], [0, 0, 1, 1], [], []>} : vector<328x128xbf16>, vector<128x128xbf16>, vector<328x128xf32> -> vector<328x128xf32>
    %34 = arith.addf %27, %33 : vector<328x128xf32>
    %c0_37 = arith.constant 0 : index
    %c0_38 = arith.constant 0 : index
    %35 = vector.load %arg15[%c0_37, %c0_38] : memref<328x128xf32, #tpu.memory_space<vmem>>, vector<328x128xf32>
    tpu.vector_store %arg15[%c0_37, %c0_38], %34 {strides = array<i32>} : memref<328x128xf32, #tpu.memory_space<vmem>>, vector<328x128xf32>,
    %c0_39 = arith.constant 0 : index
    %c0_40 = arith.constant 0 : index
    %36 = vector.load %arg15[%c0_39, %c0_40] : memref<328x128xf32, #tpu.memory_space<vmem>>, vector<328x128xf32>
    %c0_41 = arith.constant 0 : index
    %c19 = arith.constant 19 : index
    %c0_42 = arith.constant 0 : index
    %37 = vector.load %arg1[%c0_41, %c19, %c0_42] : memref<1x368x128xf32, #tpu.memory_space<vmem>>, vector<1x328x128xf32>
    %38 = vector.shape_cast %37 : vector<1x328x128xf32> to vector<328x128xf32>
    %39 = arith.truncf %38 : vector<328x128xf32> to vector<328x128xbf16>
    %c3_43 = arith.constant 3 : index
    %c0_44 = arith.constant 0 : index
    %c0_45 = arith.constant 0 : index
    %40 = vector.load %arg2[%c3_43, %c0_44, %c0_45] : memref<9x128x128xbf16, #tpu.memory_space<vmem>>, vector<1x128x128xbf16>
    %41 = vector.shape_cast %40 : vector<1x128x128xbf16> to vector<128x128xbf16>
    %cst_46 = arith.constant dense<0.000000e+00> : vector<328x128xf32>
    %42 = tpu.matmul %39, %41, %cst_46 {dimension_numbers = #tpu.dot_dimension_numbers<[1], [0], [0], [1], [0, 0, 1, 1], [], []>} : vector<328x128xbf16>, vector<128x128xbf16>, vector<328x128xf32> -> vector<328x128xf32>
    %43 = arith.addf %36, %42 : vector<328x128xf32>
    %c0_47 = arith.constant 0 : index
    %c0_48 = arith.constant 0 : index
    %44 = vector.load %arg15[%c0_47, %c0_48] : memref<328x128xf32, #tpu.memory_space<vmem>>, vector<328x128xf32>
    tpu.vector_store %arg15[%c0_47, %c0_48], %43 {strides = array<i32>} : memref<328x128xf32, #tpu.memory_space<vmem>>, vector<328x128xf32>,
    %c0_49 = arith.constant 0 : index
    %c0_50 = arith.constant 0 : index
    %45 = vector.load %arg15[%c0_49, %c0_50] : memref<328x128xf32, #tpu.memory_space<vmem>>, vector<328x128xf32>
    %c0_51 = arith.constant 0 : index
    %c20 = arith.constant 20 : index
    %c0_52 = arith.constant 0 : index
    %46 = vector.load %arg1[%c0_51, %c20, %c0_52] : memref<1x368x128xf32, #tpu.memory_space<vmem>>, vector<1x328x128xf32>
    %47 = vector.shape_cast %46 : vector<1x328x128xf32> to vector<328x128xf32>
    %48 = arith.truncf %47 : vector<328x128xf32> to vector<328x128xbf16>
    %c4 = arith.constant 4 : index
    %c0_53 = arith.constant 0 : index
    %c0_54 = arith.constant 0 : index
    %49 = vector.load %arg2[%c4, %c0_53, %c0_54] : memref<9x128x128xbf16, #tpu.memory_space<vmem>>, vector<1x128x128xbf16>
    %50 = vector.shape_cast %49 : vector<1x128x128xbf16> to vector<128x128xbf16>
    %cst_55 = arith.constant dense<0.000000e+00> : vector<328x128xf32>
    %51 = tpu.matmul %48, %50, %cst_55 {dimension_numbers = #tpu.dot_dimension_numbers<[1], [0], [0], [1], [0, 0, 1, 1], [], []>} : vector<328x128xbf16>, vector<128x128xbf16>, vector<328x128xf32> -> vector<328x128xf32>
    %52 = arith.addf %45, %51 : vector<328x128xf32>
    %c0_56 = arith.constant 0 : index
    %c0_57 = arith.constant 0 : index
    %53 = vector.load %arg15[%c0_56, %c0_57] : memref<328x128xf32, #tpu.memory_space<vmem>>, vector<328x128xf32>
    tpu.vector_store %arg15[%c0_56, %c0_57], %52 {strides = array<i32>} : memref<328x128xf32, #tpu.memory_space<vmem>>, vector<328x128xf32>,
    %c0_58 = arith.constant 0 : index
    %c0_59 = arith.constant 0 : index
    %54 = vector.load %arg15[%c0_58, %c0_59] : memref<328x128xf32, #tpu.memory_space<vmem>>, vector<328x128xf32>
    %c0_60 = arith.constant 0 : index
    %c21 = arith.constant 21 : index
    %c0_61 = arith.constant 0 : index
    %55 = vector.load %arg1[%c0_60, %c21, %c0_61] : memref<1x368x128xf32, #tpu.memory_space<vmem>>, vector<1x328x128xf32>
    %56 = vector.shape_cast %55 : vector<1x328x128xf32> to vector<328x128xf32>
    %57 = arith.truncf %56 : vector<328x128xf32> to vector<328x128xbf16>
    %c5 = arith.constant 5 : index
    %c0_62 = arith.constant 0 : index
    %c0_63 = arith.constant 0 : index
    %58 = vector.load %arg2[%c5, %c0_62, %c0_63] : memref<9x128x128xbf16, #tpu.memory_space<vmem>>, vector<1x128x128xbf16>
    %59 = vector.shape_cast %58 : vector<1x128x128xbf16> to vector<128x128xbf16>
    %cst_64 = arith.constant dense<0.000000e+00> : vector<328x128xf32>
    %60 = tpu.matmul %57, %59, %cst_64 {dimension_numbers = #tpu.dot_dimension_numbers<[1], [0], [0], [1], [0, 0, 1, 1], [], []>} : vector<328x128xbf16>, vector<128x128xbf16>, vector<328x128xf32> -> vector<328x128xf32>
    %61 = arith.addf %54, %60 : vector<328x128xf32>
    %c0_65 = arith.constant 0 : index
    %c0_66 = arith.constant 0 : index
    %62 = vector.load %arg15[%c0_65, %c0_66] : memref<328x128xf32, #tpu.memory_space<vmem>>, vector<328x128xf32>
    tpu.vector_store %arg15[%c0_65, %c0_66], %61 {strides = array<i32>} : memref<328x128xf32, #tpu.memory_space<vmem>>, vector<328x128xf32>,
    %c0_67 = arith.constant 0 : index
    %c0_68 = arith.constant 0 : index
    %63 = vector.load %arg15[%c0_67, %c0_68] : memref<328x128xf32, #tpu.memory_space<vmem>>, vector<328x128xf32>
    %c0_69 = arith.constant 0 : index
    %c37 = arith.constant 37 : index
    %c0_70 = arith.constant 0 : index
    %64 = vector.load %arg1[%c0_69, %c37, %c0_70] : memref<1x368x128xf32, #tpu.memory_space<vmem>>, vector<1x328x128xf32>
    %65 = vector.shape_cast %64 : vector<1x328x128xf32> to vector<328x128xf32>
    %66 = arith.truncf %65 : vector<328x128xf32> to vector<328x128xbf16>
    %c6 = arith.constant 6 : index
    %c0_71 = arith.constant 0 : index
    %c0_72 = arith.constant 0 : index
    %67 = vector.load %arg2[%c6, %c0_71, %c0_72] : memref<9x128x128xbf16, #tpu.memory_space<vmem>>, vector<1x128x128xbf16>
    %68 = vector.shape_cast %67 : vector<1x128x128xbf16> to vector<128x128xbf16>
    %cst_73 = arith.constant dense<0.000000e+00> : vector<328x128xf32>
    %69 = tpu.matmul %66, %68, %cst_73 {dimension_numbers = #tpu.dot_dimension_numbers<[1], [0], [0], [1], [0, 0, 1, 1], [], []>} : vector<328x128xbf16>, vector<128x128xbf16>, vector<328x128xf32> -> vector<328x128xf32>
    %70 = arith.addf %63, %69 : vector<328x128xf32>
    %c0_74 = arith.constant 0 : index
    %c0_75 = arith.constant 0 : index
    %71 = vector.load %arg15[%c0_74, %c0_75] : memref<328x128xf32, #tpu.memory_space<vmem>>, vector<328x128xf32>
    tpu.vector_store %arg15[%c0_74, %c0_75], %70 {strides = array<i32>} : memref<328x128xf32, #tpu.memory_space<vmem>>, vector<328x128xf32>,
    %c0_76 = arith.constant 0 : index
    %c0_77 = arith.constant 0 : index
    %72 = vector.load %arg15[%c0_76, %c0_77] : memref<328x128xf32, #tpu.memory_space<vmem>>, vector<328x128xf32>
    %c0_78 = arith.constant 0 : index
    %c38 = arith.constant 38 : index
    %c0_79 = arith.constant 0 : index
    %73 = vector.load %arg1[%c0_78, %c38, %c0_79] : memref<1x368x128xf32, #tpu.memory_space<vmem>>, vector<1x328x128xf32>
    %74 = vector.shape_cast %73 : vector<1x328x128xf32> to vector<328x128xf32>
    %75 = arith.truncf %74 : vector<328x128xf32> to vector<328x128xbf16>
    %c7 = arith.constant 7 : index
    %c0_80 = arith.constant 0 : index
    %c0_81 = arith.constant 0 : index
    %76 = vector.load %arg2[%c7, %c0_80, %c0_81] : memref<9x128x128xbf16, #tpu.memory_space<vmem>>, vector<1x128x128xbf16>
    %77 = vector.shape_cast %76 : vector<1x128x128xbf16> to vector<128x128xbf16>
    %cst_82 = arith.constant dense<0.000000e+00> : vector<328x128xf32>
    %78 = tpu.matmul %75, %77, %cst_82 {dimension_numbers = #tpu.dot_dimension_numbers<[1], [0], [0], [1], [0, 0, 1, 1], [], []>} : vector<328x128xbf16>, vector<128x128xbf16>, vector<328x128xf32> -> vector<328x128xf32>
    %79 = arith.addf %72, %78 : vector<328x128xf32>
    %c0_83 = arith.constant 0 : index
    %c0_84 = arith.constant 0 : index
    %80 = vector.load %arg15[%c0_83, %c0_84] : memref<328x128xf32, #tpu.memory_space<vmem>>, vector<328x128xf32>
    tpu.vector_store %arg15[%c0_83, %c0_84], %79 {strides = array<i32>} : memref<328x128xf32, #tpu.memory_space<vmem>>, vector<328x128xf32>,
    %c0_85 = arith.constant 0 : index
    %c0_86 = arith.constant 0 : index
    %81 = vector.load %arg15[%c0_85, %c0_86] : memref<328x128xf32, #tpu.memory_space<vmem>>, vector<328x128xf32>
    %c0_87 = arith.constant 0 : index
    %c39 = arith.constant 39 : index
    %c0_88 = arith.constant 0 : index
    %82 = vector.load %arg1[%c0_87, %c39, %c0_88] : memref<1x368x128xf32, #tpu.memory_space<vmem>>, vector<1x328x128xf32>
    %83 = vector.shape_cast %82 : vector<1x328x128xf32> to vector<328x128xf32>
    %84 = arith.truncf %83 : vector<328x128xf32> to vector<328x128xbf16>
    %c8 = arith.constant 8 : index
    %c0_89 = arith.constant 0 : index
    %c0_90 = arith.constant 0 : index
    %85 = vector.load %arg2[%c8, %c0_89, %c0_90] : memref<9x128x128xbf16, #tpu.memory_space<vmem>>, vector<1x128x128xbf16>
    %86 = vector.shape_cast %85 : vector<1x128x128xbf16> to vector<128x128xbf16>
    %cst_91 = arith.constant dense<0.000000e+00> : vector<328x128xf32>
    %87 = tpu.matmul %84, %86, %cst_91 {dimension_numbers = #tpu.dot_dimension_numbers<[1], [0], [0], [1], [0, 0, 1, 1], [], []>} : vector<328x128xbf16>, vector<128x128xbf16>, vector<328x128xf32> -> vector<328x128xf32>
    %88 = arith.addf %81, %87 : vector<328x128xf32>
    %c0_92 = arith.constant 0 : index
    %c0_93 = arith.constant 0 : index
    %89 = vector.load %arg15[%c0_92, %c0_93] : memref<328x128xf32, #tpu.memory_space<vmem>>, vector<328x128xf32>
    tpu.vector_store %arg15[%c0_92, %c0_93], %88 {strides = array<i32>} : memref<328x128xf32, #tpu.memory_space<vmem>>, vector<328x128xf32>,
    %c0_94 = arith.constant 0 : index
    %c0_95 = arith.constant 0 : index
    %90 = vector.load %arg15[%c0_94, %c0_95] : memref<328x128xf32, #tpu.memory_space<vmem>>, vector<328x128xf32>
    %c0_96 = arith.constant 0 : index
    %c0_97 = arith.constant 0 : index
    %91 = vector.load %arg3[%c0_96, %c0_97] : memref<1x128xf32, #tpu.memory_space<vmem>>, vector<1x128xf32>
    %92 = vector.broadcast %91 : vector<1x128xf32> to vector<328x128xf32>
    %93 = arith.mulf %90, %92 : vector<328x128xf32>
    %c0_98 = arith.constant 0 : index
    %c0_99 = arith.constant 0 : index
    %94 = vector.load %arg4[%c0_98, %c0_99] : memref<1x128xf32, #tpu.memory_space<vmem>>, vector<1x128xf32>
    %95 = vector.broadcast %94 : vector<1x128xf32> to vector<328x128xf32>
    %96 = arith.addf %93, %95 : vector<328x128xf32>
    %cst_100 = arith.constant 0.000000e+00 : f32
    %97 = vector.broadcast %cst_100 : f32 to vector<328x128xf32>
    %98 = arith.maximumf %96, %97 : vector<328x128xf32>
    %99 = arith.mulf %98, %2 : vector<328x128xf32>
    %c20_101 = arith.constant 20 : index
    %c0_102 = arith.constant 0 : index
    %100 = vector.load %arg13[%c20_101, %c0_102] : memref<368x128xf32, #tpu.memory_space<vmem>>, vector<328x128xf32>
    tpu.vector_store %arg13[%c20_101, %c0_102], %99 {strides = array<i32>} : memref<368x128xf32, #tpu.memory_space<vmem>>, vector<328x128xf32>,
    %cst_103 = arith.constant 0.000000e+00 : f32
    %101 = vector.broadcast %cst_103 : f32 to vector<328x128xf32>
    %c0_104 = arith.constant 0 : index
    %c0_105 = arith.constant 0 : index
    %102 = vector.load %arg15[%c0_104, %c0_105] : memref<328x128xf32, #tpu.memory_space<vmem>>, vector<328x128xf32>
    tpu.vector_store %arg15[%c0_104, %c0_105], %101 {strides = array<i32>} : memref<328x128xf32, #tpu.memory_space<vmem>>, vector<328x128xf32>,
    %c0_106 = arith.constant 0 : index
    %c0_107 = arith.constant 0 : index
    %103 = vector.load %arg15[%c0_106, %c0_107] : memref<328x128xf32, #tpu.memory_space<vmem>>, vector<328x128xf32>
    %c1_108 = arith.constant 1 : index
    %c0_109 = arith.constant 0 : index
    %104 = vector.load %arg13[%c1_108, %c0_109] : memref<368x128xf32, #tpu.memory_space<vmem>>, vector<328x128xf32>
    %105 = arith.truncf %104 : vector<328x128xf32> to vector<328x128xbf16>
    %c0_110 = arith.constant 0 : index
    %c0_111 = arith.constant 0 : index
    %c0_112 = arith.constant 0 : index
    %106 = vector.load %arg5[%c0_110, %c0_111, %c0_112] : memref<9x128x128xbf16, #tpu.memory_space<vmem>>, vector<1x128x128xbf16>
    %107 = vector.shape_cast %106 : vector<1x128x128xbf16> to vector<128x128xbf16>
    %cst_113 = arith.constant dense<0.000000e+00> : vector<328x128xf32>
    %108 = tpu.matmul %105, %107, %cst_113 {dimension_numbers = #tpu.dot_dimension_numbers<[1], [0], [0], [1], [0, 0, 1, 1], [], []>} : vector<328x128xbf16>, vector<128x128xbf16>, vector<328x128xf32> -> vector<328x128xf32>
    %109 = arith.addf %103, %108 : vector<328x128xf32>
    %c0_114 = arith.constant 0 : index
    %c0_115 = arith.constant 0 : index
    %110 = vector.load %arg15[%c0_114, %c0_115] : memref<328x128xf32, #tpu.memory_space<vmem>>, vector<328x128xf32>
    tpu.vector_store %arg15[%c0_114, %c0_115], %109 {strides = array<i32>} : memref<328x128xf32, #tpu.memory_space<vmem>>, vector<328x128xf32>,
    %c0_116 = arith.constant 0 : index
    %c0_117 = arith.constant 0 : index
    %111 = vector.load %arg15[%c0_116, %c0_117] : memref<328x128xf32, #tpu.memory_space<vmem>>, vector<328x128xf32>
    %c2_118 = arith.constant 2 : index
    %c0_119 = arith.constant 0 : index
    %112 = vector.load %arg13[%c2_118, %c0_119] : memref<368x128xf32, #tpu.memory_space<vmem>>, vector<328x128xf32>
    %113 = arith.truncf %112 : vector<328x128xf32> to vector<328x128xbf16>
    %c1_120 = arith.constant 1 : index
    %c0_121 = arith.constant 0 : index
    %c0_122 = arith.constant 0 : index
    %114 = vector.load %arg5[%c1_120, %c0_121, %c0_122] : memref<9x128x128xbf16, #tpu.memory_space<vmem>>, vector<1x128x128xbf16>
    %115 = vector.shape_cast %114 : vector<1x128x128xbf16> to vector<128x128xbf16>
    %cst_123 = arith.constant dense<0.000000e+00> : vector<328x128xf32>
    %116 = tpu.matmul %113, %115, %cst_123 {dimension_numbers = #tpu.dot_dimension_numbers<[1], [0], [0], [1], [0, 0, 1, 1], [], []>} : vector<328x128xbf16>, vector<128x128xbf16>, vector<328x128xf32> -> vector<328x128xf32>
    %117 = arith.addf %111, %116 : vector<328x128xf32>
    %c0_124 = arith.constant 0 : index
    %c0_125 = arith.constant 0 : index
    %118 = vector.load %arg15[%c0_124, %c0_125] : memref<328x128xf32, #tpu.memory_space<vmem>>, vector<328x128xf32>
    tpu.vector_store %arg15[%c0_124, %c0_125], %117 {strides = array<i32>} : memref<328x128xf32, #tpu.memory_space<vmem>>, vector<328x128xf32>,
    %c0_126 = arith.constant 0 : index
    %c0_127 = arith.constant 0 : index
    %119 = vector.load %arg15[%c0_126, %c0_127] : memref<328x128xf32, #tpu.memory_space<vmem>>, vector<328x128xf32>
    %c3_128 = arith.constant 3 : index
    %c0_129 = arith.constant 0 : index
    %120 = vector.load %arg13[%c3_128, %c0_129] : memref<368x128xf32, #tpu.memory_space<vmem>>, vector<328x128xf32>
    %121 = arith.truncf %120 : vector<328x128xf32> to vector<328x128xbf16>
    %c2_130 = arith.constant 2 : index
    %c0_131 = arith.constant 0 : index
    %c0_132 = arith.constant 0 : index
    %122 = vector.load %arg5[%c2_130, %c0_131, %c0_132] : memref<9x128x128xbf16, #tpu.memory_space<vmem>>, vector<1x128x128xbf16>
    %123 = vector.shape_cast %122 : vector<1x128x128xbf16> to vector<128x128xbf16>
    %cst_133 = arith.constant dense<0.000000e+00> : vector<328x128xf32>
    %124 = tpu.matmul %121, %123, %cst_133 {dimension_numbers = #tpu.dot_dimension_numbers<[1], [0], [0], [1], [0, 0, 1, 1], [], []>} : vector<328x128xbf16>, vector<128x128xbf16>, vector<328x128xf32> -> vector<328x128xf32>
    %125 = arith.addf %119, %124 : vector<328x128xf32>
    %c0_134 = arith.constant 0 : index
    %c0_135 = arith.constant 0 : index
    %126 = vector.load %arg15[%c0_134, %c0_135] : memref<328x128xf32, #tpu.memory_space<vmem>>, vector<328x128xf32>
    tpu.vector_store %arg15[%c0_134, %c0_135], %125 {strides = array<i32>} : memref<328x128xf32, #tpu.memory_space<vmem>>, vector<328x128xf32>,
    %c0_136 = arith.constant 0 : index
    %c0_137 = arith.constant 0 : index
    %127 = vector.load %arg15[%c0_136, %c0_137] : memref<328x128xf32, #tpu.memory_space<vmem>>, vector<328x128xf32>
    %c19_138 = arith.constant 19 : index
    %c0_139 = arith.constant 0 : index
    %128 = vector.load %arg13[%c19_138, %c0_139] : memref<368x128xf32, #tpu.memory_space<vmem>>, vector<328x128xf32>
    %129 = arith.truncf %128 : vector<328x128xf32> to vector<328x128xbf16>
    %c3_140 = arith.constant 3 : index
    %c0_141 = arith.constant 0 : index
    %c0_142 = arith.constant 0 : index
    %130 = vector.load %arg5[%c3_140, %c0_141, %c0_142] : memref<9x128x128xbf16, #tpu.memory_space<vmem>>, vector<1x128x128xbf16>
    %131 = vector.shape_cast %130 : vector<1x128x128xbf16> to vector<128x128xbf16>
    %cst_143 = arith.constant dense<0.000000e+00> : vector<328x128xf32>
    %132 = tpu.matmul %129, %131, %cst_143 {dimension_numbers = #tpu.dot_dimension_numbers<[1], [0], [0], [1], [0, 0, 1, 1], [], []>} : vector<328x128xbf16>, vector<128x128xbf16>, vector<328x128xf32> -> vector<328x128xf32>
    %133 = arith.addf %127, %132 : vector<328x128xf32>
    %c0_144 = arith.constant 0 : index
    %c0_145 = arith.constant 0 : index
    %134 = vector.load %arg15[%c0_144, %c0_145] : memref<328x128xf32, #tpu.memory_space<vmem>>, vector<328x128xf32>
    tpu.vector_store %arg15[%c0_144, %c0_145], %133 {strides = array<i32>} : memref<328x128xf32, #tpu.memory_space<vmem>>, vector<328x128xf32>,
    %c0_146 = arith.constant 0 : index
    %c0_147 = arith.constant 0 : index
    %135 = vector.load %arg15[%c0_146, %c0_147] : memref<328x128xf32, #tpu.memory_space<vmem>>, vector<328x128xf32>
    %c20_148 = arith.constant 20 : index
    %c0_149 = arith.constant 0 : index
    %136 = vector.load %arg13[%c20_148, %c0_149] : memref<368x128xf32, #tpu.memory_space<vmem>>, vector<328x128xf32>
    %137 = arith.truncf %136 : vector<328x128xf32> to vector<328x128xbf16>
    %c4_150 = arith.constant 4 : index
    %c0_151 = arith.constant 0 : index
    %c0_152 = arith.constant 0 : index
    %138 = vector.load %arg5[%c4_150, %c0_151, %c0_152] : memref<9x128x128xbf16, #tpu.memory_space<vmem>>, vector<1x128x128xbf16>
    %139 = vector.shape_cast %138 : vector<1x128x128xbf16> to vector<128x128xbf16>
    %cst_153 = arith.constant dense<0.000000e+00> : vector<328x128xf32>
    %140 = tpu.matmul %137, %139, %cst_153 {dimension_numbers = #tpu.dot_dimension_numbers<[1], [0], [0], [1], [0, 0, 1, 1], [], []>} : vector<328x128xbf16>, vector<128x128xbf16>, vector<328x128xf32> -> vector<328x128xf32>
    %141 = arith.addf %135, %140 : vector<328x128xf32>
    %c0_154 = arith.constant 0 : index
    %c0_155 = arith.constant 0 : index
    %142 = vector.load %arg15[%c0_154, %c0_155] : memref<328x128xf32, #tpu.memory_space<vmem>>, vector<328x128xf32>
    tpu.vector_store %arg15[%c0_154, %c0_155], %141 {strides = array<i32>} : memref<328x128xf32, #tpu.memory_space<vmem>>, vector<328x128xf32>,
    %c0_156 = arith.constant 0 : index
    %c0_157 = arith.constant 0 : index
    %143 = vector.load %arg15[%c0_156, %c0_157] : memref<328x128xf32, #tpu.memory_space<vmem>>, vector<328x128xf32>
    %c21_158 = arith.constant 21 : index
    %c0_159 = arith.constant 0 : index
    %144 = vector.load %arg13[%c21_158, %c0_159] : memref<368x128xf32, #tpu.memory_space<vmem>>, vector<328x128xf32>
    %145 = arith.truncf %144 : vector<328x128xf32> to vector<328x128xbf16>
    %c5_160 = arith.constant 5 : index
    %c0_161 = arith.constant 0 : index
    %c0_162 = arith.constant 0 : index
    %146 = vector.load %arg5[%c5_160, %c0_161, %c0_162] : memref<9x128x128xbf16, #tpu.memory_space<vmem>>, vector<1x128x128xbf16>
    %147 = vector.shape_cast %146 : vector<1x128x128xbf16> to vector<128x128xbf16>
    %cst_163 = arith.constant dense<0.000000e+00> : vector<328x128xf32>
    %148 = tpu.matmul %145, %147, %cst_163 {dimension_numbers = #tpu.dot_dimension_numbers<[1], [0], [0], [1], [0, 0, 1, 1], [], []>} : vector<328x128xbf16>, vector<128x128xbf16>, vector<328x128xf32> -> vector<328x128xf32>
    %149 = arith.addf %143, %148 : vector<328x128xf32>
    %c0_164 = arith.constant 0 : index
    %c0_165 = arith.constant 0 : index
    %150 = vector.load %arg15[%c0_164, %c0_165] : memref<328x128xf32, #tpu.memory_space<vmem>>, vector<328x128xf32>
    tpu.vector_store %arg15[%c0_164, %c0_165], %149 {strides = array<i32>} : memref<328x128xf32, #tpu.memory_space<vmem>>, vector<328x128xf32>,
    %c0_166 = arith.constant 0 : index
    %c0_167 = arith.constant 0 : index
    %151 = vector.load %arg15[%c0_166, %c0_167] : memref<328x128xf32, #tpu.memory_space<vmem>>, vector<328x128xf32>
    %c37_168 = arith.constant 37 : index
    %c0_169 = arith.constant 0 : index
    %152 = vector.load %arg13[%c37_168, %c0_169] : memref<368x128xf32, #tpu.memory_space<vmem>>, vector<328x128xf32>
    %153 = arith.truncf %152 : vector<328x128xf32> to vector<328x128xbf16>
    %c6_170 = arith.constant 6 : index
    %c0_171 = arith.constant 0 : index
    %c0_172 = arith.constant 0 : index
    %154 = vector.load %arg5[%c6_170, %c0_171, %c0_172] : memref<9x128x128xbf16, #tpu.memory_space<vmem>>, vector<1x128x128xbf16>
    %155 = vector.shape_cast %154 : vector<1x128x128xbf16> to vector<128x128xbf16>
    %cst_173 = arith.constant dense<0.000000e+00> : vector<328x128xf32>
    %156 = tpu.matmul %153, %155, %cst_173 {dimension_numbers = #tpu.dot_dimension_numbers<[1], [0], [0], [1], [0, 0, 1, 1], [], []>} : vector<328x128xbf16>, vector<128x128xbf16>, vector<328x128xf32> -> vector<328x128xf32>
    %157 = arith.addf %151, %156 : vector<328x128xf32>
    %c0_174 = arith.constant 0 : index
    %c0_175 = arith.constant 0 : index
    %158 = vector.load %arg15[%c0_174, %c0_175] : memref<328x128xf32, #tpu.memory_space<vmem>>, vector<328x128xf32>
    tpu.vector_store %arg15[%c0_174, %c0_175], %157 {strides = array<i32>} : memref<328x128xf32, #tpu.memory_space<vmem>>, vector<328x128xf32>,
    %c0_176 = arith.constant 0 : index
    %c0_177 = arith.constant 0 : index
    %159 = vector.load %arg15[%c0_176, %c0_177] : memref<328x128xf32, #tpu.memory_space<vmem>>, vector<328x128xf32>
    %c38_178 = arith.constant 38 : index
    %c0_179 = arith.constant 0 : index
    %160 = vector.load %arg13[%c38_178, %c0_179] : memref<368x128xf32, #tpu.memory_space<vmem>>, vector<328x128xf32>
    %161 = arith.truncf %160 : vector<328x128xf32> to vector<328x128xbf16>
    %c7_180 = arith.constant 7 : index
    %c0_181 = arith.constant 0 : index
    %c0_182 = arith.constant 0 : index
    %162 = vector.load %arg5[%c7_180, %c0_181, %c0_182] : memref<9x128x128xbf16, #tpu.memory_space<vmem>>, vector<1x128x128xbf16>
    %163 = vector.shape_cast %162 : vector<1x128x128xbf16> to vector<128x128xbf16>
    %cst_183 = arith.constant dense<0.000000e+00> : vector<328x128xf32>
    %164 = tpu.matmul %161, %163, %cst_183 {dimension_numbers = #tpu.dot_dimension_numbers<[1], [0], [0], [1], [0, 0, 1, 1], [], []>} : vector<328x128xbf16>, vector<128x128xbf16>, vector<328x128xf32> -> vector<328x128xf32>
    %165 = arith.addf %159, %164 : vector<328x128xf32>
    %c0_184 = arith.constant 0 : index
    %c0_185 = arith.constant 0 : index
    %166 = vector.load %arg15[%c0_184, %c0_185] : memref<328x128xf32, #tpu.memory_space<vmem>>, vector<328x128xf32>
    tpu.vector_store %arg15[%c0_184, %c0_185], %165 {strides = array<i32>} : memref<328x128xf32, #tpu.memory_space<vmem>>, vector<328x128xf32>,
    %c0_186 = arith.constant 0 : index
    %c0_187 = arith.constant 0 : index
    %167 = vector.load %arg15[%c0_186, %c0_187] : memref<328x128xf32, #tpu.memory_space<vmem>>, vector<328x128xf32>
    %c39_188 = arith.constant 39 : index
    %c0_189 = arith.constant 0 : index
    %168 = vector.load %arg13[%c39_188, %c0_189] : memref<368x128xf32, #tpu.memory_space<vmem>>, vector<328x128xf32>
    %169 = arith.truncf %168 : vector<328x128xf32> to vector<328x128xbf16>
    %c8_190 = arith.constant 8 : index
    %c0_191 = arith.constant 0 : index
    %c0_192 = arith.constant 0 : index
    %170 = vector.load %arg5[%c8_190, %c0_191, %c0_192] : memref<9x128x128xbf16, #tpu.memory_space<vmem>>, vector<1x128x128xbf16>
    %171 = vector.shape_cast %170 : vector<1x128x128xbf16> to vector<128x128xbf16>
    %cst_193 = arith.constant dense<0.000000e+00> : vector<328x128xf32>
    %172 = tpu.matmul %169, %171, %cst_193 {dimension_numbers = #tpu.dot_dimension_numbers<[1], [0], [0], [1], [0, 0, 1, 1], [], []>} : vector<328x128xbf16>, vector<128x128xbf16>, vector<328x128xf32> -> vector<328x128xf32>
    %173 = arith.addf %167, %172 : vector<328x128xf32>
    %c0_194 = arith.constant 0 : index
    %c0_195 = arith.constant 0 : index
    %174 = vector.load %arg15[%c0_194, %c0_195] : memref<328x128xf32, #tpu.memory_space<vmem>>, vector<328x128xf32>
    tpu.vector_store %arg15[%c0_194, %c0_195], %173 {strides = array<i32>} : memref<328x128xf32, #tpu.memory_space<vmem>>, vector<328x128xf32>,
    %c0_196 = arith.constant 0 : index
    %c0_197 = arith.constant 0 : index
    %175 = vector.load %arg15[%c0_196, %c0_197] : memref<328x128xf32, #tpu.memory_space<vmem>>, vector<328x128xf32>
    %c0_198 = arith.constant 0 : index
    %c0_199 = arith.constant 0 : index
    %176 = vector.load %arg6[%c0_198, %c0_199] : memref<1x128xf32, #tpu.memory_space<vmem>>, vector<1x128xf32>
    %177 = vector.broadcast %176 : vector<1x128xf32> to vector<328x128xf32>
    %178 = arith.mulf %175, %177 : vector<328x128xf32>
    %c0_200 = arith.constant 0 : index
    %c0_201 = arith.constant 0 : index
    %179 = vector.load %arg7[%c0_200, %c0_201] : memref<1x128xf32, #tpu.memory_space<vmem>>, vector<1x128xf32>
    %180 = vector.broadcast %179 : vector<1x128xf32> to vector<328x128xf32>
    %181 = arith.addf %178, %180 : vector<328x128xf32>
    %cst_202 = arith.constant 0.000000e+00 : f32
    %182 = vector.broadcast %cst_202 : f32 to vector<328x128xf32>
    %183 = arith.maximumf %181, %182 : vector<328x128xf32>
    %184 = arith.mulf %183, %2 : vector<328x128xf32>
    %c20_203 = arith.constant 20 : index
    %c0_204 = arith.constant 0 : index
    %185 = vector.load %arg14[%c20_203, %c0_204] : memref<368x128xf32, #tpu.memory_space<vmem>>, vector<328x128xf32>
    tpu.vector_store %arg14[%c20_203, %c0_204], %184 {strides = array<i32>} : memref<368x128xf32, #tpu.memory_space<vmem>>, vector<328x128xf32>,
    %c20_205 = arith.constant 20 : index
    %c0_206 = arith.constant 0 : index
    %186 = vector.load %arg13[%c20_205, %c0_206] : memref<368x128xf32, #tpu.memory_space<vmem>>, vector<328x128xf32>
    %cst_207 = arith.constant 0.000000e+00 : f32
    %187 = vector.broadcast %cst_207 : f32 to vector<328x128xf32>
    %c0_208 = arith.constant 0 : index
    %c0_209 = arith.constant 0 : index
    %188 = vector.load %arg15[%c0_208, %c0_209] : memref<328x128xf32, #tpu.memory_space<vmem>>, vector<328x128xf32>
    tpu.vector_store %arg15[%c0_208, %c0_209], %187 {strides = array<i32>} : memref<328x128xf32, #tpu.memory_space<vmem>>, vector<328x128xf32>,
    %c0_210 = arith.constant 0 : index
    %c0_211 = arith.constant 0 : index
    %189 = vector.load %arg15[%c0_210, %c0_211] : memref<328x128xf32, #tpu.memory_space<vmem>>, vector<328x128xf32>
    %c1_212 = arith.constant 1 : index
    %c0_213 = arith.constant 0 : index
    %190 = vector.load %arg14[%c1_212, %c0_213] : memref<368x128xf32, #tpu.memory_space<vmem>>, vector<328x128xf32>
    %191 = arith.truncf %190 : vector<328x128xf32> to vector<328x128xbf16>
    %c0_214 = arith.constant 0 : index
    %c0_215 = arith.constant 0 : index
    %c0_216 = arith.constant 0 : index
    %192 = vector.load %arg8[%c0_214, %c0_215, %c0_216] : memref<9x128x128xbf16, #tpu.memory_space<vmem>>, vector<1x128x128xbf16>
    %193 = vector.shape_cast %192 : vector<1x128x128xbf16> to vector<128x128xbf16>
    %cst_217 = arith.constant dense<0.000000e+00> : vector<328x128xf32>
    %194 = tpu.matmul %191, %193, %cst_217 {dimension_numbers = #tpu.dot_dimension_numbers<[1], [0], [0], [1], [0, 0, 1, 1], [], []>} : vector<328x128xbf16>, vector<128x128xbf16>, vector<328x128xf32> -> vector<328x128xf32>
    %195 = arith.addf %189, %194 : vector<328x128xf32>
    %c0_218 = arith.constant 0 : index
    %c0_219 = arith.constant 0 : index
    %196 = vector.load %arg15[%c0_218, %c0_219] : memref<328x128xf32, #tpu.memory_space<vmem>>, vector<328x128xf32>
    tpu.vector_store %arg15[%c0_218, %c0_219], %195 {strides = array<i32>} : memref<328x128xf32, #tpu.memory_space<vmem>>, vector<328x128xf32>,
    %c0_220 = arith.constant 0 : index
    %c0_221 = arith.constant 0 : index
    %197 = vector.load %arg15[%c0_220, %c0_221] : memref<328x128xf32, #tpu.memory_space<vmem>>, vector<328x128xf32>
    %c2_222 = arith.constant 2 : index
    %c0_223 = arith.constant 0 : index
    %198 = vector.load %arg14[%c2_222, %c0_223] : memref<368x128xf32, #tpu.memory_space<vmem>>, vector<328x128xf32>
    %199 = arith.truncf %198 : vector<328x128xf32> to vector<328x128xbf16>
    %c1_224 = arith.constant 1 : index
    %c0_225 = arith.constant 0 : index
    %c0_226 = arith.constant 0 : index
    %200 = vector.load %arg8[%c1_224, %c0_225, %c0_226] : memref<9x128x128xbf16, #tpu.memory_space<vmem>>, vector<1x128x128xbf16>
    %201 = vector.shape_cast %200 : vector<1x128x128xbf16> to vector<128x128xbf16>
    %cst_227 = arith.constant dense<0.000000e+00> : vector<328x128xf32>
    %202 = tpu.matmul %199, %201, %cst_227 {dimension_numbers = #tpu.dot_dimension_numbers<[1], [0], [0], [1], [0, 0, 1, 1], [], []>} : vector<328x128xbf16>, vector<128x128xbf16>, vector<328x128xf32> -> vector<328x128xf32>
    %203 = arith.addf %197, %202 : vector<328x128xf32>
    %c0_228 = arith.constant 0 : index
    %c0_229 = arith.constant 0 : index
    %204 = vector.load %arg15[%c0_228, %c0_229] : memref<328x128xf32, #tpu.memory_space<vmem>>, vector<328x128xf32>
    tpu.vector_store %arg15[%c0_228, %c0_229], %203 {strides = array<i32>} : memref<328x128xf32, #tpu.memory_space<vmem>>, vector<328x128xf32>,
    %c0_230 = arith.constant 0 : index
    %c0_231 = arith.constant 0 : index
    %205 = vector.load %arg15[%c0_230, %c0_231] : memref<328x128xf32, #tpu.memory_space<vmem>>, vector<328x128xf32>
    %c3_232 = arith.constant 3 : index
    %c0_233 = arith.constant 0 : index
    %206 = vector.load %arg14[%c3_232, %c0_233] : memref<368x128xf32, #tpu.memory_space<vmem>>, vector<328x128xf32>
    %207 = arith.truncf %206 : vector<328x128xf32> to vector<328x128xbf16>
    %c2_234 = arith.constant 2 : index
    %c0_235 = arith.constant 0 : index
    %c0_236 = arith.constant 0 : index
    %208 = vector.load %arg8[%c2_234, %c0_235, %c0_236] : memref<9x128x128xbf16, #tpu.memory_space<vmem>>, vector<1x128x128xbf16>
    %209 = vector.shape_cast %208 : vector<1x128x128xbf16> to vector<128x128xbf16>
    %cst_237 = arith.constant dense<0.000000e+00> : vector<328x128xf32>
    %210 = tpu.matmul %207, %209, %cst_237 {dimension_numbers = #tpu.dot_dimension_numbers<[1], [0], [0], [1], [0, 0, 1, 1], [], []>} : vector<328x128xbf16>, vector<128x128xbf16>, vector<328x128xf32> -> vector<328x128xf32>
    %211 = arith.addf %205, %210 : vector<328x128xf32>
    %c0_238 = arith.constant 0 : index
    %c0_239 = arith.constant 0 : index
    %212 = vector.load %arg15[%c0_238, %c0_239] : memref<328x128xf32, #tpu.memory_space<vmem>>, vector<328x128xf32>
    tpu.vector_store %arg15[%c0_238, %c0_239], %211 {strides = array<i32>} : memref<328x128xf32, #tpu.memory_space<vmem>>, vector<328x128xf32>,
    %c0_240 = arith.constant 0 : index
    %c0_241 = arith.constant 0 : index
    %213 = vector.load %arg15[%c0_240, %c0_241] : memref<328x128xf32, #tpu.memory_space<vmem>>, vector<328x128xf32>
    %c19_242 = arith.constant 19 : index
    %c0_243 = arith.constant 0 : index
    %214 = vector.load %arg14[%c19_242, %c0_243] : memref<368x128xf32, #tpu.memory_space<vmem>>, vector<328x128xf32>
    %215 = arith.truncf %214 : vector<328x128xf32> to vector<328x128xbf16>
    %c3_244 = arith.constant 3 : index
    %c0_245 = arith.constant 0 : index
    %c0_246 = arith.constant 0 : index
    %216 = vector.load %arg8[%c3_244, %c0_245, %c0_246] : memref<9x128x128xbf16, #tpu.memory_space<vmem>>, vector<1x128x128xbf16>
    %217 = vector.shape_cast %216 : vector<1x128x128xbf16> to vector<128x128xbf16>
    %cst_247 = arith.constant dense<0.000000e+00> : vector<328x128xf32>
    %218 = tpu.matmul %215, %217, %cst_247 {dimension_numbers = #tpu.dot_dimension_numbers<[1], [0], [0], [1], [0, 0, 1, 1], [], []>} : vector<328x128xbf16>, vector<128x128xbf16>, vector<328x128xf32> -> vector<328x128xf32>
    %219 = arith.addf %213, %218 : vector<328x128xf32>
    %c0_248 = arith.constant 0 : index
    %c0_249 = arith.constant 0 : index
    %220 = vector.load %arg15[%c0_248, %c0_249] : memref<328x128xf32, #tpu.memory_space<vmem>>, vector<328x128xf32>
    tpu.vector_store %arg15[%c0_248, %c0_249], %219 {strides = array<i32>} : memref<328x128xf32, #tpu.memory_space<vmem>>, vector<328x128xf32>,
    %c0_250 = arith.constant 0 : index
    %c0_251 = arith.constant 0 : index
    %221 = vector.load %arg15[%c0_250, %c0_251] : memref<328x128xf32, #tpu.memory_space<vmem>>, vector<328x128xf32>
    %c20_252 = arith.constant 20 : index
    %c0_253 = arith.constant 0 : index
    %222 = vector.load %arg14[%c20_252, %c0_253] : memref<368x128xf32, #tpu.memory_space<vmem>>, vector<328x128xf32>
    %223 = arith.truncf %222 : vector<328x128xf32> to vector<328x128xbf16>
    %c4_254 = arith.constant 4 : index
    %c0_255 = arith.constant 0 : index
    %c0_256 = arith.constant 0 : index
    %224 = vector.load %arg8[%c4_254, %c0_255, %c0_256] : memref<9x128x128xbf16, #tpu.memory_space<vmem>>, vector<1x128x128xbf16>
    %225 = vector.shape_cast %224 : vector<1x128x128xbf16> to vector<128x128xbf16>
    %cst_257 = arith.constant dense<0.000000e+00> : vector<328x128xf32>
    %226 = tpu.matmul %223, %225, %cst_257 {dimension_numbers = #tpu.dot_dimension_numbers<[1], [0], [0], [1], [0, 0, 1, 1], [], []>} : vector<328x128xbf16>, vector<128x128xbf16>, vector<328x128xf32> -> vector<328x128xf32>
    %227 = arith.addf %221, %226 : vector<328x128xf32>
    %c0_258 = arith.constant 0 : index
    %c0_259 = arith.constant 0 : index
    %228 = vector.load %arg15[%c0_258, %c0_259] : memref<328x128xf32, #tpu.memory_space<vmem>>, vector<328x128xf32>
    tpu.vector_store %arg15[%c0_258, %c0_259], %227 {strides = array<i32>} : memref<328x128xf32, #tpu.memory_space<vmem>>, vector<328x128xf32>,
    %c0_260 = arith.constant 0 : index
    %c0_261 = arith.constant 0 : index
    %229 = vector.load %arg15[%c0_260, %c0_261] : memref<328x128xf32, #tpu.memory_space<vmem>>, vector<328x128xf32>
    %c21_262 = arith.constant 21 : index
    %c0_263 = arith.constant 0 : index
    %230 = vector.load %arg14[%c21_262, %c0_263] : memref<368x128xf32, #tpu.memory_space<vmem>>, vector<328x128xf32>
    %231 = arith.truncf %230 : vector<328x128xf32> to vector<328x128xbf16>
    %c5_264 = arith.constant 5 : index
    %c0_265 = arith.constant 0 : index
    %c0_266 = arith.constant 0 : index
    %232 = vector.load %arg8[%c5_264, %c0_265, %c0_266] : memref<9x128x128xbf16, #tpu.memory_space<vmem>>, vector<1x128x128xbf16>
    %233 = vector.shape_cast %232 : vector<1x128x128xbf16> to vector<128x128xbf16>
    %cst_267 = arith.constant dense<0.000000e+00> : vector<328x128xf32>
    %234 = tpu.matmul %231, %233, %cst_267 {dimension_numbers = #tpu.dot_dimension_numbers<[1], [0], [0], [1], [0, 0, 1, 1], [], []>} : vector<328x128xbf16>, vector<128x128xbf16>, vector<328x128xf32> -> vector<328x128xf32>
    %235 = arith.addf %229, %234 : vector<328x128xf32>
    %c0_268 = arith.constant 0 : index
    %c0_269 = arith.constant 0 : index
    %236 = vector.load %arg15[%c0_268, %c0_269] : memref<328x128xf32, #tpu.memory_space<vmem>>, vector<328x128xf32>
    tpu.vector_store %arg15[%c0_268, %c0_269], %235 {strides = array<i32>} : memref<328x128xf32, #tpu.memory_space<vmem>>, vector<328x128xf32>,
    %c0_270 = arith.constant 0 : index
    %c0_271 = arith.constant 0 : index
    %237 = vector.load %arg15[%c0_270, %c0_271] : memref<328x128xf32, #tpu.memory_space<vmem>>, vector<328x128xf32>
    %c37_272 = arith.constant 37 : index
    %c0_273 = arith.constant 0 : index
    %238 = vector.load %arg14[%c37_272, %c0_273] : memref<368x128xf32, #tpu.memory_space<vmem>>, vector<328x128xf32>
    %239 = arith.truncf %238 : vector<328x128xf32> to vector<328x128xbf16>
    %c6_274 = arith.constant 6 : index
    %c0_275 = arith.constant 0 : index
    %c0_276 = arith.constant 0 : index
    %240 = vector.load %arg8[%c6_274, %c0_275, %c0_276] : memref<9x128x128xbf16, #tpu.memory_space<vmem>>, vector<1x128x128xbf16>
    %241 = vector.shape_cast %240 : vector<1x128x128xbf16> to vector<128x128xbf16>
    %cst_277 = arith.constant dense<0.000000e+00> : vector<328x128xf32>
    %242 = tpu.matmul %239, %241, %cst_277 {dimension_numbers = #tpu.dot_dimension_numbers<[1], [0], [0], [1], [0, 0, 1, 1], [], []>} : vector<328x128xbf16>, vector<128x128xbf16>, vector<328x128xf32> -> vector<328x128xf32>
    %243 = arith.addf %237, %242 : vector<328x128xf32>
    %c0_278 = arith.constant 0 : index
    %c0_279 = arith.constant 0 : index
    %244 = vector.load %arg15[%c0_278, %c0_279] : memref<328x128xf32, #tpu.memory_space<vmem>>, vector<328x128xf32>
    tpu.vector_store %arg15[%c0_278, %c0_279], %243 {strides = array<i32>} : memref<328x128xf32, #tpu.memory_space<vmem>>, vector<328x128xf32>,
    %c0_280 = arith.constant 0 : index
    %c0_281 = arith.constant 0 : index
    %245 = vector.load %arg15[%c0_280, %c0_281] : memref<328x128xf32, #tpu.memory_space<vmem>>, vector<328x128xf32>
    %c38_282 = arith.constant 38 : index
    %c0_283 = arith.constant 0 : index
    %246 = vector.load %arg14[%c38_282, %c0_283] : memref<368x128xf32, #tpu.memory_space<vmem>>, vector<328x128xf32>
    %247 = arith.truncf %246 : vector<328x128xf32> to vector<328x128xbf16>
    %c7_284 = arith.constant 7 : index
    %c0_285 = arith.constant 0 : index
    %c0_286 = arith.constant 0 : index
    %248 = vector.load %arg8[%c7_284, %c0_285, %c0_286] : memref<9x128x128xbf16, #tpu.memory_space<vmem>>, vector<1x128x128xbf16>
    %249 = vector.shape_cast %248 : vector<1x128x128xbf16> to vector<128x128xbf16>
    %cst_287 = arith.constant dense<0.000000e+00> : vector<328x128xf32>
    %250 = tpu.matmul %247, %249, %cst_287 {dimension_numbers = #tpu.dot_dimension_numbers<[1], [0], [0], [1], [0, 0, 1, 1], [], []>} : vector<328x128xbf16>, vector<128x128xbf16>, vector<328x128xf32> -> vector<328x128xf32>
    %251 = arith.addf %245, %250 : vector<328x128xf32>
    %c0_288 = arith.constant 0 : index
    %c0_289 = arith.constant 0 : index
    %252 = vector.load %arg15[%c0_288, %c0_289] : memref<328x128xf32, #tpu.memory_space<vmem>>, vector<328x128xf32>
    tpu.vector_store %arg15[%c0_288, %c0_289], %251 {strides = array<i32>} : memref<328x128xf32, #tpu.memory_space<vmem>>, vector<328x128xf32>,
    %c0_290 = arith.constant 0 : index
    %c0_291 = arith.constant 0 : index
    %253 = vector.load %arg15[%c0_290, %c0_291] : memref<328x128xf32, #tpu.memory_space<vmem>>, vector<328x128xf32>
    %c39_292 = arith.constant 39 : index
    %c0_293 = arith.constant 0 : index
    %254 = vector.load %arg14[%c39_292, %c0_293] : memref<368x128xf32, #tpu.memory_space<vmem>>, vector<328x128xf32>
    %255 = arith.truncf %254 : vector<328x128xf32> to vector<328x128xbf16>
    %c8_294 = arith.constant 8 : index
    %c0_295 = arith.constant 0 : index
    %c0_296 = arith.constant 0 : index
    %256 = vector.load %arg8[%c8_294, %c0_295, %c0_296] : memref<9x128x128xbf16, #tpu.memory_space<vmem>>, vector<1x128x128xbf16>
    %257 = vector.shape_cast %256 : vector<1x128x128xbf16> to vector<128x128xbf16>
    %cst_297 = arith.constant dense<0.000000e+00> : vector<328x128xf32>
    %258 = tpu.matmul %255, %257, %cst_297 {dimension_numbers = #tpu.dot_dimension_numbers<[1], [0], [0], [1], [0, 0, 1, 1], [], []>} : vector<328x128xbf16>, vector<128x128xbf16>, vector<328x128xf32> -> vector<328x128xf32>
    %259 = arith.addf %253, %258 : vector<328x128xf32>
    %c0_298 = arith.constant 0 : index
    %c0_299 = arith.constant 0 : index
    %260 = vector.load %arg15[%c0_298, %c0_299] : memref<328x128xf32, #tpu.memory_space<vmem>>, vector<328x128xf32>
    tpu.vector_store %arg15[%c0_298, %c0_299], %259 {strides = array<i32>} : memref<328x128xf32, #tpu.memory_space<vmem>>, vector<328x128xf32>,
    %c0_300 = arith.constant 0 : index
    %c0_301 = arith.constant 0 : index
    %261 = vector.load %arg15[%c0_300, %c0_301] : memref<328x128xf32, #tpu.memory_space<vmem>>, vector<328x128xf32>
    %c0_302 = arith.constant 0 : index
    %c0_303 = arith.constant 0 : index
    %262 = vector.load %arg9[%c0_302, %c0_303] : memref<1x128xf32, #tpu.memory_space<vmem>>, vector<1x128xf32>
    %263 = vector.broadcast %262 : vector<1x128xf32> to vector<328x128xf32>
    %264 = arith.mulf %261, %263 : vector<328x128xf32>
    %c0_304 = arith.constant 0 : index
    %c0_305 = arith.constant 0 : index
    %265 = vector.load %arg10[%c0_304, %c0_305] : memref<1x128xf32, #tpu.memory_space<vmem>>, vector<1x128xf32>
    %266 = vector.broadcast %265 : vector<1x128xf32> to vector<328x128xf32>
    %267 = arith.addf %264, %266 : vector<328x128xf32>
    %268 = arith.addf %267, %186 : vector<328x128xf32>
    %cst_306 = arith.constant 0.000000e+00 : f32
    %269 = vector.broadcast %cst_306 : f32 to vector<328x128xf32>
    %270 = arith.maximumf %268, %269 : vector<328x128xf32>
    %271 = arith.mulf %270, %2 : vector<328x128xf32>
    %cst_307 = arith.constant dense<0.000000e+00> : vector<128xf32>
    %272 = vector.multi_reduction <add>, %271, %cst_307 [0] : vector<328x128xf32> to vector<128xf32>
    %273 = vector.shape_cast %272 : vector<128xf32> to vector<1x128xf32>
    %cst_308 = arith.constant 3.906250e-03 : f32
    %274 = vector.broadcast %cst_308 : f32 to vector<1x128xf32>
    %275 = arith.mulf %273, %274 : vector<1x128xf32>
    %c0_309 = arith.constant 0 : index
    %c0_310 = arith.constant 0 : index
    %c0_311 = arith.constant 0 : index
    %276 = vector.load %arg12[%c0_309, %c0_310, %c0_311] : memref<1x1x128xf32, #tpu.memory_space<vmem>>, vector<1x1x128xf32>
    %277 = vector.shape_cast %276 : vector<1x1x128xf32> to vector<1x128xf32>
    %278 = vector.shape_cast %275 : vector<1x128xf32> to vector<1x1x128xf32>
    tpu.vector_store %arg12[%c0_309, %c0_310, %c0_311], %278 {strides = array<i32>} : memref<1x1x128xf32, #tpu.memory_space<vmem>>, vector<1x1x128xf32>,
    return
  }
  func.func @transform_0(%arg0: i32) -> (i32, i32, i32) {
    %c0_i32 = arith.constant 0 : i32
    %c0_i32_0 = arith.constant 0 : i32
    %c0_i32_1 = arith.constant 0 : i32
    return %arg0, %c0_i32, %c0_i32_0 : i32, i32, i32
  }
  func.func @transform_1(%arg0: i32) -> (i32, i32, i32) {
    %c0_i32 = arith.constant 0 : i32
    %c0_i32_0 = arith.constant 0 : i32
    %c0_i32_1 = arith.constant 0 : i32
    %c0_i32_2 = arith.constant 0 : i32
    return %c0_i32, %c0_i32_0, %c0_i32_1 : i32, i32, i32
  }
  func.func @transform_2(%arg0: i32) -> (i32, i32) {
    %c0_i32 = arith.constant 0 : i32
    %c0_i32_0 = arith.constant 0 : i32
    %c0_i32_1 = arith.constant 0 : i32
    return %c0_i32, %c0_i32_0 : i32, i32
  }
  func.func @transform_3(%arg0: i32) -> (i32, i32) {
    %c0_i32 = arith.constant 0 : i32
    %c0_i32_0 = arith.constant 0 : i32
    %c0_i32_1 = arith.constant 0 : i32
    return %c0_i32, %c0_i32_0 : i32, i32
  }
  func.func @transform_4(%arg0: i32) -> (i32, i32, i32) {
    %c0_i32 = arith.constant 0 : i32
    %c0_i32_0 = arith.constant 0 : i32
    %c0_i32_1 = arith.constant 0 : i32
    %c0_i32_2 = arith.constant 0 : i32
    return %c0_i32, %c0_i32_0, %c0_i32_1 : i32, i32, i32
  }
  func.func @transform_5(%arg0: i32) -> (i32, i32) {
    %c0_i32 = arith.constant 0 : i32
    %c0_i32_0 = arith.constant 0 : i32
    %c0_i32_1 = arith.constant 0 : i32
    return %c0_i32, %c0_i32_0 : i32, i32
  }
  func.func @transform_6(%arg0: i32) -> (i32, i32) {
    %c0_i32 = arith.constant 0 : i32
    %c0_i32_0 = arith.constant 0 : i32
    %c0_i32_1 = arith.constant 0 : i32
    return %c0_i32, %c0_i32_0 : i32, i32
  }
  func.func @transform_7(%arg0: i32) -> (i32, i32, i32) {
    %c0_i32 = arith.constant 0 : i32
    %c0_i32_0 = arith.constant 0 : i32
    %c0_i32_1 = arith.constant 0 : i32
    %c0_i32_2 = arith.constant 0 : i32
    return %c0_i32, %c0_i32_0, %c0_i32_1 : i32, i32, i32
  }
  func.func @transform_8(%arg0: i32) -> (i32, i32) {
    %c0_i32 = arith.constant 0 : i32
    %c0_i32_0 = arith.constant 0 : i32
    %c0_i32_1 = arith.constant 0 : i32
    return %c0_i32, %c0_i32_0 : i32, i32
  }
  func.func @transform_9(%arg0: i32) -> (i32, i32) {
    %c0_i32 = arith.constant 0 : i32
    %c0_i32_0 = arith.constant 0 : i32
    %c0_i32_1 = arith.constant 0 : i32
    return %c0_i32, %c0_i32_0 : i32, i32
  }
  func.func @transform_10(%arg0: i32) -> (i32, i32) {
    %c0_i32 = arith.constant 0 : i32
    %c0_i32_0 = arith.constant 0 : i32
    %c0_i32_1 = arith.constant 0 : i32
    return %c0_i32, %c0_i32_0 : i32, i32
  }
  func.func @transform_11(%arg0: i32) -> (i32, i32, i32) {
    %c0_i32 = arith.constant 0 : i32
    %c0_i32_0 = arith.constant 0 : i32
    %c0_i32_1 = arith.constant 0 : i32
    return %arg0, %c0_i32, %c0_i32_0 : i32, i32, i32
  }
}

</mosaic_0001>

<bundles_post_ra>
// kernel: simclr_ds_forward.1
= control target key start
LH: loop header
LB: loop body
LE: loop exit
PB: predicated region body
PF: predicated region fallthrough
CT: control target
= control target key end

     0   :  { %s24111_s0 = inlined_call_operand.vmem [shape: f32[2,368,128], index: 0, kind: input, shape index: {}]   ;;  %s24112_s1 = inlined_call_operand.vmem [shape: bf16[9,128,128], index: 1, kind: input, shape index: {}]   ;;  %s24113_s2 = inlined_call_operand.vmem [shape: f32[1,128], index: 2, kind: input, shape index: {}]   ;;  %s24114_s3 = inlined_call_operand.vmem [shape: f32[1,128], index: 3, kind: input, shape index: {}]   ;;  %s24115_s4 = inlined_call_operand.vmem [shape: bf16[9,128,128], index: 4, kind: input, shape index: {}]   ;;  %s24116_s5 = inlined_call_operand.vmem [shape: f32[1,128], index: 5, kind: input, shape index: {}]   ;;  %s24117_s6 = inlined_call_operand.vmem [shape: f32[1,128], index: 6, kind: input, shape index: {}]   ;;  %s24118_s7 = inlined_call_operand.vmem [shape: bf16[9,128,128], index: 7, kind: input, shape index: {}]   ;;  %s24119_s8 = inlined_call_operand.vmem [shape: f32[1,128], index: 8, kind: input, shape index: {}]   ;;  %s24120_s9 = inlined_call_operand.vmem [shape: f32[1,128], index: 9, kind: input, shape index: {}]   ;;  %s24121_s10 = inlined_call_operand.vmem [shape: f32[328,1], index: 10, kind: input, shape index: {}]   ;;  %s24122_s11 = inlined_call_operand.hbm [shape: f32[2,1,128], index: 11, kind: output, shape index: {}]  }
   0x1   :  { %24129 = sst [smem:[#allocation11_spill]] %s24111_s0 }
   0x2   :  { %16 = vsyncpa [#allocation6], 0 }
   0x3   :  { %18 = vsyncpa [#allocation6 + $0x1], 0  ;;  %s20421_s17 = smov 0   ;;  %s20423_s18 = smov 0  }
   0x4   :  { %s20425_s19 = smov 0   ;;  %s20427_s20 = smov 0  }
   0x5 LB: > { %s20442_s21 = sadd.s32 4294967295, %s20355_s20   ;;  %s13930_s22 = sadd.s32 4294967294, %s20355_s20   ;;  %s20355_s20 = sphi %s20427_s20, %s24145_s20   ;;  %s20351_s19 = sphi %s20425_s19, %s24144_s19   ;;  %s20347_s18 = sphi %s20423_s18, %s24143_s18   ;;  %s20343_s17 = sphi %s20421_s17, %s24142_s17  }
   0x6   : > { %s20446_s23 = sadd.s32 1, %s20355_s20   ;;  %s267_s24 = sadd.s32 1, %s20351_s19 }
   0x7   : > { %s264_s25 = ssub.s32 %s20355_s20, %s20446_s23  ;;  %p277_p0 = scmp.ne.s32.totalorder %s20351_s19, %s20347_s18 }
   0x8   : > { %p265_p1 = scmp.eq.s32.totalorder %s264_s25, 0  ;;  %p278_p2 = scmp.eq.s32.totalorder %s20442_s21, 1 }
   0x9   : > { %p283_p3 = scmp.ne.s32.totalorder %s20347_s18, %s20343_s17  ;;  %p284_p4 = scmp.eq.s32.totalorder %s13930_s22, 1 }
   0xa   : > { %s20457_s26 = scalar_select %p265_p1, %s20351_s19, %s267_s24  }
   0xb   : > { %p20459_p5 = por %p278_p2, %p277_p0  ;;  %p20463_p6 = por %p284_p4, %p283_p3 }
   0xc   : > { %p13933_p7 = scmp.ge.s32.totalorder %s20355_s20, 1  ;;  %p340_p8 = scmp.lt.s32.totalorder %s20355_s20, 3 }
   0xe   : > { %p341_p9 = pnand %p13933_p7, %p340_p8 }
  0x10   : > { %344 = sbr.rel (%p341_p9) target bundleno = 4199 (0x1067), region = 64 }
  0x17   : > { %v20472_v0 = vld [vmem:[%s24112_s1] sm:$0xff]   ;;  %v20357_v1 = vmov 0.0   ;;  %v20063_v3 = vld [vmem:[%s24112_s1 + $0x8] sm:$0xff]   ;;  %vm20358_vm0 = vmmov 0   ;;  %v20065_v5 = vld [vmem:[%s24112_s1 + $0x10] sm:$0xff]   ;;  %p379_p10 = scmp.lt.s32.totalorder %s20442_s21, 1 }
  0x18   : > { %15327 = vmatprep.subr.bf16.mxu1 %v20357_v1  ;;  %631 = vst [vmem:[#allocation2] sm:$0xff] %v20357_v1  ;;  %632 = vst [vmem:[#allocation2 + $0x8] sm:$0xff] %v20357_v1  ;;  %15727 = vmatprep.subr.bf16.mxu0 %v20357_v1  ;;  %v20062_v2 = vld [vmem:[%s24112_s1 + $0x100] sm:$0xff]   ;;  %v20064_v4 = vld [vmem:[%s24112_s1 + $0x108] sm:$0xff]   ;;  %s24132_s0 = sld [smem:[#allocation11_spill]] }
  0x19   : > { %633 = vst [vmem:[#allocation2 + $0x10] sm:$0xff] %v20357_v1  ;;  %634 = vst [vmem:[#allocation2 + $0x18] sm:$0xff] %v20357_v1  ;;  %15328 = vmatpush3.bf16.msra.mxu1 %v20472_v0  ;;  %15343 = vmatprep.mubr.msk.bf16.mxu1 %vm20358_vm0, %v20357_v1  ;;  %v20066_v6 = vld [vmem:[%s24112_s1 + $0x110] sm:$0xff]   ;;  %v20067_v7 = vld [vmem:[%s24112_s1 + $0x18] sm:$0xff]   ;;  %s380_s29 = scalar_select %p379_p10, %s20442_s21, 1 }
  0x1a   : > { %635 = vst [vmem:[#allocation2 + $0x20] sm:$0xff] %v20357_v1  ;;  %636 = vst [vmem:[#allocation2 + $0x28] sm:$0xff] %v20357_v1  ;;  %15728 = vmatpush3.bf16.msra.mxu0 %v20062_v2  ;;  %15329 = vmatprep.subr.bf16.mxu1 %v20357_v1  ;;  %v20068_v8 = vld [vmem:[%s24112_s1 + $0x118] sm:$0xff]   ;;  %v20069_v9 = vld [vmem:[%s24112_s1 + $0x20] sm:$0xff]  }
  0x1b   : > { %637 = vst [vmem:[#allocation2 + $0x30] sm:$0xff] %v20357_v1  ;;  %638 = vst [vmem:[#allocation2 + $0x38] sm:$0xff] %v20357_v1  ;;  %15729 = vmatprep.subr.bf16.mxu0 %v20357_v1  ;;  %15743 = vmatprep.mubr.msk.bf16.mxu0 %vm20358_vm0, %v20357_v1  ;;  %v20070_v10 = vld [vmem:[%s24112_s1 + $0x120] sm:$0xff]   ;;  %v20071_v11 = vld [vmem:[%s24112_s1 + $0x28] sm:$0xff]   ;;  %s20016_s15 = smul.u32 368, %s380_s29  ;;  %s14541_s29 = sshll.u32 %s20442_s21, 4 }
  0x1c   : > { %639 = vst [vmem:[#allocation2 + $0x40] sm:$0xff] %v20357_v1  ;;  %640 = vst [vmem:[#allocation2 + $0x48] sm:$0xff] %v20357_v1  ;;  %v20072_v12 = vld [vmem:[%s24112_s1 + $0x128] sm:$0xff]   ;;  %v20073_v13 = vld [vmem:[%s24112_s1 + $0x30] sm:$0xff]   ;;  %s24069_s24 = scalar_lea.hbm %s24122_s11, %s14541_s29  ;;  %s20360_s21 = smov [#allocation5]  }
  0x1d   : > { %641 = vst [vmem:[#allocation2 + $0x50] sm:$0xff] %v20357_v1  ;;  %642 = vst [vmem:[#allocation2 + $0x58] sm:$0xff] %v20357_v1  ;;  %15330 = vmatpush3.bf16.msra.mxu1 %v20063_v3  ;;  %v20074_v14 = vld [vmem:[%s24112_s1 + $0x130] sm:$0xff]   ;;  %v20075_v15 = vld [vmem:[%s24112_s1 + $0x38] sm:$0xff]   ;;  %s20297_s12 = sshll.u32 %s20360_s21, 4  ;;  %s20298_s12 = int_to_ptr.vmem [resolvable:$false] %s20297_s12 }
  0x1e   : > { %643 = vst [vmem:[#allocation2 + $0x60] sm:$0xff] %v20357_v1  ;;  %644 = vst [vmem:[#allocation2 + $0x68] sm:$0xff] %v20357_v1  ;;  %15730 = vmatpush3.bf16.msra.mxu0 %v20064_v4  ;;  %15331 = vmatprep.subr.bf16.mxu1 %v20357_v1  ;;  %s20628_s13 = scalar_lea.vmem %s24132_s0, %s20016_s15  ;;  %v20076_v16 = vld [vmem:[%s24112_s1 + $0x138] sm:$0xff]   ;;  %v20077_v23 = vld [vmem:[%s24112_s1 + $0x140] sm:$0xff]   ;;  %s20299_s0 = scalar_lea.vmem %s20298_s12, 32 }
  0x1f   : > { %645 = vst [vmem:[#allocation2 + $0x70] sm:$0xff] %v20357_v1  ;;  %646 = vst [vmem:[#allocation2 + $0x78] sm:$0xff] %v20357_v1  ;;  %15731 = vmatprep.subr.bf16.mxu0 %v20357_v1  ;;  %v805_v17 = vld [vmem:[%s20628_s13 + $0x1] sm:$0xff]  ;;  %v806_v18 = vld [vmem:[%s20628_s13 + $0x9] sm:$0xff] }
  0x20   : > { %647 = vst [vmem:[#allocation2 + $0x80] sm:$0xff] %v20357_v1  ;;  %648 = vst [vmem:[#allocation2 + $0x88] sm:$0xff] %v20357_v1  ;;  %v2604_v19 = vld [vmem:[%s20628_s13 + $0x14] sm:$0xff]  ;;  %v2605_v20 = vld [vmem:[%s20628_s13 + $0x1c] sm:$0xff]  ;;  %v846_v21 = vpack.c.bf16 %v806_v18, %v805_v17 }
  0x21   : > { %649 = vst [vmem:[#allocation2 + $0x90] sm:$0xff] %v20357_v1  ;;  %650 = vst [vmem:[#allocation2 + $0x98] sm:$0xff] %v20357_v1  ;;  %15332 = vmatpush3.bf16.msra.mxu1 %v20065_v5  ;;  %v2645_v22 = vpack.c.bf16 %v2605_v20, %v2604_v19  ;;  %v20078_v24 = vld [vmem:[%s24112_s1 + $0x40] sm:$0xff]   ;;  %v807_v25 = vld [vmem:[%s20628_s13 + $0x11] sm:$0xff] }
  0x22   : > { %651 = vst [vmem:[#allocation2 + $0xa0] sm:$0xff] %v20357_v1  ;;  %652 = vst [vmem:[#allocation2 + $0xa8] sm:$0xff] %v20357_v1  ;;  %15732 = vmatpush3.bf16.msra.mxu0 %v20066_v6  ;;  %15333 = vmatprep.subr.bf16.mxu1 %v20357_v1  ;;  %v808_v26 = vld [vmem:[%s20628_s13 + $0x19] sm:$0xff]  ;;  %v2606_v27 = vld [vmem:[%s20628_s13 + $0x24] sm:$0xff] }
  0x23   : > { %653 = vst [vmem:[#allocation2 + $0xb0] sm:$0xff] %v20357_v1  ;;  %654 = vst [vmem:[#allocation2 + $0xb8] sm:$0xff] %v20357_v1  ;;  %15733 = vmatprep.subr.bf16.mxu0 %v20357_v1  ;;  %v2607_v28 = vld [vmem:[%s20628_s13 + $0x2c] sm:$0xff]  ;;  %v847_v31 = vpack.c.bf16 %v808_v26, %v807_v25  ;;  %v809_v35 = vld [vmem:[%s20628_s13 + $0x21] sm:$0xff] }
  0x24   : > { %655 = vst [vmem:[#allocation2 + $0xc0] sm:$0xff] %v20357_v1  ;;  %656 = vst [vmem:[#allocation2 + $0xc8] sm:$0xff] %v20357_v1  ;;  %v20079_v29 = vld [vmem:[%s24112_s1 + $0x148] sm:$0xff]   ;;  %v2646_v32 = vpack.c.bf16 %v2607_v28, %v2606_v27  ;;  %v20080_v33 = vld [vmem:[%s24112_s1 + $0x150] sm:$0xff]  }
  0x25   : > { %657 = vst [vmem:[#allocation2 + $0xd0] sm:$0xff] %v20357_v1  ;;  %658 = vst [vmem:[#allocation2 + $0xd8] sm:$0xff] %v20357_v1  ;;  %15334 = vmatpush3.bf16.msra.mxu1 %v20067_v7  ;;  %v20081_v30 = vld [vmem:[%s24112_s1 + $0x48] sm:$0xff]   ;;  %v20084_v34 = vld [vmem:[%s24112_s1 + $0x50] sm:$0xff]  }
  0x26   : > { %659 = vst [vmem:[#allocation2 + $0xe0] sm:$0xff] %v20357_v1  ;;  %660 = vst [vmem:[#allocation2 + $0xe8] sm:$0xff] %v20357_v1  ;;  %15734 = vmatpush3.bf16.msra.mxu0 %v20068_v8  ;;  %15335 = vmatprep.subr.bf16.mxu1 %v20357_v1  ;;  %v810_v36 = vld [vmem:[%s20628_s13 + $0x29] sm:$0xff]  ;;  %v2608_v37 = vld [vmem:[%s20628_s13 + $0x34] sm:$0xff] }
  0x27   : > { %661 = vst [vmem:[#allocation2 + $0xf0] sm:$0xff] %v20357_v1  ;;  %662 = vst [vmem:[#allocation2 + $0xf8] sm:$0xff] %v20357_v1  ;;  %15735 = vmatprep.subr.bf16.mxu0 %v20357_v1  ;;  %v2609_v38 = vld [vmem:[%s20628_s13 + $0x3c] sm:$0xff]  ;;  %v848_v41 = vpack.c.bf16 %v810_v36, %v809_v35  ;;  %v811_v45 = vld [vmem:[%s20628_s13 + $0x31] sm:$0xff] }
  0x28   : > { %663 = vst [vmem:[#allocation2 + $0x100] sm:$0xff] %v20357_v1  ;;  %664 = vst [vmem:[#allocation2 + $0x108] sm:$0xff] %v20357_v1  ;;  %v20082_v39 = vld [vmem:[%s24112_s1 + $0x158] sm:$0xff]   ;;  %v2647_v42 = vpack.c.bf16 %v2609_v38, %v2608_v37  ;;  %v20083_v43 = vld [vmem:[%s24112_s1 + $0x160] sm:$0xff]  }
  0x29   : > { %665 = vst [vmem:[#allocation2 + $0x110] sm:$0xff] %v20357_v1  ;;  %666 = vst [vmem:[#allocation2 + $0x118] sm:$0xff] %v20357_v1  ;;  %15336 = vmatpush3.bf16.msra.mxu1 %v20069_v9  ;;  %v20087_v40 = vld [vmem:[%s24112_s1 + $0x58] sm:$0xff]   ;;  %v20090_v44 = vld [vmem:[%s24112_s1 + $0x60] sm:$0xff]  }
  0x2a   : > { %667 = vst [vmem:[#allocation2 + $0x120] sm:$0xff] %v20357_v1  ;;  %668 = vst [vmem:[#allocation2 + $0x128] sm:$0xff] %v20357_v1  ;;  %15736 = vmatpush3.bf16.msra.mxu0 %v20070_v10  ;;  %15337 = vmatprep.subr.bf16.mxu1 %v20357_v1  ;;  %v812_v46 = vld [vmem:[%s20628_s13 + $0x39] sm:$0xff]  ;;  %v2610_v47 = vld [vmem:[%s20628_s13 + $0x44] sm:$0xff] }
  0x2b   : > { %669 = vst [vmem:[#allocation2 + $0x130] sm:$0xff] %v20357_v1  ;;  %670 = vst [vmem:[#allocation2 + $0x138] sm:$0xff] %v20357_v1  ;;  %15737 = vmatprep.subr.bf16.mxu0 %v20357_v1  ;;  %v2611_v48 = vld [vmem:[%s20628_s13 + $0x4c] sm:$0xff]  ;;  %v849_v51 = vpack.c.bf16 %v812_v46, %v811_v45  ;;  %v813_v55 = vld [vmem:[%s20628_s13 + $0x41] sm:$0xff] }
  0x2c   : > { %671 = vst [vmem:[#allocation2 + $0x140] sm:$0xff] %v20357_v1  ;;  %672 = vst [vmem:[#allocation2 + $0x148] sm:$0xff] %v20357_v1  ;;  %v20085_v49 = vld [vmem:[%s24112_s1 + $0x168] sm:$0xff]   ;;  %v2648_v52 = vpack.c.bf16 %v2611_v48, %v2610_v47  ;;  %v20086_v53 = vld [vmem:[%s24112_s1 + $0x170] sm:$0xff]  }
  0x2d   : > { %673 = vst [vmem:[#allocation2 + $0x150] sm:$0xff] %v20357_v1  ;;  %674 = vst [vmem:[#allocation2 + $0x158] sm:$0xff] %v20357_v1  ;;  %15338 = vmatpush3.bf16.msra.mxu1 %v20071_v11  ;;  %v20092_v50 = vld [vmem:[%s24112_s1 + $0x68] sm:$0xff]   ;;  %v20094_v54 = vld [vmem:[%s24112_s1 + $0x70] sm:$0xff]  }
  0x2e   : > { %675 = vst [vmem:[#allocation2 + $0x160] sm:$0xff] %v20357_v1  ;;  %676 = vst [vmem:[#allocation2 + $0x168] sm:$0xff] %v20357_v1  ;;  %15738 = vmatpush3.bf16.msra.mxu0 %v20072_v12  ;;  %15339 = vmatprep.subr.bf16.mxu1 %v20357_v1  ;;  %v814_v56 = vld [vmem:[%s20628_s13 + $0x49] sm:$0xff]  ;;  %v2612_v57 = vld [vmem:[%s20628_s13 + $0x54] sm:$0xff] }
  0x2f   : > { %677 = vst [vmem:[#allocation3] sm:$0xff] %v20357_v1  ;;  %678 = vst [vmem:[#allocation3 + $0x8] sm:$0xff] %v20357_v1  ;;  %15739 = vmatprep.subr.bf16.mxu0 %v20357_v1  ;;  %v2613_v58 = vld [vmem:[%s20628_s13 + $0x5c] sm:$0xff]  ;;  %v850_v60 = vpack.c.bf16 %v814_v56, %v813_v55  ;;  %v815_v63 = vld [vmem:[%s20628_s13 + $0x51] sm:$0xff] }
  0x30   : > { %679 = vst [vmem:[#allocation3 + $0x10] sm:$0xff] %v20357_v1  ;;  %680 = vst [vmem:[#allocation3 + $0x18] sm:$0xff] %v20357_v1  ;;  %v20088_v59 = vld [vmem:[%s24112_s1 + $0x178] sm:$0xff]   ;;  %v2649_v61 = vpack.c.bf16 %v2613_v58, %v2612_v57  ;;  %v2614_v2 = vld [vmem:[%s20628_s13 + $0x64] sm:$0xff] }
  0x31   : > { %681 = vst [vmem:[#allocation3 + $0x20] sm:$0xff] %v20357_v1  ;;  %682 = vst [vmem:[#allocation3 + $0x28] sm:$0xff] %v20357_v1  ;;  %15340 = vmatpush3.bf16.msra.mxu1 %v20073_v13  ;;  %v20096_v62 = vld [vmem:[%s24112_s1 + $0x78] sm:$0xff]   ;;  %v2615_v3 = vld [vmem:[%s20628_s13 + $0x6c] sm:$0xff] }
  0x32   : > { %683 = vst [vmem:[#allocation3 + $0x30] sm:$0xff] %v20357_v1  ;;  %684 = vst [vmem:[#allocation3 + $0x38] sm:$0xff] %v20357_v1  ;;  %15740 = vmatpush3.bf16.msra.mxu0 %v20074_v14  ;;  %15341 = vmatprep.subr.bf16.mxu1 %v20357_v1  ;;  %v816_v0 = vld [vmem:[%s20628_s13 + $0x59] sm:$0xff]  ;;  %v2650_v5 = vpack.c.bf16 %v2615_v3, %v2614_v2  ;;  %v817_v6 = vld [vmem:[%s20628_s13 + $0x61] sm:$0xff] }
  0x33   : > { %685 = vst [vmem:[#allocation3 + $0x40] sm:$0xff] %v20357_v1  ;;  %686 = vst [vmem:[#allocation3 + $0x48] sm:$0xff] %v20357_v1  ;;  %15741 = vmatprep.subr.bf16.mxu0 %v20357_v1  ;;  %v851_v4 = vpack.c.bf16 %v816_v0, %v815_v63  ;;  %v818_v7 = vld [vmem:[%s20628_s13 + $0x69] sm:$0xff]  ;;  %v2616_v8 = vld [vmem:[%s20628_s13 + $0x74] sm:$0xff] }
  0x34   : > { %687 = vst [vmem:[#allocation3 + $0x50] sm:$0xff] %v20357_v1  ;;  %688 = vst [vmem:[#allocation3 + $0x58] sm:$0xff] %v20357_v1  ;;  %v2617_v9 = vld [vmem:[%s20628_s13 + $0x7c] sm:$0xff]  ;;  %v852_v10 = vpack.c.bf16 %v818_v7, %v817_v6  ;;  %v819_v12 = vld [vmem:[%s20628_s13 + $0x71] sm:$0xff] }
  0x35   : > { %689 = vst [vmem:[#allocation3 + $0x60] sm:$0xff] %v20357_v1  ;;  %690 = vst [vmem:[#allocation3 + $0x68] sm:$0xff] %v20357_v1  ;;  %15342 = vmatpush3.bf16.msra.mxu1 %v20075_v15  ;;  %v2651_v11 = vpack.c.bf16 %v2617_v9, %v2616_v8  ;;  %v820_v13 = vld [vmem:[%s20628_s13 + $0x79] sm:$0xff]  ;;  %v2618_v14 = vld [vmem:[%s20628_s13 + $0x84] sm:$0xff] }
  0x36   : > { %691 = vst [vmem:[#allocation3 + $0x70] sm:$0xff] %v20357_v1  ;;  %692 = vst [vmem:[#allocation3 + $0x78] sm:$0xff] %v20357_v1  ;;  %15742 = vmatpush3.bf16.msra.mxu0 %v20076_v16  ;;  %15427 = vmatprep.subr.bf16.mxu1 %v20357_v1  ;;  %v2619_v15 = vld [vmem:[%s20628_s13 + $0x8c] sm:$0xff]  ;;  %v853_v16 = vpack.c.bf16 %v820_v13, %v819_v12  ;;  %v821_v18 = vld [vmem:[%s20628_s13 + $0x81] sm:$0xff] }
  0x37   : > { %693 = vst [vmem:[#allocation3 + $0x80] sm:$0xff] %v20357_v1  ;;  %694 = vst [vmem:[#allocation3 + $0x88] sm:$0xff] %v20357_v1  ;;  %15827 = vmatprep.subr.bf16.mxu0 %v20357_v1  ;;  %v2652_v17 = vpack.c.bf16 %v2619_v15, %v2618_v14  ;;  %v822_v19 = vld [vmem:[%s20628_s13 + $0x89] sm:$0xff]  ;;  %v2620_v20 = vld [vmem:[%s20628_s13 + $0x94] sm:$0xff] }
  0x38   : > { %695 = vst [vmem:[#allocation3 + $0x90] sm:$0xff] %v20357_v1  ;;  %696 = vst [vmem:[#allocation3 + $0x98] sm:$0xff] %v20357_v1  ;;  %15344 = vmatmul.mubr.bf16.vlgmr.msra.gmra.mrb[0].mxu1 %v846_v21  ;;  %v2621_v21 = vld [vmem:[%s20628_s13 + $0x9c] sm:$0xff]  ;;  %v2622_v26 = vld [vmem:[%s20628_s13 + $0xa4] sm:$0xff] }
  0x39   : > { %697 = vst [vmem:[#allocation3 + $0xa0] sm:$0xff] %v20357_v1  ;;  %698 = vst [vmem:[#allocation3 + $0xa8] sm:$0xff] %v20357_v1  ;;  %15744 = vmatmul.mubr.bf16.vlgmr.msra.gmra.mrb[0].mxu0 %v2645_v22  ;;  %15347 = vmatprep.mubr.msk.bf16.mxu1 %vm20358_vm0, %v20357_v1  ;;  %v854_v22 = vpack.c.bf16 %v822_v19, %v821_v18  ;;  %v824_v25 = vld [vmem:[%s20628_s13 + $0x99] sm:$0xff]  ;;  %v2623_v27 = vld [vmem:[%s20628_s13 + $0xac] sm:$0xff] }
  0x3a   : > { %699 = vst [vmem:[#allocation3 + $0xb0] sm:$0xff] %v20357_v1  ;;  %700 = vst [vmem:[#allocation3 + $0xb8] sm:$0xff] %v20357_v1  ;;  %15828 = vmatpush3.bf16.msra.mxu0 %v20077_v23  ;;  %15747 = vmatprep.mubr.msk.bf16.mxu0 %vm20358_vm0, %v20357_v1  ;;  %v2653_v23 = vpack.c.bf16 %v2621_v21, %v2620_v20  ;;  %v827_v36 = vld [vmem:[%s20628_s13 + $0xb1] sm:$0xff]  ;;  %v828_v37 = vld [vmem:[%s20628_s13 + $0xb9] sm:$0xff] }
  0x3b   : > { %701 = vst [vmem:[#allocation3 + $0xc0] sm:$0xff] %v20357_v1  ;;  %702 = vst [vmem:[#allocation3 + $0xc8] sm:$0xff] %v20357_v1  ;;  %15428 = vmatpush3.bf16.msra.mxu1 %v20078_v24  ;;  %15829 = vmatprep.subr.bf16.mxu0 %v20357_v1  ;;  %v823_v24 = vld [vmem:[%s20628_s13 + $0x91] sm:$0xff]  ;;  %v20802_v45 = vld [vmem:[#allocation2] sm:$0xff] }
  0x3c   : > { %703 = vst [vmem:[#allocation3 + $0xd0] sm:$0xff] %v20357_v1  ;;  %704 = vst [vmem:[#allocation3 + $0xd8] sm:$0xff] %v20357_v1  ;;  %15429 = vmatprep.subr.bf16.mxu1 %v20357_v1  ;;  %v855_v28 = vpack.c.bf16 %v824_v25, %v823_v24  ;;  %v3054_v38 = vld [vmem:[%s20628_s13 + $0x15] sm:$0xff]  ;;  %v3057_v46 = vld [vmem:[%s20628_s13 + $0x2d] sm:$0xff] }
  0x3d   : > { %705 = vst [vmem:[#allocation3 + $0xe0] sm:$0xff] %v20357_v1  ;;  %706 = vst [vmem:[#allocation3 + $0xe8] sm:$0xff] %v20357_v1  ;;  %v20091_v47 = vld [vmem:[%s24112_s1 + $0x188] sm:$0xff]   ;;  %v20095_v55 = vld [vmem:[%s24112_s1 + $0x198] sm:$0xff]  }
  0x3e   : > { %707 = vst [vmem:[#allocation3 + $0xf0] sm:$0xff] %v20357_v1  ;;  %708 = vst [vmem:[#allocation3 + $0xf8] sm:$0xff] %v20357_v1  ;;  %15830 = vmatpush3.bf16.msra.mxu0 %v20079_v29  ;;  %v2654_v29 = vpack.c.bf16 %v2623_v27, %v2622_v26  ;;  %v20097_v58 = vld [vmem:[%s24112_s1 + $0x1a0] sm:$0xff]   ;;  %v20099_v63 = vld [vmem:[%s24112_s1 + $0x1a8] sm:$0xff]  }
  0x3f   : > { %709 = vst [vmem:[#allocation3 + $0x100] sm:$0xff] %v20357_v1  ;;  %710 = vst [vmem:[#allocation3 + $0x108] sm:$0xff] %v20357_v1  ;;  %15831 = vmatprep.subr.bf16.mxu0 %v20357_v1  ;;  %15430 = vmatpush3.bf16.msra.mxu1 %v20081_v30  ;;  %v825_v30 = vld [vmem:[%s20628_s13 + $0xa1] sm:$0xff]  ;;  %v20101_v3 = vld [vmem:[%s24112_s1 + $0x1b0] sm:$0xff]  }
  0x40   : > { %711 = vst [vmem:[#allocation3 + $0x110] sm:$0xff] %v20357_v1  ;;  %712 = vst [vmem:[#allocation3 + $0x118] sm:$0xff] %v20357_v1  ;;  %15348 = vmatmul.mubr.bf16.gmra.mrb[4].mxu1 %v847_v31  ;;  %15431 = vmatprep.subr.bf16.mxu1 %v20357_v1  ;;  %v826_v31 = vld [vmem:[%s20628_s13 + $0xa9] sm:$0xff]  ;;  %v3062_v6 = vld [vmem:[%s20628_s13 + $0x55] sm:$0xff] }
  0x41   : > { %713 = vst [vmem:[#allocation3 + $0x120] sm:$0xff] %v20357_v1  ;;  %714 = vst [vmem:[#allocation3 + $0x128] sm:$0xff] %v20357_v1  ;;  %15748 = vmatmul.mubr.bf16.gmra.mrb[4].mxu0 %v2646_v32  ;;  %15351 = vmatprep.mubr.msk.bf16.mxu1 %vm20358_vm0, %v20357_v1  ;;  %v2624_v32 = vld [vmem:[%s20628_s13 + $0xb4] sm:$0xff]  ;;  %v3063_v7 = vld [vmem:[%s20628_s13 + $0x5d] sm:$0xff] }
  0x42   : > { %715 = vst [vmem:[#allocation3 + $0x130] sm:$0xff] %v20357_v1  ;;  %716 = vst [vmem:[#allocation3 + $0x138] sm:$0xff] %v20357_v1  ;;  %15751 = vmatprep.mubr.msk.bf16.mxu0 %vm20358_vm0, %v20357_v1  ;;  %15832 = vmatpush3.bf16.msra.mxu0 %v20080_v33  ;;  %v2625_v33 = vld [vmem:[%s20628_s13 + $0xbc] sm:$0xff]  ;;  %v838_v12 = vld [vmem:[%s20628_s13 + $0x109] sm:$0xff] }
  0x43   : > { %717 = vst [vmem:[#allocation3 + $0x140] sm:$0xff] %v20357_v1  ;;  %718 = vst [vmem:[#allocation3 + $0x148] sm:$0xff] %v20357_v1  ;;  %15833 = vmatprep.subr.bf16.mxu0 %v20357_v1  ;;  %15432 = vmatpush3.bf16.msra.mxu1 %v20084_v34  ;;  %v856_v34 = vpack.c.bf16 %v826_v31, %v825_v30  ;;  %v2655_v35 = vpack.c.bf16 %v2625_v33, %v2624_v32  ;;  %v20103_v8 = vld [vmem:[%s24112_s1 + $0x1b8] sm:$0xff]   ;;  %v3064_v13 = vld [vmem:[%s20628_s13 + $0x65] sm:$0xff] }
  0x44   : > { %719 = vst [vmem:[#allocation3 + $0x150] sm:$0xff] %v20357_v1  ;;  %720 = vst [vmem:[#allocation3 + $0x158] sm:$0xff] %v20357_v1  ;;  %15433 = vmatprep.subr.bf16.mxu1 %v20357_v1  ;;  %v3065_v14 = vld [vmem:[%s20628_s13 + $0x6d] sm:$0xff]  ;;  %v840_v18 = vld [vmem:[%s20628_s13 + $0x119] sm:$0xff] }
  0x45   : > { %721 = vst [vmem:[#allocation3 + $0x160] sm:$0xff] %v20357_v1  ;;  %722 = vst [vmem:[#allocation3 + $0x168] sm:$0xff] %v20357_v1  ;;  %v3066_v19 = vld [vmem:[%s20628_s13 + $0x75] sm:$0xff]  ;;  %v3067_v20 = vld [vmem:[%s20628_s13 + $0x7d] sm:$0xff] }
  0x46   : > { %15834 = vmatpush3.bf16.msra.mxu0 %v20082_v39  ;;  %v3055_v39 = vld [vmem:[%s20628_s13 + $0x1d] sm:$0xff]  ;;  %v842_v24 = vld [vmem:[%s20628_s13 + $0x129] sm:$0xff]  ;;  %v3070_v31 = vld [vmem:[%s20628_s13 + $0x95] sm:$0xff] }
  0x47   : > { %15835 = vmatprep.subr.bf16.mxu0 %v20357_v1  ;;  %15434 = vmatpush3.bf16.msra.mxu1 %v20087_v40  ;;  %v857_v40 = vpack.c.bf16 %v828_v37, %v827_v36  ;;  %v3068_v25 = vld [vmem:[%s20628_s13 + $0x85] sm:$0xff]  ;;  %v3069_v26 = vld [vmem:[%s20628_s13 + $0x8d] sm:$0xff]  ;;  %v844_v30 = vld [vmem:[%s20628_s13 + $0x139] sm:$0xff] }
  0x48   : > { %15352 = vmatmul.mubr.bf16.gmra.mrb[8].mxu1 %v848_v41  ;;  %15435 = vmatprep.subr.bf16.mxu1 %v20357_v1  ;;  %v3095_v41 = vpack.c.bf16 %v3055_v39, %v3054_v38  ;;  %v3071_v32 = vld [vmem:[%s20628_s13 + $0x9d] sm:$0xff]  ;;  %v3072_v36 = vld [vmem:[%s20628_s13 + $0xa5] sm:$0xff]  ;;  %v3073_v37 = vld [vmem:[%s20628_s13 + $0xad] sm:$0xff] }
  0x49   : > { %15752 = vmatmul.mubr.bf16.gmra.mrb[8].mxu0 %v2647_v42  ;;  %15355 = vmatprep.mubr.msk.bf16.mxu1 %vm20358_vm0, %v20357_v1  ;;  %v20089_v42 = vld [vmem:[%s24112_s1 + $0x180] sm:$0xff]   ;;  %v20926_v39 = vpack.c.bf16 %v3073_v37, %v3072_v36 }
  0x4a   : > { %15755 = vmatprep.mubr.msk.bf16.mxu0 %vm20358_vm0, %v20357_v1  ;;  %15836 = vmatpush3.bf16.msra.mxu0 %v20083_v43  ;;  %v829_v43 = vld [vmem:[%s20628_s13 + $0xc1] sm:$0xff] }
  0x4b   : > { %15837 = vmatprep.subr.bf16.mxu0 %v20357_v1  ;;  %15436 = vmatpush3.bf16.msra.mxu1 %v20090_v44  ;;  %v830_v44 = vld [vmem:[%s20628_s13 + $0xc9] sm:$0xff]  ;;  %v1269_v36 = vld [vmem:[%s20628_s13 + $0x7a] sm:$0xff] }
  0x4c   : > { %15437 = vmatprep.subr.bf16.mxu1 %v20357_v1  ;;  %v858_v48 = vpack.c.bf16 %v830_v44, %v829_v43  ;;  %v3075_v43 = vld [vmem:[%s20628_s13 + $0xbd] sm:$0xff]  ;;  %v3088_v37 = vld [vmem:[%s20628_s13 + $0x125] sm:$0xff] }
  0x4e   : > { %15838 = vmatpush3.bf16.msra.mxu0 %v20085_v49 }
  0x4f   : > { %15839 = vmatprep.subr.bf16.mxu0 %v20357_v1  ;;  %15438 = vmatpush3.bf16.msra.mxu1 %v20092_v50  ;;  %v20093_v50 = vld [vmem:[%s24112_s1 + $0x190] sm:$0xff]  }
  0x50   : > { %15356 = vmatmul.mubr.bf16.gmra.mrb[12].mxu1 %v849_v51  ;;  %15439 = vmatprep.subr.bf16.mxu1 %v20357_v1  ;;  %v831_v51 = vld [vmem:[%s20628_s13 + $0xd1] sm:$0xff] }
  0x51   : > { %15756 = vmatmul.mubr.bf16.gmra.mrb[12].mxu0 %v2648_v52  ;;  %15359 = vmatprep.mubr.msk.bf16.mxu1 %vm20358_vm0, %v20357_v1  ;;  %v832_v52 = vld [vmem:[%s20628_s13 + $0xd9] sm:$0xff] }
  0x52   : > { %15759 = vmatprep.mubr.msk.bf16.mxu0 %vm20358_vm0, %v20357_v1  ;;  %15840 = vmatpush3.bf16.msra.mxu0 %v20086_v53  ;;  %v3058_v53 = vld [vmem:[%s20628_s13 + $0x35] sm:$0xff]  ;;  %v859_v56 = vpack.c.bf16 %v832_v52, %v831_v51  ;;  %v3077_v51 = vld [vmem:[%s20628_s13 + $0xcd] sm:$0xff] }
  0x53   : > { %15841 = vmatprep.subr.bf16.mxu0 %v20357_v1  ;;  %15440 = vmatpush3.bf16.msra.mxu1 %v20094_v54  ;;  %v3059_v54 = vld [vmem:[%s20628_s13 + $0x3d] sm:$0xff]  ;;  %v20100_v52 = vld [vmem:[%s24112_s1 + $0x88] sm:$0xff]  }
  0x54   : > { %15441 = vmatprep.subr.bf16.mxu1 %v20357_v1  ;;  %v20833_v57 = vpack.c.bf16 %v3059_v54, %v3058_v53 }
  0x56   : > { %15842 = vmatpush3.bf16.msra.mxu0 %v20088_v59  ;;  %v833_v59 = vld [vmem:[%s20628_s13 + $0xe1] sm:$0xff] }
  0x57   : > { %15927 = vmatprep.subr.bf16.mxu0 %v20357_v1  ;;  %15442 = vmatpush3.bf16.msra.mxu1 %v20096_v62  ;;  %v3061_v62 = vld [vmem:[%s20628_s13 + $0x4d] sm:$0xff] }
  0x58   : > { %15360 = vmatmul.mubr.bf16.gmra.mrb[16].mxu1 %v850_v60  ;;  %15527 = vmatprep.subr.bf16.mxu1 %v20357_v1  ;;  %v834_v60 = vld [vmem:[%s20628_s13 + $0xe9] sm:$0xff] }
  0x59   : > { %15760 = vmatmul.mubr.bf16.gmra.mrb[16].mxu0 %v2649_v61  ;;  %15363 = vmatprep.mubr.msk.bf16.mxu1 %vm20358_vm0, %v20357_v1  ;;  %v3060_v61 = vld [vmem:[%s20628_s13 + $0x45] sm:$0xff]  ;;  %v860_v0 = vpack.c.bf16 %v834_v60, %v833_v59  ;;  %v3078_v59 = vld [vmem:[%s20628_s13 + $0xd5] sm:$0xff]  ;;  %v3079_v60 = vld [vmem:[%s20628_s13 + $0xdd] sm:$0xff] }
  0x5a   : > { %15763 = vmatprep.mubr.msk.bf16.mxu0 %vm20358_vm0, %v20357_v1  ;;  %v20852_v2 = vpack.c.bf16 %v3061_v62, %v3060_v61  ;;  %v20104_v61 = vld [vmem:[%s24112_s1 + $0x98] sm:$0xff]  }
  0x60   : > { %15364 = vmatmul.mubr.bf16.gmra.mrb[20].mxu1 %v851_v4  ;;  %v835_v4 = vld [vmem:[%s20628_s13 + $0xf1] sm:$0xff] }
  0x61   : > { %15764 = vmatmul.mubr.bf16.gmra.mrb[20].mxu0 %v2650_v5  ;;  %15367 = vmatprep.mubr.msk.bf16.mxu1 %vm20358_vm0, %v20357_v1  ;;  %v836_v5 = vld [vmem:[%s20628_s13 + $0xf9] sm:$0xff] }
  0x62   : > { %15767 = vmatprep.mubr.msk.bf16.mxu0 %vm20358_vm0, %v20357_v1  ;;  %v861_v9 = vpack.c.bf16 %v836_v5, %v835_v4  ;;  %v1261_v4 = vld [vmem:[%s20628_s13 + $0x3a] sm:$0xff]  ;;  %v3080_v5 = vld [vmem:[%s20628_s13 + $0xe5] sm:$0xff] }
  0x68   : > { %15368 = vmatmul.mubr.bf16.gmra.mrb[24].mxu1 %v852_v10  ;;  %v20871_v10 = vpack.c.bf16 %v3063_v7, %v3062_v6  ;;  %v3081_v6 = vld [vmem:[%s20628_s13 + $0xed] sm:$0xff] }
  0x69   : > { %15768 = vmatmul.mubr.bf16.gmra.mrb[24].mxu0 %v2651_v11  ;;  %15371 = vmatprep.mubr.msk.bf16.mxu1 %vm20358_vm0, %v20357_v1  ;;  %v837_v11 = vld [vmem:[%s20628_s13 + $0x101] sm:$0xff] }
  0x6a   : > { %15771 = vmatprep.mubr.msk.bf16.mxu0 %vm20358_vm0, %v20357_v1  ;;  %v862_v15 = vpack.c.bf16 %v838_v12, %v837_v11  ;;  %v20108_v7 = vld [vmem:[%s24112_s1 + $0xa8] sm:$0xff]   ;;  %v20110_v11 = vld [vmem:[%s24112_s1 + $0xb0] sm:$0xff]  }
  0x6b   : > { %v1262_v12 = vld [vmem:[%s20628_s13 + $0x42] sm:$0xff] }
  0x70   : > { %15372 = vmatmul.mubr.bf16.gmra.mrb[28].mxu1 %v853_v16  ;;  %v20883_v16 = vpack.c.bf16 %v3065_v14, %v3064_v13  ;;  %v1263_v13 = vld [vmem:[%s20628_s13 + $0x4a] sm:$0xff]  ;;  %v3082_v14 = vld [vmem:[%s20628_s13 + $0xf5] sm:$0xff] }
  0x71   : > { %15772 = vmatmul.mubr.bf16.gmra.mrb[28].mxu0 %v2652_v17  ;;  %15375 = vmatprep.mubr.msk.bf16.mxu1 %vm20358_vm0, %v20357_v1  ;;  %v839_v17 = vld [vmem:[%s20628_s13 + $0x111] sm:$0xff] }
  0x72   : > { %15775 = vmatprep.mubr.msk.bf16.mxu0 %vm20358_vm0, %v20357_v1  ;;  %v863_v21 = vpack.c.bf16 %v840_v18, %v839_v17  ;;  %v20112_v17 = vld [vmem:[%s24112_s1 + $0xb8] sm:$0xff]   ;;  %v1299_v18 = vpack.c.bf16 %v1263_v13, %v1262_v12 }
  0x73   : > { %v1280_v12 = vld [vmem:[%s20628_s13 + $0xd2] sm:$0xff]  ;;  %v1281_v13 = vld [vmem:[%s20628_s13 + $0xda] sm:$0xff] }
  0x78   : > { %15376 = vmatmul.mubr.bf16.gmra.mrb[32].mxu1 %v854_v22  ;;  %v20894_v22 = vpack.c.bf16 %v3067_v20, %v3066_v19  ;;  %v1264_v20 = vld [vmem:[%s20628_s13 + $0x52] sm:$0xff] }
  0x79   : > { %15776 = vmatmul.mubr.bf16.gmra.mrb[32].mxu0 %v2653_v23  ;;  %15379 = vmatprep.mubr.msk.bf16.mxu1 %vm20358_vm0, %v20357_v1  ;;  %v841_v23 = vld [vmem:[%s20628_s13 + $0x121] sm:$0xff] }
  0x7a   : > { %15779 = vmatprep.mubr.msk.bf16.mxu0 %vm20358_vm0, %v20357_v1  ;;  %v864_v27 = vpack.c.bf16 %v842_v24, %v841_v23  ;;  %v3084_v23 = vld [vmem:[%s20628_s13 + $0x105] sm:$0xff]  ;;  %v3085_v24 = vld [vmem:[%s20628_s13 + $0x10d] sm:$0xff] }
  0x80   : > { %15380 = vmatmul.mubr.bf16.gmra.mrb[36].mxu1 %v855_v28  ;;  %v20905_v28 = vpack.c.bf16 %v3069_v26, %v3068_v25  ;;  %v21024_v26 = vpack.c.bf16 %v3085_v24, %v3084_v23  ;;  %v1284_v23 = vld [vmem:[%s20628_s13 + $0xf2] sm:$0xff]  ;;  %v1285_v24 = vld [vmem:[%s20628_s13 + $0xfa] sm:$0xff] }
  0x81   : > { %15780 = vmatmul.mubr.bf16.gmra.mrb[36].mxu0 %v2654_v29  ;;  %15383 = vmatprep.mubr.msk.bf16.mxu1 %vm20358_vm0, %v20357_v1  ;;  %v843_v29 = vld [vmem:[%s20628_s13 + $0x131] sm:$0xff] }
  0x82   : > { %15783 = vmatprep.mubr.msk.bf16.mxu0 %vm20358_vm0, %v20357_v1  ;;  %v865_v33 = vpack.c.bf16 %v844_v30, %v843_v29  ;;  %v1267_v29 = vld [vmem:[%s20628_s13 + $0x6a] sm:$0xff]  ;;  %v3086_v30 = vld [vmem:[%s20628_s13 + $0x115] sm:$0xff] }
  0x88   : > { %15384 = vmatmul.mubr.bf16.gmra.mrb[40].mxu1 %v856_v34  ;;  %v20916_v34 = vpack.c.bf16 %v3071_v32, %v3070_v31  ;;  %v3087_v31 = vld [vmem:[%s20628_s13 + $0x11d] sm:$0xff] }
  0x89   : > { %15784 = vmatmul.mubr.bf16.gmra.mrb[40].mxu0 %v2655_v35  ;;  %15387 = vmatprep.mubr.msk.bf16.mxu1 %vm20358_vm0, %v20357_v1  ;;  %v845_v35 = vld [vmem:[%s20628_s13 + $0x141] sm:$0xff] }
  0x8a   : > { %15843 = vmatprep.mubr.msk.bf16.mxu0 %vm20358_vm0, %v20357_v1  ;;  %v3056_v1 = vld [vmem:[%s20628_s13 + $0x25] sm:$0xff]  ;;  %v866_v38 = vpack.c.bf16 %v845_v35, %v845_v35  ;;  %v1268_v35 = vld [vmem:[%s20628_s13 + $0x72] sm:$0xff] }
  0x8b   : > { %v20814_v49 = vpack.c.bf16 %v3057_v46, %v3056_v1  ;;  %v20098_v1 = vld [vmem:[%s24112_s1 + $0x80] sm:$0xff]  }
  0x90   : > { %15388 = vmatmul.mubr.bf16.gmra.mrb[44].mxu1 %v857_v40  ;;  %v1254_v40 = vld [vmem:[%s20628_s13 + $0x2] sm:$0xff] }
  0x91   : > { %15844 = vmatmul.mubr.bf16.vlgmr.msra.gmra.mrb[0].mxu0 %v3095_v41  ;;  %15391 = vmatprep.mubr.msk.bf16.mxu1 %vm20358_vm0, %v20802_v45  ;;  %v1255_v41 = vld [vmem:[%s20628_s13 + $0xa] sm:$0xff] }
  0x92   : > { %15928 = vmatpush3.bf16.msra.mxu0 %v20089_v42  ;;  %15847 = vmatprep.mubr.msk.bf16.mxu0 %vm20358_vm0, %v20802_v45  ;;  %v3074_v42 = vld [vmem:[%s20628_s13 + $0xb5] sm:$0xff]  ;;  %v1295_v44 = vpack.c.bf16 %v1255_v41, %v1254_v40  ;;  %v1302_v40 = vpack.c.bf16 %v1269_v36, %v1268_v35  ;;  %v1290_v35 = vld [vmem:[%s20628_s13 + $0x122] sm:$0xff] }
  0x93   : > { %15929 = vmatprep.subr.bf16.mxu0 %v20802_v45  ;;  %v20940_v46 = vpack.c.bf16 %v3075_v43, %v3074_v42  ;;  %v1270_v42 = vld [vmem:[%s20628_s13 + $0x82] sm:$0xff]  ;;  %v1271_v43 = vld [vmem:[%s20628_s13 + $0x8a] sm:$0xff] }
  0x96   : > { %15930 = vmatpush3.bf16.msra.mxu0 %v20091_v47  ;;  %v1256_v47 = vld [vmem:[%s20628_s13 + $0x12] sm:$0xff] }
  0x97   : > { %15931 = vmatprep.subr.bf16.mxu0 %v20802_v45 }
  0x98   : > { %15392 = vmatmul.mubr.bf16.gmra.mrb[48].mxu1 %v858_v48  ;;  %v1257_v48 = vld [vmem:[%s20628_s13 + $0x1a] sm:$0xff] }
  0x99   : > { %15848 = vmatmul.mubr.bf16.gmra.mrb[4].mxu0 %v20814_v49  ;;  %15395 = vmatprep.mubr.msk.bf16.mxu1 %vm20358_vm0, %v20802_v45  ;;  %v1296_v53 = vpack.c.bf16 %v1257_v48, %v1256_v47  ;;  %v1303_v47 = vpack.c.bf16 %v1271_v43, %v1270_v42  ;;  %v1704_v42 = vld [vmem:[%s20628_s13 + $0x3] sm:$0xff]  ;;  %v1705_v43 = vld [vmem:[%s20628_s13 + $0xb] sm:$0xff] }
  0x9a   : > { %15851 = vmatprep.mubr.msk.bf16.mxu0 %vm20358_vm0, %v20802_v45  ;;  %15932 = vmatpush3.bf16.msra.mxu0 %v20093_v50  ;;  %v3076_v50 = vld [vmem:[%s20628_s13 + $0xc5] sm:$0xff] }
  0x9b   : > { %15933 = vmatprep.subr.bf16.mxu0 %v20802_v45  ;;  %v20955_v54 = vpack.c.bf16 %v3077_v51, %v3076_v50  ;;  %v1272_v50 = vld [vmem:[%s20628_s13 + $0x92] sm:$0xff]  ;;  %v1273_v51 = vld [vmem:[%s20628_s13 + $0x9a] sm:$0xff] }
  0x9e   : > { %15934 = vmatpush3.bf16.msra.mxu0 %v20095_v55  ;;  %v20102_v55 = vld [vmem:[%s24112_s1 + $0x90] sm:$0xff]  }
  0x9f   : > { %15935 = vmatprep.subr.bf16.mxu0 %v20802_v45 }
  0xa0   : > { %15396 = vmatmul.mubr.bf16.gmra.mrb[52].mxu1 %v859_v56  ;;  %v1258_v56 = vld [vmem:[%s20628_s13 + $0x22] sm:$0xff] }
  0xa1   : > { %15852 = vmatmul.mubr.bf16.gmra.mrb[8].mxu0 %v20833_v57  ;;  %15399 = vmatprep.mubr.msk.bf16.mxu1 %vm20358_vm0, %v20802_v45 }
  0xa2   : > { %15855 = vmatprep.mubr.msk.bf16.mxu0 %vm20358_vm0, %v20802_v45  ;;  %15936 = vmatpush3.bf16.msra.mxu0 %v20097_v58  ;;  %v1259_v58 = vld [vmem:[%s20628_s13 + $0x2a] sm:$0xff] }
  0xa3   : > { %15937 = vmatprep.subr.bf16.mxu0 %v20802_v45  ;;  %v1297_v62 = vpack.c.bf16 %v1259_v58, %v1258_v56  ;;  %v1274_v58 = vld [vmem:[%s20628_s13 + $0xa2] sm:$0xff] }
  0xa6   : > { %15938 = vmatpush3.bf16.msra.mxu0 %v20099_v63  ;;  %v20974_v63 = vpack.c.bf16 %v3079_v60, %v3078_v59  ;;  %v1275_v59 = vld [vmem:[%s20628_s13 + $0xaa] sm:$0xff]  ;;  %v21078_v60 = vld [vmem:[%s20628_s13 + $0x155] sm:$0xff] }
  0xa7   : > { %15939 = vmatprep.subr.bf16.mxu0 %v20802_v45 }
  0xa8   : > { %15400 = vmatmul.mubr.bf16.gmra.mrb[56].mxu1 %v860_v0  ;;  %v20106_v0 = vld [vmem:[%s24112_s1 + $0xa0] sm:$0xff]  }
  0xa9   : > { %15856 = vmatmul.mubr.bf16.gmra.mrb[12].mxu0 %v20852_v2  ;;  %15403 = vmatprep.mubr.msk.bf16.mxu1 %vm20358_vm0, %v20802_v45 }
  0xaa   : > { %15859 = vmatprep.mubr.msk.bf16.mxu0 %vm20358_vm0, %v20802_v45  ;;  %15940 = vmatpush3.bf16.msra.mxu0 %v20101_v3  ;;  %v1260_v3 = vld [vmem:[%s20628_s13 + $0x32] sm:$0xff] }
  0xab   : > { %15941 = vmatprep.subr.bf16.mxu0 %v20802_v45 }
  0xae   : > { %15942 = vmatpush3.bf16.msra.mxu0 %v20103_v8  ;;  %v1298_v8 = vpack.c.bf16 %v1261_v4, %v1260_v3  ;;  %v1277_v3 = vld [vmem:[%s20628_s13 + $0xba] sm:$0xff] }
  0xaf   : > { %16027 = vmatprep.subr.bf16.mxu0 %v20802_v45 }
  0xb0   : > { %15404 = vmatmul.mubr.bf16.gmra.mrb[60].mxu1 %v861_v9  ;;  %v20993_v9 = vpack.c.bf16 %v3081_v6, %v3080_v5  ;;  %v20105_v5 = vld [vmem:[%s24112_s1 + $0x1c0] sm:$0xff]  }
  0xb1   : > { %15860 = vmatmul.mubr.bf16.gmra.mrb[16].mxu0 %v20871_v10  ;;  %15407 = vmatprep.mubr.msk.bf16.mxu1 %vm20358_vm0, %v20802_v45  ;;  %v1278_v6 = vld [vmem:[%s20628_s13 + $0xc2] sm:$0xff] }
  0xb2   : > { %15863 = vmatprep.mubr.msk.bf16.mxu0 %vm20358_vm0, %v20802_v45 }
  0xb8   : > { %15408 = vmatmul.mubr.bf16.gmra.mrb[64].mxu1 %v862_v15  ;;  %v3083_v15 = vld [vmem:[%s20628_s13 + $0xfd] sm:$0xff] }
  0xb9   : > { %15864 = vmatmul.mubr.bf16.gmra.mrb[20].mxu0 %v20883_v16  ;;  %15411 = vmatprep.mubr.msk.bf16.mxu1 %vm20358_vm0, %v20802_v45  ;;  %v21012_v19 = vpack.c.bf16 %v3083_v15, %v3082_v14  ;;  %v20111_v14 = vld [vmem:[%s24112_s1 + $0x1d8] sm:$0xff]   ;;  %v1308_v15 = vpack.c.bf16 %v1281_v13, %v1280_v12  ;;  %v1721_v13 = vld [vmem:[%s20628_s13 + $0x8b] sm:$0xff] }
  0xba   : > { %15867 = vmatprep.mubr.msk.bf16.mxu0 %vm20358_vm0, %v20802_v45 }
  0xc0   : > { %15412 = vmatmul.mubr.bf16.gmra.mrb[68].mxu1 %v863_v21  ;;  %v1265_v21 = vld [vmem:[%s20628_s13 + $0x5a] sm:$0xff] }
  0xc1   : > { %15868 = vmatmul.mubr.bf16.gmra.mrb[24].mxu0 %v20894_v22  ;;  %15415 = vmatprep.mubr.msk.bf16.mxu1 %vm20358_vm0, %v20802_v45  ;;  %v1300_v25 = vpack.c.bf16 %v1265_v21, %v1264_v20  ;;  %v20115_v20 = vld [vmem:[%s24112_s1 + $0x1e8] sm:$0xff]  }
  0xc2   : > { %15871 = vmatprep.mubr.msk.bf16.mxu0 %vm20358_vm0, %v20802_v45 }
  0xc8   : > { %15416 = vmatmul.mubr.bf16.gmra.mrb[72].mxu1 %v864_v27  ;;  %v1266_v27 = vld [vmem:[%s20628_s13 + $0x62] sm:$0xff] }
  0xc9   : > { %15872 = vmatmul.mubr.bf16.gmra.mrb[28].mxu0 %v20905_v28  ;;  %15419 = vmatprep.mubr.msk.bf16.mxu1 %vm20358_vm0, %v20802_v45  ;;  %v1301_v32 = vpack.c.bf16 %v1267_v29, %v1266_v27  ;;  %v21146_v27 = vld [vmem:[#allocation2] sm:$0xff]  ;;  %v1287_v29 = vld [vmem:[%s20628_s13 + $0x10a] sm:$0xff] }
  0xca   : > { %15875 = vmatprep.mubr.msk.bf16.mxu0 %vm20358_vm0, %v20802_v45 }
  0xd0   : > { %15420 = vmatmul.mubr.bf16.gmra.mrb[76].mxu1 %v865_v33  ;;  %v21035_v33 = vpack.c.bf16 %v3087_v31, %v3086_v30  ;;  %v1289_v31 = vld [vmem:[%s20628_s13 + $0x11a] sm:$0xff] }
  0xd1   : > { %15876 = vmatmul.mubr.bf16.gmra.mrb[32].mxu0 %v20916_v34  ;;  %15423 = vmatprep.mubr.msk.bf16.mxu1 %vm20358_vm0, %v20802_v45 }
  0xd2   : > { %15879 = vmatprep.mubr.msk.bf16.mxu0 %vm20358_vm0, %v20802_v45 }
  0xd8   : > { %15424 = vmatmul.mubr.bf16.gmra.mrb[80].mxu1 %v866_v38  ;;  %v3089_v38 = vld [vmem:[%s20628_s13 + $0x12d] sm:$0xff] }
  0xd9   : > { %15880 = vmatmul.mubr.bf16.gmra.mrb[36].mxu0 %v20926_v39  ;;  %15443 = vmatprep.mubr.msk.bf16.mxu1 %vm20358_vm0, %v20802_v45  ;;  %v21046_v41 = vpack.c.bf16 %v3089_v38, %v3088_v37  ;;  %v1292_v37 = vld [vmem:[%s20628_s13 + $0x132] sm:$0xff] }
  0xda   : > { %15883 = vmatprep.mubr.msk.bf16.mxu0 %vm20358_vm0, %v20802_v45 }
  0xe0   : > { %15444 = vmatmul.mubr.bf16.vlgmr.msra.gmra.mrb[0].mxu1 %v1295_v44  ;;  %v3090_v44 = vld [vmem:[%s20628_s13 + $0x135] sm:$0xff] }
  0xe1   : > { %15884 = vmatmul.mubr.bf16.gmra.mrb[40].mxu0 %v20940_v46  ;;  %15447 = vmatprep.mubr.msk.bf16.mxu1 %vm20358_vm0, %v20802_v45 }
  0xe2   : > { %15887 = vmatprep.mubr.msk.bf16.mxu0 %vm20358_vm0, %v20802_v45  ;;  %15528 = vmatpush3.bf16.msra.mxu1 %v20098_v1  ;;  %v3091_v1 = vld [vmem:[%s20628_s13 + $0x13d] sm:$0xff] }
  0xe3   : > { %15529 = vmatprep.subr.bf16.mxu1 %v20802_v45  ;;  %v21057_v48 = vpack.c.bf16 %v3091_v1, %v3090_v44  ;;  %v20114_v44 = vld [vmem:[%s24112_s1 + $0xc0] sm:$0xff]  }
  0xe4   : > { %v1707_v1 = vld [vmem:[%s20628_s13 + $0x1b] sm:$0xff] }
  0xe6   : > { %15530 = vmatpush3.bf16.msra.mxu1 %v20100_v52  ;;  %v3092_v52 = vld [vmem:[%s20628_s13 + $0x145] sm:$0xff] }
  0xe7   : > { %15531 = vmatprep.subr.bf16.mxu1 %v20802_v45 }
  0xe8   : > { %15448 = vmatmul.mubr.bf16.gmra.mrb[4].mxu1 %v1296_v53  ;;  %v3093_v53 = vld [vmem:[%s20628_s13 + $0x14d] sm:$0xff] }
  0xe9   : > { %15888 = vmatmul.mubr.bf16.gmra.mrb[44].mxu0 %v20955_v54  ;;  %15451 = vmatprep.mubr.msk.bf16.mxu1 %vm20358_vm0, %v20802_v45  ;;  %v21068_v56 = vpack.c.bf16 %v3093_v53, %v3092_v52  ;;  %v1709_v52 = vld [vmem:[%s20628_s13 + $0x2b] sm:$0xff]  ;;  %v20120_v53 = vld [vmem:[%s24112_s1 + $0xd8] sm:$0xff]  }
  0xea   : > { %15891 = vmatprep.mubr.msk.bf16.mxu0 %vm20358_vm0, %v20802_v45  ;;  %15532 = vmatpush3.bf16.msra.mxu1 %v20102_v55  ;;  %v1304_v55 = vpack.c.bf16 %v1273_v51, %v1272_v50  ;;  %v1708_v51 = vld [vmem:[%s20628_s13 + $0x23] sm:$0xff] }
  0xeb   : > { %15533 = vmatprep.subr.bf16.mxu1 %v20802_v45 }
  0xee   : > { %15534 = vmatpush3.bf16.msra.mxu1 %v20104_v61  ;;  %v1305_v61 = vpack.c.bf16 %v1275_v59, %v1274_v58  ;;  %v1710_v58 = vld [vmem:[%s20628_s13 + $0x33] sm:$0xff]  ;;  %v1711_v59 = vld [vmem:[%s20628_s13 + $0x3b] sm:$0xff] }
  0xef   : > { %15535 = vmatprep.subr.bf16.mxu1 %v20802_v45 }
  0xf0   : > { %15452 = vmatmul.mubr.bf16.gmra.mrb[8].mxu1 %v1297_v62  ;;  %v3115_v62 = vpack.c.bf16 %v21078_v60, %v21078_v60 }
  0xf1   : > { %15892 = vmatmul.mubr.bf16.gmra.mrb[48].mxu0 %v20974_v63  ;;  %15455 = vmatprep.mubr.msk.bf16.mxu1 %vm20358_vm0, %v20802_v45 }
  0xf2   : > { %15895 = vmatprep.mubr.msk.bf16.mxu0 %vm20358_vm0, %v20802_v45  ;;  %15536 = vmatpush3.bf16.msra.mxu1 %v20106_v0  ;;  %v1276_v0 = vld [vmem:[%s20628_s13 + $0xb2] sm:$0xff] }
  0xf3   : > { %15537 = vmatprep.subr.bf16.mxu1 %v20802_v45  ;;  %v1306_v4 = vpack.c.bf16 %v1277_v3, %v1276_v0  ;;  %v1712_v0 = vld [vmem:[%s20628_s13 + $0x43] sm:$0xff]  ;;  %v1713_v3 = vld [vmem:[%s20628_s13 + $0x4b] sm:$0xff] }
  0xf6   : > { %15538 = vmatpush3.bf16.msra.mxu1 %v20108_v7  ;;  %v1279_v7 = vld [vmem:[%s20628_s13 + $0xca] sm:$0xff] }
  0xf7   : > { %15539 = vmatprep.subr.bf16.mxu1 %v20802_v45 }
  0xf8   : > { %15456 = vmatmul.mubr.bf16.gmra.mrb[12].mxu1 %v1298_v8  ;;  %v20107_v8 = vld [vmem:[%s24112_s1 + $0x1c8] sm:$0xff]  }
  0xf9   : > { %15896 = vmatmul.mubr.bf16.gmra.mrb[52].mxu0 %v20993_v9  ;;  %15459 = vmatprep.mubr.msk.bf16.mxu1 %vm20358_vm0, %v20802_v45 }
  0xfa   : > { %15899 = vmatprep.mubr.msk.bf16.mxu0 %vm20358_vm0, %v20802_v45  ;;  %15540 = vmatpush3.bf16.msra.mxu1 %v20110_v11  ;;  %v1307_v11 = vpack.c.bf16 %v1279_v7, %v1278_v6  ;;  %v1715_v6 = vld [vmem:[%s20628_s13 + $0x5b] sm:$0xff] }
  0xfb   : > { %15541 = vmatprep.subr.bf16.mxu1 %v20802_v45 }
  0xfe   : > { %15542 = vmatpush3.bf16.msra.mxu1 %v20112_v17  ;;  %v1282_v17 = vld [vmem:[%s20628_s13 + $0xe2] sm:$0xff] }
  0xff   : > { %15627 = vmatprep.subr.bf16.mxu1 %v20802_v45 }
 0x100   : > { %15460 = vmatmul.mubr.bf16.gmra.mrb[16].mxu1 %v1299_v18  ;;  %v1283_v18 = vld [vmem:[%s20628_s13 + $0xea] sm:$0xff] }
 0x101   : > { %15900 = vmatmul.mubr.bf16.gmra.mrb[56].mxu0 %v21012_v19  ;;  %15463 = vmatprep.mubr.msk.bf16.mxu1 %vm20358_vm0, %v20802_v45  ;;  %v1309_v21 = vpack.c.bf16 %v1283_v18, %v1282_v17 }
 0x102   : > { %15903 = vmatprep.mubr.msk.bf16.mxu0 %vm20358_vm0, %v20802_v45 }
 0x108   : > { %15464 = vmatmul.mubr.bf16.gmra.mrb[20].mxu1 %v1300_v25  ;;  %v20119_v25 = vld [vmem:[%s24112_s1 + $0x1f8] sm:$0xff]  }
 0x109   : > { %15904 = vmatmul.mubr.bf16.gmra.mrb[60].mxu0 %v21024_v26  ;;  %15467 = vmatprep.mubr.msk.bf16.mxu1 %vm20358_vm0, %v20802_v45 }
 0x10a   : > { %15907 = vmatprep.mubr.msk.bf16.mxu0 %vm20358_vm0, %v20802_v45 }
 0x110   : > { %15468 = vmatmul.mubr.bf16.gmra.mrb[24].mxu1 %v1301_v32 }
 0x111   : > { %15908 = vmatmul.mubr.bf16.gmra.mrb[64].mxu0 %v21035_v33  ;;  %15471 = vmatprep.mubr.msk.bf16.mxu1 %vm20358_vm0, %v20802_v45 }
 0x112   : > { %15911 = vmatprep.mubr.msk.bf16.mxu0 %vm20358_vm0, %v20802_v45 }
 0x118   : > { %15472 = vmatmul.mubr.bf16.gmra.mrb[28].mxu1 %v1302_v40  ;;  %v1294_v40 = vld [vmem:[%s20628_s13 + $0x142] sm:$0xff] }
 0x119   : > { %15912 = vmatmul.mubr.bf16.gmra.mrb[68].mxu0 %v21046_v41  ;;  %15475 = vmatprep.mubr.msk.bf16.mxu1 %vm20358_vm0, %v20802_v45 }
 0x11a   : > { %15915 = vmatprep.mubr.msk.bf16.mxu0 %vm20358_vm0, %v20802_v45 }
 0x120   : > { %15476 = vmatmul.mubr.bf16.gmra.mrb[32].mxu1 %v1303_v47  ;;  %v20116_v47 = vld [vmem:[%s24112_s1 + $0xc8] sm:$0xff]  }
 0x121   : > { %15916 = vmatmul.mubr.bf16.gmra.mrb[72].mxu0 %v21057_v48  ;;  %15479 = vmatprep.mubr.msk.bf16.mxu1 %vm20358_vm0, %v20802_v45 }
 0x122   : > { %15919 = vmatprep.mubr.msk.bf16.mxu0 %vm20358_vm0, %v20802_v45 }
 0x128   : > { %15480 = vmatmul.mubr.bf16.gmra.mrb[36].mxu1 %v1304_v55  ;;  %v21223_v55 = vpack.c.bf16 %v1709_v52, %v1708_v51  ;;  %v3961_v51 = vld [vmem:[%s20628_s13 + $0x5e] sm:$0xff]  ;;  %v20130_v52 = vld [vmem:[%s24112_s1 + $0x228] sm:$0xff]  }
 0x129   : > { %15920 = vmatmul.mubr.bf16.gmra.mrb[76].mxu0 %v21068_v56  ;;  %15483 = vmatprep.mubr.msk.bf16.mxu1 %vm20358_vm0, %v20802_v45 }
 0x12a   : > { %15923 = vmatprep.mubr.msk.bf16.mxu0 %vm20358_vm0, %v20802_v45 }
 0x130   : > { %15484 = vmatmul.mubr.bf16.gmra.mrb[40].mxu1 %v1305_v61  ;;  %v20124_v61 = vld [vmem:[%s24112_s1 + $0xe8] sm:$0xff]  }
 0x131   : > { %15924 = vmatmul.mubr.bf16.gmra.mrb[80].mxu0 %v3115_v62  ;;  %15487 = vmatprep.mubr.msk.bf16.mxu1 %vm20358_vm0, %v20802_v45  ;;  %v21241_v62 = vpack.c.bf16 %v1711_v59, %v1710_v58  ;;  %v20131_v58 = vld [vmem:[%s24112_s1 + $0x230] sm:$0xff]  }
 0x132   : > { %15943 = vmatprep.mubr.msk.bf16.mxu0 %vm20358_vm0, %v20802_v45  ;;  %v1734_v59 = vld [vmem:[%s20628_s13 + $0xf3] sm:$0xff] }
 0x138   : > { %15488 = vmatmul.mubr.bf16.gmra.mrb[44].mxu1 %v1306_v4  ;;  %v20128_v4 = vld [vmem:[%s24112_s1 + $0xf8] sm:$0xff]  }
 0x139   : > { %15944 = vmatmul.mubr.bf16.vlgmr.msra.gmra.mrb[0].mxu0 %v20814_v49  ;;  %15491 = vmatprep.mubr.msk.bf16.mxu1 %vm20358_vm0, %v20802_v45  ;;  %v20109_v49 = vld [vmem:[%s24112_s1 + $0x1d0] sm:$0xff]  }
 0x13a   : > { %16028 = vmatpush3.bf16.msra.mxu0 %v20105_v5  ;;  %15947 = vmatprep.mubr.msk.bf16.mxu0 %vm20358_vm0, %v20802_v45  ;;  %v21259_v5 = vpack.c.bf16 %v1713_v3, %v1712_v0  ;;  %v3963_v0 = vld [vmem:[%s20628_s13 + $0x6e] sm:$0xff]  ;;  %v20132_v3 = vld [vmem:[%s24112_s1 + $0x238] sm:$0xff]  }
 0x13b   : > { %16029 = vmatprep.subr.bf16.mxu0 %v20802_v45 }
 0x13e   : > { %16030 = vmatpush3.bf16.msra.mxu0 %v20107_v8  ;;  %v1717_v8 = vld [vmem:[%s20628_s13 + $0x6b] sm:$0xff] }
 0x13f   : > { %16031 = vmatprep.subr.bf16.mxu0 %v20802_v45 }
 0x140   : > { %15492 = vmatmul.mubr.bf16.gmra.mrb[48].mxu1 %v1307_v11 }
 0x141   : > { %15948 = vmatmul.mubr.bf16.gmra.mrb[4].mxu0 %v20833_v57  ;;  %15495 = vmatprep.mubr.msk.bf16.mxu1 %vm20358_vm0, %v20802_v45  ;;  %v20113_v57 = vld [vmem:[%s24112_s1 + $0x1e0] sm:$0xff]  }
 0x142   : > { %15951 = vmatprep.mubr.msk.bf16.mxu0 %vm20358_vm0, %v20802_v45  ;;  %16032 = vmatpush3.bf16.msra.mxu0 %v20109_v49  ;;  %v1719_v49 = vld [vmem:[%s20628_s13 + $0x7b] sm:$0xff] }
 0x143   : > { %16033 = vmatprep.subr.bf16.mxu0 %v20802_v45 }
 0x146   : > { %16034 = vmatpush3.bf16.msra.mxu0 %v20111_v14 }
 0x147   : > { %16035 = vmatprep.subr.bf16.mxu0 %v20802_v45 }
 0x148   : > { %15496 = vmatmul.mubr.bf16.gmra.mrb[52].mxu1 %v1308_v15  ;;  %v1723_v15 = vld [vmem:[%s20628_s13 + $0x9b] sm:$0xff] }
 0x149   : > { %15952 = vmatmul.mubr.bf16.gmra.mrb[8].mxu0 %v20852_v2  ;;  %15499 = vmatprep.mubr.msk.bf16.mxu1 %vm20358_vm0, %v20802_v45  ;;  %v20117_v2 = vld [vmem:[%s24112_s1 + $0x1f0] sm:$0xff]  }
 0x14a   : > { %15955 = vmatprep.mubr.msk.bf16.mxu0 %vm20358_vm0, %v20802_v45  ;;  %16036 = vmatpush3.bf16.msra.mxu0 %v20113_v57  ;;  %v3543_v57 = vld [vmem:[%s20628_s13 + $0x15d] sm:$0xff] }
 0x14b   : > { %16037 = vmatprep.subr.bf16.mxu0 %v20802_v45  ;;  %v3564_v18 = vpack.c.bf16 %v3543_v57, %v21078_v60  ;;  %v1726_v60 = vld [vmem:[%s20628_s13 + $0xb3] sm:$0xff] }
 0x14c   : > { %v3967_v57 = vld [vmem:[%s20628_s13 + $0x8e] sm:$0xff] }
 0x14e   : > { %16038 = vmatpush3.bf16.msra.mxu0 %v20115_v20  ;;  %v1725_v20 = vld [vmem:[%s20628_s13 + $0xab] sm:$0xff] }
 0x14f   : > { %16039 = vmatprep.subr.bf16.mxu0 %v20802_v45 }
 0x150   : > { %15500 = vmatmul.mubr.bf16.gmra.mrb[56].mxu1 %v1309_v21  ;;  %v3544_v21 = vld [vmem:[%s20628_s13 + $0x165] sm:$0xff] }
 0x151   : > { %15956 = vmatmul.mubr.bf16.gmra.mrb[12].mxu0 %v20871_v10  ;;  %15503 = vmatprep.mubr.msk.bf16.mxu1 %vm20358_vm0, %v20802_v45  ;;  %v1310_v10 = vpack.c.bf16 %v1285_v24, %v1284_v23  ;;  %v3565_v23 = vpack.c.bf16 %v3544_v21, %v3544_v21  ;;  %v1727_v24 = vld [vmem:[%s20628_s13 + $0xbb] sm:$0xff]  ;;  %v1741_v21 = vld [vmem:[%s20628_s13 + $0x12b] sm:$0xff] }
 0x152   : > { %15959 = vmatprep.mubr.msk.bf16.mxu0 %vm20358_vm0, %v20802_v45  ;;  %16040 = vmatpush3.bf16.msra.mxu0 %v20117_v2  ;;  %v1286_v45 = vld [vmem:[%s20628_s13 + $0x102] sm:$0xff] }
 0x153   : > { %16041 = vmatprep.subr.bf16.mxu0 %v21146_v27  ;;  %v1311_v30 = vpack.c.bf16 %v1287_v29, %v1286_v45  ;;  %v21333_v45 = vpack.c.bf16 %v1727_v24, %v1726_v60  ;;  %v3968_v60 = vld [vmem:[%s20628_s13 + $0x96] sm:$0xff]  ;;  %v3969_v24 = vld [vmem:[%s20628_s13 + $0x9e] sm:$0xff] }
 0x156   : > { %16042 = vmatpush3.bf16.msra.mxu0 %v20119_v25  ;;  %v3954_v25 = vld [vmem:[%s20628_s13 + $0x26] sm:$0xff] }
 0x157   : > { %16127 = vmatprep.subr.bf16.mxu0 %v21146_v27 }
 0x158   : > { %15504 = vmatmul.mubr.bf16.gmra.mrb[60].mxu1 %v1310_v10  ;;  %v3955_v10 = vld [vmem:[%s20628_s13 + $0x2e] sm:$0xff] }
 0x159   : > { %15960 = vmatmul.mubr.bf16.gmra.mrb[16].mxu0 %v20883_v16  ;;  %15507 = vmatprep.mubr.msk.bf16.mxu1 %vm20358_vm0, %v21146_v27  ;;  %v1288_v16 = vld [vmem:[%s20628_s13 + $0x112] sm:$0xff]  ;;  %v3995_v29 = vpack.c.bf16 %v3955_v10, %v3954_v25  ;;  %v20359_v25 = vmov 0  }
 0x15a   : > { %15963 = vmatprep.mubr.msk.bf16.mxu0 %vm20358_vm0, %v21146_v27  ;;  %v1312_v32 = vpack.c.bf16 %v1289_v31, %v1288_v16  ;;  %v1728_v16 = vld [vmem:[%s20628_s13 + $0xc3] sm:$0xff]  ;;  %v1729_v31 = vld [vmem:[%s20628_s13 + $0xcb] sm:$0xff]  ;;  %20059 = vset.pattern.permute.xlu0 %v20359_v25 }
 0x15b   : > { %20060 = vset.pattern.permute.xlu1 %v20359_v25  ;;  %v409_v25 = vld [vmem:[%s24121_s10 + $0xc0] sm:$0xff] }
 0x160   : > { %15508 = vmatmul.mubr.bf16.gmra.mrb[64].mxu1 %v1311_v30  ;;  %v20121_v30 = vld [vmem:[%s24112_s1 + $0x200] sm:$0xff]  }
 0x161   : > { %15964 = vmatmul.mubr.bf16.gmra.mrb[20].mxu0 %v20894_v22  ;;  %15511 = vmatprep.mubr.msk.bf16.mxu1 %vm20358_vm0, %v21146_v27  ;;  %v1291_v22 = vld [vmem:[%s20628_s13 + $0x12a] sm:$0xff] }
 0x162   : > { %15967 = vmatprep.mubr.msk.bf16.mxu0 %vm20358_vm0, %v21146_v27  ;;  %v1313_v36 = vpack.c.bf16 %v1291_v22, %v1290_v35  ;;  %v3957_v35 = vld [vmem:[%s20628_s13 + $0x3e] sm:$0xff]  ;;  %v20123_v22 = vld [vmem:[%s24112_s1 + $0x208] sm:$0xff]  }
 0x168   : > { %15512 = vmatmul.mubr.bf16.gmra.mrb[68].mxu1 %v1312_v32  ;;  %v3956_v32 = vld [vmem:[%s20628_s13 + $0x36] sm:$0xff] }
 0x169   : > { %15968 = vmatmul.mubr.bf16.gmra.mrb[24].mxu0 %v20905_v28  ;;  %15515 = vmatprep.mubr.msk.bf16.mxu1 %vm20358_vm0, %v21146_v27  ;;  %v1293_v28 = vld [vmem:[%s20628_s13 + $0x13a] sm:$0xff] }
 0x16a   : > { %15971 = vmatprep.mubr.msk.bf16.mxu0 %vm20358_vm0, %v21146_v27  ;;  %v1314_v38 = vpack.c.bf16 %v1293_v28, %v1292_v37  ;;  %v3996_v37 = vpack.c.bf16 %v3957_v35, %v3956_v32  ;;  %v20125_v28 = vld [vmem:[%s24112_s1 + $0x210] sm:$0xff]   ;;  %v389_v32 = vld [vmem:[%s24121_s10 + $0x20] sm:$0xff] }
 0x16b   : > { %v387_v35 = vld [vmem:[%s24121_s10 + $0x10] sm:$0xff] }
 0x16c   : > { %438 = vperm.xlu1 %20060, %v387_v35   ;;  %v20284_v35 = vld [vmem:[%s24112_s1 + $0x128] sm:$0xff]  }
 0x170   : > { %15516 = vmatmul.mubr.bf16.gmra.mrb[72].mxu1 %v1313_v36  ;;  %v21351_v36 = vpack.c.bf16 %v1729_v31, %v1728_v16  ;;  %v1742_v16 = vld [vmem:[%s20628_s13 + $0x133] sm:$0xff]  ;;  %v1743_v31 = vld [vmem:[%s20628_s13 + $0x13b] sm:$0xff] }
 0x171   : > { %15972 = vmatmul.mubr.bf16.gmra.mrb[28].mxu0 %v20916_v34  ;;  %15519 = vmatprep.mubr.msk.bf16.mxu1 %vm20358_vm0, %v21146_v27  ;;  %v1315_v34 = vpack.c.bf16 %v1294_v40, %v1294_v40  ;;  %v1731_v40 = vld [vmem:[%s20628_s13 + $0xdb] sm:$0xff] }
 0x172   : > { %15975 = vmatprep.mubr.msk.bf16.mxu0 %vm20358_vm0, %v21146_v27 }
 0x178   : > { %15520 = vmatmul.mubr.bf16.gmra.mrb[76].mxu1 %v1314_v38  ;;  %v1730_v38 = vld [vmem:[%s20628_s13 + $0xd3] sm:$0xff] }
 0x179   : > { %15976 = vmatmul.mubr.bf16.gmra.mrb[32].mxu0 %v20926_v39  ;;  %15523 = vmatprep.mubr.msk.bf16.mxu1 %vm20358_vm0, %v21146_v27  ;;  %v1745_v39 = vpack.c.bf16 %v1705_v43, %v1704_v42  ;;  %v3959_v42 = vld [vmem:[%s20628_s13 + $0x4e] sm:$0xff]  ;;  %v20127_v43 = vld [vmem:[%s24112_s1 + $0x218] sm:$0xff]  }
 0x17a   : > { %15979 = vmatprep.mubr.msk.bf16.mxu0 %vm20358_vm0, %v21146_v27 }
 0x180   : > { %15524 = vmatmul.mubr.bf16.gmra.mrb[80].mxu1 %v1315_v34  ;;  %v3958_v34 = vld [vmem:[%s20628_s13 + $0x46] sm:$0xff] }
 0x181   : > { %15980 = vmatmul.mubr.bf16.gmra.mrb[36].mxu0 %v20940_v46  ;;  %15543 = vmatprep.mubr.msk.bf16.mxu1 %vm20358_vm0, %v21146_v27  ;;  %v1706_v46 = vld [vmem:[%s20628_s13 + $0x13] sm:$0xff] }
 0x182   : > { %15983 = vmatprep.mubr.msk.bf16.mxu0 %vm20358_vm0, %v21146_v27  ;;  %v21205_v50 = vpack.c.bf16 %v1707_v1, %v1706_v46  ;;  %v20129_v46 = vld [vmem:[%s24112_s1 + $0x220] sm:$0xff]  }
 0x183   : > { %v1732_v1 = vld [vmem:[%s20628_s13 + $0xe3] sm:$0xff] }
 0x188   : > { %15544 = vmatmul.mubr.bf16.vlgmr.msra.gmra.mrb[0].mxu1 %v1745_v39  ;;  %v21370_v39 = vpack.c.bf16 %v1731_v40, %v1730_v38  ;;  %v391_v38 = vld [vmem:[%s24121_s10 + $0x30] sm:$0xff] }
 0x189   : > { %15984 = vmatmul.mubr.bf16.gmra.mrb[40].mxu0 %v20955_v54  ;;  %15547 = vmatprep.mubr.msk.bf16.mxu1 %vm20358_vm0, %v21146_v27  ;;  %v20118_v54 = vld [vmem:[%s24112_s1 + $0xd0] sm:$0xff]  }
 0x18a   : > { %15987 = vmatprep.mubr.msk.bf16.mxu0 %vm20358_vm0, %v21146_v27  ;;  %15628 = vmatpush3.bf16.msra.mxu1 %v20114_v44  ;;  %v3997_v44 = vpack.c.bf16 %v3959_v42, %v3958_v34  ;;  %v21474_v34 = vld [vmem:[%s20628_s13 + $0x143] sm:$0xff]  ;;  %v388_v42 = vld [vmem:[%s24121_s10 + $0x18] sm:$0xff] }
 0x18b   : > { %15629 = vmatprep.subr.bf16.mxu1 %v21146_v27  ;;  %443 = vperm.xlu1 %20060, %v388_v42   ;;  %v410_v42 = vld [vmem:[%s24121_s10 + $0xc8] sm:$0xff] }
 0x18e   : > { %15630 = vmatpush3.bf16.msra.mxu1 %v20116_v47  ;;  %v1733_v47 = vld [vmem:[%s20628_s13 + $0xeb] sm:$0xff] }
 0x18f   : > { %15631 = vmatprep.subr.bf16.mxu1 %v21146_v27 }
 0x190   : > { %15548 = vmatmul.mubr.bf16.gmra.mrb[4].mxu1 %v21205_v50 }
 0x191   : > { %15988 = vmatmul.mubr.bf16.gmra.mrb[44].mxu0 %v20974_v63  ;;  %15551 = vmatprep.mubr.msk.bf16.mxu1 %vm20358_vm0, %v21146_v27  ;;  %v20122_v63 = vld [vmem:[%s24112_s1 + $0xe0] sm:$0xff]  }
 0x192   : > { %15991 = vmatprep.mubr.msk.bf16.mxu0 %vm20358_vm0, %v21146_v27  ;;  %15632 = vmatpush3.bf16.msra.mxu1 %v20118_v54  ;;  %v3960_v54 = vld [vmem:[%s20628_s13 + $0x56] sm:$0xff] }
 0x193   : > { %15633 = vmatprep.subr.bf16.mxu1 %v21146_v27 }
 0x196   : > { %15634 = vmatpush3.bf16.msra.mxu1 %v20120_v53  ;;  %v21389_v53 = vpack.c.bf16 %v1733_v47, %v1732_v1  ;;  %v390_v1 = vld [vmem:[%s24121_s10 + $0x28] sm:$0xff]  ;;  %v1765_v47 = vpack.c.bf16 %v21474_v34, %v21474_v34 }
 0x197   : > { %15635 = vmatprep.subr.bf16.mxu1 %v21146_v27  ;;  %453 = vperm.xlu1 %20060, %v390_v1   ;;  %v412_v1 = vld [vmem:[%s24121_s10 + $0xd8] sm:$0xff] }
 0x198   : > { %15552 = vmatmul.mubr.bf16.gmra.mrb[8].mxu1 %v21223_v55 }
 0x199   : > { %15992 = vmatmul.mubr.bf16.gmra.mrb[48].mxu0 %v20993_v9  ;;  %15555 = vmatprep.mubr.msk.bf16.mxu1 %vm20358_vm0, %v21146_v27  ;;  %v20126_v9 = vld [vmem:[%s24112_s1 + $0xf0] sm:$0xff]  }
 0x19a   : > { %15995 = vmatprep.mubr.msk.bf16.mxu0 %vm20358_vm0, %v21146_v27  ;;  %15636 = vmatpush3.bf16.msra.mxu1 %v20122_v63  ;;  %v3998_v63 = vpack.c.bf16 %v3961_v51, %v3960_v54  ;;  %v395_v54 = vld [vmem:[%s24121_s10 + $0x50] sm:$0xff] }
 0x19b   : > { %15637 = vmatprep.subr.bf16.mxu1 %v21146_v27 }
 0x19e   : > { %15638 = vmatpush3.bf16.msra.mxu1 %v20124_v61  ;;  %v1735_v61 = vld [vmem:[%s20628_s13 + $0xfb] sm:$0xff] }
 0x19f   : > { %15639 = vmatprep.subr.bf16.mxu1 %v21146_v27 }
 0x1a0   : > { %15556 = vmatmul.mubr.bf16.gmra.mrb[12].mxu1 %v21241_v62 }
 0x1a1   : > { %15996 = vmatmul.mubr.bf16.gmra.mrb[52].mxu0 %v21012_v19  ;;  %15559 = vmatprep.mubr.msk.bf16.mxu1 %vm20358_vm0, %v21146_v27  ;;  %v1714_v19 = vld [vmem:[%s20628_s13 + $0x53] sm:$0xff] }
 0x1a2   : > { %15999 = vmatprep.mubr.msk.bf16.mxu0 %vm20358_vm0, %v21146_v27  ;;  %15640 = vmatpush3.bf16.msra.mxu1 %v20126_v9  ;;  %v21270_v7 = vpack.c.bf16 %v1715_v6, %v1714_v19  ;;  %v3962_v9 = vld [vmem:[%s20628_s13 + $0x66] sm:$0xff] }
 0x1a3   : > { %15641 = vmatprep.subr.bf16.mxu1 %v21146_v27  ;;  %v3999_v19 = vpack.c.bf16 %v3963_v0, %v3962_v9  ;;  %v1736_v6 = vld [vmem:[%s20628_s13 + $0x103] sm:$0xff]  ;;  %v399_v9 = vld [vmem:[%s24121_s10 + $0x70] sm:$0xff] }
 0x1a6   : > { %15642 = vmatpush3.bf16.msra.mxu1 %v20128_v4  ;;  %v21408_v4 = vpack.c.bf16 %v1735_v61, %v1734_v59  ;;  %v3975_v59 = vld [vmem:[%s20628_s13 + $0xce] sm:$0xff] }
 0x1a7   : > { %18027 = vmatprep.subr.bf16.mxu1 %v21146_v27  ;;  %v394_v61 = vld [vmem:[%s24121_s10 + $0x48] sm:$0xff] }
 0x1a8   : > { %15560 = vmatmul.mubr.bf16.gmra.mrb[16].mxu1 %v21259_v5 }
 0x1a9   : > { %16000 = vmatmul.mubr.bf16.gmra.mrb[56].mxu0 %v21024_v26  ;;  %15563 = vmatprep.mubr.msk.bf16.mxu1 %vm20358_vm0, %v21146_v27  ;;  %v1716_v26 = vld [vmem:[%s20628_s13 + $0x63] sm:$0xff] }
 0x1aa   : > { %16003 = vmatprep.mubr.msk.bf16.mxu0 %vm20358_vm0, %v21146_v27  ;;  %v21280_v11 = vpack.c.bf16 %v1717_v8, %v1716_v26  ;;  %v1737_v26 = vld [vmem:[%s20628_s13 + $0x10b] sm:$0xff]  ;;  %v3964_v8 = vld [vmem:[%s20628_s13 + $0x76] sm:$0xff] }
 0x1b0   : > { %15564 = vmatmul.mubr.bf16.gmra.mrb[20].mxu1 %v21270_v7 }
 0x1b1   : > { %16004 = vmatmul.mubr.bf16.gmra.mrb[60].mxu0 %v21035_v33  ;;  %15567 = vmatprep.mubr.msk.bf16.mxu1 %vm20358_vm0, %v21146_v27  ;;  %v1718_v33 = vld [vmem:[%s20628_s13 + $0x73] sm:$0xff] }
 0x1b2   : > { %16007 = vmatprep.mubr.msk.bf16.mxu0 %vm20358_vm0, %v21146_v27  ;;  %v21290_v12 = vpack.c.bf16 %v1719_v49, %v1718_v33  ;;  %v3965_v33 = vld [vmem:[%s20628_s13 + $0x7e] sm:$0xff]  ;;  %v21420_v49 = vpack.c.bf16 %v1737_v26, %v1736_v6  ;;  %v3976_v6 = vld [vmem:[%s20628_s13 + $0xd6] sm:$0xff] }
 0x1b3   : > { %v3977_v26 = vld [vmem:[%s20628_s13 + $0xde] sm:$0xff] }
 0x1b8   : > { %15568 = vmatmul.mubr.bf16.gmra.mrb[24].mxu1 %v21280_v11 }
 0x1b9   : > { %16008 = vmatmul.mubr.bf16.gmra.mrb[64].mxu0 %v21046_v41  ;;  %15571 = vmatprep.mubr.msk.bf16.mxu1 %vm20358_vm0, %v21146_v27  ;;  %v1720_v41 = vld [vmem:[%s20628_s13 + $0x83] sm:$0xff] }
 0x1ba   : > { %16011 = vmatprep.mubr.msk.bf16.mxu0 %vm20358_vm0, %v21146_v27  ;;  %v21300_v14 = vpack.c.bf16 %v1721_v13, %v1720_v41  ;;  %v4000_v41 = vpack.c.bf16 %v3965_v33, %v3964_v8  ;;  %v1738_v13 = vld [vmem:[%s20628_s13 + $0x113] sm:$0xff]  ;;  %v398_v8 = vld [vmem:[%s24121_s10 + $0x68] sm:$0xff]  ;;  %v4006_v33 = vpack.c.bf16 %v3977_v26, %v3976_v6  ;;  %v425_v6 = vld [vmem:[%s24121_s10 + $0x140] sm:$0xff] }
 0x1bb   : > { %v3988_v26 = vld [vmem:[%s20628_s13 + $0x136] sm:$0xff] }
 0x1c0   : > { %15572 = vmatmul.mubr.bf16.gmra.mrb[28].mxu1 %v21290_v12 }
 0x1c1   : > { %16012 = vmatmul.mubr.bf16.gmra.mrb[68].mxu0 %v21057_v48  ;;  %15575 = vmatprep.mubr.msk.bf16.mxu1 %vm20358_vm0, %v21146_v27  ;;  %v1722_v48 = vld [vmem:[%s20628_s13 + $0x93] sm:$0xff] }
 0x1c2   : > { %16015 = vmatprep.mubr.msk.bf16.mxu0 %vm20358_vm0, %v21146_v27  ;;  %v21311_v17 = vpack.c.bf16 %v1723_v15, %v1722_v48  ;;  %v1739_v48 = vld [vmem:[%s20628_s13 + $0x11b] sm:$0xff]  ;;  %v3966_v15 = vld [vmem:[%s20628_s13 + $0x86] sm:$0xff] }
 0x1c8   : > { %15576 = vmatmul.mubr.bf16.gmra.mrb[32].mxu1 %v21300_v14 }
 0x1c9   : > { %16016 = vmatmul.mubr.bf16.gmra.mrb[72].mxu0 %v21068_v56  ;;  %15579 = vmatprep.mubr.msk.bf16.mxu1 %vm20358_vm0, %v21146_v27  ;;  %v1724_v56 = vld [vmem:[%s20628_s13 + $0xa3] sm:$0xff] }
 0x1ca   : > { %16019 = vmatprep.mubr.msk.bf16.mxu0 %vm20358_vm0, %v21146_v27  ;;  %v21322_v2 = vpack.c.bf16 %v1725_v20, %v1724_v56  ;;  %v4001_v56 = vpack.c.bf16 %v3967_v57, %v3966_v15  ;;  %v1740_v20 = vld [vmem:[%s20628_s13 + $0x123] sm:$0xff] }
 0x1cb   : > { %v21445_v10 = vpack.c.bf16 %v1741_v21, %v1740_v20  ;;  %v405_v15 = vld [vmem:[%s24121_s10 + $0xa0] sm:$0xff]  ;;  %v402_v20 = vld [vmem:[%s24121_s10 + $0x88] sm:$0xff] }
 0x1cc   : > { %v3978_v57 = vld [vmem:[%s20628_s13 + $0xe6] sm:$0xff] }
 0x1d0   : > { %15580 = vmatmul.mubr.bf16.gmra.mrb[36].mxu1 %v21311_v17 }
 0x1d1   : > { %16020 = vmatmul.mubr.bf16.gmra.mrb[76].mxu0 %v3564_v18  ;;  %15583 = vmatprep.mubr.msk.bf16.mxu1 %vm20358_vm0, %v21146_v27  ;;  %v21431_v18 = vpack.c.bf16 %v1739_v48, %v1738_v13  ;;  %v20280_v13 = vld [vmem:[%s24112_s1 + $0x108] sm:$0xff]   ;;  %v400_v48 = vld [vmem:[%s24121_s10 + $0x78] sm:$0xff] }
 0x1d2   : > { %16023 = vmatprep.mubr.msk.bf16.mxu0 %vm20358_vm0, %v21146_v27 }
 0x1d8   : > { %15584 = vmatmul.mubr.bf16.gmra.mrb[40].mxu1 %v21322_v2 }
 0x1d9   : > { %16024 = vmatmul.mubr.bf16.gmra.mrb[80].mxu0 %v3565_v23  ;;  %15587 = vmatprep.mubr.msk.bf16.mxu1 %vm20358_vm0, %v21146_v27  ;;  %v385_v23 = vld [vmem:[%s24121_s10] sm:$0xff] }
 0x1da   : > { %16043 = vmatprep.mubr.msk.bf16.mxu0 %vm20358_vm0, %v21146_v27  ;;  %428 = vperm.xlu0 %20059, %v385_v23   ;;  %v407_v23 = vld [vmem:[%s24121_s10 + $0xb0] sm:$0xff] }
 0x1e0   : > { %15588 = vmatmul.mubr.bf16.gmra.mrb[44].mxu1 %v21333_v45 }
 0x1e1   : > { %16044 = vmatmul.mubr.bf16.vlgmr.msra.gmra.mrb[0].mxu0 %v3995_v29  ;;  %15591 = vmatprep.mubr.msk.bf16.mxu1 %vm20358_vm0, %v21146_v27  ;;  %v386_v29 = vld [vmem:[%s24121_s10 + $0x8] sm:$0xff] }
 0x1e2   : > { %16128 = vmatpush3.bf16.msra.mxu0 %v20121_v30  ;;  %16047 = vmatprep.mubr.msk.bf16.mxu0 %vm20358_vm0, %v21146_v27  ;;  %v4002_v30 = vpack.c.bf16 %v3969_v24, %v3968_v60  ;;  %v20282_v60 = vld [vmem:[%s24112_s1 + $0x118] sm:$0xff]  }
 0x1e3   : > { %16129 = vmatprep.subr.bf16.mxu0 %v21146_v27  ;;  %433 = vperm.xlu0 %20059, %v386_v29   ;;  %v404_v24 = vld [vmem:[%s24121_s10 + $0x98] sm:$0xff] }
 0x1e4   : > { %v3980_v29 = vld [vmem:[%s20628_s13 + $0xf6] sm:$0xff] }
 0x1e6   : > { %16130 = vmatpush3.bf16.msra.mxu0 %v20123_v22  ;;  %v3970_v22 = vld [vmem:[%s20628_s13 + $0xa6] sm:$0xff] }
 0x1e7   : > { %16131 = vmatprep.subr.bf16.mxu0 %v21146_v27  ;;  %448 = vperm.xlu0 %20059, %v389_v32   ;;  %v411_v32 = vld [vmem:[%s24121_s10 + $0xd0] sm:$0xff] }
 0x1e8   : > { %15592 = vmatmul.mubr.bf16.gmra.mrb[48].mxu1 %v21351_v36 }
 0x1e9   : > { %16048 = vmatmul.mubr.bf16.gmra.mrb[4].mxu0 %v3996_v37  ;;  %15595 = vmatprep.mubr.msk.bf16.mxu1 %vm20358_vm0, %v21146_v27  ;;  %v3971_v37 = vld [vmem:[%s20628_s13 + $0xae] sm:$0xff] }
 0x1ea   : > { %16051 = vmatprep.mubr.msk.bf16.mxu0 %vm20358_vm0, %v21146_v27  ;;  %16132 = vmatpush3.bf16.msra.mxu0 %v20125_v28  ;;  %v21465_v28 = vpack.c.bf16 %v1743_v31, %v1742_v16  ;;  %v4003_v40 = vpack.c.bf16 %v3971_v37, %v3970_v22  ;;  %v406_v16 = vld [vmem:[%s24121_s10 + $0xa8] sm:$0xff]  ;;  %v408_v22 = vld [vmem:[%s24121_s10 + $0xb8] sm:$0xff]  ;;  %v413_v37 = vld [vmem:[%s24121_s10 + $0xe0] sm:$0xff] }
 0x1eb   : > { %16133 = vmatprep.subr.bf16.mxu0 %v21146_v27  ;;  %458 = vperm.xlu0 %20059, %v391_v38   ;;  %v3982_v38 = vld [vmem:[%s20628_s13 + $0x106] sm:$0xff] }
 0x1ee   : > { %16134 = vmatpush3.bf16.msra.mxu0 %v20127_v43  ;;  %v393_v43 = vld [vmem:[%s24121_s10 + $0x40] sm:$0xff] }
 0x1ef   : > { %16135 = vmatprep.subr.bf16.mxu0 %v21146_v27  ;;  %468 = vperm.xlu0 %20059, %v393_v43  }
 0x1f0   : > { %15596 = vmatmul.mubr.bf16.gmra.mrb[52].mxu1 %v21370_v39 }
 0x1f1   : > { %16052 = vmatmul.mubr.bf16.gmra.mrb[8].mxu0 %v3997_v44  ;;  %15599 = vmatprep.mubr.msk.bf16.mxu1 %vm20358_vm0, %v21146_v27  ;;  %v3972_v44 = vld [vmem:[%s20628_s13 + $0xb6] sm:$0xff] }
 0x1f2   : > { %16055 = vmatprep.mubr.msk.bf16.mxu0 %vm20358_vm0, %v21146_v27  ;;  %16136 = vmatpush3.bf16.msra.mxu0 %v20129_v46  ;;  %v3973_v46 = vld [vmem:[%s20628_s13 + $0xbe] sm:$0xff] }
 0x1f3   : > { %16137 = vmatprep.subr.bf16.mxu0 %v21146_v27  ;;  %v4004_v51 = vpack.c.bf16 %v3973_v46, %v3972_v44  ;;  %478 = vperm.xlu0 %20059, %v395_v54   ;;  %v415_v44 = vld [vmem:[%s24121_s10 + $0xf0] sm:$0xff]  ;;  %v20286_v46 = vld [vmem:[%s24112_s1 + $0x138] sm:$0xff]  }
 0x1f4   : > { %v3984_v54 = vld [vmem:[%s20628_s13 + $0x116] sm:$0xff] }
 0x1f6   : > { %16138 = vmatpush3.bf16.msra.mxu0 %v20130_v52  ;;  %v392_v52 = vld [vmem:[%s24121_s10 + $0x38] sm:$0xff] }
 0x1f7   : > { %16139 = vmatprep.subr.bf16.mxu0 %v21146_v27  ;;  %463 = vperm.xlu1 %20060, %v392_v52  }
 0x1f8   : > { %15600 = vmatmul.mubr.bf16.gmra.mrb[56].mxu1 %v21389_v53 }
 0x1f9   : > { %16056 = vmatmul.mubr.bf16.gmra.mrb[12].mxu0 %v3998_v63  ;;  %15603 = vmatprep.mubr.msk.bf16.mxu1 %vm20358_vm0, %v21146_v27  ;;  %v397_v63 = vld [vmem:[%s24121_s10 + $0x60] sm:$0xff] }
 0x1fa   : > { %16059 = vmatprep.mubr.msk.bf16.mxu0 %vm20358_vm0, %v21146_v27  ;;  %16140 = vmatpush3.bf16.msra.mxu0 %v20131_v58  ;;  %v3974_v58 = vld [vmem:[%s20628_s13 + $0xc6] sm:$0xff] }
 0x1fb   : > { %16141 = vmatprep.subr.bf16.mxu0 %v21146_v27  ;;  %488 = vperm.xlu0 %20059, %v397_v63   ;;  %v4005_v0 = vpack.c.bf16 %v3975_v59, %v3974_v58  ;;  %v419_v63 = vld [vmem:[%s24121_s10 + $0x110] sm:$0xff]  ;;  %v416_v58 = vld [vmem:[%s24121_s10 + $0xf8] sm:$0xff]  ;;  %v421_v59 = vld [vmem:[%s24121_s10 + $0x120] sm:$0xff] }
 0x1fc   : > { %473 = vperm.xlu1 %20060, %v394_v61   ;;  %v3986_v61 = vld [vmem:[%s20628_s13 + $0x126] sm:$0xff] }
 0x1fe   : > { %16142 = vmatpush3.bf16.msra.mxu0 %v20132_v3  ;;  %v396_v3 = vld [vmem:[%s24121_s10 + $0x58] sm:$0xff] }
 0x1ff   : > { %17127 = vmatprep.subr.bf16.mxu0 %v21146_v27  ;;  %498 = vperm.xlu0 %20059, %v399_v9   ;;  %v418_v9 = vld [vmem:[%s24121_s10 + $0x108] sm:$0xff] }
 0x200   : > { %15604 = vmatmul.mubr.bf16.gmra.mrb[60].mxu1 %v21408_v4  ;;  %483 = vperm.xlu1 %20060, %v396_v3   ;;  %v423_v3 = vld [vmem:[%s24121_s10 + $0x130] sm:$0xff] }
 0x201   : > { %16060 = vmatmul.mubr.bf16.gmra.mrb[16].mxu0 %v3999_v19  ;;  %15607 = vmatprep.mubr.msk.bf16.mxu1 %vm20358_vm0, %v21146_v27  ;;  %v401_v19 = vld [vmem:[%s24121_s10 + $0x80] sm:$0xff] }
 0x202   : > { %16063 = vmatprep.mubr.msk.bf16.mxu0 %vm20358_vm0, %v21146_v27 }
 0x203   : > { %508 = vperm.xlu0 %20059, %v401_v19   ;;  %v420_v19 = vld [vmem:[%s24121_s10 + $0x118] sm:$0xff] }
 0x204   : > { %493 = vperm.xlu1 %20060, %v398_v8  }
 0x208   : > { %15608 = vmatmul.mubr.bf16.gmra.mrb[64].mxu1 %v21420_v49  ;;  %503 = vperm.xlu1 %20060, %v400_v48  }
 0x209   : > { %16064 = vmatmul.mubr.bf16.gmra.mrb[20].mxu0 %v4000_v41  ;;  %15611 = vmatprep.mubr.msk.bf16.mxu1 %vm20358_vm0, %v21146_v27  ;;  %v403_v41 = vld [vmem:[%s24121_s10 + $0x90] sm:$0xff] }
 0x20a   : > { %16067 = vmatprep.mubr.msk.bf16.mxu0 %vm20358_vm0, %v21146_v27  ;;  %518 = vperm.xlu0 %20059, %v403_v41   ;;  %v3990_v41 = vld [vmem:[%s20628_s13 + $0x146] sm:$0xff] }
 0x20c   : > { %513 = vperm.xlu1 %20060, %v402_v20  }
 0x20e   : > { %528 = vperm.xlu0 %20059, %v405_v15   ;;  %v3993_v15 = vld [vmem:[%s20628_s13 + $0x15e] sm:$0xff] }
 0x210   : > { %15612 = vmatmul.mubr.bf16.gmra.mrb[68].mxu1 %v21431_v18  ;;  %523 = vperm.xlu1 %20060, %v404_v24  }
 0x211   : > { %16068 = vmatmul.mubr.bf16.gmra.mrb[24].mxu0 %v4001_v56  ;;  %15615 = vmatprep.mubr.msk.bf16.mxu1 %vm20358_vm0, %v21146_v27  ;;  %v3979_v56 = vld [vmem:[%s20628_s13 + $0xee] sm:$0xff] }
 0x212   : > { %16071 = vmatprep.mubr.msk.bf16.mxu0 %vm20358_vm0, %v21146_v27  ;;  %v4007_v21 = vpack.c.bf16 %v3979_v56, %v3978_v57  ;;  %538 = vperm.xlu0 %20059, %v407_v23  }
 0x214   : > { %533 = vperm.xlu1 %20060, %v406_v16   ;;  %v4415_v16 = vld [vmem:[%s20628_s13 + $0x7f] sm:$0xff] }
 0x216   : > { %548 = vperm.xlu0 %20059, %v409_v25   ;;  %v4411_v25 = vld [vmem:[%s20628_s13 + $0x5f] sm:$0xff] }
 0x218   : > { %15616 = vmatmul.mubr.bf16.gmra.mrb[72].mxu1 %v21445_v10  ;;  %543 = vperm.xlu1 %20060, %v408_v22   ;;  %v4419_v22 = vld [vmem:[%s20628_s13 + $0x9f] sm:$0xff] }
 0x219   : > { %16072 = vmatmul.mubr.bf16.gmra.mrb[28].mxu0 %v4002_v30  ;;  %15619 = vmatprep.mubr.msk.bf16.mxu1 %vm20358_vm0, %v21146_v27  ;;  %v3981_v30 = vld [vmem:[%s20628_s13 + $0xfe] sm:$0xff] }
 0x21a   : > { %16075 = vmatprep.mubr.msk.bf16.mxu0 %vm20358_vm0, %v21146_v27  ;;  %v4008_v31 = vpack.c.bf16 %v3981_v30, %v3980_v29  ;;  %558 = vperm.xlu0 %20059, %v411_v32   ;;  %v4413_v30 = vld [vmem:[%s20628_s13 + $0x6f] sm:$0xff] }
 0x21b   : > { %v4417_v32 = vld [vmem:[%s20628_s13 + $0x8f] sm:$0xff] }
 0x21c   : > { %553 = vperm.xlu1 %20060, %v410_v42  }
 0x21e   : > { %568 = vperm.xlu0 %20059, %v413_v37  }
 0x220   : > { %15620 = vmatmul.mubr.bf16.gmra.mrb[76].mxu1 %v21465_v28  ;;  %563 = vperm.xlu1 %20060, %v412_v1  }
 0x221   : > { %16076 = vmatmul.mubr.bf16.gmra.mrb[32].mxu0 %v4003_v40  ;;  %15623 = vmatprep.mubr.msk.bf16.mxu1 %vm20358_vm0, %v21146_v27  ;;  %v3983_v40 = vld [vmem:[%s20628_s13 + $0x10e] sm:$0xff] }
 0x222   : > { %16079 = vmatprep.mubr.msk.bf16.mxu0 %vm20358_vm0, %v21146_v27  ;;  %v4009_v43 = vpack.c.bf16 %v3983_v40, %v3982_v38  ;;  %578 = vperm.xlu0 %20059, %v415_v44   ;;  %v4420_v38 = vld [vmem:[%s20628_s13 + $0xa7] sm:$0xff]  ;;  %v4421_v40 = vld [vmem:[%s20628_s13 + $0xaf] sm:$0xff]  ;;  %v4422_v44 = vld [vmem:[%s20628_s13 + $0xb7] sm:$0xff] }
 0x223   : > { %v4453_v42 = vpack.c.bf16 %v4421_v40, %v4420_v38  ;;  %v2640_v38 = vld [vmem:[%s20628_s13 + $0x134] sm:$0xff]  ;;  %v2641_v40 = vld [vmem:[%s20628_s13 + $0x13c] sm:$0xff] }
 0x228   : > { %15624 = vmatmul.mubr.bf16.gmra.mrb[80].mxu1 %v1765_v47  ;;  %v417_v47 = vld [vmem:[%s24121_s10 + $0x100] sm:$0xff] }
 0x229   : > { %16080 = vmatmul.mubr.bf16.gmra.mrb[36].mxu0 %v4004_v51  ;;  %15643 = vmatprep.mubr.msk.bf16.mxu1 %vm20358_vm0, %v21146_v27  ;;  %v414_v51 = vld [vmem:[%s24121_s10 + $0xe8] sm:$0xff] }
 0x22a   : > { %16083 = vmatprep.mubr.msk.bf16.mxu0 %vm20358_vm0, %v21146_v27  ;;  %588 = vperm.xlu0 %20059, %v417_v47   ;;  %v2627_v47 = vld [vmem:[%s20628_s13 + $0xcc] sm:$0xff] }
 0x22b   : > { %573 = vperm.xlu1 %20060, %v414_v51  }
 0x22e   : > { %598 = vperm.xlu0 %20059, %v419_v63   ;;  %v20133_v63 = vld [vmem:[%s24115_s4] sm:$0xff]  }
 0x22f   : > { %583 = vperm.xlu1 %20060, %v416_v58   ;;  %v2628_v58 = vld [vmem:[%s20628_s13 + $0xd4] sm:$0xff] }
 0x230   : > { %15644 = vmatmul.mubr.bf16.vlgmr.msra.gmra.mrb[0].mxu1 %v21205_v50  ;;  %v20279_v50 = vld [vmem:[%s24112_s1 + $0x100] sm:$0xff]  }
 0x231   : > { %16084 = vmatmul.mubr.bf16.gmra.mrb[40].mxu0 %v4005_v0  ;;  %15647 = vmatprep.mubr.msk.bf16.mxu1 %vm20358_vm0, %v21146_v27 }
 0x232   : > { %16087 = vmatprep.mubr.msk.bf16.mxu0 %vm20358_vm0, %v21146_v27  ;;  %18035 = vmatpush3.bf16.msra.mxu1 %v20279_v50  ;;  %v422_v50 = vld [vmem:[%s24121_s10 + $0x128] sm:$0xff] }
 0x233   : > { %18028 = vmatprep.subr.bf16.mxu1 %v21146_v27  ;;  %608 = vperm.xlu0 %20059, %v421_v59   ;;  %v2629_v59 = vld [vmem:[%s20628_s13 + $0xdc] sm:$0xff] }
 0x234   : > { %593 = vperm.xlu1 %20060, %v418_v9   ;;  %v20134_v9 = vld [vmem:[%s24115_s4 + $0x8] sm:$0xff]  }
 0x236   : > { %18036 = vmatpush3.bf16.msra.mxu1 %v20280_v13  ;;  %v3991_v13 = vld [vmem:[%s20628_s13 + $0x14e] sm:$0xff] }
 0x237   : > { %18029 = vmatprep.subr.bf16.mxu1 %v21146_v27  ;;  %618 = vperm.xlu0 %20059, %v423_v3   ;;  %v4013_v48 = vpack.c.bf16 %v3991_v13, %v3990_v41  ;;  %v20137_v13 = vld [vmem:[%s24115_s4 + $0x20] sm:$0xff]  }
 0x238   : > { %15648 = vmatmul.mubr.bf16.gmra.mrb[4].mxu1 %v21223_v55  ;;  %v20281_v55 = vld [vmem:[%s24112_s1 + $0x110] sm:$0xff]   ;;  %603 = vperm.xlu1 %20060, %v420_v19  }
 0x239   : > { %16088 = vmatmul.mubr.bf16.gmra.mrb[44].mxu0 %v4006_v33  ;;  %15651 = vmatprep.mubr.msk.bf16.mxu1 %vm20358_vm0, %v21146_v27  ;;  %v424_v33 = vld [vmem:[%s24121_s10 + $0x138] sm:$0xff]  ;;  %v20135_v19 = vld [vmem:[%s24115_s4 + $0x10] sm:$0xff]  }
 0x23a   : > { %16091 = vmatprep.mubr.msk.bf16.mxu0 %vm20358_vm0, %v21146_v27  ;;  %18037 = vmatpush3.bf16.msra.mxu1 %v20281_v55  ;;  %v4405_v55 = vld [vmem:[%s20628_s13 + $0x2f] sm:$0xff] }
 0x23b   : > { %18030 = vmatprep.subr.bf16.mxu1 %v21146_v27  ;;  %628 = vperm.xlu0 %20059, %v425_v6   ;;  %v2630_v6 = vld [vmem:[%s20628_s13 + $0xe4] sm:$0xff] }
 0x23c   : > { %613 = vperm.xlu1 %20060, %v422_v50   ;;  %v4429_v50 = vld [vmem:[%s20628_s13 + $0xef] sm:$0xff] }
 0x23e   : > { %18038 = vmatpush3.bf16.msra.mxu1 %v20282_v60  ;;  %v4409_v60 = vld [vmem:[%s20628_s13 + $0x4f] sm:$0xff] }
 0x23f   : > { %18031 = vmatprep.subr.bf16.mxu1 %v21146_v27 }
 0x240   : > { %15652 = vmatmul.mubr.bf16.gmra.mrb[8].mxu1 %v21241_v62  ;;  %v20283_v62 = vld [vmem:[%s24112_s1 + $0x120] sm:$0xff]   ;;  %623 = vperm.xlu1 %20060, %v424_v33  }
 0x241   : > { %16092 = vmatmul.mubr.bf16.gmra.mrb[48].mxu0 %v4007_v21  ;;  %15655 = vmatprep.mubr.msk.bf16.mxu1 %vm20358_vm0, %v21146_v27  ;;  %v4407_v21 = vld [vmem:[%s20628_s13 + $0x3f] sm:$0xff] }
 0x242   : > { %16095 = vmatprep.mubr.msk.bf16.mxu0 %vm20358_vm0, %v21146_v27  ;;  %18039 = vmatpush3.bf16.msra.mxu1 %v20283_v62 }
 0x243   : > { %18032 = vmatprep.subr.bf16.mxu1 %v21146_v27 }
 0x246   : > { %18040 = vmatpush3.bf16.msra.mxu1 %v20284_v35 }
 0x247   : > { %18033 = vmatprep.subr.bf16.mxu1 %v21146_v27 }
 0x248   : > { %15656 = vmatmul.mubr.bf16.gmra.mrb[12].mxu1 %v21259_v5  ;;  %v20285_v5 = vld [vmem:[%s24112_s1 + $0x130] sm:$0xff]  }
 0x249   : > { %16096 = vmatmul.mubr.bf16.gmra.mrb[52].mxu0 %v4008_v31  ;;  %15659 = vmatprep.mubr.msk.bf16.mxu1 %vm20358_vm0, %v21146_v27 }
 0x24a   : > { %16099 = vmatprep.mubr.msk.bf16.mxu0 %vm20358_vm0, %v21146_v27  ;;  %18041 = vmatpush3.bf16.msra.mxu1 %v20285_v5 }
 0x24b   : > { %18034 = vmatprep.subr.bf16.mxu1 %v21146_v27 }
 0x24e   : > { %18042 = vmatpush3.bf16.msra.mxu1 %v20286_v46  ;;  %v4423_v46 = vld [vmem:[%s20628_s13 + $0xbf] sm:$0xff] }
 0x24f   : > { %16227 = vmatprep.subr.bf16.mxu1 %v21146_v27 }
 0x250   : > { %15660 = vmatmul.mubr.bf16.gmra.mrb[16].mxu1 %v21270_v7  ;;  %v3985_v7 = vld [vmem:[%s20628_s13 + $0x11e] sm:$0xff] }
 0x251   : > { %16100 = vmatmul.mubr.bf16.gmra.mrb[56].mxu0 %v4009_v43  ;;  %15663 = vmatprep.mubr.msk.bf16.mxu1 %vm20358_vm0, %v21146_v27  ;;  %v4010_v52 = vpack.c.bf16 %v3985_v7, %v3984_v54  ;;  %v21765_v43 = vld [vmem:[#allocation2] sm:$0xff]  ;;  %v4425_v7 = vld [vmem:[%s20628_s13 + $0xcf] sm:$0xff] }
 0x252   : > { %16103 = vmatprep.mubr.msk.bf16.mxu0 %vm20358_vm0, %v21146_v27  ;;  %v4424_v54 = vld [vmem:[%s20628_s13 + $0xc7] sm:$0xff] }
 0x258   : > { %15664 = vmatmul.mubr.bf16.gmra.mrb[20].mxu1 %v21280_v11  ;;  %v3987_v11 = vld [vmem:[%s20628_s13 + $0x12e] sm:$0xff] }
 0x259   : > { %16104 = vmatmul.mubr.bf16.gmra.mrb[60].mxu0 %v4010_v52  ;;  %15667 = vmatprep.mubr.msk.bf16.mxu1 %vm20358_vm0, %v21146_v27  ;;  %v4011_v0 = vpack.c.bf16 %v3987_v11, %v3986_v61  ;;  %v4455_v52 = vpack.c.bf16 %v4425_v7, %v4424_v54  ;;  %v4426_v61 = vld [vmem:[%s20628_s13 + $0xd7] sm:$0xff]  ;;  %v4427_v11 = vld [vmem:[%s20628_s13 + $0xdf] sm:$0xff]  ;;  %v2643_v54 = vld [vmem:[%s20628_s13 + $0x14c] sm:$0xff] }
 0x25a   : > { %16107 = vmatprep.mubr.msk.bf16.mxu0 %vm20358_vm0, %v21146_v27  ;;  %v4456_v3 = vpack.c.bf16 %v4427_v11, %v4426_v61  ;;  %v4440_v7 = vld [vmem:[%s20628_s13 + $0x147] sm:$0xff] }
 0x260   : > { %15668 = vmatmul.mubr.bf16.gmra.mrb[24].mxu1 %v21290_v12  ;;  %v3989_v12 = vld [vmem:[%s20628_s13 + $0x13e] sm:$0xff] }
 0x261   : > { %16108 = vmatmul.mubr.bf16.gmra.mrb[64].mxu0 %v4011_v0  ;;  %15671 = vmatprep.mubr.msk.bf16.mxu1 %vm20358_vm0, %v21146_v27  ;;  %v4012_v8 = vpack.c.bf16 %v3989_v12, %v3988_v26  ;;  %v2657_v0 = vpack.c.bf16 %v2629_v59, %v2628_v58  ;;  %v2631_v26 = vld [vmem:[%s20628_s13 + $0xec] sm:$0xff] }
 0x262   : > { %16111 = vmatprep.mubr.msk.bf16.mxu0 %vm20358_vm0, %v21146_v27  ;;  %v4428_v12 = vld [vmem:[%s20628_s13 + $0xe7] sm:$0xff]  ;;  %v2658_v33 = vpack.c.bf16 %v2631_v26, %v2630_v6 }
 0x263   : > { %v4457_v41 = vpack.c.bf16 %v4429_v50, %v4428_v12 }
 0x268   : > { %15672 = vmatmul.mubr.bf16.gmra.mrb[28].mxu1 %v21300_v14  ;;  %v3992_v14 = vld [vmem:[%s20628_s13 + $0x156] sm:$0xff] }
 0x269   : > { %16112 = vmatmul.mubr.bf16.gmra.mrb[68].mxu0 %v4012_v8  ;;  %15675 = vmatprep.mubr.msk.bf16.mxu1 %vm20358_vm0, %v21146_v27  ;;  %v4014_v57 = vpack.c.bf16 %v3993_v15, %v3992_v14  ;;  %v20136_v8 = vld [vmem:[%s24115_s4 + $0x18] sm:$0xff]  }
 0x26a   : > { %16115 = vmatprep.mubr.msk.bf16.mxu0 %vm20358_vm0, %v21146_v27  ;;  %v2633_v14 = vld [vmem:[%s20628_s13 + $0xfc] sm:$0xff] }
 0x26b   : > { %v4430_v15 = vld [vmem:[%s20628_s13 + $0xf7] sm:$0xff] }
 0x270   : > { %15676 = vmatmul.mubr.bf16.gmra.mrb[32].mxu1 %v21311_v17  ;;  %v3994_v17 = vld [vmem:[%s20628_s13 + $0x166] sm:$0xff] }
 0x271   : > { %16116 = vmatmul.mubr.bf16.gmra.mrb[72].mxu0 %v4013_v48  ;;  %15679 = vmatprep.mubr.msk.bf16.mxu1 %vm20358_vm0, %v21146_v27  ;;  %v4015_v56 = vpack.c.bf16 %v3994_v17, %v3994_v17  ;;  %v2632_v48 = vld [vmem:[%s20628_s13 + $0xf4] sm:$0xff]  ;;  %v20138_v17 = vld [vmem:[%s24115_s4 + $0x28] sm:$0xff]  }
 0x272   : > { %16119 = vmatprep.mubr.msk.bf16.mxu0 %vm20358_vm0, %v21146_v27 }
 0x278   : > { %15680 = vmatmul.mubr.bf16.gmra.mrb[36].mxu1 %v21322_v2  ;;  %v4404_v2 = vld [vmem:[%s20628_s13 + $0x27] sm:$0xff] }
 0x279   : > { %16120 = vmatmul.mubr.bf16.gmra.mrb[76].mxu0 %v4014_v57  ;;  %15683 = vmatprep.mubr.msk.bf16.mxu1 %vm20358_vm0, %v21146_v27  ;;  %v4445_v20 = vpack.c.bf16 %v4405_v55, %v4404_v2  ;;  %v4431_v57 = vld [vmem:[%s20628_s13 + $0xff] sm:$0xff]  ;;  %v20139_v55 = vld [vmem:[%s24115_s4 + $0x30] sm:$0xff]  }
 0x27a   : > { %16123 = vmatprep.mubr.msk.bf16.mxu0 %vm20358_vm0, %v21146_v27  ;;  %v4458_v2 = vpack.c.bf16 %v4431_v57, %v4430_v15 }
 0x280   : > { %15684 = vmatmul.mubr.bf16.gmra.mrb[40].mxu1 %v21333_v45  ;;  %v4406_v45 = vld [vmem:[%s20628_s13 + $0x37] sm:$0xff] }
 0x281   : > { %16124 = vmatmul.mubr.bf16.gmra.mrb[80].mxu0 %v4015_v56  ;;  %15687 = vmatprep.mubr.msk.bf16.mxu1 %vm20358_vm0, %v21146_v27  ;;  %v4446_v23 = vpack.c.bf16 %v4407_v21, %v4406_v45  ;;  %v2659_v56 = vpack.c.bf16 %v2633_v14, %v2632_v48  ;;  %v2635_v45 = vld [vmem:[%s20628_s13 + $0x10c] sm:$0xff] }
 0x282   : > { %16143 = vmatprep.mubr.msk.bf16.mxu0 %vm20358_vm0, %v21146_v27  ;;  %v4432_v21 = vld [vmem:[%s20628_s13 + $0x107] sm:$0xff] }
 0x288   : > { %15688 = vmatmul.mubr.bf16.gmra.mrb[44].mxu1 %v21351_v36  ;;  %v4408_v36 = vld [vmem:[%s20628_s13 + $0x47] sm:$0xff] }
 0x289   : > { %16144 = vmatmul.mubr.bf16.vlgmr.msra.gmra.mrb[0].mxu0 %v4445_v20  ;;  %15691 = vmatprep.mubr.msk.bf16.mxu1 %vm20358_vm0, %v21146_v27  ;;  %v4447_v24 = vpack.c.bf16 %v4409_v60, %v4408_v36  ;;  %v2634_v20 = vld [vmem:[%s20628_s13 + $0x104] sm:$0xff]  ;;  %v20140_v36 = vld [vmem:[%s24115_s4 + $0x38] sm:$0xff]  }
 0x28a   : > { %16147 = vmatprep.mubr.msk.bf16.mxu0 %vm20358_vm0, %v21146_v27  ;;  %v2660_v60 = vpack.c.bf16 %v2635_v45, %v2634_v20 }
 0x290   : > { %15692 = vmatmul.mubr.bf16.gmra.mrb[48].mxu1 %v21370_v39  ;;  %v4410_v39 = vld [vmem:[%s20628_s13 + $0x57] sm:$0xff] }
 0x291   : > { %16148 = vmatmul.mubr.bf16.gmra.mrb[4].mxu0 %v4446_v23  ;;  %15695 = vmatprep.mubr.msk.bf16.mxu1 %vm20358_vm0, %v21146_v27  ;;  %v4448_v29 = vpack.c.bf16 %v4411_v25, %v4410_v39  ;;  %v4433_v23 = vld [vmem:[%s20628_s13 + $0x10f] sm:$0xff]  ;;  %v2637_v25 = vld [vmem:[%s20628_s13 + $0x11c] sm:$0xff] }
 0x292   : > { %16151 = vmatprep.mubr.msk.bf16.mxu0 %vm20358_vm0, %v21146_v27  ;;  %v2636_v39 = vld [vmem:[%s20628_s13 + $0x114] sm:$0xff] }
 0x298   : > { %15696 = vmatmul.mubr.bf16.gmra.mrb[52].mxu1 %v21389_v53  ;;  %v4412_v53 = vld [vmem:[%s20628_s13 + $0x67] sm:$0xff] }
 0x299   : > { %16152 = vmatmul.mubr.bf16.gmra.mrb[8].mxu0 %v4447_v24  ;;  %15699 = vmatprep.mubr.msk.bf16.mxu1 %vm20358_vm0, %v21146_v27  ;;  %v4449_v62 = vpack.c.bf16 %v4413_v30, %v4412_v53  ;;  %v4459_v24 = vpack.c.bf16 %v4433_v23, %v4432_v21  ;;  %v4435_v53 = vld [vmem:[%s20628_s13 + $0x11f] sm:$0xff]  ;;  %v2661_v30 = vpack.c.bf16 %v2637_v25, %v2636_v39  ;;  %v20143_v23 = vld [vmem:[%s24115_s4 + $0x50] sm:$0xff]  }
 0x29a   : > { %16155 = vmatprep.mubr.msk.bf16.mxu0 %vm20358_vm0, %v21146_v27 }
 0x2a0   : > { %15700 = vmatmul.mubr.bf16.gmra.mrb[56].mxu1 %v21408_v4  ;;  %v4414_v4 = vld [vmem:[%s20628_s13 + $0x77] sm:$0xff] }
 0x2a1   : > { %16156 = vmatmul.mubr.bf16.gmra.mrb[12].mxu0 %v4448_v29  ;;  %15703 = vmatprep.mubr.msk.bf16.mxu1 %vm20358_vm0, %v21146_v27  ;;  %v4450_v31 = vpack.c.bf16 %v4415_v16, %v4414_v4  ;;  %v4434_v29 = vld [vmem:[%s20628_s13 + $0x117] sm:$0xff]  ;;  %v2638_v4 = vld [vmem:[%s20628_s13 + $0x124] sm:$0xff]  ;;  %v2639_v16 = vld [vmem:[%s20628_s13 + $0x12c] sm:$0xff] }
 0x2a2   : > { %16159 = vmatprep.mubr.msk.bf16.mxu0 %vm20358_vm0, %v21146_v27 }
 0x2a8   : > { %15704 = vmatmul.mubr.bf16.gmra.mrb[60].mxu1 %v21420_v49  ;;  %v4416_v49 = vld [vmem:[%s20628_s13 + $0x87] sm:$0xff] }
 0x2a9   : > { %16160 = vmatmul.mubr.bf16.gmra.mrb[16].mxu0 %v4449_v62  ;;  %15707 = vmatprep.mubr.msk.bf16.mxu1 %vm20358_vm0, %v21146_v27  ;;  %v4451_v35 = vpack.c.bf16 %v4417_v32, %v4416_v49  ;;  %v4460_v62 = vpack.c.bf16 %v4435_v53, %v4434_v29  ;;  %v4437_v49 = vld [vmem:[%s20628_s13 + $0x12f] sm:$0xff] }
 0x2aa   : > { %16163 = vmatprep.mubr.msk.bf16.mxu0 %vm20358_vm0, %v21146_v27 }
 0x2b0   : > { %15708 = vmatmul.mubr.bf16.gmra.mrb[64].mxu1 %v21431_v18  ;;  %v4418_v18 = vld [vmem:[%s20628_s13 + $0x97] sm:$0xff] }
 0x2b1   : > { %16164 = vmatmul.mubr.bf16.gmra.mrb[20].mxu0 %v4450_v31  ;;  %15711 = vmatprep.mubr.msk.bf16.mxu1 %vm20358_vm0, %v21146_v27  ;;  %v4452_v37 = vpack.c.bf16 %v4419_v22, %v4418_v18  ;;  %v4436_v31 = vld [vmem:[%s20628_s13 + $0x127] sm:$0xff]  ;;  %v2662_v18 = vpack.c.bf16 %v2639_v16, %v2638_v4 }
 0x2b2   : > { %16167 = vmatprep.mubr.msk.bf16.mxu0 %vm20358_vm0, %v21146_v27 }
 0x2b8   : > { %15712 = vmatmul.mubr.bf16.gmra.mrb[68].mxu1 %v21445_v10  ;;  %v2193_v10 = vld [vmem:[%s20628_s13 + $0x14b] sm:$0xff] }
 0x2b9   : > { %16168 = vmatmul.mubr.bf16.gmra.mrb[24].mxu0 %v4451_v35  ;;  %15715 = vmatprep.mubr.msk.bf16.mxu1 %vm20358_vm0, %v21146_v27  ;;  %v2214_v5 = vpack.c.bf16 %v2193_v10, %v21474_v34  ;;  %v4454_v34 = vpack.c.bf16 %v4423_v46, %v4422_v44  ;;  %v2663_v46 = vpack.c.bf16 %v2641_v40, %v2640_v38 }
 0x2ba   : > { %16171 = vmatprep.mubr.msk.bf16.mxu0 %vm20358_vm0, %v21146_v27 }
 0x2c0   : > { %15716 = vmatmul.mubr.bf16.gmra.mrb[72].mxu1 %v21465_v28  ;;  %v2194_v28 = vld [vmem:[%s20628_s13 + $0x153] sm:$0xff] }
 0x2c1   : > { %16172 = vmatmul.mubr.bf16.gmra.mrb[28].mxu0 %v4452_v37  ;;  %15719 = vmatprep.mubr.msk.bf16.mxu1 %vm20358_vm0, %v21146_v27  ;;  %v2215_v1 = vpack.c.bf16 %v2194_v28, %v2194_v28  ;;  %v4461_v37 = vpack.c.bf16 %v4437_v49, %v4436_v31 }
 0x2c2   : > { %16175 = vmatprep.mubr.msk.bf16.mxu0 %vm20358_vm0, %v21146_v27 }
 0x2c8   : > { %15720 = vmatmul.mubr.bf16.gmra.mrb[76].mxu1 %v2214_v5  ;;  %v4438_v5 = vld [vmem:[%s20628_s13 + $0x137] sm:$0xff] }
 0x2c9   : > { %16176 = vmatmul.mubr.bf16.gmra.mrb[32].mxu0 %v4453_v42  ;;  %15723 = vmatprep.mubr.msk.bf16.mxu1 %vm20358_vm0, %v21146_v27  ;;  %v2626_v27 = vld [vmem:[%s20628_s13 + $0xc4] sm:$0xff] }
 0x2ca   : > { %16179 = vmatprep.mubr.msk.bf16.mxu0 %vm20358_vm0, %v21765_v43  ;;  %v2656_v51 = vpack.c.bf16 %v2627_v47, %v2626_v27  ;;  %v4439_v42 = vld [vmem:[%s20628_s13 + $0x13f] sm:$0xff] }
 0x2cb   : > { %v2642_v47 = vld [vmem:[%s20628_s13 + $0x144] sm:$0xff] }
 0x2cc   : > { %v2664_v58 = vpack.c.bf16 %v2643_v54, %v2642_v47 }
 0x2d0   : > { %15724 = vmatmul.mubr.bf16.gmra.mrb[80].mxu1 %v2215_v1 }
 0x2d1   : > { %16180 = vmatmul.mubr.bf16.gmra.mrb[36].mxu0 %v4454_v34  ;;  %15787 = vmatprep.mubr.msk.bf16.mxu1 %vm20358_vm0, %v21765_v43  ;;  %v4462_v34 = vpack.c.bf16 %v4439_v42, %v4438_v5 }
 0x2d2   : > { %16183 = vmatprep.mubr.msk.bf16.mxu0 %vm20358_vm0, %v21765_v43 }
 0x2d8   : > { %15788 = vmatmul.mubr.bf16.vlgmr.msra.gmra.mrb[44].mxu1 %v2656_v51  ;;  %v4441_v51 = vld [vmem:[%s20628_s13 + $0x14f] sm:$0xff] }
 0x2d9   : > { %16184 = vmatmul.mubr.bf16.gmra.mrb[40].mxu0 %v4455_v52  ;;  %15791 = vmatprep.mubr.msk.bf16.mxu1 %vm20358_vm0, %v21765_v43  ;;  %v4463_v61 = vpack.c.bf16 %v4441_v51, %v4440_v7  ;;  %v21964_v7 = vld [vmem:[%s24114_s3] ss:$0 sm:$0xff] }
 0x2da   : > { %16187 = vmatprep.mubr.msk.bf16.mxu0 %vm20358_vm0, %v21765_v43  ;;  %16228 = vmatpush3.bf16.msra.mxu1 %v20133_v63 }
 0x2db   : > { %16229 = vmatprep.subr.bf16.mxu1 %v21765_v43 }
 0x2de   : > { %16230 = vmatpush3.bf16.msra.mxu1 %v20134_v9  ;;  %v2644_v9 = vld [vmem:[%s20628_s13 + $0x154] sm:$0xff] }
 0x2df   : > { %16231 = vmatprep.subr.bf16.mxu1 %v21765_v43  ;;  %v2665_v26 = vpack.c.bf16 %v2644_v9, %v2644_v9  ;;  %v21971_v9 = vpop.permute.xlu0 %428 }
 0x2e0   : > { %15792 = vmatmul.mubr.bf16.gmra.mrb[48].mxu1 %v2657_v0  ;;  %v4442_v0 = vld [vmem:[%s20628_s13 + $0x157] sm:$0xff] }
 0x2e1   : > { %16188 = vmatmul.mubr.bf16.gmra.mrb[44].mxu0 %v4456_v3  ;;  %15795 = vmatprep.mubr.msk.bf16.mxu1 %vm20358_vm0, %v21765_v43  ;;  %v4443_v3 = vld [vmem:[%s20628_s13 + $0x15f] sm:$0xff] }
 0x2e2   : > { %16191 = vmatprep.mubr.msk.bf16.mxu0 %vm20358_vm0, %v21765_v43  ;;  %16232 = vmatpush3.bf16.msra.mxu1 %v20135_v19  ;;  %v4464_v50 = vpack.c.bf16 %v4443_v3, %v4442_v0 }
 0x2e3   : > { %16233 = vmatprep.subr.bf16.mxu1 %v21765_v43 }
 0x2e6   : > { %16234 = vmatpush3.bf16.msra.mxu1 %v20136_v8 }
 0x2e7   : > { %16235 = vmatprep.subr.bf16.mxu1 %v21765_v43 }
 0x2e8   : > { %15796 = vmatmul.mubr.bf16.gmra.mrb[52].mxu1 %v2658_v33  ;;  %v5155_v33 = vld [vmem:[#allocation2 + $0x1] sm:$0xff] }
 0x2e9   : > { %16192 = vmatmul.mubr.bf16.gmra.mrb[48].mxu0 %v4457_v41  ;;  %15799 = vmatprep.mubr.msk.bf16.mxu1 %vm20358_vm0, %v21765_v43  ;;  %v5156_v41 = vld [vmem:[#allocation2 + $0x9] sm:$0xff] }
 0x2ea   : > { %16195 = vmatprep.mubr.msk.bf16.mxu0 %vm20358_vm0, %v21765_v43  ;;  %16236 = vmatpush3.bf16.msra.mxu1 %v20137_v13  ;;  %v4444_v13 = vld [vmem:[%s20628_s13 + $0x167] sm:$0xff]  ;;  %v5196_v15 = vpack.c.bf16 %v5156_v41, %v5155_v33  ;;  %v21979_v41 = vpop.permute.xlu0 %433  ;;  %s377_s13 = sand.u32 1, %s20347_s18  }
 0x2eb   : > { %16237 = vmatprep.subr.bf16.mxu1 %v21765_v43  ;;  %s378_s14 = scalar_lea.vmem [#allocation5], %s377_s13  ;;  %s13863_s25 = scalar_lea.sflag [#allocation6], %s377_s13 }
 0x2ec   : > { %s13875_s16 = sshll.u32 %s378_s14, 4  ;;  %s24071_s16 = int_to_ptr.vmem [resolvable:$true] %s13875_s16 }
 0x2ed   : > { %s20293_s30 = scalar_lea.vmem %s24071_s16, 16  ;;  %p20300_p0 = scmp.lt.s32.totalorder %s24071_s16, %s20298_s12 }
 0x2ee   : > { %16238 = vmatpush3.bf16.msra.mxu1 %v20138_v17  ;;  %v4465_v17 = vpack.c.bf16 %v4444_v13, %v4444_v13  ;;  %p20294_p11 = scmp.ne.s32.totalorder %s24071_s16, %s20293_s30  ;;  %p20301_p1 = scmp.lt.s32.totalorder %s20299_s0, %s20293_s30 }
 0x2ef   : > { %16239 = vmatprep.subr.bf16.mxu1 %v21765_v43 }
 0x2f0   : > { %15800 = vmatmul.mubr.bf16.gmra.mrb[56].mxu1 %v2659_v56  ;;  %v20141_v56 = vld [vmem:[%s24115_s4 + $0x40] sm:$0xff]   ;;  %p20295_p12 = pnand %p20294_p11, %p20459_p5  ;;  %p20302_p2 = por %p20301_p1, %p20300_p0 }
 0x2f1   : > { %16196 = vmatmul.mubr.bf16.gmra.mrb[52].mxu0 %v4458_v2  ;;  %15803 = vmatprep.mubr.msk.bf16.mxu1 %vm20358_vm0, %v21765_v43 }
 0x2f2   : > { %16199 = vmatprep.mubr.msk.bf16.mxu0 %vm20358_vm0, %v21765_v43  ;;  %16240 = vmatpush3.bf16.msra.mxu1 %v20139_v55  ;;  %v20142_v55 = vld [vmem:[%s24115_s4 + $0x48] sm:$0xff]   ;;  %p20296_p13 = pneg %p20295_p12 }
 0x2f3   : > { %16241 = vmatprep.subr.bf16.mxu1 %v21765_v43 }
 0x2f4   : > { %p20303_p3 = pnand %p20302_p2, %p20296_p13 }
 0x2f6   : > { %16242 = vmatpush3.bf16.msra.mxu1 %v20140_v36 }
 0x2f7   : > { %16327 = vmatprep.subr.bf16.mxu1 %v21765_v43 }
 0x2f8   : > { %15804 = vmatmul.mubr.bf16.gmra.mrb[60].mxu1 %v2660_v60  ;;  %v20144_v60 = vld [vmem:[%s24115_s4 + $0x58] sm:$0xff]  }
 0x2f9   : > { %16200 = vmatmul.mubr.bf16.gmra.mrb[56].mxu0 %v4459_v24  ;;  %15807 = vmatprep.mubr.msk.bf16.mxu1 %vm20358_vm0, %v21765_v43 }
 0x2fa   : > { %16203 = vmatprep.mubr.msk.bf16.mxu0 %vm20358_vm0, %v21765_v43 }
 0x300   : > { %15808 = vmatmul.mubr.bf16.gmra.mrb[64].mxu1 %v2661_v30 }
 0x301   : > { %16204 = vmatmul.mubr.bf16.gmra.mrb[60].mxu0 %v4460_v62  ;;  %15811 = vmatprep.mubr.msk.bf16.mxu1 %vm20358_vm0, %v21765_v43 }
 0x302   : > { %16207 = vmatprep.mubr.msk.bf16.mxu0 %vm20358_vm0, %v21765_v43 }
 0x303   : > { %v21859_v32 = vpop.f32.mrb[0].mxu1 }
 0x304   : > { %v15645_v35 = vpop.f32.mrb[1].mxu1 }
 0x305   : > { %v21861_v22 = vpop.f32.mrb[2].mxu1 }
 0x306   : > { %v15646_v10 = vpop.f32.mrb[3].mxu1 }
 0x308   : > { %15812 = vmatmul.mubr.bf16.gmra.mrb[68].mxu1 %v2662_v18  ;;  %v20145_v18 = vld [vmem:[%s24115_s4 + $0x60] sm:$0xff]  }
 0x309   : > { %16208 = vmatmul.mubr.bf16.gmra.mrb[64].mxu0 %v4461_v37  ;;  %15815 = vmatprep.mubr.msk.bf16.mxu1 %vm20358_vm0, %v21765_v43 }
 0x30a   : > { %16211 = vmatprep.mubr.msk.bf16.mxu0 %vm20358_vm0, %v21765_v43 }
 0x30b   : > { %v21871_v28 = vpop.f32.mrb[4].mxu1 }
 0x30c   : > { %v15649_v44 = vpop.f32.mrb[5].mxu1 }
 0x30d   : > { %v21873_v1 = vpop.f32.mrb[6].mxu1 }
 0x30e   : > { %v15650_v27 = vpop.f32.mrb[7].mxu1 }
 0x30f   : > { %v21958_v27 = vld [vmem:[%s24113_s2] ss:$0 sm:$0xff] }
 0x310   : > { %15816 = vmatmul.mubr.bf16.gmra.mrb[72].mxu1 %v2663_v46 }
 0x311   : > { %16212 = vmatmul.mubr.bf16.gmra.mrb[68].mxu0 %v4462_v34  ;;  %15819 = vmatprep.mubr.msk.bf16.mxu1 %vm20358_vm0, %v21765_v43 }
 0x312   : > { %16215 = vmatprep.mubr.msk.bf16.mxu0 %vm20358_vm0, %v21765_v43 }
 0x313   : > { %v21883_v52 = vpop.f32.mrb[8].mxu1 }
 0x314   : > { %v15653_v63 = vpop.f32.mrb[9].mxu1 }
 0x315   : > { %v21885_v59 = vpop.f32.mrb[10].mxu1 }
 0x316   : > { %v15654_v11 = vpop.f32.mrb[11].mxu1 }
 0x317   : > { %v20146_v11 = vld [vmem:[%s24115_s4 + $0x68] sm:$0xff]  }
 0x318   : > { %15820 = vmatmul.mubr.bf16.gmra.mrb[76].mxu1 %v2664_v58 }
 0x319   : > { %16216 = vmatmul.mubr.bf16.gmra.mrb[72].mxu0 %v4463_v61  ;;  %15823 = vmatprep.mubr.msk.bf16.mxu1 %vm20358_vm0, %v21765_v43 }
 0x31a   : > { %16219 = vmatprep.mubr.msk.bf16.mxu0 %vm20358_vm0, %v21765_v43 }
 0x31b   : > { %v21894_v19 = vpop.f32.mrb[12].mxu1 }
 0x31c   : > { %v15657_v6 = vpop.f32.mrb[13].mxu1 }
 0x31d   : > { %v21896_v12 = vpop.f32.mrb[14].mxu1 }
 0x31e   : > { %v15658_v8 = vpop.f32.mrb[15].mxu1 }
 0x320   : > { %15824 = vmatmul.mubr.bf16.gmra.mrb[80].mxu1 %v2665_v26 }
 0x321   : > { %16220 = vmatmul.mubr.bf16.gmra.mrb[76].mxu0 %v4464_v50  ;;  %16243 = vmatprep.mubr.msk.bf16.mxu1 %vm20358_vm0, %v21765_v43 }
 0x322   : > { %16223 = vmatprep.mubr.msk.bf16.mxu0 %vm20358_vm0, %v21765_v43 }
 0x323   : > { %v21903_v48 = vpop.f32.mrb[16].mxu1 }
 0x324   : > { %v15661_v14 = vpop.f32.mrb[17].mxu1 }
 0x325   : > { %v21905_v57 = vpop.f32.mrb[18].mxu1 }
 0x326   : > { %v15662_v2 = vpop.f32.mrb[19].mxu1 }
 0x327   : > { %v21984_v2 = vpop.permute.xlu1 %438 }
 0x328   : > { %16244 = vmatmul.mubr.bf16.vlgmr.msra.gmra.mrb[84].mxu1 %v5196_v15 }
 0x329   : > { %16224 = vmatmul.mubr.bf16.gmra.mrb[80].mxu0 %v4465_v17  ;;  %16328 = vmatpush3.bf16.msra.mxu1 %v20141_v56 }
 0x32a   : > { %16247 = vmatprep.mubr.msk.bf16.mxu1 %vm20358_vm0, %v21765_v43  ;;  %16329 = vmatprep.subr.bf16.mxu1 %v21765_v43 }
 0x32b   : > { %v21916_v20 = vpop.f32.mrb[20].mxu1  ;;  %17143 = vmatprep.mubr.msk.bf16.mxu0 %vm20358_vm0, %v21765_v43 }
 0x32c   : > { %v15665_v45 = vpop.f32.mrb[21].mxu1 }
 0x32d   : > { %v21920_v21 = vpop.f32.mrb[22].mxu1  ;;  %16330 = vmatpush3.bf16.msra.mxu1 %v20142_v55 }
 0x32e   : > { %v15666_v36 = vpop.f32.mrb[23].mxu1  ;;  %16331 = vmatprep.subr.bf16.mxu1 %v21765_v43 }
 0x331   : > { %16332 = vmatpush3.bf16.msra.mxu1 %v20143_v23 }
 0x332   : > { %16333 = vmatprep.subr.bf16.mxu1 %v21765_v43 }
 0x333   : > { %v21930_v24 = vpop.f32.mrb[24].mxu1 }
 0x334   : > { %v15669_v39 = vpop.f32.mrb[25].mxu1 }
 0x335   : > { %v21932_v25 = vpop.f32.mrb[26].mxu1  ;;  %16334 = vmatpush3.bf16.msra.mxu1 %v20144_v60 }
 0x336   : > { %v15670_v29 = vpop.f32.mrb[27].mxu1  ;;  %16335 = vmatprep.subr.bf16.mxu1 %v21765_v43 }
 0x339   : > { %16336 = vmatpush3.bf16.msra.mxu1 %v20145_v18 }
 0x33a   : > { %16337 = vmatprep.subr.bf16.mxu1 %v21765_v43 }
 0x33b   : > { %v21935_v53 = vpop.f32.mrb[28].mxu1 }
 0x33c   : > { %v15673_v30 = vpop.f32.mrb[29].mxu1 }
 0x33d   : > { %v21937_v62 = vpop.f32.mrb[30].mxu1  ;;  %16338 = vmatpush3.bf16.msra.mxu1 %v20146_v11 }
 0x33e   : > { %v15674_v4 = vpop.f32.mrb[31].mxu1  ;;  %16339 = vmatprep.subr.bf16.mxu1 %v21765_v43 }
 0x33f   : > { %v21991_v4 = vpop.permute.xlu1 %443 }
 0x343   : > { %v21939_v16 = vpop.f32.mrb[32].mxu1 }
 0x344   : > { %v15677_v31 = vpop.f32.mrb[33].mxu1 }
 0x345   : > { %v21941_v49 = vpop.f32.mrb[34].mxu1 }
 0x346   : > { %v15678_v35 = vpop.f32.mrb[35].mxu1 }
 0x34b   : > { %v21946_v37 = vpop.f32.mrb[36].mxu1 }
 0x34c   : > { %v15681_v10 = vpop.f32.mrb[37].mxu1 }
 0x34d   : > { %v21949_v38 = vpop.f32.mrb[38].mxu1 }
 0x34e   : > { %v15682_v40 = vpop.f32.mrb[39].mxu1 }
 0x353   : > { %v21951_v5 = vpop.f32.mrb[40].mxu1 }
 0x354   : > { %v15685_v42 = vpop.f32.mrb[41].mxu1 }
 0x355   : > { %v21953_v44 = vpop.f32.mrb[42].mxu1 }
 0x356   : > { %v15686_v46 = vpop.f32.mrb[43].mxu1 }
 0x35c   : > { %v4565_v34 = vpop.f32.mrb[0].mxu0 }
 0x35d   : > { %v18043_v47 = vadd.f32 %v4565_v34, %v21859_v32  ;;  %v16145_v54 = vpop.f32.mrb[1].mxu0 }
 0x35e   : > { %v4568_v51 = vpop.f32.mrb[2].mxu0 }
 0x35f   : > { %v4861_v63 = vmul.f32 %v18043_v47, %v21958_v27  ;;  %v18044_v58 = vadd.f32 %v4568_v51, %v21861_v22  ;;  %v16146_v61 = vpop.f32.mrb[3].mxu0  ;;  %v20147_v47 = vld [vmem:[%s24115_s4 + $0x70] sm:$0xff]  }
 0x360   : > { %16340 = vmatpush3.bf16.msra.mxu1 %v20147_v47 }
 0x361   : > { %v4909_v32 = vadd.f32 %v21964_v7, %v4861_v63  ;;  %v4862_v0 = vmul.f32 %v18044_v58, %v21958_v27  ;;  %v22002_v63 = vpop.permute.xlu0 %448  ;;  %16341 = vmatprep.subr.bf16.mxu1 %v21765_v43 }
 0x363   : > { %v4950_v3 = vmax.f32 %v4909_v32, 0.0  ;;  %v4910_v6 = vadd.f32 %v21964_v7, %v4862_v0  ;;  %v22009_v0 = vpop.permute.xlu1 %453 }
 0x364   : > { %v4573_v26 = vpop.f32.mrb[4].mxu0 }
 0x365   : > { %v4991_v22 = vmul.f32 %v4950_v3, %v21971_v9  ;;  %v4951_v50 = vmax.f32 %v4910_v6, 0.0  ;;  %v18045_v8 = vadd.f32 %v4573_v26, %v21871_v28  ;;  %v16149_v33 = vpop.f32.mrb[5].mxu0 }
 0x366   : > { %v4576_v13 = vpop.f32.mrb[6].mxu0 }
 0x367   : > { %5032 = vst [vmem:[#allocation2 + $0x14] sm:$0xff] %v4991_v22  ;;  %v4992_v14 = vmul.f32 %v4951_v50, %v21979_v41  ;;  %v4863_v15 = vmul.f32 %v18045_v8, %v21958_v27  ;;  %v18046_v17 = vadd.f32 %v4576_v13, %v21873_v1  ;;  %v16150_v56 = vpop.f32.mrb[7].mxu0 }
 0x368   : > { %v22017_v56 = vpop.permute.xlu0 %458 }
 0x369   : > { %5033 = vst [vmem:[#allocation2 + $0x1c] sm:$0xff] %v4992_v14  ;;  %v4911_v55 = vadd.f32 %v21964_v7, %v4863_v15  ;;  %v4864_v45 = vmul.f32 %v18046_v17, %v21958_v27 }
 0x36b   : > { %v4952_v28 = vmax.f32 %v4911_v55, 0.0  ;;  %v4912_v23 = vadd.f32 %v21964_v7, %v4864_v45 }
 0x36c   : > { %v4581_v36 = vpop.f32.mrb[8].mxu0 }
 0x36d   : > { %v4993_v60 = vmul.f32 %v4952_v28, %v21984_v2  ;;  %v4953_v39 = vmax.f32 %v4912_v23, 0.0  ;;  %v18047_v29 = vadd.f32 %v4581_v36, %v21883_v52  ;;  %v16153_v30 = vpop.f32.mrb[9].mxu0  ;;  %v22023_v36 = vpop.permute.xlu1 %463 }
 0x36e   : > { %v4584_v1 = vpop.f32.mrb[10].mxu0  ;;  %v5157_v40 = vld [vmem:[#allocation2 + $0x11] sm:$0xff] }
 0x36f   : > { %5034 = vst [vmem:[#allocation2 + $0x24] sm:$0xff] %v4993_v60  ;;  %v4994_v31 = vmul.f32 %v4953_v39, %v21991_v4  ;;  %v4865_v35 = vmul.f32 %v18047_v29, %v21958_v27  ;;  %v18048_v18 = vadd.f32 %v4584_v1, %v21885_v59  ;;  %v16154_v10 = vpop.f32.mrb[11].mxu0 }
 0x370   : > { %v5158_v42 = vld [vmem:[#allocation2 + $0x19] sm:$0xff] }
 0x371   : > { %5035 = vst [vmem:[#allocation2 + $0x2c] sm:$0xff] %v4994_v31  ;;  %v4913_v46 = vadd.f32 %v21964_v7, %v4865_v35  ;;  %v4866_v34 = vmul.f32 %v18048_v18, %v21958_v27  ;;  %v5197_v52 = vpack.c.bf16 %v5158_v42, %v5157_v40 }
 0x373   : > { %v4954_v54 = vmax.f32 %v4913_v46, 0.0  ;;  %v4914_v51 = vadd.f32 %v21964_v7, %v4866_v34  ;;  %16248 = vmatmul.mubr.bf16.gmra.mrb[88].mxu1 %v5197_v52  ;;  %v22031_v46 = vpop.permute.xlu0 %468 }
 0x374   : > { %v4589_v59 = vpop.f32.mrb[12].mxu0  ;;  %16251 = vmatprep.mubr.msk.bf16.mxu1 %vm20358_vm0, %v21765_v43 }
 0x375   : > { %v4995_v58 = vmul.f32 %v4954_v54, %v22002_v63  ;;  %v4955_v61 = vmax.f32 %v4914_v51, 0.0  ;;  %v18049_v11 = vadd.f32 %v4589_v59, %v21894_v19  ;;  %v16157_v32 = vpop.f32.mrb[13].mxu0  ;;  %v22037_v51 = vpop.permute.xlu1 %473 }
 0x376   : > { %v4592_v3 = vpop.f32.mrb[14].mxu0  ;;  %v5159_v8 = vld [vmem:[#allocation2 + $0x21] sm:$0xff] }
 0x377   : > { %5036 = vst [vmem:[#allocation2 + $0x34] sm:$0xff] %v4995_v58  ;;  %v4996_v6 = vmul.f32 %v4955_v61, %v22009_v0  ;;  %v4867_v26 = vmul.f32 %v18049_v11, %v21958_v27  ;;  %v18050_v22 = vadd.f32 %v4592_v3, %v21896_v12  ;;  %v16158_v50 = vpop.f32.mrb[15].mxu0  ;;  %v20148_v3 = vld [vmem:[%s24115_s4 + $0x78] sm:$0xff]  }
 0x378   : > { %v5160_v33 = vld [vmem:[#allocation2 + $0x29] sm:$0xff]  ;;  %16342 = vmatpush3.bf16.msra.mxu1 %v20148_v3 }
 0x379   : > { %5037 = vst [vmem:[#allocation2 + $0x3c] sm:$0xff] %v4996_v6  ;;  %v4915_v13 = vadd.f32 %v21964_v7, %v4867_v26  ;;  %v4868_v19 = vmul.f32 %v18050_v22, %v21958_v27  ;;  %v5198_v14 = vpack.c.bf16 %v5160_v33, %v5159_v8  ;;  %16427 = vmatprep.subr.bf16.mxu1 %v21765_v43 }
 0x37b   : > { %v4956_v15 = vmax.f32 %v4915_v13, 0.0  ;;  %v4916_v17 = vadd.f32 %v21964_v7, %v4868_v19  ;;  %16252 = vmatmul.mubr.bf16.gmra.mrb[92].mxu1 %v5198_v14 }
 0x37c   : > { %v4597_v55 = vpop.f32.mrb[16].mxu0  ;;  %16255 = vmatprep.mubr.msk.bf16.mxu1 %vm20358_vm0, %v21765_v43 }
 0x37d   : > { %v4997_v12 = vmul.f32 %v4956_v15, %v22017_v56  ;;  %v4957_v45 = vmax.f32 %v4916_v17, 0.0  ;;  %v18051_v28 = vadd.f32 %v4597_v55, %v21903_v48  ;;  %v16161_v23 = vpop.f32.mrb[17].mxu0  ;;  %v22055_v55 = vpop.permute.xlu1 %483 }
 0x37e   : > { %v4600_v60 = vpop.f32.mrb[18].mxu0  ;;  %v5161_v31 = vld [vmem:[#allocation2 + $0x31] sm:$0xff] }
 0x37f   : > { %5038 = vst [vmem:[#allocation2 + $0x44] sm:$0xff] %v4997_v12  ;;  %v4998_v39 = vmul.f32 %v4957_v45, %v22023_v36  ;;  %v4869_v29 = vmul.f32 %v18051_v28, %v21958_v27  ;;  %v18052_v30 = vadd.f32 %v4600_v60, %v21905_v57  ;;  %v16162_v1 = vpop.f32.mrb[19].mxu0 }
 0x380   : > { %v5162_v35 = vld [vmem:[#allocation2 + $0x39] sm:$0xff] }
 0x381   : > { %5039 = vst [vmem:[#allocation2 + $0x4c] sm:$0xff] %v4998_v39  ;;  %v4917_v18 = vadd.f32 %v21964_v7, %v4869_v29  ;;  %v4870_v10 = vmul.f32 %v18052_v30, %v21958_v27  ;;  %v5199_v48 = vpack.c.bf16 %v5162_v35, %v5161_v31 }
 0x383   : > { %v4958_v40 = vmax.f32 %v4917_v18, 0.0  ;;  %v4918_v42 = vadd.f32 %v21964_v7, %v4870_v10  ;;  %16256 = vmatmul.mubr.bf16.gmra.mrb[96].mxu1 %v5199_v48 }
 0x384   : > { %v4605_v34 = vpop.f32.mrb[20].mxu0  ;;  %16259 = vmatprep.mubr.msk.bf16.mxu1 %vm20358_vm0, %v21765_v43 }
 0x385   : > { %v4999_v57 = vmul.f32 %v4958_v40, %v22031_v46  ;;  %v4959_v52 = vmax.f32 %v4918_v42, 0.0  ;;  %v18053_v47 = vadd.f32 %v4605_v34, %v21916_v20  ;;  %v16165_v54 = vpop.f32.mrb[21].mxu0  ;;  %v22069_v34 = vpop.permute.xlu1 %493 }
 0x386   : > { %v4608_v59 = vpop.f32.mrb[22].mxu0  ;;  %v5163_v6 = vld [vmem:[#allocation2 + $0x41] sm:$0xff] }
 0x387   : > { %5040 = vst [vmem:[#allocation2 + $0x54] sm:$0xff] %v4999_v57  ;;  %v5000_v58 = vmul.f32 %v4959_v52, %v22037_v51  ;;  %v4871_v61 = vmul.f32 %v18053_v47, %v21958_v27  ;;  %v18054_v11 = vadd.f32 %v4608_v59, %v21920_v21  ;;  %v16166_v32 = vpop.f32.mrb[23].mxu0  ;;  %v22049_v21 = vpop.permute.xlu0 %478 }
 0x388   : > { %v5164_v26 = vld [vmem:[#allocation2 + $0x49] sm:$0xff] }
 0x389   : > { %5041 = vst [vmem:[#allocation2 + $0x5c] sm:$0xff] %v5000_v58  ;;  %v4919_v20 = vadd.f32 %v21964_v7, %v4871_v61  ;;  %v4872_v22 = vmul.f32 %v18054_v11, %v21958_v27  ;;  %v5200_v50 = vpack.c.bf16 %v5164_v26, %v5163_v6 }
 0x38b   : > { %v4960_v8 = vmax.f32 %v4919_v20, 0.0  ;;  %v4920_v33 = vadd.f32 %v21964_v7, %v4872_v22  ;;  %16260 = vmatmul.mubr.bf16.gmra.mrb[100].mxu1 %v5200_v50  ;;  %v22063_v18 = vpop.permute.xlu0 %488 }
 0x38c   : > { %v4613_v13 = vpop.f32.mrb[24].mxu0  ;;  %16263 = vmatprep.mubr.msk.bf16.mxu1 %vm20358_vm0, %v21765_v43 }
 0x38d   : > { %v5001_v19 = vmul.f32 %v4960_v8, %v22049_v21  ;;  %v4961_v14 = vmax.f32 %v4920_v33, 0.0  ;;  %v18055_v15 = vadd.f32 %v4613_v13, %v21930_v24  ;;  %v16169_v17 = vpop.f32.mrb[25].mxu0  ;;  %v22083_v33 = vpop.permute.xlu1 %503 }
 0x38e   : > { %v4616_v12 = vpop.f32.mrb[26].mxu0  ;;  %v5165_v39 = vld [vmem:[#allocation2 + $0x51] sm:$0xff] }
 0x38f   : > { %5042 = vst [vmem:[#allocation2 + $0x64] sm:$0xff] %v5001_v19  ;;  %v5002_v45 = vmul.f32 %v4961_v14, %v22055_v55  ;;  %v4873_v28 = vmul.f32 %v18055_v15, %v21958_v27  ;;  %v18056_v23 = vadd.f32 %v4616_v12, %v21932_v25  ;;  %v16170_v60 = vpop.f32.mrb[27].mxu0  ;;  %v22077_v26 = vpop.permute.xlu0 %498 }
 0x390   : > { %v5166_v29 = vld [vmem:[#allocation2 + $0x59] sm:$0xff] }
 0x391   : > { %5043 = vst [vmem:[#allocation2 + $0x6c] sm:$0xff] %v5002_v45  ;;  %v4921_v30 = vadd.f32 %v21964_v7, %v4873_v28  ;;  %v4874_v1 = vmul.f32 %v18056_v23, %v21958_v27  ;;  %v5201_v24 = vpack.c.bf16 %v5166_v29, %v5165_v39 }
 0x393   : > { %v4962_v31 = vmax.f32 %v4921_v30, 0.0  ;;  %v4922_v35 = vadd.f32 %v21964_v7, %v4874_v1  ;;  %16264 = vmatmul.mubr.bf16.gmra.mrb[104].mxu1 %v5201_v24  ;;  %v22091_v29 = vpop.permute.xlu0 %508 }
 0x394   : > { %v4621_v10 = vpop.f32.mrb[28].mxu0  ;;  %16267 = vmatprep.mubr.msk.bf16.mxu1 %vm20358_vm0, %v21765_v43 }
 0x395   : > { %v5003_v25 = vmul.f32 %v4962_v31, %v22063_v18  ;;  %v4963_v48 = vmax.f32 %v4922_v35, 0.0  ;;  %v18057_v40 = vadd.f32 %v4621_v10, %v21935_v53  ;;  %v16173_v42 = vpop.f32.mrb[29].mxu0 }
 0x396   : > { %v4624_v57 = vpop.f32.mrb[30].mxu0  ;;  %v5167_v58 = vld [vmem:[#allocation2 + $0x61] sm:$0xff] }
 0x397   : > { %5044 = vst [vmem:[#allocation2 + $0x74] sm:$0xff] %v5003_v25  ;;  %v5004_v52 = vmul.f32 %v4963_v48, %v22069_v34  ;;  %v4875_v47 = vmul.f32 %v18057_v40, %v21958_v27  ;;  %v18058_v54 = vadd.f32 %v4624_v57, %v21937_v62  ;;  %v16174_v59 = vpop.f32.mrb[31].mxu0 }
 0x398   : > { %v5168_v61 = vld [vmem:[#allocation2 + $0x69] sm:$0xff] }
 0x399   : > { %5045 = vst [vmem:[#allocation2 + $0x7c] sm:$0xff] %v5004_v52  ;;  %v4923_v11 = vadd.f32 %v21964_v7, %v4875_v47  ;;  %v4876_v32 = vmul.f32 %v18058_v54, %v21958_v27  ;;  %v5202_v53 = vpack.c.bf16 %v5168_v61, %v5167_v58  ;;  %v22104_v58 = vpop.permute.xlu0 %518 }
 0x39b   : > { %v4964_v3 = vmax.f32 %v4923_v11, 0.0  ;;  %v4924_v6 = vadd.f32 %v21964_v7, %v4876_v32  ;;  %16268 = vmatmul.mubr.bf16.gmra.mrb[108].mxu1 %v5202_v53 }
 0x39c   : > { %v4629_v20 = vpop.f32.mrb[32].mxu0  ;;  %16271 = vmatprep.mubr.msk.bf16.mxu1 %vm20358_vm0, %v21765_v43 }
 0x39d   : > { %v5005_v62 = vmul.f32 %v4964_v3, %v22077_v26  ;;  %v4965_v22 = vmax.f32 %v4924_v6, 0.0  ;;  %v18059_v50 = vadd.f32 %v4629_v20, %v21939_v16  ;;  %v16177_v8 = vpop.f32.mrb[33].mxu0 }
 0x39e   : > { %v4632_v13 = vpop.f32.mrb[34].mxu0  ;;  %v5169_v12 = vld [vmem:[#allocation2 + $0x71] sm:$0xff] }
 0x39f   : > { %5046 = vst [vmem:[#allocation2 + $0x84] sm:$0xff] %v5005_v62  ;;  %v5006_v19 = vmul.f32 %v4965_v22, %v22083_v33  ;;  %v4877_v14 = vmul.f32 %v18059_v50, %v21958_v27  ;;  %v18060_v15 = vadd.f32 %v4632_v13, %v21941_v49  ;;  %v16178_v17 = vpop.f32.mrb[35].mxu0  ;;  %v22095_v49 = vpop.permute.xlu1 %513 }
 0x3a0   : > { %v5170_v45 = vld [vmem:[#allocation2 + $0x79] sm:$0xff] }
 0x3a1   : > { %5047 = vst [vmem:[#allocation2 + $0x8c] sm:$0xff] %v5006_v19  ;;  %v4925_v28 = vadd.f32 %v21964_v7, %v4877_v14  ;;  %v4878_v23 = vmul.f32 %v18060_v15, %v21958_v27  ;;  %v5203_v16 = vpack.c.bf16 %v5170_v45, %v5169_v12 }
 0x3a3   : > { %v4966_v60 = vmax.f32 %v4925_v28, 0.0  ;;  %v4926_v39 = vadd.f32 %v21964_v7, %v4878_v23  ;;  %16272 = vmatmul.mubr.bf16.gmra.mrb[112].mxu1 %v5203_v16  ;;  %v22118_v23 = vpop.permute.xlu0 %528 }
 0x3a4   : > { %v4637_v30 = vpop.f32.mrb[36].mxu0  ;;  %16275 = vmatprep.mubr.msk.bf16.mxu1 %vm20358_vm0, %v21765_v43 }
 0x3a5   : > { %v5007_v1 = vmul.f32 %v4966_v60, %v22091_v29  ;;  %v4967_v24 = vmax.f32 %v4926_v39, 0.0  ;;  %v18061_v31 = vadd.f32 %v4637_v30, %v21946_v37  ;;  %v16181_v35 = vpop.f32.mrb[37].mxu0  ;;  %v22106_v37 = vpop.permute.xlu1 %523 }
 0x3a6   : > { %v4640_v10 = vpop.f32.mrb[38].mxu0  ;;  %v5171_v57 = vld [vmem:[#allocation2 + $0x81] sm:$0xff] }
 0x3a7   : > { %5048 = vst [vmem:[#allocation2 + $0x94] sm:$0xff] %v5007_v1  ;;  %v5008_v25 = vmul.f32 %v4967_v24, %v22095_v49  ;;  %v4879_v48 = vmul.f32 %v18061_v31, %v21958_v27  ;;  %v18062_v40 = vadd.f32 %v4640_v10, %v21949_v38  ;;  %v16182_v42 = vpop.f32.mrb[39].mxu0 }
 0x3a8   : > { %v5172_v52 = vld [vmem:[#allocation2 + $0x89] sm:$0xff] }
 0x3a9   : > { %5049 = vst [vmem:[#allocation2 + $0x9c] sm:$0xff] %v5008_v25  ;;  %v4927_v47 = vadd.f32 %v21964_v7, %v4879_v48  ;;  %v4880_v54 = vmul.f32 %v18062_v40, %v21958_v27  ;;  %v5204_v59 = vpack.c.bf16 %v5172_v52, %v5171_v57  ;;  %v22120_v16 = vpop.permute.xlu1 %533 }
 0x3ab   : > { %v4968_v61 = vmax.f32 %v4927_v47, 0.0  ;;  %v4928_v11 = vadd.f32 %v21964_v7, %v4880_v54  ;;  %16276 = vmatmul.mubr.bf16.gmra.mrb[116].mxu1 %v5204_v59  ;;  %v2853_v32 = vpop.f32.mrb[44].mxu1 }
 0x3ac   : > { %v4645_v53 = vpop.f32.mrb[40].mxu0  ;;  %v15789_v38 = vpop.f32.mrb[45].mxu1  ;;  %16279 = vmatprep.mubr.msk.bf16.mxu1 %vm20358_vm0, %v21765_v43 }
 0x3ad   : > { %v5009_v3 = vmul.f32 %v4968_v61, %v22104_v58  ;;  %v4969_v6 = vmax.f32 %v4928_v11, 0.0  ;;  %v18063_v20 = vadd.f32 %v4645_v53, %v21951_v5  ;;  %v16185_v62 = vpop.f32.mrb[41].mxu0  ;;  %v2856_v22 = vpop.f32.mrb[46].mxu1 }
 0x3ae   : > { %v4648_v50 = vpop.f32.mrb[42].mxu0  ;;  %v15790_v8 = vpop.f32.mrb[47].mxu1  ;;  %v5173_v17 = vld [vmem:[#allocation2 + $0x91] sm:$0xff] }
 0x3af   : > { %5050 = vst [vmem:[#allocation2 + $0xa4] sm:$0xff] %v5009_v3  ;;  %v5010_v13 = vmul.f32 %v4969_v6, %v22106_v37  ;;  %v4881_v19 = vmul.f32 %v18063_v20, %v21958_v27  ;;  %v18064_v14 = vadd.f32 %v4648_v50, %v21953_v44  ;;  %v16186_v15 = vpop.f32.mrb[43].mxu0  ;;  %v22132_v38 = vpop.permute.xlu1 %543 }
 0x3b0   : > { %v5174_v12 = vld [vmem:[#allocation2 + $0x99] sm:$0xff] }
 0x3b1   : > { %5051 = vst [vmem:[#allocation2 + $0xac] sm:$0xff] %v5010_v13  ;;  %v4929_v45 = vadd.f32 %v21964_v7, %v4881_v19  ;;  %v4882_v28 = vmul.f32 %v18064_v14, %v21958_v27  ;;  %v5205_v5 = vpack.c.bf16 %v5174_v12, %v5173_v17 }
 0x3b3   : > { %v4970_v60 = vmax.f32 %v4929_v45, 0.0  ;;  %v4930_v39 = vadd.f32 %v21964_v7, %v4882_v28  ;;  %16280 = vmatmul.mubr.bf16.gmra.mrb[120].mxu1 %v5205_v5  ;;  %v2861_v30 = vpop.f32.mrb[48].mxu1 }
 0x3b4   : > { %v4653_v1 = vpop.f32.mrb[44].mxu0  ;;  %v15793_v44 = vpop.f32.mrb[49].mxu1  ;;  %16283 = vmatprep.mubr.msk.bf16.mxu1 %vm20358_vm0, %v21765_v43 }
 0x3b5   : > { %v5011_v24 = vmul.f32 %v4970_v60, %v22118_v23  ;;  %v4971_v31 = vmax.f32 %v4930_v39, 0.0  ;;  %v18065_v35 = vadd.f32 %v4653_v1, %v2853_v32  ;;  %v16189_v10 = vpop.f32.mrb[45].mxu0  ;;  %v2864_v25 = vpop.f32.mrb[50].mxu1 }
 0x3b6   : > { %v4656_v48 = vpop.f32.mrb[46].mxu0  ;;  %v15794_v40 = vpop.f32.mrb[51].mxu1  ;;  %v5175_v54 = vld [vmem:[#allocation2 + $0xa1] sm:$0xff] }
 0x3b7   : > { %5052 = vst [vmem:[#allocation2 + $0xb4] sm:$0xff] %v5011_v24  ;;  %v5012_v42 = vmul.f32 %v4971_v31, %v22120_v16  ;;  %v4883_v57 = vmul.f32 %v18065_v35, %v21958_v27  ;;  %v18066_v52 = vadd.f32 %v4656_v48, %v2856_v22  ;;  %v16190_v47 = vpop.f32.mrb[47].mxu0  ;;  %v22130_v32 = vpop.permute.xlu0 %538 }
 0x3b8   : > { %v5176_v59 = vld [vmem:[#allocation2 + $0xa9] sm:$0xff]  ;;  %v22144_v31 = vpop.permute.xlu1 %553 }
 0x3b9   : > { %5053 = vst [vmem:[#allocation2 + $0xbc] sm:$0xff] %v5012_v42  ;;  %v4931_v61 = vadd.f32 %v21964_v7, %v4883_v57  ;;  %v4884_v11 = vmul.f32 %v18066_v52, %v21958_v27  ;;  %v5206_v53 = vpack.c.bf16 %v5176_v59, %v5175_v54 }
 0x3bb   : > { %v4972_v3 = vmax.f32 %v4931_v61, 0.0  ;;  %v4932_v6 = vadd.f32 %v21964_v7, %v4884_v11  ;;  %16284 = vmatmul.mubr.bf16.gmra.mrb[124].mxu1 %v5206_v53  ;;  %v2869_v20 = vpop.f32.mrb[52].mxu1 }
 0x3bc   : > { %v4661_v62 = vpop.f32.mrb[48].mxu0  ;;  %v15797_v22 = vpop.f32.mrb[53].mxu1  ;;  %16287 = vmatprep.mubr.msk.bf16.mxu1 %vm20358_vm0, %v21765_v43 }
 0x3bd   : > { %v5013_v50 = vmul.f32 %v4972_v3, %v22130_v32  ;;  %v4973_v8 = vmax.f32 %v4932_v6, 0.0  ;;  %v18067_v13 = vadd.f32 %v4661_v62, %v2861_v30  ;;  %v16193_v19 = vpop.f32.mrb[49].mxu0  ;;  %v2872_v14 = vpop.f32.mrb[54].mxu1 }
 0x3be   : > { %v4664_v15 = vpop.f32.mrb[50].mxu0  ;;  %v15798_v17 = vpop.f32.mrb[55].mxu1  ;;  %v5177_v60 = vld [vmem:[#allocation2 + $0xb1] sm:$0xff] }
 0x3bf   : > { %5054 = vst [vmem:[#allocation2 + $0xc4] sm:$0xff] %v5013_v50  ;;  %v5014_v12 = vmul.f32 %v4973_v8, %v22132_v38  ;;  %v4885_v45 = vmul.f32 %v18067_v13, %v21958_v27  ;;  %v18068_v28 = vadd.f32 %v4664_v15, %v2864_v25  ;;  %v16194_v5 = vpop.f32.mrb[51].mxu0  ;;  %v22142_v30 = vpop.permute.xlu0 %548 }
 0x3c0   : > { %v5178_v39 = vld [vmem:[#allocation2 + $0xb9] sm:$0xff]  ;;  %v22156_v13 = vpop.permute.xlu1 %563 }
 0x3c1   : > { %5055 = vst [vmem:[#allocation2 + $0xcc] sm:$0xff] %v5014_v12  ;;  %v4933_v1 = vadd.f32 %v21964_v7, %v4885_v45  ;;  %v4886_v44 = vmul.f32 %v18068_v28, %v21958_v27  ;;  %v5207_v24 = vpack.c.bf16 %v5178_v39, %v5177_v60  ;;  %v22159_v45 = vld [vmem:[#allocation2] sm:$0xff] }
 0x3c3   : > { %v4974_v35 = vmax.f32 %v4933_v1, 0.0  ;;  %v4934_v10 = vadd.f32 %v21964_v7, %v4886_v44  ;;  %16288 = vmatmul.mubr.bf16.gmra.mrb[128].mxu1 %v5207_v24  ;;  %v2877_v48 = vpop.f32.mrb[56].mxu1 }
 0x3c4   : > { %v4669_v40 = vpop.f32.mrb[52].mxu0  ;;  %v15801_v25 = vpop.f32.mrb[57].mxu1  ;;  %16291 = vmatprep.mubr.msk.bf16.mxu1 %vm20358_vm0, %v21765_v43 }
 0x3c5   : > { %v5015_v42 = vmul.f32 %v4974_v35, %v22142_v30  ;;  %v4975_v57 = vmax.f32 %v4934_v10, 0.0  ;;  %v18069_v52 = vadd.f32 %v4669_v40, %v2869_v20  ;;  %v16197_v47 = vpop.f32.mrb[53].mxu0  ;;  %v2880_v54 = vpop.f32.mrb[58].mxu1 }
 0x3c6   : > { %v4672_v59 = vpop.f32.mrb[54].mxu0  ;;  %v15802_v61 = vpop.f32.mrb[59].mxu1  ;;  %v5179_v62 = vld [vmem:[#allocation2 + $0xc1] sm:$0xff] }
 0x3c7   : > { %5056 = vst [vmem:[#allocation2 + $0xd4] sm:$0xff] %v5015_v42  ;;  %v5016_v11 = vmul.f32 %v4975_v57, %v22144_v31  ;;  %v4887_v53 = vmul.f32 %v18069_v52, %v21958_v27  ;;  %v18070_v3 = vadd.f32 %v4672_v59, %v2872_v14  ;;  %v16198_v6 = vpop.f32.mrb[55].mxu0  ;;  %v22154_v20 = vpop.permute.xlu0 %558 }
 0x3c8   : > { %v5180_v22 = vld [vmem:[#allocation2 + $0xc9] sm:$0xff]  ;;  %v22170_v61 = vpop.permute.xlu1 %573 }
 0x3c9   : > { %5057 = vst [vmem:[#allocation2 + $0xdc] sm:$0xff] %v5016_v11  ;;  %v4935_v43 = vadd.f32 %v21964_v7, %v4887_v53  ;;  %v4888_v50 = vmul.f32 %v18070_v3, %v21958_v27  ;;  %v5208_v8 = vpack.c.bf16 %v5180_v22, %v5179_v62 }
 0x3cb   : > { %v4976_v19 = vmax.f32 %v4935_v43, 0.0  ;;  %v4936_v15 = vadd.f32 %v21964_v7, %v4888_v50  ;;  %16292 = vmatmul.mubr.bf16.gmra.mrb[132].mxu1 %v5208_v8  ;;  %v2885_v17 = vpop.f32.mrb[60].mxu1 }
 0x3cc   : > { %v4677_v12 = vpop.f32.mrb[56].mxu0  ;;  %v15805_v14 = vpop.f32.mrb[61].mxu1  ;;  %16295 = vmatprep.mubr.msk.bf16.mxu1 %vm20358_vm0, %v22159_v45 }
 0x3cd   : > { %v5017_v28 = vmul.f32 %v4976_v19, %v22154_v20  ;;  %v4977_v5 = vmax.f32 %v4936_v15, 0.0  ;;  %v18071_v60 = vadd.f32 %v4677_v12, %v2877_v48  ;;  %v16201_v39 = vpop.f32.mrb[57].mxu0  ;;  %v2888_v1 = vpop.f32.mrb[62].mxu1 }
 0x3ce   : > { %v4680_v44 = vpop.f32.mrb[58].mxu0  ;;  %v15806_v24 = vpop.f32.mrb[63].mxu1  ;;  %v5181_v42 = vld [vmem:[#allocation2 + $0xd1] sm:$0xff] }
 0x3cf   : > { %5058 = vst [vmem:[#allocation2 + $0xe4] sm:$0xff] %v5017_v28  ;;  %v5018_v35 = vmul.f32 %v4977_v5, %v22156_v13  ;;  %v4889_v10 = vmul.f32 %v18071_v60, %v21958_v27  ;;  %v18072_v40 = vadd.f32 %v4680_v44, %v2880_v54  ;;  %v16202_v25 = vpop.f32.mrb[59].mxu0  ;;  %v22168_v48 = vpop.permute.xlu0 %568 }
 0x3d0   : > { %v5182_v57 = vld [vmem:[#allocation2 + $0xd9] sm:$0xff] }
 0x3d1   : > { %5059 = vst [vmem:[#allocation2 + $0xec] sm:$0xff] %v5018_v35  ;;  %v4937_v52 = vadd.f32 %v21964_v7, %v4889_v10  ;;  %v4890_v47 = vmul.f32 %v18072_v40, %v21958_v27  ;;  %v5209_v59 = vpack.c.bf16 %v5182_v57, %v5181_v42  ;;  %v22182_v10 = vpop.permute.xlu1 %583 }
 0x3d3   : > { %v4978_v11 = vmax.f32 %v4937_v52, 0.0  ;;  %v4938_v53 = vadd.f32 %v21964_v7, %v4890_v47  ;;  %16296 = vmatmul.mubr.bf16.gmra.mrb[136].mxu1 %v5209_v59  ;;  %v2893_v3 = vpop.f32.mrb[64].mxu1 }
 0x3d4   : > { %v4685_v6 = vpop.f32.mrb[60].mxu0  ;;  %v15809_v54 = vpop.f32.mrb[65].mxu1  ;;  %16299 = vmatprep.mubr.msk.bf16.mxu1 %vm20358_vm0, %v22159_v45 }
 0x3d5   : > { %v5019_v62 = vmul.f32 %v4978_v11, %v22168_v48  ;;  %v4979_v22 = vmax.f32 %v4938_v53, 0.0  ;;  %v18073_v43 = vadd.f32 %v4685_v6, %v2885_v17  ;;  %v16205_v50 = vpop.f32.mrb[61].mxu0  ;;  %v2896_v8 = vpop.f32.mrb[66].mxu1 }
 0x3d6   : > { %v4688_v19 = vpop.f32.mrb[62].mxu0  ;;  %v15810_v15 = vpop.f32.mrb[67].mxu1  ;;  %v5183_v60 = vld [vmem:[#allocation2 + $0xe1] sm:$0xff] }
 0x3d7   : > { %5060 = vst [vmem:[#allocation2 + $0xf4] sm:$0xff] %v5019_v62  ;;  %v5020_v12 = vmul.f32 %v4979_v22, %v22170_v61  ;;  %v4891_v14 = vmul.f32 %v18073_v43, %v21958_v27  ;;  %v18074_v28 = vadd.f32 %v4688_v19, %v2888_v1  ;;  %v16206_v5 = vpop.f32.mrb[63].mxu0  ;;  %v22180_v17 = vpop.permute.xlu0 %578 }
 0x3d8   : > { %v5184_v39 = vld [vmem:[#allocation2 + $0xe9] sm:$0xff]  ;;  %v22194_v5 = vpop.permute.xlu1 %593 }
 0x3d9   : > { %5061 = vst [vmem:[#allocation2 + $0xfc] sm:$0xff] %v5020_v12  ;;  %v4939_v44 = vadd.f32 %v21964_v7, %v4891_v14  ;;  %v4892_v24 = vmul.f32 %v18074_v28, %v21958_v27  ;;  %v5210_v35 = vpack.c.bf16 %v5184_v39, %v5183_v60 }
 0x3db   : > { %v4980_v40 = vmax.f32 %v4939_v44, 0.0  ;;  %v4940_v25 = vadd.f32 %v21964_v7, %v4892_v24  ;;  %16300 = vmatmul.mubr.bf16.gmra.mrb[140].mxu1 %v5210_v35  ;;  %v2901_v42 = vpop.f32.mrb[68].mxu1 }
 0x3dc   : > { %v4693_v57 = vpop.f32.mrb[64].mxu0  ;;  %v15813_v1 = vpop.f32.mrb[69].mxu1  ;;  %16303 = vmatprep.mubr.msk.bf16.mxu1 %vm20358_vm0, %v22159_v45 }
 0x3dd   : > { %v5021_v52 = vmul.f32 %v4980_v40, %v22180_v17  ;;  %v4981_v47 = vmax.f32 %v4940_v25, 0.0  ;;  %v18075_v59 = vadd.f32 %v4693_v57, %v2893_v3  ;;  %v16209_v11 = vpop.f32.mrb[65].mxu0  ;;  %v2904_v53 = vpop.f32.mrb[70].mxu1 }
 0x3de   : > { %v4696_v6 = vpop.f32.mrb[66].mxu0  ;;  %v15814_v54 = vpop.f32.mrb[71].mxu1  ;;  %v5185_v19 = vld [vmem:[#allocation2 + $0xf1] sm:$0xff] }
 0x3df   : > { %5062 = vst [vmem:[#allocation2 + $0x104] sm:$0xff] %v5021_v52  ;;  %v5022_v62 = vmul.f32 %v4981_v47, %v22182_v10  ;;  %v4893_v22 = vmul.f32 %v18075_v59, %v21958_v27  ;;  %v18076_v43 = vadd.f32 %v4696_v6, %v2896_v8  ;;  %v16210_v50 = vpop.f32.mrb[67].mxu0  ;;  %v22192_v3 = vpop.permute.xlu0 %588 }
 0x3e0   : > { %v5186_v15 = vld [vmem:[#allocation2 + $0xf9] sm:$0xff] }
 0x3e1   : > { %5063 = vst [vmem:[#allocation2 + $0x10c] sm:$0xff] %v5022_v62  ;;  %v4941_v12 = vadd.f32 %v21964_v7, %v4893_v22  ;;  %v4894_v14 = vmul.f32 %v18076_v43, %v21958_v27  ;;  %v5211_v28 = vpack.c.bf16 %v5186_v15, %v5185_v19  ;;  %v22206_v15 = vpop.permute.xlu1 %603 }
 0x3e3   : > { %v4982_v60 = vmax.f32 %v4941_v12, 0.0  ;;  %v4942_v39 = vadd.f32 %v21964_v7, %v4894_v14  ;;  %16304 = vmatmul.mubr.bf16.gmra.mrb[144].mxu1 %v5211_v28  ;;  %v2909_v44 = vpop.f32.mrb[72].mxu1 }
 0x3e4   : > { %v4701_v24 = vpop.f32.mrb[68].mxu0  ;;  %v15817_v8 = vpop.f32.mrb[73].mxu1  ;;  %16307 = vmatprep.mubr.msk.bf16.mxu1 %vm20358_vm0, %v22159_v45 }
 0x3e5   : > { %v5023_v35 = vmul.f32 %v4982_v60, %v22192_v3  ;;  %v4983_v40 = vmax.f32 %v4942_v39, 0.0  ;;  %v18077_v25 = vadd.f32 %v4701_v24, %v2901_v42  ;;  %v16213_v57 = vpop.f32.mrb[69].mxu0  ;;  %v2912_v1 = vpop.f32.mrb[74].mxu1 }
 0x3e6   : > { %v4704_v52 = vpop.f32.mrb[70].mxu0  ;;  %v15818_v47 = vpop.f32.mrb[75].mxu1  ;;  %v5187_v62 = vld [vmem:[#allocation2 + $0x101] sm:$0xff] }
 0x3e7   : > { %5064 = vst [vmem:[#allocation2 + $0x114] sm:$0xff] %v5023_v35  ;;  %v5024_v59 = vmul.f32 %v4983_v40, %v22194_v5  ;;  %v4895_v11 = vmul.f32 %v18077_v25, %v21958_v27  ;;  %v18078_v6 = vadd.f32 %v4704_v52, %v2904_v53  ;;  %v16214_v54 = vpop.f32.mrb[71].mxu0  ;;  %v22204_v42 = vpop.permute.xlu0 %598 }
 0x3e8   : > { %v5188_v22 = vld [vmem:[#allocation2 + $0x109] sm:$0xff] }
 0x3e9   : > { %5065 = vst [vmem:[#allocation2 + $0x11c] sm:$0xff] %v5024_v59  ;;  %v4943_v43 = vadd.f32 %v21964_v7, %v4895_v11  ;;  %v4896_v50 = vmul.f32 %v18078_v6, %v21958_v27  ;;  %v5212_v19 = vpack.c.bf16 %v5188_v22, %v5187_v62 }
 0x3eb   : > { %v4984_v12 = vmax.f32 %v4943_v43, 0.0  ;;  %v4944_v14 = vadd.f32 %v21964_v7, %v4896_v50  ;;  %16308 = vmatmul.mubr.bf16.gmra.mrb[148].mxu1 %v5212_v19  ;;  %v2917_v28 = vpop.f32.mrb[76].mxu1  ;;  %v22218_v50 = vpop.permute.xlu1 %613 }
 0x3ec   : > { %v4709_v60 = vpop.f32.mrb[72].mxu0  ;;  %v15821_v53 = vpop.f32.mrb[77].mxu1  ;;  %16311 = vmatprep.mubr.msk.bf16.mxu1 %vm20358_vm0, %v22159_v45 }
 0x3ed   : > { %v5025_v39 = vmul.f32 %v4984_v12, %v22204_v42  ;;  %v4985_v24 = vmax.f32 %v4944_v14, 0.0  ;;  %v18079_v8 = vadd.f32 %v4709_v60, %v2909_v44  ;;  %v16217_v35 = vpop.f32.mrb[73].mxu0  ;;  %v2920_v40 = vpop.f32.mrb[78].mxu1 }
 0x3ee   : > { %v4712_v25 = vpop.f32.mrb[74].mxu0  ;;  %v15822_v57 = vpop.f32.mrb[79].mxu1  ;;  %v5189_v6 = vld [vmem:[#allocation2 + $0x111] sm:$0xff] }
 0x3ef   : > { %5066 = vst [vmem:[#allocation2 + $0x124] sm:$0xff] %v5025_v39  ;;  %v5026_v52 = vmul.f32 %v4985_v24, %v22206_v15  ;;  %v4897_v47 = vmul.f32 %v18079_v8, %v21958_v27  ;;  %v18080_v59 = vadd.f32 %v4712_v25, %v2912_v1  ;;  %v16218_v11 = vpop.f32.mrb[75].mxu0  ;;  %v22216_v44 = vpop.permute.xlu0 %608 }
 0x3f0   : > { %v5190_v54 = vld [vmem:[#allocation2 + $0x119] sm:$0xff] }
 0x3f1   : > { %5067 = vst [vmem:[#allocation2 + $0x12c] sm:$0xff] %v5026_v52  ;;  %v4945_v62 = vadd.f32 %v21964_v7, %v4897_v47  ;;  %v4898_v22 = vmul.f32 %v18080_v59, %v21958_v27  ;;  %v5213_v43 = vpack.c.bf16 %v5190_v54, %v5189_v6 }
 0x3f3   : > { %v4986_v19 = vmax.f32 %v4945_v62, 0.0  ;;  %v4946_v12 = vadd.f32 %v21964_v7, %v4898_v22  ;;  %16312 = vmatmul.mubr.bf16.gmra.mrb[152].mxu1 %v5213_v43  ;;  %v2925_v14 = vpop.f32.mrb[80].mxu1 }
 0x3f4   : > { %v4717_v60 = vpop.f32.mrb[76].mxu0  ;;  %v15825_v1 = vpop.f32.mrb[81].mxu1  ;;  %16315 = vmatprep.mubr.msk.bf16.mxu1 %vm20358_vm0, %v22159_v45 }
 0x3f5   : > { %v5027_v53 = vmul.f32 %v4986_v19, %v22216_v44  ;;  %v4987_v39 = vmax.f32 %v4946_v12, 0.0  ;;  %v18081_v24 = vadd.f32 %v4717_v60, %v2917_v28  ;;  %v16221_v8 = vpop.f32.mrb[77].mxu0  ;;  %v2928_v35 = vpop.f32.mrb[82].mxu1 }
 0x3f6   : > { %v4720_v25 = vpop.f32.mrb[78].mxu0  ;;  %v15826_v57 = vpop.f32.mrb[83].mxu1  ;;  %v5191_v6 = vld [vmem:[#allocation2 + $0x121] sm:$0xff] }
 0x3f7   : > { %5068 = vst [vmem:[#allocation2 + $0x134] sm:$0xff] %v5027_v53  ;;  %v5028_v52 = vmul.f32 %v4987_v39, %v22218_v50  ;;  %v4899_v47 = vmul.f32 %v18081_v24, %v21958_v27  ;;  %v18082_v59 = vadd.f32 %v4720_v25, %v2920_v40  ;;  %v16222_v11 = vpop.f32.mrb[79].mxu0  ;;  %v22229_v12 = vpop.permute.xlu0 %618 }
 0x3f8   : > { %v5192_v54 = vld [vmem:[#allocation2 + $0x129] sm:$0xff]  ;;  %24133 = vst [vmem:[#allocation8_spill] sm:$0xff] %v22229_v12  ;;  %v22234_v24 = vpop.permute.xlu1 %623 }
 0x3f9   : > { %5069 = vst [vmem:[#allocation2 + $0x13c] sm:$0xff] %v5028_v52  ;;  %v4947_v62 = vadd.f32 %v21964_v7, %v4899_v47  ;;  %v4900_v22 = vmul.f32 %v18082_v59, %v21958_v27  ;;  %v5214_v43 = vpack.c.bf16 %v5192_v54, %v5191_v6  ;;  %24134 = vst [vmem:[#allocation9_spill] sm:$0xff] %v22234_v24 }
 0x3fb   : > { %v4988_v28 = vmax.f32 %v4947_v62, 0.0  ;;  %v4948_v19 = vadd.f32 %v21964_v7, %v4900_v22  ;;  %16316 = vmatmul.mubr.bf16.gmra.mrb[156].mxu1 %v5214_v43  ;;  %v22239_v54 = vpop.permute.xlu0 %628  ;;  %v5605_v43 = vld [vmem:[#allocation2 + $0xa] sm:$0xff] }
 0x3fc   : > { %v4725_v60 = vpop.f32.mrb[80].mxu0  ;;  %16319 = vmatprep.mubr.msk.bf16.mxu1 %vm20358_vm0, %v22159_v45  ;;  %24135 = vst [vmem:[#allocation10_spill] sm:$0xff] %v22239_v54 }
 0x3fd   : > { %v5029_v40 = vmul.f32 %v4988_v28, %v22229_v12  ;;  %v4989_v1 = vmax.f32 %v4948_v19, 0.0  ;;  %v18083_v53 = vadd.f32 %v4725_v60, %v2925_v14  ;;  %v16225_v39 = vpop.f32.mrb[81].mxu0  ;;  %v20149_v28 = vld [vmem:[%s24115_s4 + $0x80] sm:$0xff]   ;;  %v20150_v19 = vld [vmem:[%s24115_s4 + $0x88] sm:$0xff]  }
 0x3fe   : > { %v4728_v8 = vpop.f32.mrb[82].mxu0  ;;  %v5193_v52 = vld [vmem:[#allocation2 + $0x131] sm:$0xff]  ;;  %v5607_v60 = vld [vmem:[#allocation2 + $0x1a] sm:$0xff] }
 0x3ff   : > { %5070 = vst [vmem:[#allocation2 + $0x144] sm:$0xff] %v5029_v40  ;;  %v5030_v35 = vmul.f32 %v4989_v1, %v22234_v24  ;;  %v4901_v25 = vmul.f32 %v18083_v53, %v21958_v27  ;;  %v16226_v57 = vpop.f32.mrb[83].mxu0  ;;  %v5604_v27 = vld [vmem:[#allocation2 + $0x2] sm:$0xff]  ;;  %v5606_v40 = vld [vmem:[#allocation2 + $0x12] sm:$0xff]  ;;  %v5609_v8 = vld [vmem:[#allocation2 + $0x2a] sm:$0xff] }
 0x400   : > { %v5194_v47 = vld [vmem:[#allocation2 + $0x139] sm:$0xff]  ;;  %v20151_v1 = vld [vmem:[%s24115_s4 + $0x90] sm:$0xff]   ;;  %v5646_v53 = vpack.c.bf16 %v5607_v60, %v5606_v40  ;;  %v5616_v60 = vld [vmem:[#allocation2 + $0x62] sm:$0xff] }
 0x401   : > { %5071 = vst [vmem:[#allocation2 + $0x14c] sm:$0xff] %v5030_v35  ;;  %v4949_v59 = vadd.f32 %v21964_v7, %v4901_v25  ;;  %v5215_v11 = vpack.c.bf16 %v5194_v47, %v5193_v52  ;;  %v5645_v7 = vpack.c.bf16 %v5605_v43, %v5604_v27  ;;  %v20152_v39 = vld [vmem:[%s24115_s4 + $0x98] sm:$0xff]   ;;  %v5608_v35 = vld [vmem:[#allocation2 + $0x22] sm:$0xff] }
 0x402   : > { %v20153_v25 = vld [vmem:[%s24115_s4 + $0xa0] sm:$0xff]   ;;  %v5647_v57 = vpack.c.bf16 %v5609_v8, %v5608_v35  ;;  %v20154_v52 = vld [vmem:[%s24115_s4 + $0xa8] sm:$0xff]  }
 0x403   : > { %v4990_v6 = vmax.f32 %v4949_v59, 0.0  ;;  %16320 = vmatmul.mubr.bf16.gmra.mrb[160].mxu1 %v5215_v11  ;;  %v5611_v47 = vld [vmem:[#allocation2 + $0x3a] sm:$0xff]  ;;  %v5610_v59 = vld [vmem:[#allocation2 + $0x32] sm:$0xff]  ;;  %v5621_v8 = vld [vmem:[#allocation2 + $0x8a] sm:$0xff] }
 0x404   : > { %16323 = vmatprep.mubr.msk.bf16.mxu1 %vm20358_vm0, %v22159_v45  ;;  %v20155_v11 = vld [vmem:[%s24115_s4 + $0xb0] sm:$0xff]   ;;  %v5615_v43 = vld [vmem:[#allocation2 + $0x5a] sm:$0xff]  ;;  %v5620_v35 = vld [vmem:[#allocation2 + $0x82] sm:$0xff] }
 0x405   : > { %v5031_v14 = vmul.f32 %v4990_v6, %v22239_v54  ;;  %v5648_v6 = vpack.c.bf16 %v5611_v47, %v5610_v59  ;;  %v5625_v59 = vld [vmem:[#allocation2 + $0xaa] sm:$0xff] }
 0x406   : > { %v5195_v62 = vld [vmem:[#allocation2 + $0x141] sm:$0xff] }
 0x407   : > { %5072 = vst [vmem:[#allocation2 + $0x154] sm:$0xff] %v5031_v14  ;;  %v5216_v22 = vpack.c.bf16 %v5195_v62, %v5195_v62  ;;  %v20156_v14 = vld [vmem:[%s24115_s4 + $0xb8] sm:$0xff]   ;;  %v5613_v62 = vld [vmem:[#allocation2 + $0x4a] sm:$0xff] }
 0x40b   : > { %16324 = vmatmul.mubr.bf16.gmra.mrb[164].mxu1 %v5216_v22  ;;  %v5612_v22 = vld [vmem:[#allocation2 + $0x42] sm:$0xff] }
 0x40c   : > { %16343 = vmatprep.mubr.msk.bf16.mxu1 %vm20358_vm0, %v22159_v45  ;;  %v5649_v27 = vpack.c.bf16 %v5613_v62, %v5612_v22  ;;  %v5626_v62 = vld [vmem:[#allocation2 + $0xb2] sm:$0xff] }
 0x413   : > { %16344 = vmatmul.mubr.bf16.vlgmr.msra.gmra.mrb[84].mxu1 %v5645_v7  ;;  %v5614_v7 = vld [vmem:[#allocation2 + $0x52] sm:$0xff] }
 0x414   : > { %16428 = vmatpush3.bf16.msra.mxu1 %v20149_v28  ;;  %16347 = vmatprep.mubr.msk.bf16.mxu1 %vm20358_vm0, %v22159_v45  ;;  %v5650_v28 = vpack.c.bf16 %v5615_v43, %v5614_v7  ;;  %v5628_v43 = vld [vmem:[#allocation2 + $0xc2] sm:$0xff] }
 0x415   : > { %16429 = vmatprep.subr.bf16.mxu1 %v22159_v45 }
 0x418   : > { %16430 = vmatpush3.bf16.msra.mxu1 %v20150_v19  ;;  %v5617_v19 = vld [vmem:[#allocation2 + $0x6a] sm:$0xff] }
 0x419   : > { %16431 = vmatprep.subr.bf16.mxu1 %v22159_v45  ;;  %v5651_v40 = vpack.c.bf16 %v5617_v19, %v5616_v60  ;;  %v5630_v19 = vld [vmem:[#allocation2 + $0xd2] sm:$0xff] }
 0x41b   : > { %16348 = vmatmul.mubr.bf16.gmra.mrb[88].mxu1 %v5646_v53  ;;  %v5618_v53 = vld [vmem:[#allocation2 + $0x72] sm:$0xff] }
 0x41c   : > { %16351 = vmatprep.mubr.msk.bf16.mxu1 %vm20358_vm0, %v22159_v45  ;;  %16432 = vmatpush3.bf16.msra.mxu1 %v20151_v1  ;;  %v5619_v1 = vld [vmem:[#allocation2 + $0x7a] sm:$0xff] }
 0x41d   : > { %16433 = vmatprep.subr.bf16.mxu1 %v22159_v45 }
 0x420   : > { %16434 = vmatpush3.bf16.msra.mxu1 %v20152_v39  ;;  %v5652_v39 = vpack.c.bf16 %v5619_v1, %v5618_v53  ;;  %v5632_v1 = vld [vmem:[#allocation2 + $0xe2] sm:$0xff] }
 0x421   : > { %16435 = vmatprep.subr.bf16.mxu1 %v22159_v45 }
 0x423   : > { %16352 = vmatmul.mubr.bf16.gmra.mrb[92].mxu1 %v5647_v57  ;;  %v5623_v57 = vld [vmem:[#allocation2 + $0x9a] sm:$0xff] }
 0x424   : > { %16355 = vmatprep.mubr.msk.bf16.mxu1 %vm20358_vm0, %v22159_v45  ;;  %16436 = vmatpush3.bf16.msra.mxu1 %v20153_v25  ;;  %v5653_v25 = vpack.c.bf16 %v5621_v8, %v5620_v35  ;;  %v5634_v8 = vld [vmem:[#allocation2 + $0xf2] sm:$0xff] }
 0x425   : > { %16437 = vmatprep.subr.bf16.mxu1 %v22159_v45 }
 0x428   : > { %16438 = vmatpush3.bf16.msra.mxu1 %v20154_v52  ;;  %v5622_v52 = vld [vmem:[#allocation2 + $0x92] sm:$0xff] }
 0x429   : > { %16439 = vmatprep.subr.bf16.mxu1 %v22159_v45  ;;  %v5654_v47 = vpack.c.bf16 %v5623_v57, %v5622_v52  ;;  %v5636_v57 = vld [vmem:[#allocation2 + $0x102] sm:$0xff] }
 0x42b   : > { %16356 = vmatmul.mubr.bf16.gmra.mrb[96].mxu1 %v5648_v6 }
 0x42c   : > { %16359 = vmatprep.mubr.msk.bf16.mxu1 %vm20358_vm0, %v22159_v45  ;;  %16440 = vmatpush3.bf16.msra.mxu1 %v20155_v11  ;;  %v5624_v11 = vld [vmem:[#allocation2 + $0xa2] sm:$0xff] }
 0x42d   : > { %16441 = vmatprep.subr.bf16.mxu1 %v22159_v45  ;;  %v5655_v6 = vpack.c.bf16 %v5625_v59, %v5624_v11  ;;  %v5638_v59 = vld [vmem:[#allocation2 + $0x112] sm:$0xff] }
 0x430   : > { %16442 = vmatpush3.bf16.msra.mxu1 %v20156_v14  ;;  %v5627_v14 = vld [vmem:[#allocation2 + $0xba] sm:$0xff] }
 0x431   : > { %16527 = vmatprep.subr.bf16.mxu1 %v22159_v45  ;;  %v5656_v22 = vpack.c.bf16 %v5627_v14, %v5626_v62  ;;  %v5640_v14 = vld [vmem:[#allocation2 + $0x122] sm:$0xff] }
 0x433   : > { %16360 = vmatmul.mubr.bf16.gmra.mrb[100].mxu1 %v5649_v27  ;;  %v5629_v27 = vld [vmem:[#allocation2 + $0xca] sm:$0xff] }
 0x434   : > { %16363 = vmatprep.mubr.msk.bf16.mxu1 %vm20358_vm0, %v22159_v45  ;;  %v5657_v7 = vpack.c.bf16 %v5629_v27, %v5628_v43  ;;  %v5642_v27 = vld [vmem:[#allocation2 + $0x132] sm:$0xff] }
 0x43b   : > { %16364 = vmatmul.mubr.bf16.gmra.mrb[104].mxu1 %v5650_v28  ;;  %v5631_v28 = vld [vmem:[#allocation2 + $0xda] sm:$0xff] }
 0x43c   : > { %16367 = vmatprep.mubr.msk.bf16.mxu1 %vm20358_vm0, %v22159_v45  ;;  %v5658_v60 = vpack.c.bf16 %v5631_v28, %v5630_v19  ;;  %v6054_v19 = vld [vmem:[#allocation2 + $0x3] sm:$0xff] }
 0x443   : > { %16368 = vmatmul.mubr.bf16.gmra.mrb[108].mxu1 %v5651_v40  ;;  %v5633_v40 = vld [vmem:[#allocation2 + $0xea] sm:$0xff] }
 0x444   : > { %16371 = vmatprep.mubr.msk.bf16.mxu1 %vm20358_vm0, %v22159_v45  ;;  %v5659_v53 = vpack.c.bf16 %v5633_v40, %v5632_v1  ;;  %v20157_v1 = vld [vmem:[%s24115_s4 + $0xc0] sm:$0xff]  }
 0x44b   : > { %16372 = vmatmul.mubr.bf16.gmra.mrb[112].mxu1 %v5652_v39  ;;  %v5635_v39 = vld [vmem:[#allocation2 + $0xfa] sm:$0xff] }
 0x44c   : > { %16375 = vmatprep.mubr.msk.bf16.mxu1 %vm20358_vm0, %v22159_v45  ;;  %v5660_v35 = vpack.c.bf16 %v5635_v39, %v5634_v8  ;;  %v6057_v39 = vld [vmem:[#allocation2 + $0x1b] sm:$0xff]  ;;  %v6056_v8 = vld [vmem:[#allocation2 + $0x13] sm:$0xff] }
 0x453   : > { %16376 = vmatmul.mubr.bf16.gmra.mrb[116].mxu1 %v5653_v25  ;;  %v5637_v25 = vld [vmem:[#allocation2 + $0x10a] sm:$0xff] }
 0x454   : > { %16379 = vmatprep.mubr.msk.bf16.mxu1 %vm20358_vm0, %v22159_v45  ;;  %v5661_v52 = vpack.c.bf16 %v5637_v25, %v5636_v57  ;;  %v22332_v25 = vpack.c.bf16 %v6057_v39, %v6056_v8  ;;  %v20160_v57 = vld [vmem:[%s24115_s4 + $0xd8] sm:$0xff]   ;;  %v6066_v39 = vld [vmem:[#allocation2 + $0x63] sm:$0xff] }
 0x45b   : > { %16380 = vmatmul.mubr.bf16.gmra.mrb[120].mxu1 %v5654_v47  ;;  %v5639_v47 = vld [vmem:[#allocation2 + $0x11a] sm:$0xff] }
 0x45c   : > { %16383 = vmatprep.mubr.msk.bf16.mxu1 %vm20358_vm0, %v22159_v45  ;;  %v5662_v11 = vpack.c.bf16 %v5639_v47, %v5638_v59  ;;  %v6058_v47 = vld [vmem:[#allocation2 + $0x23] sm:$0xff] }
 0x45d   : > { %v20161_v59 = vld [vmem:[%s24115_s4 + $0xe0] sm:$0xff]  }
 0x463   : > { %16384 = vmatmul.mubr.bf16.gmra.mrb[124].mxu1 %v5655_v6  ;;  %v5641_v6 = vld [vmem:[#allocation2 + $0x12a] sm:$0xff] }
 0x464   : > { %16387 = vmatprep.mubr.msk.bf16.mxu1 %vm20358_vm0, %v22159_v45  ;;  %v5663_v62 = vpack.c.bf16 %v5641_v6, %v5640_v14  ;;  %v20162_v6 = vld [vmem:[%s24115_s4 + $0xe8] sm:$0xff]   ;;  %v6061_v14 = vld [vmem:[#allocation2 + $0x3b] sm:$0xff] }
 0x46b   : > { %16388 = vmatmul.mubr.bf16.gmra.mrb[128].mxu1 %v5656_v22  ;;  %v5643_v22 = vld [vmem:[#allocation2 + $0x13a] sm:$0xff] }
 0x46c   : > { %16391 = vmatprep.mubr.msk.bf16.mxu1 %vm20358_vm0, %v22159_v45  ;;  %v5664_v43 = vpack.c.bf16 %v5643_v22, %v5642_v27  ;;  %v20163_v22 = vld [vmem:[%s24115_s4 + $0xf0] sm:$0xff]  }
 0x473   : > { %16392 = vmatmul.mubr.bf16.gmra.mrb[132].mxu1 %v5657_v7  ;;  %v5644_v7 = vld [vmem:[#allocation2 + $0x142] sm:$0xff] }
 0x474   : > { %16395 = vmatprep.mubr.msk.bf16.mxu1 %vm20358_vm0, %v22159_v45  ;;  %v5665_v28 = vpack.c.bf16 %v5644_v7, %v5644_v7  ;;  %v6063_v7 = vld [vmem:[#allocation2 + $0x4b] sm:$0xff] }
 0x47b   : > { %16396 = vmatmul.mubr.bf16.gmra.mrb[136].mxu1 %v5658_v60  ;;  %v6055_v60 = vld [vmem:[#allocation2 + $0xb] sm:$0xff] }
 0x47c   : > { %16399 = vmatprep.mubr.msk.bf16.mxu1 %vm20358_vm0, %v22159_v45  ;;  %v6095_v40 = vpack.c.bf16 %v6055_v60, %v6054_v19  ;;  %v6065_v60 = vld [vmem:[#allocation2 + $0x5b] sm:$0xff] }
 0x483   : > { %16400 = vmatmul.mubr.bf16.gmra.mrb[140].mxu1 %v5659_v53  ;;  %v20158_v53 = vld [vmem:[%s24115_s4 + $0xc8] sm:$0xff]  }
 0x484   : > { %16403 = vmatprep.mubr.msk.bf16.mxu1 %vm20358_vm0, %v22159_v45 }
 0x48b   : > { %16404 = vmatmul.mubr.bf16.gmra.mrb[144].mxu1 %v5660_v35  ;;  %v20159_v35 = vld [vmem:[%s24115_s4 + $0xd0] sm:$0xff]  }
 0x48c   : > { %16407 = vmatprep.mubr.msk.bf16.mxu1 %vm20358_vm0, %v22159_v45 }
 0x493   : > { %16408 = vmatmul.mubr.bf16.gmra.mrb[148].mxu1 %v5661_v52  ;;  %v6059_v52 = vld [vmem:[#allocation2 + $0x2b] sm:$0xff] }
 0x494   : > { %16411 = vmatprep.mubr.msk.bf16.mxu1 %vm20358_vm0, %v22159_v45 }
 0x49b   : > { %16412 = vmatmul.mubr.bf16.gmra.mrb[152].mxu1 %v5662_v11  ;;  %v22345_v11 = vpack.c.bf16 %v6059_v52, %v6058_v47  ;;  %v6071_v47 = vld [vmem:[#allocation2 + $0x8b] sm:$0xff] }
 0x49c   : > { %16415 = vmatprep.mubr.msk.bf16.mxu1 %vm20358_vm0, %v22159_v45 }
 0x4a3   : > { %16416 = vmatmul.mubr.bf16.gmra.mrb[156].mxu1 %v5663_v62  ;;  %v6060_v62 = vld [vmem:[#allocation2 + $0x33] sm:$0xff] }
 0x4a4   : > { %16419 = vmatprep.mubr.msk.bf16.mxu1 %vm20358_vm0, %v22159_v45  ;;  %v22358_v27 = vpack.c.bf16 %v6061_v14, %v6060_v62  ;;  %v6073_v14 = vld [vmem:[#allocation2 + $0x9b] sm:$0xff]  ;;  %v6072_v62 = vld [vmem:[#allocation2 + $0x93] sm:$0xff] }
 0x4ab   : > { %16420 = vmatmul.mubr.bf16.gmra.mrb[160].mxu1 %v5664_v43  ;;  %v20164_v43 = vld [vmem:[%s24115_s4 + $0xf8] sm:$0xff]  }
 0x4ac   : > { %16423 = vmatprep.mubr.msk.bf16.mxu1 %vm20358_vm0, %v22159_v45 }
 0x4b3   : > { %16424 = vmatmul.mubr.bf16.gmra.mrb[164].mxu1 %v5665_v28  ;;  %v6062_v28 = vld [vmem:[#allocation2 + $0x43] sm:$0xff] }
 0x4b4   : > { %16443 = vmatprep.mubr.msk.bf16.mxu1 %vm20358_vm0, %v22159_v45  ;;  %v22368_v19 = vpack.c.bf16 %v6063_v7, %v6062_v28  ;;  %v6074_v7 = vld [vmem:[#allocation2 + $0xa3] sm:$0xff] }
 0x4bb   : > { %16444 = vmatmul.mubr.bf16.vlgmr.msra.gmra.mrb[84].mxu1 %v6095_v40  ;;  %v6064_v40 = vld [vmem:[#allocation2 + $0x53] sm:$0xff] }
 0x4bc   : > { %16528 = vmatpush3.bf16.msra.mxu1 %v20157_v1  ;;  %16447 = vmatprep.mubr.msk.bf16.mxu1 %vm20358_vm0, %v22159_v45  ;;  %v22374_v1 = vpack.c.bf16 %v6065_v60, %v6064_v40  ;;  %v6077_v60 = vld [vmem:[#allocation2 + $0xbb] sm:$0xff]  ;;  %v6076_v40 = vld [vmem:[#allocation2 + $0xb3] sm:$0xff] }
 0x4bd   : > { %16529 = vmatprep.subr.bf16.mxu1 %v22159_v45 }
 0x4c0   : > { %16530 = vmatpush3.bf16.msra.mxu1 %v20158_v53  ;;  %v6067_v53 = vld [vmem:[#allocation2 + $0x6b] sm:$0xff] }
 0x4c1   : > { %16531 = vmatprep.subr.bf16.mxu1 %v22159_v45  ;;  %v22379_v8 = vpack.c.bf16 %v6067_v53, %v6066_v39  ;;  %v22404_v53 = vpack.c.bf16 %v6077_v60, %v6076_v40  ;;  %v6079_v39 = vld [vmem:[#allocation2 + $0xcb] sm:$0xff]  ;;  %v6085_v60 = vld [vmem:[#allocation2 + $0xfb] sm:$0xff]  ;;  %v6084_v40 = vld [vmem:[#allocation2 + $0xf3] sm:$0xff] }
 0x4c3   : > { %16448 = vmatmul.mubr.bf16.gmra.mrb[88].mxu1 %v22332_v25 }
 0x4c4   : > { %16451 = vmatprep.mubr.msk.bf16.mxu1 %vm20358_vm0, %v22159_v45  ;;  %16532 = vmatpush3.bf16.msra.mxu1 %v20159_v35  ;;  %v6069_v35 = vld [vmem:[#allocation2 + $0x7b] sm:$0xff] }
 0x4c5   : > { %16533 = vmatprep.subr.bf16.mxu1 %v22159_v45 }
 0x4c8   : > { %16534 = vmatpush3.bf16.msra.mxu1 %v20160_v57  ;;  %v6068_v57 = vld [vmem:[#allocation2 + $0x73] sm:$0xff] }
 0x4c9   : > { %16535 = vmatprep.subr.bf16.mxu1 %v22159_v45  ;;  %v22384_v52 = vpack.c.bf16 %v6069_v35, %v6068_v57  ;;  %v6078_v35 = vld [vmem:[#allocation2 + $0xc3] sm:$0xff] }
 0x4ca   : > { %v22409_v57 = vpack.c.bf16 %v6079_v39, %v6078_v35  ;;  %v22424_v39 = vpack.c.bf16 %v6085_v60, %v6084_v40  ;;  %v6087_v35 = vld [vmem:[#allocation2 + $0x10b] sm:$0xff]  ;;  %v6090_v40 = vld [vmem:[#allocation2 + $0x123] sm:$0xff] }
 0x4cb   : > { %16452 = vmatmul.mubr.bf16.gmra.mrb[92].mxu1 %v22345_v11  ;;  %v6091_v60 = vld [vmem:[#allocation2 + $0x12b] sm:$0xff] }
 0x4cc   : > { %16455 = vmatprep.mubr.msk.bf16.mxu1 %vm20358_vm0, %v22159_v45  ;;  %16536 = vmatpush3.bf16.msra.mxu1 %v20161_v59  ;;  %v6070_v59 = vld [vmem:[#allocation2 + $0x83] sm:$0xff]  ;;  %v22439_v24 = vpack.c.bf16 %v6091_v60, %v6090_v40 }
 0x4cd   : > { %16537 = vmatprep.subr.bf16.mxu1 %v22159_v45  ;;  %v20165_v60 = vld [vmem:[%s24115_s4 + $0x100] sm:$0xff]   ;;  %v20166_v40 = vld [vmem:[%s24115_s4 + $0x108] sm:$0xff]  }
 0x4d0   : > { %16538 = vmatpush3.bf16.msra.mxu1 %v20162_v6  ;;  %v22389_v6 = vpack.c.bf16 %v6071_v47, %v6070_v59  ;;  %v6081_v47 = vld [vmem:[#allocation2 + $0xdb] sm:$0xff]  ;;  %v6080_v59 = vld [vmem:[#allocation2 + $0xd3] sm:$0xff] }
 0x4d1   : > { %16539 = vmatprep.subr.bf16.mxu1 %v22159_v45 }
 0x4d3   : > { %16456 = vmatmul.mubr.bf16.gmra.mrb[96].mxu1 %v22358_v27 }
 0x4d4   : > { %16459 = vmatprep.mubr.msk.bf16.mxu1 %vm20358_vm0, %v22159_v45  ;;  %16540 = vmatpush3.bf16.msra.mxu1 %v20163_v22  ;;  %v22394_v22 = vpack.c.bf16 %v6073_v14, %v6072_v62  ;;  %v22414_v14 = vpack.c.bf16 %v6081_v47, %v6080_v59  ;;  %v6083_v62 = vld [vmem:[#allocation2 + $0xeb] sm:$0xff]  ;;  %v6086_v47 = vld [vmem:[#allocation2 + $0x103] sm:$0xff] }
 0x4d5   : > { %16541 = vmatprep.subr.bf16.mxu1 %v22159_v45  ;;  %v22429_v59 = vpack.c.bf16 %v6087_v35, %v6086_v47  ;;  %v6093_v35 = vld [vmem:[#allocation2 + $0x13b] sm:$0xff]  ;;  %v6092_v47 = vld [vmem:[#allocation2 + $0x133] sm:$0xff] }
 0x4d6   : > { %v22444_v12 = vpack.c.bf16 %v6093_v35, %v6092_v47  ;;  %v20167_v35 = vld [vmem:[%s24115_s4 + $0x110] sm:$0xff]   ;;  %v20169_v47 = vld [vmem:[%s24115_s4 + $0x120] sm:$0xff]  }
 0x4d8   : > { %16542 = vmatpush3.bf16.msra.mxu1 %v20164_v43  ;;  %v6075_v43 = vld [vmem:[#allocation2 + $0xab] sm:$0xff] }
 0x4d9   : > { %16627 = vmatprep.subr.bf16.mxu1 %v22159_v45  ;;  %v22399_v28 = vpack.c.bf16 %v6075_v43, %v6074_v7  ;;  %v6082_v43 = vld [vmem:[#allocation2 + $0xe3] sm:$0xff] }
 0x4da   : > { %v22419_v7 = vpack.c.bf16 %v6083_v62, %v6082_v43  ;;  %v6089_v62 = vld [vmem:[#allocation2 + $0x11b] sm:$0xff]  ;;  %v6088_v43 = vld [vmem:[#allocation2 + $0x113] sm:$0xff] }
 0x4db   : > { %16460 = vmatmul.mubr.bf16.gmra.mrb[100].mxu1 %v22368_v19  ;;  %v22434_v54 = vpack.c.bf16 %v6089_v62, %v6088_v43  ;;  %v22449_v62 = vld [vmem:[#allocation2 + $0x143] sm:$0xff] }
 0x4dc   : > { %16463 = vmatprep.mubr.msk.bf16.mxu1 %vm20358_vm0, %v22159_v45  ;;  %v6115_v43 = vpack.c.bf16 %v22449_v62, %v22449_v62 }
 0x4e3   : > { %16464 = vmatmul.mubr.bf16.gmra.mrb[104].mxu1 %v22374_v1 }
 0x4e4   : > { %16467 = vmatprep.mubr.msk.bf16.mxu1 %vm20358_vm0, %v22159_v45 }
 0x4eb   : > { %16468 = vmatmul.mubr.bf16.gmra.mrb[108].mxu1 %v22379_v8 }
 0x4ec   : > { %16471 = vmatprep.mubr.msk.bf16.mxu1 %vm20358_vm0, %v22159_v45 }
 0x4f3   : > { %16472 = vmatmul.mubr.bf16.gmra.mrb[112].mxu1 %v22384_v52 }
 0x4f4   : > { %16475 = vmatprep.mubr.msk.bf16.mxu1 %vm20358_vm0, %v22159_v45 }
 0x4fb   : > { %16476 = vmatmul.mubr.bf16.gmra.mrb[116].mxu1 %v22389_v6 }
 0x4fc   : > { %16479 = vmatprep.mubr.msk.bf16.mxu1 %vm20358_vm0, %v22159_v45 }
 0x503   : > { %16480 = vmatmul.mubr.bf16.gmra.mrb[120].mxu1 %v22394_v22 }
 0x504   : > { %16483 = vmatprep.mubr.msk.bf16.mxu1 %vm20358_vm0, %v22159_v45 }
 0x50b   : > { %16484 = vmatmul.mubr.bf16.gmra.mrb[124].mxu1 %v22399_v28 }
 0x50c   : > { %16487 = vmatprep.mubr.msk.bf16.mxu1 %vm20358_vm0, %v22159_v45 }
 0x513   : > { %16488 = vmatmul.mubr.bf16.gmra.mrb[128].mxu1 %v22404_v53 }
 0x514   : > { %16491 = vmatprep.mubr.msk.bf16.mxu1 %vm20358_vm0, %v22159_v45 }
 0x51b   : > { %16492 = vmatmul.mubr.bf16.gmra.mrb[132].mxu1 %v22409_v57 }
 0x51c   : > { %16495 = vmatprep.mubr.msk.bf16.mxu1 %vm20358_vm0, %v22159_v45 }
 0x523   : > { %16496 = vmatmul.mubr.bf16.gmra.mrb[136].mxu1 %v22414_v14 }
 0x524   : > { %16499 = vmatprep.mubr.msk.bf16.mxu1 %vm20358_vm0, %v22159_v45 }
 0x52b   : > { %16500 = vmatmul.mubr.bf16.gmra.mrb[140].mxu1 %v22419_v7 }
 0x52c   : > { %16503 = vmatprep.mubr.msk.bf16.mxu1 %vm20358_vm0, %v22159_v45 }
 0x533   : > { %16504 = vmatmul.mubr.bf16.gmra.mrb[144].mxu1 %v22424_v39 }
 0x534   : > { %16507 = vmatprep.mubr.msk.bf16.mxu1 %vm20358_vm0, %v22159_v45 }
 0x53b   : > { %16508 = vmatmul.mubr.bf16.gmra.mrb[148].mxu1 %v22429_v59 }
 0x53c   : > { %16511 = vmatprep.mubr.msk.bf16.mxu1 %vm20358_vm0, %v22159_v45 }
 0x543   : > { %16512 = vmatmul.mubr.bf16.gmra.mrb[152].mxu1 %v22434_v54 }
 0x544   : > { %16515 = vmatprep.mubr.msk.bf16.mxu1 %vm20358_vm0, %v22159_v45 }
 0x54b   : > { %16516 = vmatmul.mubr.bf16.gmra.mrb[156].mxu1 %v22439_v24 }
 0x54c   : > { %16519 = vmatprep.mubr.msk.bf16.mxu1 %vm20358_vm0, %v22159_v45 }
 0x553   : > { %16520 = vmatmul.mubr.bf16.gmra.mrb[160].mxu1 %v22444_v12 }
 0x554   : > { %16523 = vmatprep.mubr.msk.bf16.mxu1 %vm20358_vm0, %v22159_v45 }
 0x55b   : > { %16524 = vmatmul.mubr.bf16.gmra.mrb[164].mxu1 %v6115_v43  ;;  %v20171_v43 = vld [vmem:[%s24115_s4 + $0x130] sm:$0xff]  }
 0x55c   : > { %16543 = vmatprep.mubr.msk.bf16.mxu1 %vm20358_vm0, %v22159_v45 }
 0x563   : > { %16544 = vmatmul.mubr.bf16.vlgmr.msra.gmra.mrb[84].mxu1 %v22332_v25  ;;  %v20168_v25 = vld [vmem:[%s24115_s4 + $0x118] sm:$0xff]  }
 0x564   : > { %16628 = vmatpush3.bf16.msra.mxu1 %v20165_v60  ;;  %16547 = vmatprep.mubr.msk.bf16.mxu1 %vm20358_vm0, %v22159_v45 }
 0x565   : > { %16629 = vmatprep.subr.bf16.mxu1 %v22159_v45 }
 0x568   : > { %16630 = vmatpush3.bf16.msra.mxu1 %v20166_v40  ;;  %v20178_v40 = vld [vmem:[%s24115_s4 + $0x168] sm:$0xff]  }
 0x569   : > { %16631 = vmatprep.subr.bf16.mxu1 %v22159_v45 }
 0x56b   : > { %16548 = vmatmul.mubr.bf16.gmra.mrb[88].mxu1 %v22345_v11  ;;  %v20170_v11 = vld [vmem:[%s24115_s4 + $0x128] sm:$0xff]  }
 0x56c   : > { %16551 = vmatprep.mubr.msk.bf16.mxu1 %vm20358_vm0, %v22159_v45  ;;  %16632 = vmatpush3.bf16.msra.mxu1 %v20167_v35  ;;  %v6961_v35 = vld [vmem:[#allocation2 + $0x4c] sm:$0xff] }
 0x56d   : > { %16633 = vmatprep.subr.bf16.mxu1 %v22159_v45 }
 0x570   : > { %16634 = vmatpush3.bf16.msra.mxu1 %v20168_v25  ;;  %v6960_v25 = vld [vmem:[#allocation2 + $0x44] sm:$0xff] }
 0x571   : > { %16635 = vmatprep.subr.bf16.mxu1 %v22159_v45 }
 0x573   : > { %16552 = vmatmul.mubr.bf16.gmra.mrb[92].mxu1 %v22358_v27  ;;  %v20172_v27 = vld [vmem:[%s24115_s4 + $0x138] sm:$0xff]  }
 0x574   : > { %16555 = vmatprep.mubr.msk.bf16.mxu1 %vm20358_vm0, %v22159_v45  ;;  %16636 = vmatpush3.bf16.msra.mxu1 %v20169_v47  ;;  %v20179_v47 = vld [vmem:[%s24115_s4 + $0x170] sm:$0xff]  }
 0x575   : > { %16637 = vmatprep.subr.bf16.mxu1 %v22159_v45 }
 0x578   : > { %16638 = vmatpush3.bf16.msra.mxu1 %v20170_v11  ;;  %v6998_v11 = vpack.c.bf16 %v6961_v35, %v6960_v25  ;;  %v6977_v25 = vld [vmem:[#allocation2 + $0xcc] sm:$0xff] }
 0x579   : > { %16639 = vmatprep.subr.bf16.mxu1 %v22159_v45 }
 0x57b   : > { %16556 = vmatmul.mubr.bf16.gmra.mrb[96].mxu1 %v22368_v19  ;;  %v6543_v19 = vld [vmem:[#allocation2 + $0x14b] sm:$0xff] }
 0x57c   : > { %16559 = vmatprep.mubr.msk.bf16.mxu1 %vm20358_vm0, %v22159_v45  ;;  %16640 = vmatpush3.bf16.msra.mxu1 %v20171_v43  ;;  %v20180_v43 = vld [vmem:[%s24115_s4 + $0x178] sm:$0xff]  }
 0x57d   : > { %16641 = vmatprep.subr.bf16.mxu1 %v22159_v45 }
 0x580   : > { %16642 = vmatpush3.bf16.msra.mxu1 %v20172_v27  ;;  %v6963_v27 = vld [vmem:[#allocation2 + $0x5c] sm:$0xff] }
 0x581   : > { %16727 = vmatprep.subr.bf16.mxu1 %v22159_v45 }
 0x583   : > { %16560 = vmatmul.mubr.bf16.gmra.mrb[100].mxu1 %v22374_v1  ;;  %v6564_v1 = vpack.c.bf16 %v6543_v19, %v22449_v62  ;;  %v20177_v62 = vld [vmem:[%s24115_s4 + $0x160] sm:$0xff]   ;;  %v6962_v19 = vld [vmem:[#allocation2 + $0x54] sm:$0xff] }
 0x584   : > { %16563 = vmatprep.mubr.msk.bf16.mxu1 %vm20358_vm0, %v22159_v45 }
 0x58b   : > { %16564 = vmatmul.mubr.bf16.gmra.mrb[104].mxu1 %v22379_v8 }
 0x58c   : > { %16567 = vmatprep.mubr.msk.bf16.mxu1 %vm20358_vm0, %v22159_v45 }
 0x593   : > { %16568 = vmatmul.mubr.bf16.gmra.mrb[108].mxu1 %v22384_v52  ;;  %v6954_v52 = vld [vmem:[#allocation2 + $0x14] sm:$0xff] }
 0x594   : > { %16571 = vmatprep.mubr.msk.bf16.mxu1 %vm20358_vm0, %v22159_v45 }
 0x59b   : > { %16572 = vmatmul.mubr.bf16.gmra.mrb[112].mxu1 %v22389_v6 }
 0x59c   : > { %16575 = vmatprep.mubr.msk.bf16.mxu1 %vm20358_vm0, %v22159_v45 }
 0x5a3   : > { %16576 = vmatmul.mubr.bf16.gmra.mrb[116].mxu1 %v22394_v22  ;;  %v22552_v22 = vld [vmem:[#allocation2] sm:$0xff] }
 0x5a4   : > { %16579 = vmatprep.mubr.msk.bf16.mxu1 %vm20358_vm0, %v22159_v45 }
 0x5ab   : > { %16580 = vmatmul.mubr.bf16.gmra.mrb[120].mxu1 %v22399_v28  ;;  %v20174_v28 = vld [vmem:[%s24115_s4 + $0x148] sm:$0xff]  }
 0x5ac   : > { %16583 = vmatprep.mubr.msk.bf16.mxu1 %vm20358_vm0, %v22159_v45 }
 0x5b3   : > { %16584 = vmatmul.mubr.bf16.gmra.mrb[124].mxu1 %v22404_v53  ;;  %v6956_v53 = vld [vmem:[#allocation2 + $0x24] sm:$0xff] }
 0x5b4   : > { %16587 = vmatprep.mubr.msk.bf16.mxu1 %vm20358_vm0, %v22159_v45 }
 0x5bb   : > { %16588 = vmatmul.mubr.bf16.gmra.mrb[128].mxu1 %v22409_v57  ;;  %v20175_v57 = vld [vmem:[%s24115_s4 + $0x150] sm:$0xff]  }
 0x5bc   : > { %16591 = vmatprep.mubr.msk.bf16.mxu1 %vm20358_vm0, %v22159_v45 }
 0x5c3   : > { %16592 = vmatmul.mubr.bf16.gmra.mrb[132].mxu1 %v22414_v14 }
 0x5c4   : > { %16595 = vmatprep.mubr.msk.bf16.mxu1 %vm20358_vm0, %v22159_v45 }
 0x5cb   : > { %16596 = vmatmul.mubr.bf16.gmra.mrb[136].mxu1 %v22419_v7  ;;  %v20176_v7 = vld [vmem:[%s24115_s4 + $0x158] sm:$0xff]  }
 0x5cc   : > { %16599 = vmatprep.mubr.msk.bf16.mxu1 %vm20358_vm0, %v22159_v45 }
 0x5d3   : > { %16600 = vmatmul.mubr.bf16.gmra.mrb[140].mxu1 %v22424_v39  ;;  %v6959_v39 = vld [vmem:[#allocation2 + $0x3c] sm:$0xff] }
 0x5d4   : > { %16603 = vmatprep.mubr.msk.bf16.mxu1 %vm20358_vm0, %v22159_v45 }
 0x5db   : > { %16604 = vmatmul.mubr.bf16.gmra.mrb[144].mxu1 %v22429_v59  ;;  %v6958_v59 = vld [vmem:[#allocation2 + $0x34] sm:$0xff] }
 0x5dc   : > { %16607 = vmatprep.mubr.msk.bf16.mxu1 %vm20358_vm0, %v22159_v45  ;;  %v6997_v60 = vpack.c.bf16 %v6959_v39, %v6958_v59  ;;  %v6973_v39 = vld [vmem:[#allocation2 + $0xac] sm:$0xff]  ;;  %v6972_v59 = vld [vmem:[#allocation2 + $0xa4] sm:$0xff] }
 0x5e3   : > { %16608 = vmatmul.mubr.bf16.gmra.mrb[148].mxu1 %v22434_v54  ;;  %v6544_v54 = vld [vmem:[#allocation2 + $0x153] sm:$0xff] }
 0x5e4   : > { %16611 = vmatprep.mubr.msk.bf16.mxu1 %vm20358_vm0, %v22159_v45  ;;  %v6565_v8 = vpack.c.bf16 %v6544_v54, %v6544_v54  ;;  %v6965_v54 = vld [vmem:[#allocation2 + $0x6c] sm:$0xff] }
 0x5eb   : > { %16612 = vmatmul.mubr.bf16.gmra.mrb[152].mxu1 %v22439_v24  ;;  %v6955_v24 = vld [vmem:[#allocation2 + $0x1c] sm:$0xff] }
 0x5ec   : > { %16615 = vmatprep.mubr.msk.bf16.mxu1 %vm20358_vm0, %v22159_v45  ;;  %v6995_v6 = vpack.c.bf16 %v6955_v24, %v6954_v52  ;;  %v6967_v52 = vld [vmem:[#allocation2 + $0x7c] sm:$0xff] }
 0x5f3   : > { %16616 = vmatmul.mubr.bf16.gmra.mrb[156].mxu1 %v22444_v12  ;;  %v20173_v12 = vld [vmem:[%s24115_s4 + $0x140] sm:$0xff]  }
 0x5f4   : > { %16619 = vmatprep.mubr.msk.bf16.mxu1 %vm20358_vm0, %v22159_v45 }
 0x5fb   : > { %16620 = vmatmul.mubr.bf16.gmra.mrb[160].mxu1 %v6564_v1  ;;  %v6999_v1 = vpack.c.bf16 %v6963_v27, %v6962_v19  ;;  %v6978_v27 = vld [vmem:[#allocation2 + $0xd4] sm:$0xff] }
 0x5fc   : > { %16623 = vmatprep.mubr.msk.bf16.mxu1 %vm20358_vm0, %v22159_v45 }
 0x603   : > { %16624 = vmatmul.mubr.bf16.gmra.mrb[164].mxu1 %v6565_v8  ;;  %v6964_v8 = vld [vmem:[#allocation2 + $0x64] sm:$0xff] }
 0x604   : > { %16643 = vmatprep.mubr.msk.bf16.mxu1 %vm20358_vm0, %v22159_v45  ;;  %v6957_v45 = vld [vmem:[#allocation2 + $0x2c] sm:$0xff]  ;;  %v7000_v24 = vpack.c.bf16 %v6965_v54, %v6964_v8  ;;  %v6980_v54 = vld [vmem:[#allocation2 + $0xe4] sm:$0xff] }
 0x605   : > { %v6996_v14 = vpack.c.bf16 %v6957_v45, %v6956_v53  ;;  %v6968_v45 = vld [vmem:[#allocation2 + $0x84] sm:$0xff] }
 0x60b   : > { %16644 = vmatmul.mubr.bf16.vlgmr.msra.gmra.mrb[84].mxu1 %v6995_v6 }
 0x60c   : > { %16728 = vmatpush3.bf16.msra.mxu1 %v20173_v12  ;;  %16647 = vmatprep.mubr.msk.bf16.mxu1 %vm20358_vm0, %v22552_v22  ;;  %v6966_v12 = vld [vmem:[#allocation2 + $0x74] sm:$0xff] }
 0x60d   : > { %16729 = vmatprep.subr.bf16.mxu1 %v22552_v22  ;;  %v7001_v6 = vpack.c.bf16 %v6967_v52, %v6966_v12  ;;  %v6982_v52 = vld [vmem:[#allocation2 + $0xf4] sm:$0xff] }
 0x610   : > { %16730 = vmatpush3.bf16.msra.mxu1 %v20174_v28  ;;  %v6969_v28 = vld [vmem:[#allocation2 + $0x8c] sm:$0xff] }
 0x611   : > { %16731 = vmatprep.subr.bf16.mxu1 %v22552_v22  ;;  %v7002_v53 = vpack.c.bf16 %v6969_v28, %v6968_v45  ;;  %v6984_v28 = vld [vmem:[#allocation2 + $0x104] sm:$0xff] }
 0x613   : > { %16648 = vmatmul.mubr.bf16.gmra.mrb[88].mxu1 %v6996_v14  ;;  %v6970_v14 = vld [vmem:[#allocation2 + $0x94] sm:$0xff] }
 0x614   : > { %16651 = vmatprep.mubr.msk.bf16.mxu1 %vm20358_vm0, %v22552_v22  ;;  %16732 = vmatpush3.bf16.msra.mxu1 %v20175_v57  ;;  %v6971_v57 = vld [vmem:[#allocation2 + $0x9c] sm:$0xff] }
 0x615   : > { %16733 = vmatprep.subr.bf16.mxu1 %v22552_v22 }
 0x618   : > { %16734 = vmatpush3.bf16.msra.mxu1 %v20176_v7  ;;  %v7003_v7 = vpack.c.bf16 %v6971_v57, %v6970_v14  ;;  %v6986_v57 = vld [vmem:[#allocation2 + $0x114] sm:$0xff] }
 0x619   : > { %16735 = vmatprep.subr.bf16.mxu1 %v22552_v22 }
 0x61b   : > { %16652 = vmatmul.mubr.bf16.gmra.mrb[92].mxu1 %v6997_v60  ;;  %v6975_v60 = vld [vmem:[#allocation2 + $0xbc] sm:$0xff] }
 0x61c   : > { %16655 = vmatprep.mubr.msk.bf16.mxu1 %vm20358_vm0, %v22552_v22  ;;  %16736 = vmatpush3.bf16.msra.mxu1 %v20177_v62  ;;  %v7004_v62 = vpack.c.bf16 %v6973_v39, %v6972_v59  ;;  %v6988_v39 = vld [vmem:[#allocation2 + $0x124] sm:$0xff] }
 0x61d   : > { %16737 = vmatprep.subr.bf16.mxu1 %v22552_v22 }
 0x620   : > { %16738 = vmatpush3.bf16.msra.mxu1 %v20178_v40  ;;  %v6974_v40 = vld [vmem:[#allocation2 + $0xb4] sm:$0xff] }
 0x621   : > { %16739 = vmatprep.subr.bf16.mxu1 %v22552_v22  ;;  %v7005_v35 = vpack.c.bf16 %v6975_v60, %v6974_v40  ;;  %v6990_v60 = vld [vmem:[#allocation2 + $0x134] sm:$0xff] }
 0x623   : > { %16656 = vmatmul.mubr.bf16.gmra.mrb[96].mxu1 %v6998_v11 }
 0x624   : > { %16659 = vmatprep.mubr.msk.bf16.mxu1 %vm20358_vm0, %v22552_v22  ;;  %16740 = vmatpush3.bf16.msra.mxu1 %v20179_v47  ;;  %v6976_v47 = vld [vmem:[#allocation2 + $0xc4] sm:$0xff] }
 0x625   : > { %16741 = vmatprep.subr.bf16.mxu1 %v22552_v22  ;;  %v7006_v11 = vpack.c.bf16 %v6977_v25, %v6976_v47  ;;  %v6992_v25 = vld [vmem:[#allocation2 + $0x144] sm:$0xff] }
 0x628   : > { %16742 = vmatpush3.bf16.msra.mxu1 %v20180_v43  ;;  %v6979_v43 = vld [vmem:[#allocation2 + $0xdc] sm:$0xff] }
 0x629   : > { %16827 = vmatprep.subr.bf16.mxu1 %v22552_v22  ;;  %v7007_v19 = vpack.c.bf16 %v6979_v43, %v6978_v27  ;;  %v7405_v27 = vld [vmem:[#allocation2 + $0x1d] sm:$0xff] }
 0x62b   : > { %16660 = vmatmul.mubr.bf16.gmra.mrb[100].mxu1 %v6999_v1  ;;  %v6981_v1 = vld [vmem:[#allocation2 + $0xec] sm:$0xff] }
 0x62c   : > { %16663 = vmatprep.mubr.msk.bf16.mxu1 %vm20358_vm0, %v22552_v22  ;;  %v7008_v8 = vpack.c.bf16 %v6981_v1, %v6980_v54  ;;  %v20181_v1 = vld [vmem:[%s24115_s4 + $0x180] sm:$0xff]  }
 0x633   : > { %16664 = vmatmul.mubr.bf16.gmra.mrb[104].mxu1 %v7000_v24  ;;  %v6983_v24 = vld [vmem:[#allocation2 + $0xfc] sm:$0xff] }
 0x634   : > { %16667 = vmatprep.mubr.msk.bf16.mxu1 %vm20358_vm0, %v22552_v22  ;;  %v7009_v12 = vpack.c.bf16 %v6983_v24, %v6982_v52  ;;  %v7407_v24 = vld [vmem:[#allocation2 + $0x2d] sm:$0xff]  ;;  %v7406_v52 = vld [vmem:[#allocation2 + $0x25] sm:$0xff] }
 0x63b   : > { %16668 = vmatmul.mubr.bf16.gmra.mrb[108].mxu1 %v7001_v6  ;;  %v6985_v6 = vld [vmem:[#allocation2 + $0x10c] sm:$0xff] }
 0x63c   : > { %16671 = vmatprep.mubr.msk.bf16.mxu1 %vm20358_vm0, %v22552_v22  ;;  %v7010_v45 = vpack.c.bf16 %v6985_v6, %v6984_v28  ;;  %v22637_v6 = vpack.c.bf16 %v7407_v24, %v7406_v52  ;;  %v20184_v28 = vld [vmem:[%s24115_s4 + $0x198] sm:$0xff]   ;;  %v7418_v24 = vld [vmem:[#allocation2 + $0x85] sm:$0xff] }
 0x643   : > { %16672 = vmatmul.mubr.bf16.gmra.mrb[112].mxu1 %v7002_v53  ;;  %v6987_v53 = vld [vmem:[#allocation2 + $0x11c] sm:$0xff] }
 0x644   : > { %16675 = vmatprep.mubr.msk.bf16.mxu1 %vm20358_vm0, %v22552_v22  ;;  %v7011_v14 = vpack.c.bf16 %v6987_v53, %v6986_v57  ;;  %v7408_v53 = vld [vmem:[#allocation2 + $0x35] sm:$0xff]  ;;  %v20185_v57 = vld [vmem:[%s24115_s4 + $0x1a0] sm:$0xff]  }
 0x64b   : > { %16676 = vmatmul.mubr.bf16.gmra.mrb[116].mxu1 %v7003_v7  ;;  %v6989_v7 = vld [vmem:[#allocation2 + $0x12c] sm:$0xff] }
 0x64c   : > { %16679 = vmatprep.mubr.msk.bf16.mxu1 %vm20358_vm0, %v22552_v22  ;;  %v7012_v59 = vpack.c.bf16 %v6989_v7, %v6988_v39  ;;  %v20186_v7 = vld [vmem:[%s24115_s4 + $0x1a8] sm:$0xff]  }
 0x64d   : > { %v7411_v39 = vld [vmem:[#allocation2 + $0x4d] sm:$0xff] }
 0x653   : > { %16680 = vmatmul.mubr.bf16.gmra.mrb[120].mxu1 %v7004_v62  ;;  %v6991_v62 = vld [vmem:[#allocation2 + $0x13c] sm:$0xff] }
 0x654   : > { %16683 = vmatprep.mubr.msk.bf16.mxu1 %vm20358_vm0, %v22552_v22  ;;  %v7013_v40 = vpack.c.bf16 %v6991_v62, %v6990_v60  ;;  %v20187_v62 = vld [vmem:[%s24115_s4 + $0x1b0] sm:$0xff]  }
 0x65b   : > { %16684 = vmatmul.mubr.bf16.gmra.mrb[124].mxu1 %v7005_v35  ;;  %v6993_v35 = vld [vmem:[#allocation2 + $0x14c] sm:$0xff] }
 0x65c   : > { %16687 = vmatprep.mubr.msk.bf16.mxu1 %vm20358_vm0, %v22552_v22  ;;  %v7014_v47 = vpack.c.bf16 %v6993_v35, %v6992_v25  ;;  %v7413_v35 = vld [vmem:[#allocation2 + $0x5d] sm:$0xff]  ;;  %v7412_v25 = vld [vmem:[#allocation2 + $0x55] sm:$0xff] }
 0x663   : > { %16688 = vmatmul.mubr.bf16.gmra.mrb[128].mxu1 %v7006_v11  ;;  %v6994_v11 = vld [vmem:[#allocation2 + $0x154] sm:$0xff] }
 0x664   : > { %16691 = vmatprep.mubr.msk.bf16.mxu1 %vm20358_vm0, %v22552_v22  ;;  %v7015_v43 = vpack.c.bf16 %v6994_v11, %v6994_v11  ;;  %v7415_v11 = vld [vmem:[#allocation2 + $0x6d] sm:$0xff] }
 0x66b   : > { %16692 = vmatmul.mubr.bf16.gmra.mrb[132].mxu1 %v7007_v19  ;;  %v7404_v19 = vld [vmem:[#allocation2 + $0x15] sm:$0xff] }
 0x66c   : > { %16695 = vmatprep.mubr.msk.bf16.mxu1 %vm20358_vm0, %v22552_v22  ;;  %v7445_v54 = vpack.c.bf16 %v7405_v27, %v7404_v19  ;;  %v7417_v19 = vld [vmem:[#allocation2 + $0x7d] sm:$0xff] }
 0x673   : > { %16696 = vmatmul.mubr.bf16.gmra.mrb[136].mxu1 %v7008_v8  ;;  %v20182_v8 = vld [vmem:[%s24115_s4 + $0x188] sm:$0xff]  }
 0x674   : > { %16699 = vmatprep.mubr.msk.bf16.mxu1 %vm20358_vm0, %v22552_v22 }
 0x67b   : > { %16700 = vmatmul.mubr.bf16.gmra.mrb[140].mxu1 %v7009_v12  ;;  %v20183_v12 = vld [vmem:[%s24115_s4 + $0x190] sm:$0xff]  }
 0x67c   : > { %16703 = vmatprep.mubr.msk.bf16.mxu1 %vm20358_vm0, %v22552_v22 }
 0x683   : > { %16704 = vmatmul.mubr.bf16.gmra.mrb[144].mxu1 %v7010_v45  ;;  %v7409_v45 = vld [vmem:[#allocation2 + $0x3d] sm:$0xff] }
 0x684   : > { %16707 = vmatprep.mubr.msk.bf16.mxu1 %vm20358_vm0, %v22552_v22 }
 0x68b   : > { %16708 = vmatmul.mubr.bf16.gmra.mrb[148].mxu1 %v7011_v14  ;;  %v22650_v14 = vpack.c.bf16 %v7409_v45, %v7408_v53  ;;  %v7423_v53 = vld [vmem:[#allocation2 + $0xad] sm:$0xff] }
 0x68c   : > { %16711 = vmatprep.mubr.msk.bf16.mxu1 %vm20358_vm0, %v22552_v22 }
 0x693   : > { %16712 = vmatmul.mubr.bf16.gmra.mrb[152].mxu1 %v7012_v59  ;;  %v7410_v59 = vld [vmem:[#allocation2 + $0x45] sm:$0xff] }
 0x694   : > { %16715 = vmatprep.mubr.msk.bf16.mxu1 %vm20358_vm0, %v22552_v22  ;;  %v22663_v60 = vpack.c.bf16 %v7411_v39, %v7410_v59  ;;  %v7425_v39 = vld [vmem:[#allocation2 + $0xbd] sm:$0xff]  ;;  %v7424_v59 = vld [vmem:[#allocation2 + $0xb5] sm:$0xff] }
 0x69b   : > { %16716 = vmatmul.mubr.bf16.gmra.mrb[156].mxu1 %v7013_v40  ;;  %v20188_v40 = vld [vmem:[%s24115_s4 + $0x1b8] sm:$0xff]  }
 0x69c   : > { %16719 = vmatprep.mubr.msk.bf16.mxu1 %vm20358_vm0, %v22552_v22 }
 0x6a3   : > { %16720 = vmatmul.mubr.bf16.gmra.mrb[160].mxu1 %v7014_v47  ;;  %v22673_v47 = vpack.c.bf16 %v7413_v35, %v7412_v25  ;;  %v7426_v35 = vld [vmem:[#allocation2 + $0xc5] sm:$0xff] }
 0x6a4   : > { %16723 = vmatprep.mubr.msk.bf16.mxu1 %vm20358_vm0, %v22552_v22 }
 0x6ab   : > { %16724 = vmatmul.mubr.bf16.gmra.mrb[164].mxu1 %v7015_v43  ;;  %v7414_v43 = vld [vmem:[#allocation2 + $0x65] sm:$0xff] }
 0x6ac   : > { %16743 = vmatprep.mubr.msk.bf16.mxu1 %vm20358_vm0, %v22552_v22  ;;  %v22679_v27 = vpack.c.bf16 %v7415_v11, %v7414_v43  ;;  %v7429_v11 = vld [vmem:[#allocation2 + $0xdd] sm:$0xff]  ;;  %v7428_v43 = vld [vmem:[#allocation2 + $0xd5] sm:$0xff] }
 0x6b3   : > { %16744 = vmatmul.mubr.bf16.vlgmr.msra.gmra.mrb[84].mxu1 %v7445_v54 }
 0x6b4   : > { %16828 = vmatpush3.bf16.msra.mxu1 %v20181_v1  ;;  %16747 = vmatprep.mubr.msk.bf16.mxu1 %vm20358_vm0, %v22552_v22  ;;  %v7416_v1 = vld [vmem:[#allocation2 + $0x75] sm:$0xff] }
 0x6b5   : > { %16829 = vmatprep.subr.bf16.mxu1 %v22552_v22  ;;  %v22684_v54 = vpack.c.bf16 %v7417_v19, %v7416_v1  ;;  %v22714_v19 = vpack.c.bf16 %v7429_v11, %v7428_v43  ;;  %v7431_v1 = vld [vmem:[#allocation2 + $0xed] sm:$0xff] }
 0x6b6   : > { %v7439_v43 = vld [vmem:[#allocation2 + $0x12d] sm:$0xff] }
 0x6b8   : > { %16830 = vmatpush3.bf16.msra.mxu1 %v20182_v8  ;;  %v7419_v8 = vld [vmem:[#allocation2 + $0x8d] sm:$0xff] }
 0x6b9   : > { %16831 = vmatprep.subr.bf16.mxu1 %v22552_v22  ;;  %v22689_v52 = vpack.c.bf16 %v7419_v8, %v7418_v24  ;;  %v7430_v8 = vld [vmem:[#allocation2 + $0xe5] sm:$0xff] }
 0x6ba   : > { %v22719_v24 = vpack.c.bf16 %v7431_v1, %v7430_v8  ;;  %v7438_v1 = vld [vmem:[#allocation2 + $0x125] sm:$0xff] }
 0x6bb   : > { %16748 = vmatmul.mubr.bf16.gmra.mrb[88].mxu1 %v22637_v6  ;;  %v22739_v8 = vpack.c.bf16 %v7439_v43, %v7438_v1  ;;  %v22754_v43 = vld [vmem:[#allocation2 + $0x155] sm:$0xff] }
 0x6bc   : > { %16751 = vmatprep.mubr.msk.bf16.mxu1 %vm20358_vm0, %v22552_v22  ;;  %16832 = vmatpush3.bf16.msra.mxu1 %v20183_v12  ;;  %v7421_v12 = vld [vmem:[#allocation2 + $0x9d] sm:$0xff]  ;;  %v7465_v1 = vpack.c.bf16 %v22754_v43, %v22754_v43 }
 0x6bd   : > { %16833 = vmatprep.subr.bf16.mxu1 %v22552_v22 }
 0x6c0   : > { %16834 = vmatpush3.bf16.msra.mxu1 %v20184_v28  ;;  %v7420_v28 = vld [vmem:[#allocation2 + $0x95] sm:$0xff] }
 0x6c1   : > { %16835 = vmatprep.subr.bf16.mxu1 %v22552_v22  ;;  %v22694_v45 = vpack.c.bf16 %v7421_v12, %v7420_v28  ;;  %v7433_v12 = vld [vmem:[#allocation2 + $0xfd] sm:$0xff]  ;;  %v7432_v28 = vld [vmem:[#allocation2 + $0xf5] sm:$0xff] }
 0x6c3   : > { %16752 = vmatmul.mubr.bf16.gmra.mrb[92].mxu1 %v22650_v14 }
 0x6c4   : > { %16755 = vmatprep.mubr.msk.bf16.mxu1 %vm20358_vm0, %v22552_v22  ;;  %16836 = vmatpush3.bf16.msra.mxu1 %v20185_v57  ;;  %v7422_v57 = vld [vmem:[#allocation2 + $0xa5] sm:$0xff] }
 0x6c5   : > { %16837 = vmatprep.subr.bf16.mxu1 %v22552_v22 }
 0x6c8   : > { %16838 = vmatpush3.bf16.msra.mxu1 %v20186_v7  ;;  %v22699_v7 = vpack.c.bf16 %v7423_v53, %v7422_v57  ;;  %v22724_v53 = vpack.c.bf16 %v7433_v12, %v7432_v28  ;;  %v7435_v57 = vld [vmem:[#allocation2 + $0x10d] sm:$0xff]  ;;  %v7441_v12 = vld [vmem:[#allocation2 + $0x13d] sm:$0xff]  ;;  %v7440_v28 = vld [vmem:[#allocation2 + $0x135] sm:$0xff] }
 0x6c9   : > { %16839 = vmatprep.subr.bf16.mxu1 %v22552_v22 }
 0x6cb   : > { %16756 = vmatmul.mubr.bf16.gmra.mrb[96].mxu1 %v22663_v60 }
 0x6cc   : > { %16759 = vmatprep.mubr.msk.bf16.mxu1 %vm20358_vm0, %v22552_v22  ;;  %16840 = vmatpush3.bf16.msra.mxu1 %v20187_v62  ;;  %v22704_v62 = vpack.c.bf16 %v7425_v39, %v7424_v59  ;;  %v7434_v39 = vld [vmem:[#allocation2 + $0x105] sm:$0xff] }
 0x6cd   : > { %16841 = vmatprep.subr.bf16.mxu1 %v22552_v22  ;;  %v22729_v59 = vpack.c.bf16 %v7435_v57, %v7434_v39  ;;  %v22744_v57 = vpack.c.bf16 %v7441_v12, %v7440_v28  ;;  %v7443_v39 = vld [vmem:[#allocation2 + $0x14d] sm:$0xff]  ;;  %v20189_v12 = vld [vmem:[%s24115_s4 + $0x1c0] sm:$0xff]  }
 0x6ce   : > { %v20190_v28 = vld [vmem:[%s24115_s4 + $0x1c8] sm:$0xff]  }
 0x6d0   : > { %16842 = vmatpush3.bf16.msra.mxu1 %v20188_v40  ;;  %v7427_v40 = vld [vmem:[#allocation2 + $0xcd] sm:$0xff] }
 0x6d1   : > { %16927 = vmatprep.subr.bf16.mxu1 %v22552_v22  ;;  %v22709_v25 = vpack.c.bf16 %v7427_v40, %v7426_v35  ;;  %v7437_v40 = vld [vmem:[#allocation2 + $0x11d] sm:$0xff]  ;;  %v7436_v35 = vld [vmem:[#allocation2 + $0x115] sm:$0xff] }
 0x6d2   : > { %v22734_v11 = vpack.c.bf16 %v7437_v40, %v7436_v35  ;;  %v7442_v40 = vld [vmem:[#allocation2 + $0x145] sm:$0xff] }
 0x6d3   : > { %16760 = vmatmul.mubr.bf16.gmra.mrb[100].mxu1 %v22673_v47  ;;  %v22749_v35 = vpack.c.bf16 %v7443_v39, %v7442_v40  ;;  %v20191_v39 = vld [vmem:[%s24115_s4 + $0x1d0] sm:$0xff]   ;;  %v20193_v40 = vld [vmem:[%s24115_s4 + $0x1e0] sm:$0xff]  }
 0x6d4   : > { %16763 = vmatprep.mubr.msk.bf16.mxu1 %vm20358_vm0, %v22552_v22 }
 0x6db   : > { %16764 = vmatmul.mubr.bf16.gmra.mrb[104].mxu1 %v22679_v27 }
 0x6dc   : > { %16767 = vmatprep.mubr.msk.bf16.mxu1 %vm20358_vm0, %v22552_v22 }
 0x6e3   : > { %16768 = vmatmul.mubr.bf16.gmra.mrb[108].mxu1 %v22684_v54 }
 0x6e4   : > { %16771 = vmatprep.mubr.msk.bf16.mxu1 %vm20358_vm0, %v22552_v22 }
 0x6eb   : > { %16772 = vmatmul.mubr.bf16.gmra.mrb[112].mxu1 %v22689_v52 }
 0x6ec   : > { %16775 = vmatprep.mubr.msk.bf16.mxu1 %vm20358_vm0, %v22552_v22 }
 0x6f3   : > { %16776 = vmatmul.mubr.bf16.gmra.mrb[116].mxu1 %v22694_v45 }
 0x6f4   : > { %16779 = vmatprep.mubr.msk.bf16.mxu1 %vm20358_vm0, %v22552_v22 }
 0x6fb   : > { %16780 = vmatmul.mubr.bf16.gmra.mrb[120].mxu1 %v22699_v7 }
 0x6fc   : > { %16783 = vmatprep.mubr.msk.bf16.mxu1 %vm20358_vm0, %v22552_v22 }
 0x703   : > { %16784 = vmatmul.mubr.bf16.gmra.mrb[124].mxu1 %v22704_v62 }
 0x704   : > { %16787 = vmatprep.mubr.msk.bf16.mxu1 %vm20358_vm0, %v22552_v22 }
 0x70b   : > { %16788 = vmatmul.mubr.bf16.gmra.mrb[128].mxu1 %v22709_v25 }
 0x70c   : > { %16791 = vmatprep.mubr.msk.bf16.mxu1 %vm20358_vm0, %v22552_v22 }
 0x713   : > { %16792 = vmatmul.mubr.bf16.gmra.mrb[132].mxu1 %v22714_v19 }
 0x714   : > { %16795 = vmatprep.mubr.msk.bf16.mxu1 %vm20358_vm0, %v22552_v22 }
 0x71b   : > { %16796 = vmatmul.mubr.bf16.gmra.mrb[136].mxu1 %v22719_v24 }
 0x71c   : > { %16799 = vmatprep.mubr.msk.bf16.mxu1 %vm20358_vm0, %v22552_v22 }
 0x723   : > { %16800 = vmatmul.mubr.bf16.gmra.mrb[140].mxu1 %v22724_v53 }
 0x724   : > { %16803 = vmatprep.mubr.msk.bf16.mxu1 %vm20358_vm0, %v22552_v22 }
 0x72b   : > { %16804 = vmatmul.mubr.bf16.gmra.mrb[144].mxu1 %v22729_v59 }
 0x72c   : > { %16807 = vmatprep.mubr.msk.bf16.mxu1 %vm20358_vm0, %v22552_v22 }
 0x733   : > { %16808 = vmatmul.mubr.bf16.gmra.mrb[148].mxu1 %v22734_v11 }
 0x734   : > { %16811 = vmatprep.mubr.msk.bf16.mxu1 %vm20358_vm0, %v22552_v22 }
 0x73b   : > { %16812 = vmatmul.mubr.bf16.gmra.mrb[152].mxu1 %v22739_v8 }
 0x73c   : > { %16815 = vmatprep.mubr.msk.bf16.mxu1 %vm20358_vm0, %v22552_v22 }
 0x743   : > { %16816 = vmatmul.mubr.bf16.gmra.mrb[156].mxu1 %v22744_v57 }
 0x744   : > { %16819 = vmatprep.mubr.msk.bf16.mxu1 %vm20358_vm0, %v22552_v22 }
 0x74b   : > { %16820 = vmatmul.mubr.bf16.gmra.mrb[160].mxu1 %v22749_v35 }
 0x74c   : > { %16823 = vmatprep.mubr.msk.bf16.mxu1 %vm20358_vm0, %v22552_v22 }
 0x753   : > { %16824 = vmatmul.mubr.bf16.gmra.mrb[164].mxu1 %v7465_v1  ;;  %v20195_v1 = vld [vmem:[%s24115_s4 + $0x1f0] sm:$0xff]  }
 0x754   : > { %16843 = vmatprep.mubr.msk.bf16.mxu1 %vm20358_vm0, %v22552_v22 }
 0x75b   : > { %16844 = vmatmul.mubr.bf16.vlgmr.msra.gmra.mrb[84].mxu1 %v22637_v6  ;;  %v20192_v6 = vld [vmem:[%s24115_s4 + $0x1d8] sm:$0xff]  }
 0x75c   : > { %16928 = vmatpush3.bf16.msra.mxu1 %v20189_v12  ;;  %16847 = vmatprep.mubr.msk.bf16.mxu1 %vm20358_vm0, %v22552_v22 }
 0x75d   : > { %16929 = vmatprep.subr.bf16.mxu1 %v22552_v22 }
 0x760   : > { %16930 = vmatpush3.bf16.msra.mxu1 %v20190_v28  ;;  %v20202_v28 = vld [vmem:[%s24115_s4 + $0x228] sm:$0xff]  }
 0x761   : > { %16931 = vmatprep.subr.bf16.mxu1 %v22552_v22 }
 0x763   : > { %16848 = vmatmul.mubr.bf16.gmra.mrb[88].mxu1 %v22650_v14  ;;  %v20194_v14 = vld [vmem:[%s24115_s4 + $0x1e8] sm:$0xff]  }
 0x764   : > { %16851 = vmatprep.mubr.msk.bf16.mxu1 %vm20358_vm0, %v22552_v22  ;;  %16932 = vmatpush3.bf16.msra.mxu1 %v20191_v39  ;;  %v8311_v39 = vld [vmem:[#allocation2 + $0x5e] sm:$0xff] }
 0x765   : > { %16933 = vmatprep.subr.bf16.mxu1 %v22552_v22 }
 0x768   : > { %16934 = vmatpush3.bf16.msra.mxu1 %v20192_v6  ;;  %v8310_v6 = vld [vmem:[#allocation2 + $0x56] sm:$0xff] }
 0x769   : > { %16935 = vmatprep.subr.bf16.mxu1 %v22552_v22 }
 0x76b   : > { %16852 = vmatmul.mubr.bf16.gmra.mrb[92].mxu1 %v22663_v60  ;;  %v20196_v60 = vld [vmem:[%s24115_s4 + $0x1f8] sm:$0xff]  }
 0x76c   : > { %16855 = vmatprep.mubr.msk.bf16.mxu1 %vm20358_vm0, %v22552_v22  ;;  %16936 = vmatpush3.bf16.msra.mxu1 %v20193_v40  ;;  %v20203_v40 = vld [vmem:[%s24115_s4 + $0x230] sm:$0xff]  }
 0x76d   : > { %16937 = vmatprep.subr.bf16.mxu1 %v22552_v22 }
 0x770   : > { %16938 = vmatpush3.bf16.msra.mxu1 %v20194_v14  ;;  %v8348_v14 = vpack.c.bf16 %v8311_v39, %v8310_v6  ;;  %v8327_v6 = vld [vmem:[#allocation2 + $0xde] sm:$0xff] }
 0x771   : > { %16939 = vmatprep.subr.bf16.mxu1 %v22552_v22 }
 0x773   : > { %16856 = vmatmul.mubr.bf16.gmra.mrb[96].mxu1 %v22673_v47  ;;  %v7893_v47 = vld [vmem:[#allocation2 + $0x15d] sm:$0xff] }
 0x774   : > { %16859 = vmatprep.mubr.msk.bf16.mxu1 %vm20358_vm0, %v22552_v22  ;;  %16940 = vmatpush3.bf16.msra.mxu1 %v20195_v1  ;;  %v20204_v1 = vld [vmem:[%s24115_s4 + $0x238] sm:$0xff]  }
 0x775   : > { %16941 = vmatprep.subr.bf16.mxu1 %v22552_v22 }
 0x778   : > { %16942 = vmatpush3.bf16.msra.mxu1 %v20196_v60  ;;  %v8313_v60 = vld [vmem:[#allocation2 + $0x6e] sm:$0xff] }
 0x779   : > { %17027 = vmatprep.subr.bf16.mxu1 %v22552_v22 }
 0x77b   : > { %16860 = vmatmul.mubr.bf16.gmra.mrb[100].mxu1 %v22679_v27  ;;  %v7914_v27 = vpack.c.bf16 %v7893_v47, %v22754_v43  ;;  %v20201_v43 = vld [vmem:[%s24115_s4 + $0x220] sm:$0xff]  }
 0x77c   : > { %16863 = vmatprep.mubr.msk.bf16.mxu1 %vm20358_vm0, %v22552_v22  ;;  %v8312_v47 = vld [vmem:[#allocation2 + $0x66] sm:$0xff] }
 0x783   : > { %16864 = vmatmul.mubr.bf16.gmra.mrb[104].mxu1 %v22684_v54  ;;  %v7894_v54 = vld [vmem:[#allocation2 + $0x165] sm:$0xff] }
 0x784   : > { %16867 = vmatprep.mubr.msk.bf16.mxu1 %vm20358_vm0, %v22552_v22 }
 0x78b   : > { %16868 = vmatmul.mubr.bf16.gmra.mrb[108].mxu1 %v22689_v52  ;;  %v7915_v52 = vpack.c.bf16 %v7894_v54, %v7894_v54  ;;  %v8315_v54 = vld [vmem:[#allocation2 + $0x7e] sm:$0xff] }
 0x78c   : > { %16871 = vmatprep.mubr.msk.bf16.mxu1 %vm20358_vm0, %v22552_v22 }
 0x793   : > { %16872 = vmatmul.mubr.bf16.gmra.mrb[112].mxu1 %v22694_v45  ;;  %v8305_v45 = vld [vmem:[#allocation2 + $0x2e] sm:$0xff] }
 0x794   : > { %16875 = vmatprep.mubr.msk.bf16.mxu1 %vm20358_vm0, %v22552_v22 }
 0x79b   : > { %16876 = vmatmul.mubr.bf16.gmra.mrb[116].mxu1 %v22699_v7  ;;  %v8304_v7 = vld [vmem:[#allocation2 + $0x26] sm:$0xff] }
 0x79c   : > { %16879 = vmatprep.mubr.msk.bf16.mxu1 %vm20358_vm0, %v22552_v22 }
 0x7a3   : > { %16880 = vmatmul.mubr.bf16.gmra.mrb[120].mxu1 %v22704_v62  ;;  %v20197_v62 = vld [vmem:[%s24115_s4 + $0x200] sm:$0xff]  }
 0x7a4   : > { %16883 = vmatprep.mubr.msk.bf16.mxu1 %vm20358_vm0, %v22552_v22 }
 0x7ab   : > { %16884 = vmatmul.mubr.bf16.gmra.mrb[124].mxu1 %v22709_v25  ;;  %v8345_v25 = vpack.c.bf16 %v8305_v45, %v8304_v7  ;;  %v8317_v7 = vld [vmem:[#allocation2 + $0x8e] sm:$0xff] }
 0x7ac   : > { %16887 = vmatprep.mubr.msk.bf16.mxu1 %vm20358_vm0, %v22552_v22 }
 0x7b3   : > { %16888 = vmatmul.mubr.bf16.gmra.mrb[128].mxu1 %v22714_v19  ;;  %v20198_v19 = vld [vmem:[%s24115_s4 + $0x208] sm:$0xff]  }
 0x7b4   : > { %16891 = vmatprep.mubr.msk.bf16.mxu1 %vm20358_vm0, %v22552_v22 }
 0x7bb   : > { %16892 = vmatmul.mubr.bf16.gmra.mrb[132].mxu1 %v22719_v24  ;;  %v8307_v24 = vld [vmem:[#allocation2 + $0x3e] sm:$0xff] }
 0x7bc   : > { %16895 = vmatprep.mubr.msk.bf16.mxu1 %vm20358_vm0, %v22552_v22 }
 0x7c3   : > { %16896 = vmatmul.mubr.bf16.gmra.mrb[136].mxu1 %v22724_v53  ;;  %v8306_v53 = vld [vmem:[#allocation2 + $0x36] sm:$0xff] }
 0x7c4   : > { %16899 = vmatprep.mubr.msk.bf16.mxu1 %vm20358_vm0, %v22552_v22 }
 0x7cb   : > { %16900 = vmatmul.mubr.bf16.gmra.mrb[140].mxu1 %v22729_v59  ;;  %v20199_v59 = vld [vmem:[%s24115_s4 + $0x210] sm:$0xff]  }
 0x7cc   : > { %16903 = vmatprep.mubr.msk.bf16.mxu1 %vm20358_vm0, %v22552_v22 }
 0x7d3   : > { %16904 = vmatmul.mubr.bf16.gmra.mrb[144].mxu1 %v22734_v11  ;;  %v8346_v11 = vpack.c.bf16 %v8307_v24, %v8306_v53  ;;  %v8318_v24 = vld [vmem:[#allocation2 + $0x96] sm:$0xff] }
 0x7d4   : > { %16907 = vmatprep.mubr.msk.bf16.mxu1 %vm20358_vm0, %v22552_v22 }
 0x7db   : > { %16908 = vmatmul.mubr.bf16.gmra.mrb[148].mxu1 %v22739_v8  ;;  %v20200_v8 = vld [vmem:[%s24115_s4 + $0x218] sm:$0xff]  }
 0x7dc   : > { %16911 = vmatprep.mubr.msk.bf16.mxu1 %vm20358_vm0, %v22552_v22 }
 0x7e3   : > { %16912 = vmatmul.mubr.bf16.gmra.mrb[152].mxu1 %v22744_v57  ;;  %v8309_v57 = vld [vmem:[#allocation2 + $0x4e] sm:$0xff] }
 0x7e4   : > { %16915 = vmatprep.mubr.msk.bf16.mxu1 %vm20358_vm0, %v22552_v22 }
 0x7eb   : > { %16916 = vmatmul.mubr.bf16.gmra.mrb[156].mxu1 %v22749_v35  ;;  %v8308_v35 = vld [vmem:[#allocation2 + $0x46] sm:$0xff] }
 0x7ec   : > { %16919 = vmatprep.mubr.msk.bf16.mxu1 %vm20358_vm0, %v22552_v22  ;;  %v8347_v12 = vpack.c.bf16 %v8309_v57, %v8308_v35  ;;  %v8323_v57 = vld [vmem:[#allocation2 + $0xbe] sm:$0xff]  ;;  %v8322_v35 = vld [vmem:[#allocation2 + $0xb6] sm:$0xff] }
 0x7f3   : > { %16920 = vmatmul.mubr.bf16.gmra.mrb[160].mxu1 %v7914_v27  ;;  %v8349_v27 = vpack.c.bf16 %v8313_v60, %v8312_v47  ;;  %v8328_v60 = vld [vmem:[#allocation2 + $0xe6] sm:$0xff] }
 0x7f4   : > { %16923 = vmatprep.mubr.msk.bf16.mxu1 %vm20358_vm0, %v22552_v22 }
 0x7fb   : > { %16924 = vmatmul.mubr.bf16.gmra.mrb[164].mxu1 %v7915_v52  ;;  %v8314_v52 = vld [vmem:[#allocation2 + $0x76] sm:$0xff] }
 0x7fc   : > { %16943 = vmatprep.mubr.msk.bf16.mxu1 %vm20358_vm0, %v22552_v22  ;;  %v8350_v45 = vpack.c.bf16 %v8315_v54, %v8314_v52  ;;  %v8331_v54 = vld [vmem:[#allocation2 + $0xfe] sm:$0xff]  ;;  %v8330_v52 = vld [vmem:[#allocation2 + $0xf6] sm:$0xff] }
 0x803   : > { %16944 = vmatmul.mubr.bf16.vlgmr.msra.gmra.mrb[84].mxu1 %v8345_v25 }
 0x804   : > { %17028 = vmatpush3.bf16.msra.mxu1 %v20197_v62  ;;  %16947 = vmatprep.mubr.msk.bf16.mxu1 %vm20358_vm0, %v22552_v22  ;;  %v8316_v62 = vld [vmem:[#allocation2 + $0x86] sm:$0xff] }
 0x805   : > { %17029 = vmatprep.subr.bf16.mxu1 %v22552_v22  ;;  %v8351_v25 = vpack.c.bf16 %v8317_v7, %v8316_v62  ;;  %v8333_v7 = vld [vmem:[#allocation2 + $0x10e] sm:$0xff]  ;;  %v8332_v62 = vld [vmem:[#allocation2 + $0x106] sm:$0xff] }
 0x808   : > { %17030 = vmatpush3.bf16.msra.mxu1 %v20198_v19  ;;  %v8319_v19 = vld [vmem:[#allocation2 + $0x9e] sm:$0xff] }
 0x809   : > { %17031 = vmatprep.subr.bf16.mxu1 %v22552_v22  ;;  %v8352_v53 = vpack.c.bf16 %v8319_v19, %v8318_v24  ;;  %v20206_v19 = vld [vmem:[%s24118_s7 + $0x8] sm:$0xff]   ;;  %v8335_v24 = vld [vmem:[#allocation2 + $0x11e] sm:$0xff] }
 0x80b   : > { %16948 = vmatmul.mubr.bf16.gmra.mrb[88].mxu1 %v8346_v11  ;;  %v8320_v11 = vld [vmem:[#allocation2 + $0xa6] sm:$0xff] }
 0x80c   : > { %16951 = vmatprep.mubr.msk.bf16.mxu1 %vm20358_vm0, %v22552_v22  ;;  %17032 = vmatpush3.bf16.msra.mxu1 %v20199_v59  ;;  %v8321_v59 = vld [vmem:[#allocation2 + $0xae] sm:$0xff] }
 0x80d   : > { %17033 = vmatprep.subr.bf16.mxu1 %v22552_v22 }
 0x810   : > { %17034 = vmatpush3.bf16.msra.mxu1 %v20200_v8  ;;  %v8353_v8 = vpack.c.bf16 %v8321_v59, %v8320_v11  ;;  %v8337_v11 = vld [vmem:[#allocation2 + $0x12e] sm:$0xff] }
 0x811   : > { %17035 = vmatprep.subr.bf16.mxu1 %v22552_v22 }
 0x813   : > { %16952 = vmatmul.mubr.bf16.gmra.mrb[92].mxu1 %v8347_v12  ;;  %v8325_v12 = vld [vmem:[#allocation2 + $0xce] sm:$0xff] }
 0x814   : > { %16955 = vmatprep.mubr.msk.bf16.mxu1 %vm20358_vm0, %v22552_v22  ;;  %17036 = vmatpush3.bf16.msra.mxu1 %v20201_v43  ;;  %v8354_v43 = vpack.c.bf16 %v8323_v57, %v8322_v35  ;;  %v8339_v35 = vld [vmem:[#allocation2 + $0x13e] sm:$0xff] }
 0x815   : > { %17037 = vmatprep.subr.bf16.mxu1 %v22552_v22 }
 0x818   : > { %17038 = vmatpush3.bf16.msra.mxu1 %v20202_v28  ;;  %v8324_v28 = vld [vmem:[#allocation2 + $0xc6] sm:$0xff] }
 0x819   : > { %17039 = vmatprep.subr.bf16.mxu1 %v22552_v22  ;;  %v8355_v39 = vpack.c.bf16 %v8325_v12, %v8324_v28  ;;  %v20207_v28 = vld [vmem:[%s24118_s7 + $0x10] sm:$0xff]  }
 0x81b   : > { %16956 = vmatmul.mubr.bf16.gmra.mrb[96].mxu1 %v8348_v14 }
 0x81c   : > { %16959 = vmatprep.mubr.msk.bf16.mxu1 %vm20358_vm0, %v22552_v22  ;;  %17040 = vmatpush3.bf16.msra.mxu1 %v20203_v40  ;;  %v8326_v40 = vld [vmem:[#allocation2 + $0xd6] sm:$0xff] }
 0x81d   : > { %17041 = vmatprep.subr.bf16.mxu1 %v22552_v22  ;;  %v8356_v14 = vpack.c.bf16 %v8327_v6, %v8326_v40  ;;  %v8340_v6 = vld [vmem:[#allocation2 + $0x146] sm:$0xff] }
 0x820   : > { %17042 = vmatpush3.bf16.msra.mxu1 %v20204_v1  ;;  %v8329_v1 = vld [vmem:[#allocation2 + $0xee] sm:$0xff] }
 0x821   : > { %v8357_v47 = vpack.c.bf16 %v8329_v1, %v8328_v60  ;;  %v8343_v1 = vld [vmem:[#allocation2 + $0x15e] sm:$0xff] }
 0x823   : > { %16960 = vmatmul.mubr.bf16.gmra.mrb[100].mxu1 %v8349_v27  ;;  %v20205_v27 = vld [vmem:[%s24118_s7] sm:$0xff]  }
 0x824   : > { %16963 = vmatprep.mubr.msk.bf16.mxu1 %vm20358_vm0, %v22552_v22  ;;  %17128 = vmatpush3.bf16.msra.mxu0 %v20205_v27 }
 0x825   : > { %17129 = vmatprep.subr.bf16.mxu0 %v22552_v22 }
 0x828   : > { %17130 = vmatpush3.bf16.msra.mxu0 %v20206_v19 }
 0x829   : > { %17131 = vmatprep.subr.bf16.mxu0 %v22552_v22 }
 0x82b   : > { %16964 = vmatmul.mubr.bf16.gmra.mrb[104].mxu1 %v8350_v45  ;;  %v8358_v45 = vpack.c.bf16 %v8331_v54, %v8330_v52  ;;  %v20208_v54 = vld [vmem:[%s24118_s7 + $0x18] sm:$0xff]   ;;  %v8755_v52 = vld [vmem:[#allocation2 + $0x2f] sm:$0xff] }
 0x82c   : > { %16967 = vmatprep.mubr.msk.bf16.mxu1 %vm20358_vm0, %v22552_v22  ;;  %17132 = vmatpush3.bf16.msra.mxu0 %v20207_v28 }
 0x82d   : > { %17133 = vmatprep.subr.bf16.mxu0 %v22552_v22 }
 0x830   : > { %17134 = vmatpush3.bf16.msra.mxu0 %v20208_v54 }
 0x831   : > { %17135 = vmatprep.subr.bf16.mxu0 %v22552_v22 }
 0x833   : > { %16968 = vmatmul.mubr.bf16.gmra.mrb[108].mxu1 %v8351_v25  ;;  %v8359_v25 = vpack.c.bf16 %v8333_v7, %v8332_v62  ;;  %v8757_v62 = vld [vmem:[#allocation2 + $0x3f] sm:$0xff] }
 0x834   : > { %16971 = vmatprep.mubr.msk.bf16.mxu1 %vm20358_vm0, %v22552_v22 }
 0x83b   : > { %16972 = vmatmul.mubr.bf16.gmra.mrb[112].mxu1 %v8352_v53  ;;  %v8334_v53 = vld [vmem:[#allocation2 + $0x116] sm:$0xff] }
 0x83c   : > { %16975 = vmatprep.mubr.msk.bf16.mxu1 %vm20358_vm0, %v22552_v22  ;;  %v8360_v59 = vpack.c.bf16 %v8335_v24, %v8334_v53  ;;  %v20209_v24 = vld [vmem:[%s24118_s7 + $0x20] sm:$0xff]   ;;  %v8759_v53 = vld [vmem:[#allocation2 + $0x4f] sm:$0xff] }
 0x83d   : > { %17136 = vmatpush3.bf16.msra.mxu0 %v20209_v24  ;;  %v22975_v24 = vld [vmem:[#allocation2] sm:$0xff] }
 0x83e   : > { %17137 = vmatprep.subr.bf16.mxu0 %v22552_v22 }
 0x843   : > { %16976 = vmatmul.mubr.bf16.gmra.mrb[116].mxu1 %v8353_v8  ;;  %v8336_v8 = vld [vmem:[#allocation2 + $0x126] sm:$0xff] }
 0x844   : > { %16979 = vmatprep.mubr.msk.bf16.mxu1 %vm20358_vm0, %v22552_v22  ;;  %v8361_v57 = vpack.c.bf16 %v8337_v11, %v8336_v8  ;;  %v8761_v8 = vld [vmem:[#allocation2 + $0x5f] sm:$0xff] }
 0x84b   : > { %16980 = vmatmul.mubr.bf16.gmra.mrb[120].mxu1 %v8354_v43  ;;  %v8338_v43 = vld [vmem:[#allocation2 + $0x136] sm:$0xff] }
 0x84c   : > { %16983 = vmatprep.mubr.msk.bf16.mxu1 %vm20358_vm0, %v22552_v22  ;;  %v8362_v12 = vpack.c.bf16 %v8339_v35, %v8338_v43  ;;  %v8763_v43 = vld [vmem:[#allocation2 + $0x6f] sm:$0xff] }
 0x853   : > { %16984 = vmatmul.mubr.bf16.gmra.mrb[124].mxu1 %v8355_v39  ;;  %v8341_v39 = vld [vmem:[#allocation2 + $0x14e] sm:$0xff] }
 0x854   : > { %16987 = vmatprep.mubr.msk.bf16.mxu1 %vm20358_vm0, %v22552_v22  ;;  %v8363_v40 = vpack.c.bf16 %v8341_v39, %v8340_v6  ;;  %v20210_v39 = vld [vmem:[%s24118_s7 + $0x28] sm:$0xff]   ;;  %v20211_v6 = vld [vmem:[%s24118_s7 + $0x30] sm:$0xff]  }
 0x855   : > { %17138 = vmatpush3.bf16.msra.mxu0 %v20210_v39  ;;  %v8778_v39 = vld [vmem:[#allocation2 + $0xe7] sm:$0xff] }
 0x856   : > { %17139 = vmatprep.subr.bf16.mxu0 %v22552_v22 }
 0x859   : > { %17140 = vmatpush3.bf16.msra.mxu0 %v20211_v6 }
 0x85a   : > { %17141 = vmatprep.subr.bf16.mxu0 %v22552_v22 }
 0x85b   : > { %16988 = vmatmul.mubr.bf16.gmra.mrb[128].mxu1 %v8356_v14  ;;  %v8342_v14 = vld [vmem:[#allocation2 + $0x156] sm:$0xff] }
 0x85c   : > { %16991 = vmatprep.mubr.msk.bf16.mxu1 %vm20358_vm0, %v22552_v22  ;;  %v8364_v60 = vpack.c.bf16 %v8343_v1, %v8342_v14  ;;  %v8764_v14 = vld [vmem:[#allocation2 + $0x77] sm:$0xff] }
 0x863   : > { %16992 = vmatmul.mubr.bf16.gmra.mrb[132].mxu1 %v8357_v47  ;;  %v8344_v47 = vld [vmem:[#allocation2 + $0x166] sm:$0xff] }
 0x864   : > { %16995 = vmatprep.mubr.msk.bf16.mxu1 %vm20358_vm0, %v22552_v22  ;;  %v8365_v27 = vpack.c.bf16 %v8344_v47, %v8344_v47  ;;  %v8767_v47 = vld [vmem:[#allocation2 + $0x8f] sm:$0xff] }
 0x86b   : > { %16996 = vmatmul.mubr.bf16.gmra.mrb[136].mxu1 %v8358_v45  ;;  %v8754_v45 = vld [vmem:[#allocation2 + $0x27] sm:$0xff] }
 0x86c   : > { %16999 = vmatprep.mubr.msk.bf16.mxu1 %vm20358_vm0, %v22552_v22  ;;  %v8795_v7 = vpack.c.bf16 %v8755_v52, %v8754_v45  ;;  %v8769_v52 = vld [vmem:[#allocation2 + $0x9f] sm:$0xff]  ;;  %v8768_v45 = vld [vmem:[#allocation2 + $0x97] sm:$0xff] }
 0x873   : > { %17000 = vmatmul.mubr.bf16.gmra.mrb[140].mxu1 %v8359_v25  ;;  %v8756_v25 = vld [vmem:[#allocation2 + $0x37] sm:$0xff] }
 0x874   : > { %17003 = vmatprep.mubr.msk.bf16.mxu1 %vm20358_vm0, %v22552_v22  ;;  %v8796_v19 = vpack.c.bf16 %v8757_v62, %v8756_v25  ;;  %v8771_v62 = vld [vmem:[#allocation2 + $0xaf] sm:$0xff]  ;;  %v8770_v25 = vld [vmem:[#allocation2 + $0xa7] sm:$0xff] }
 0x87b   : > { %17004 = vmatmul.mubr.bf16.gmra.mrb[144].mxu1 %v8360_v59  ;;  %v8758_v59 = vld [vmem:[#allocation2 + $0x47] sm:$0xff] }
 0x87c   : > { %17007 = vmatprep.mubr.msk.bf16.mxu1 %vm20358_vm0, %v22552_v22  ;;  %v8797_v11 = vpack.c.bf16 %v8759_v53, %v8758_v59  ;;  %v8773_v53 = vld [vmem:[#allocation2 + $0xbf] sm:$0xff]  ;;  %v8772_v59 = vld [vmem:[#allocation2 + $0xb7] sm:$0xff] }
 0x883   : > { %17008 = vmatmul.mubr.bf16.gmra.mrb[148].mxu1 %v8361_v57  ;;  %v8760_v57 = vld [vmem:[#allocation2 + $0x57] sm:$0xff] }
 0x884   : > { %17011 = vmatprep.mubr.msk.bf16.mxu1 %vm20358_vm0, %v22552_v22  ;;  %v8798_v35 = vpack.c.bf16 %v8761_v8, %v8760_v57  ;;  %v8775_v8 = vld [vmem:[#allocation2 + $0xcf] sm:$0xff]  ;;  %v8774_v57 = vld [vmem:[#allocation2 + $0xc7] sm:$0xff] }
 0x88b   : > { %17012 = vmatmul.mubr.bf16.gmra.mrb[152].mxu1 %v8362_v12  ;;  %v8762_v12 = vld [vmem:[#allocation2 + $0x67] sm:$0xff] }
 0x88c   : > { %17015 = vmatprep.mubr.msk.bf16.mxu1 %vm20358_vm0, %v22552_v22  ;;  %v8799_v28 = vpack.c.bf16 %v8763_v43, %v8762_v12  ;;  %v8776_v43 = vld [vmem:[#allocation2 + $0xd7] sm:$0xff] }
 0x893   : > { %17016 = vmatmul.mubr.bf16.gmra.mrb[156].mxu1 %v8363_v40  ;;  %v8765_v40 = vld [vmem:[#allocation2 + $0x7f] sm:$0xff] }
 0x894   : > { %17019 = vmatprep.mubr.msk.bf16.mxu1 %vm20358_vm0, %v22552_v22  ;;  %v8800_v1 = vpack.c.bf16 %v8765_v40, %v8764_v14  ;;  %v9546_v40 = vld [vmem:[#allocation3 + $0x1] sm:$0xff]  ;;  %v9547_v14 = vld [vmem:[#allocation3 + $0x9] sm:$0xff] }
 0x89b   : > { %17020 = vmatmul.mubr.bf16.gmra.mrb[160].mxu1 %v8364_v60  ;;  %v20212_v60 = vld [vmem:[%s24118_s7 + $0x38] sm:$0xff]  }
 0x89c   : > { %17023 = vmatprep.mubr.msk.bf16.mxu1 %vm20358_vm0, %v22552_v22  ;;  %17142 = vmatpush3.bf16.msra.mxu0 %v20212_v60  ;;  %v8781_v60 = vld [vmem:[#allocation2 + $0xff] sm:$0xff] }
 0x89d   : > { %17227 = vmatprep.subr.bf16.mxu0 %v22552_v22 }
 0x8a3   : > { %17024 = vmatmul.mubr.bf16.gmra.mrb[164].mxu1 %v8365_v27  ;;  %v8766_v27 = vld [vmem:[#allocation2 + $0x87] sm:$0xff] }
 0x8a4   : > { %17043 = vmatprep.mubr.msk.bf16.mxu1 %vm20358_vm0, %v22552_v22  ;;  %v8801_v54 = vpack.c.bf16 %v8767_v47, %v8766_v27  ;;  %v8780_v47 = vld [vmem:[#allocation2 + $0xf7] sm:$0xff] }
 0x8a5   : > { %v8808_v27 = vpack.c.bf16 %v8781_v60, %v8780_v47  ;;  %v20216_v47 = vld [vmem:[%s24118_s7 + $0x58] sm:$0xff]  }
 0x8ab   : > { %17044 = vmatmul.mubr.bf16.vlgmr.msra.gmra.mrb[84].mxu1 %v8795_v7  ;;  %v8802_v7 = vpack.c.bf16 %v8769_v52, %v8768_v45  ;;  %v8783_v52 = vld [vmem:[#allocation2 + $0x10f] sm:$0xff]  ;;  %v8782_v45 = vld [vmem:[#allocation2 + $0x107] sm:$0xff] }
 0x8ac   : > { %17047 = vmatprep.mubr.msk.bf16.mxu1 %vm20358_vm0, %v22552_v22 }
 0x8b3   : > { %17048 = vmatmul.mubr.bf16.gmra.mrb[88].mxu1 %v8796_v19  ;;  %v8803_v19 = vpack.c.bf16 %v8771_v62, %v8770_v25  ;;  %v8785_v62 = vld [vmem:[#allocation2 + $0x11f] sm:$0xff]  ;;  %v8784_v25 = vld [vmem:[#allocation2 + $0x117] sm:$0xff] }
 0x8b4   : > { %17051 = vmatprep.mubr.msk.bf16.mxu1 %vm20358_vm0, %v22552_v22 }
 0x8bb   : > { %17052 = vmatmul.mubr.bf16.gmra.mrb[92].mxu1 %v8797_v11  ;;  %v8804_v11 = vpack.c.bf16 %v8773_v53, %v8772_v59  ;;  %v8787_v53 = vld [vmem:[#allocation2 + $0x12f] sm:$0xff]  ;;  %v8786_v59 = vld [vmem:[#allocation2 + $0x127] sm:$0xff] }
 0x8bc   : > { %17055 = vmatprep.mubr.msk.bf16.mxu1 %vm20358_vm0, %v22552_v22 }
 0x8c3   : > { %17056 = vmatmul.mubr.bf16.gmra.mrb[96].mxu1 %v8798_v35  ;;  %v8805_v35 = vpack.c.bf16 %v8775_v8, %v8774_v57  ;;  %v20214_v8 = vld [vmem:[%s24118_s7 + $0x48] sm:$0xff]   ;;  %v8789_v57 = vld [vmem:[#allocation2 + $0x13f] sm:$0xff] }
 0x8c4   : > { %17059 = vmatprep.mubr.msk.bf16.mxu1 %vm20358_vm0, %v22552_v22 }
 0x8cb   : > { %17060 = vmatmul.mubr.bf16.gmra.mrb[100].mxu1 %v8799_v28  ;;  %v8779_v28 = vld [vmem:[#allocation2 + $0xef] sm:$0xff] }
 0x8cc   : > { %17063 = vmatprep.mubr.msk.bf16.mxu1 %vm20358_vm0, %v22552_v22  ;;  %v8807_v6 = vpack.c.bf16 %v8779_v28, %v8778_v39  ;;  %v8792_v39 = vld [vmem:[#allocation2 + $0x157] sm:$0xff] }
 0x8d3   : > { %17064 = vmatmul.mubr.bf16.gmra.mrb[104].mxu1 %v8800_v1  ;;  %v9587_v1 = vpack.c.bf16 %v9547_v14, %v9546_v40  ;;  %v20215_v40 = vld [vmem:[%s24118_s7 + $0x50] sm:$0xff]  }
 0x8d4   : > { %17067 = vmatprep.mubr.msk.bf16.mxu1 %vm20358_vm0, %v22552_v22 }
 0x8d5   : > { %17144 = vmatmul.mubr.bf16.vlgmr.msra.gmra.mrb[84].mxu0 %v9587_v1  ;;  %v8794_v1 = vld [vmem:[#allocation2 + $0x167] sm:$0xff] }
 0x8d6   : > { %17147 = vmatprep.mubr.msk.bf16.mxu0 %vm20358_vm0, %v22975_v24  ;;  %v8815_v60 = vpack.c.bf16 %v8794_v1, %v8794_v1 }
 0x8db   : > { %17068 = vmatmul.mubr.bf16.gmra.mrb[108].mxu1 %v8801_v54  ;;  %v20213_v54 = vld [vmem:[%s24118_s7 + $0x40] sm:$0xff]  }
 0x8dc   : > { %17071 = vmatprep.mubr.msk.bf16.mxu1 %vm20358_vm0, %v22552_v22  ;;  %17228 = vmatpush3.bf16.msra.mxu0 %v20213_v54  ;;  %v20218_v54 = vld [vmem:[%s24118_s7 + $0x68] sm:$0xff]  }
 0x8dd   : > { %17229 = vmatprep.subr.bf16.mxu0 %v22975_v24 }
 0x8e0   : > { %17230 = vmatpush3.bf16.msra.mxu0 %v20214_v8 }
 0x8e1   : > { %17231 = vmatprep.subr.bf16.mxu0 %v22975_v24 }
 0x8e3   : > { %17072 = vmatmul.mubr.bf16.gmra.mrb[112].mxu1 %v8802_v7  ;;  %v8809_v7 = vpack.c.bf16 %v8783_v52, %v8782_v45  ;;  %v23029_v52 = vld [vmem:[%s24116_s5] ss:$0 sm:$0xff] }
 0x8e4   : > { %17075 = vmatprep.mubr.msk.bf16.mxu1 %vm20358_vm0, %v22552_v22  ;;  %v8777_v22 = vld [vmem:[#allocation2 + $0xdf] sm:$0xff]  ;;  %17232 = vmatpush3.bf16.msra.mxu0 %v20215_v40 }
 0x8e5   : > { %v8806_v12 = vpack.c.bf16 %v8777_v22, %v8776_v43  ;;  %v8791_v43 = vld [vmem:[#allocation2 + $0x14f] sm:$0xff]  ;;  %17233 = vmatprep.subr.bf16.mxu0 %v22975_v24 }
 0x8e8   : > { %17234 = vmatpush3.bf16.msra.mxu0 %v20216_v47 }
 0x8e9   : > { %17235 = vmatprep.subr.bf16.mxu0 %v22975_v24 }
 0x8eb   : > { %17076 = vmatmul.mubr.bf16.gmra.mrb[116].mxu1 %v8803_v19  ;;  %v8810_v19 = vpack.c.bf16 %v8785_v62, %v8784_v25 }
 0x8ec   : > { %17079 = vmatprep.mubr.msk.bf16.mxu1 %vm20358_vm0, %v22975_v24 }
 0x8f3   : > { %17080 = vmatmul.mubr.bf16.gmra.mrb[120].mxu1 %v8804_v11  ;;  %v8811_v11 = vpack.c.bf16 %v8787_v53, %v8786_v59 }
 0x8f4   : > { %17083 = vmatprep.mubr.msk.bf16.mxu1 %vm20358_vm0, %v22975_v24 }
 0x8fb   : > { %17084 = vmatmul.mubr.bf16.gmra.mrb[124].mxu1 %v8805_v35  ;;  %v8788_v35 = vld [vmem:[#allocation2 + $0x137] sm:$0xff] }
 0x8fc   : > { %17087 = vmatprep.mubr.msk.bf16.mxu1 %vm20358_vm0, %v22975_v24  ;;  %v8812_v22 = vpack.c.bf16 %v8789_v57, %v8788_v35 }
 0x903   : > { %17088 = vmatmul.mubr.bf16.gmra.mrb[128].mxu1 %v8806_v12  ;;  %v8790_v12 = vld [vmem:[#allocation2 + $0x147] sm:$0xff] }
 0x904   : > { %17091 = vmatprep.mubr.msk.bf16.mxu1 %vm20358_vm0, %v22975_v24  ;;  %v8813_v28 = vpack.c.bf16 %v8791_v43, %v8790_v12 }
 0x90b   : > { %17092 = vmatmul.mubr.bf16.gmra.mrb[132].mxu1 %v8807_v6  ;;  %v8793_v6 = vld [vmem:[#allocation2 + $0x15f] sm:$0xff] }
 0x90c   : > { %17095 = vmatprep.mubr.msk.bf16.mxu1 %vm20358_vm0, %v22975_v24  ;;  %v8814_v14 = vpack.c.bf16 %v8793_v6, %v8792_v39 }
 0x913   : > { %17096 = vmatmul.mubr.bf16.gmra.mrb[136].mxu1 %v8808_v27  ;;  %v20217_v27 = vld [vmem:[%s24118_s7 + $0x60] sm:$0xff]  }
 0x914   : > { %17099 = vmatprep.mubr.msk.bf16.mxu1 %vm20358_vm0, %v22975_v24  ;;  %17236 = vmatpush3.bf16.msra.mxu0 %v20217_v27 }
 0x915   : > { %17237 = vmatprep.subr.bf16.mxu0 %v22975_v24 }
 0x918   : > { %17238 = vmatpush3.bf16.msra.mxu0 %v20218_v54 }
 0x919   : > { %17239 = vmatprep.subr.bf16.mxu0 %v22975_v24 }
 0x91b   : > { %17100 = vmatmul.mubr.bf16.gmra.mrb[140].mxu1 %v8809_v7  ;;  %v23035_v7 = vld [vmem:[%s24117_s6] ss:$0 sm:$0xff] }
 0x91c   : > { %17103 = vmatprep.mubr.msk.bf16.mxu1 %vm20358_vm0, %v22975_v24 }
 0x923   : > { %17104 = vmatmul.mubr.bf16.gmra.mrb[144].mxu1 %v8810_v19 }
 0x924   : > { %17107 = vmatprep.mubr.msk.bf16.mxu1 %vm20358_vm0, %v22975_v24 }
 0x92b   : > { %17108 = vmatmul.mubr.bf16.gmra.mrb[148].mxu1 %v8811_v11 }
 0x92c   : > { %17111 = vmatprep.mubr.msk.bf16.mxu1 %vm20358_vm0, %v22975_v24 }
 0x933   : > { %17112 = vmatmul.mubr.bf16.gmra.mrb[152].mxu1 %v8812_v22 }
 0x934   : > { %17115 = vmatprep.mubr.msk.bf16.mxu1 %vm20358_vm0, %v22975_v24 }
 0x93b   : > { %17116 = vmatmul.mubr.bf16.gmra.mrb[156].mxu1 %v8813_v28 }
 0x93c   : > { %17119 = vmatprep.mubr.msk.bf16.mxu1 %vm20358_vm0, %v22975_v24 }
 0x943   : > { %17120 = vmatmul.mubr.bf16.gmra.mrb[160].mxu1 %v8814_v14 }
 0x944   : > { %17123 = vmatprep.mubr.msk.bf16.mxu1 %vm20358_vm0, %v22975_v24 }
 0x94b   : > { %17124 = vmatmul.mubr.bf16.gmra.mrb[164].mxu1 %v8815_v60 }
 0x97e   : > { %v8915_v45 = vpop.f32.mrb[84].mxu1 }
 0x97f   : > { %v9211_v62 = vmul.f32 %v23029_v52, %v8915_v45  ;;  %v17045_v25 = vpop.f32.mrb[85].mxu1 }
 0x980   : > { %v8918_v19 = vpop.f32.mrb[86].mxu1 }
 0x981   : > { %v9259_v53 = vadd.f32 %v23035_v7, %v9211_v62  ;;  %v9212_v59 = vmul.f32 %v23029_v52, %v8918_v19  ;;  %v17046_v11 = vpop.f32.mrb[87].mxu1 }
 0x983   : > { %v9300_v8 = vmax.f32 %v9259_v53, 0.0  ;;  %v9260_v57 = vadd.f32 %v23035_v7, %v9212_v59 }
 0x985   : > { %v9341_v35 = vmul.f32 %v9300_v8, %v21971_v9  ;;  %v9301_v22 = vmax.f32 %v9260_v57, 0.0 }
 0x986   : > { %v8923_v43 = vpop.f32.mrb[88].mxu1 }
 0x987   : > { %9382 = vst [vmem:[#allocation3 + $0x14] sm:$0xff] %v9341_v35  ;;  %v9342_v12 = vmul.f32 %v9301_v22, %v21979_v41  ;;  %v9213_v28 = vmul.f32 %v23029_v52, %v8923_v43  ;;  %v17049_v39 = vpop.f32.mrb[89].mxu1  ;;  %v20219_v43 = vld [vmem:[%s24118_s7 + $0x70] sm:$0xff]  }
 0x988   : > { %v8926_v6 = vpop.f32.mrb[90].mxu1  ;;  %17240 = vmatpush3.bf16.msra.mxu0 %v20219_v43 }
 0x989   : > { %9383 = vst [vmem:[#allocation3 + $0x1c] sm:$0xff] %v9342_v12  ;;  %v9261_v40 = vadd.f32 %v23035_v7, %v9213_v28  ;;  %v9214_v14 = vmul.f32 %v23029_v52, %v8926_v6  ;;  %v17050_v1 = vpop.f32.mrb[91].mxu1  ;;  %17241 = vmatprep.subr.bf16.mxu0 %v22975_v24 }
 0x98b   : > { %v9302_v60 = vmax.f32 %v9261_v40, 0.0  ;;  %v9262_v47 = vadd.f32 %v23035_v7, %v9214_v14 }
 0x98d   : > { %v9343_v27 = vmul.f32 %v9302_v60, %v21984_v2  ;;  %v9303_v54 = vmax.f32 %v9262_v47, 0.0 }
 0x98e   : > { %v8931_v45 = vpop.f32.mrb[92].mxu1  ;;  %v9548_v59 = vld [vmem:[#allocation3 + $0x11] sm:$0xff] }
 0x98f   : > { %9384 = vst [vmem:[#allocation3 + $0x24] sm:$0xff] %v9343_v27  ;;  %v9344_v62 = vmul.f32 %v9303_v54, %v21991_v4  ;;  %v9215_v25 = vmul.f32 %v23029_v52, %v8931_v45  ;;  %v17053_v19 = vpop.f32.mrb[93].mxu1 }
 0x990   : > { %v8934_v53 = vpop.f32.mrb[94].mxu1  ;;  %v9549_v11 = vld [vmem:[#allocation3 + $0x19] sm:$0xff] }
 0x991   : > { %9385 = vst [vmem:[#allocation3 + $0x2c] sm:$0xff] %v9344_v62  ;;  %v9263_v8 = vadd.f32 %v23035_v7, %v9215_v25  ;;  %v9216_v57 = vmul.f32 %v23029_v52, %v8934_v53  ;;  %v17054_v35 = vpop.f32.mrb[95].mxu1  ;;  %v9588_v22 = vpack.c.bf16 %v9549_v11, %v9548_v59 }
 0x993   : > { %v9304_v12 = vmax.f32 %v9263_v8, 0.0  ;;  %v9264_v28 = vadd.f32 %v23035_v7, %v9216_v57  ;;  %17148 = vmatmul.mubr.bf16.gmra.mrb[88].mxu0 %v9588_v22 }
 0x994   : > { %17151 = vmatprep.mubr.msk.bf16.mxu0 %vm20358_vm0, %v22975_v24 }
 0x995   : > { %v9345_v39 = vmul.f32 %v9304_v12, %v22002_v63  ;;  %v9305_v6 = vmax.f32 %v9264_v28, 0.0 }
 0x996   : > { %v8939_v40 = vpop.f32.mrb[96].mxu1  ;;  %v9550_v27 = vld [vmem:[#allocation3 + $0x21] sm:$0xff] }
 0x997   : > { %9386 = vst [vmem:[#allocation3 + $0x34] sm:$0xff] %v9345_v39  ;;  %v9346_v14 = vmul.f32 %v9305_v6, %v22009_v0  ;;  %v9217_v1 = vmul.f32 %v23029_v52, %v8939_v40  ;;  %v17057_v60 = vpop.f32.mrb[97].mxu1 }
 0x998   : > { %v8942_v47 = vpop.f32.mrb[98].mxu1  ;;  %v9551_v54 = vld [vmem:[#allocation3 + $0x29] sm:$0xff] }
 0x999   : > { %9387 = vst [vmem:[#allocation3 + $0x3c] sm:$0xff] %v9346_v14  ;;  %v9265_v45 = vadd.f32 %v23035_v7, %v9217_v1  ;;  %v9218_v62 = vmul.f32 %v23029_v52, %v8942_v47  ;;  %v17058_v25 = vpop.f32.mrb[99].mxu1  ;;  %v9589_v19 = vpack.c.bf16 %v9551_v54, %v9550_v27 }
 0x99b   : > { %v9306_v53 = vmax.f32 %v9265_v45, 0.0  ;;  %v9266_v59 = vadd.f32 %v23035_v7, %v9218_v62  ;;  %17152 = vmatmul.mubr.bf16.gmra.mrb[92].mxu0 %v9589_v19 }
 0x99c   : > { %17155 = vmatprep.mubr.msk.bf16.mxu0 %vm20358_vm0, %v22975_v24 }
 0x99d   : > { %v9347_v11 = vmul.f32 %v9306_v53, %v22017_v56  ;;  %v9307_v8 = vmax.f32 %v9266_v59, 0.0  ;;  %v20220_v53 = vld [vmem:[%s24118_s7 + $0x78] sm:$0xff]  }
 0x99e   : > { %v8947_v57 = vpop.f32.mrb[100].mxu1  ;;  %v9552_v28 = vld [vmem:[#allocation3 + $0x31] sm:$0xff]  ;;  %17242 = vmatpush3.bf16.msra.mxu0 %v20220_v53 }
 0x99f   : > { %9388 = vst [vmem:[#allocation3 + $0x44] sm:$0xff] %v9347_v11  ;;  %v9348_v35 = vmul.f32 %v9307_v8, %v22023_v36  ;;  %v9219_v22 = vmul.f32 %v23029_v52, %v8947_v57  ;;  %v17061_v43 = vpop.f32.mrb[101].mxu1  ;;  %17327 = vmatprep.subr.bf16.mxu0 %v22975_v24 }
 0x9a0   : > { %v8950_v12 = vpop.f32.mrb[102].mxu1  ;;  %v9553_v39 = vld [vmem:[#allocation3 + $0x39] sm:$0xff] }
 0x9a1   : > { %9389 = vst [vmem:[#allocation3 + $0x4c] sm:$0xff] %v9348_v35  ;;  %v9267_v6 = vadd.f32 %v23035_v7, %v9219_v22  ;;  %v9220_v40 = vmul.f32 %v23029_v52, %v8950_v12  ;;  %v17062_v14 = vpop.f32.mrb[103].mxu1  ;;  %v9590_v1 = vpack.c.bf16 %v9553_v39, %v9552_v28 }
 0x9a3   : > { %v9308_v60 = vmax.f32 %v9267_v6, 0.0  ;;  %v9268_v47 = vadd.f32 %v23035_v7, %v9220_v40  ;;  %17156 = vmatmul.mubr.bf16.gmra.mrb[96].mxu0 %v9590_v1 }
 0x9a4   : > { %17159 = vmatprep.mubr.msk.bf16.mxu0 %vm20358_vm0, %v22975_v24 }
 0x9a5   : > { %v9349_v27 = vmul.f32 %v9308_v60, %v22031_v46  ;;  %v9309_v54 = vmax.f32 %v9268_v47, 0.0 }
 0x9a6   : > { %v8955_v45 = vpop.f32.mrb[104].mxu1  ;;  %v9554_v11 = vld [vmem:[#allocation3 + $0x41] sm:$0xff] }
 0x9a7   : > { %9390 = vst [vmem:[#allocation3 + $0x54] sm:$0xff] %v9349_v27  ;;  %v9350_v62 = vmul.f32 %v9309_v54, %v22037_v51  ;;  %v9221_v25 = vmul.f32 %v23029_v52, %v8955_v45  ;;  %v17065_v19 = vpop.f32.mrb[105].mxu1 }
 0x9a8   : > { %v8958_v59 = vpop.f32.mrb[106].mxu1  ;;  %v9555_v8 = vld [vmem:[#allocation3 + $0x49] sm:$0xff] }
 0x9a9   : > { %9391 = vst [vmem:[#allocation3 + $0x5c] sm:$0xff] %v9350_v62  ;;  %v9269_v57 = vadd.f32 %v23035_v7, %v9221_v25  ;;  %v9222_v35 = vmul.f32 %v23029_v52, %v8958_v59  ;;  %v17066_v22 = vpop.f32.mrb[107].mxu1  ;;  %v9591_v43 = vpack.c.bf16 %v9555_v8, %v9554_v11 }
 0x9ab   : > { %v9310_v12 = vmax.f32 %v9269_v57, 0.0  ;;  %v9270_v28 = vadd.f32 %v23035_v7, %v9222_v35  ;;  %17160 = vmatmul.mubr.bf16.gmra.mrb[100].mxu0 %v9591_v43 }
 0x9ac   : > { %17163 = vmatprep.mubr.msk.bf16.mxu0 %vm20358_vm0, %v22975_v24 }
 0x9ad   : > { %v9351_v39 = vmul.f32 %v9310_v12, %v22049_v21  ;;  %v9311_v6 = vmax.f32 %v9270_v28, 0.0 }
 0x9ae   : > { %v8963_v40 = vpop.f32.mrb[108].mxu1  ;;  %v9556_v27 = vld [vmem:[#allocation3 + $0x51] sm:$0xff] }
 0x9af   : > { %9392 = vst [vmem:[#allocation3 + $0x64] sm:$0xff] %v9351_v39  ;;  %v9352_v14 = vmul.f32 %v9311_v6, %v22055_v55  ;;  %v9223_v1 = vmul.f32 %v23029_v52, %v8963_v40  ;;  %v17069_v60 = vpop.f32.mrb[109].mxu1 }
 0x9b0   : > { %v8966_v47 = vpop.f32.mrb[110].mxu1  ;;  %v9557_v54 = vld [vmem:[#allocation3 + $0x59] sm:$0xff] }
 0x9b1   : > { %9393 = vst [vmem:[#allocation3 + $0x6c] sm:$0xff] %v9352_v14  ;;  %v9271_v45 = vadd.f32 %v23035_v7, %v9223_v1  ;;  %v9224_v62 = vmul.f32 %v23029_v52, %v8966_v47  ;;  %v17070_v25 = vpop.f32.mrb[111].mxu1  ;;  %v9592_v19 = vpack.c.bf16 %v9557_v54, %v9556_v27 }
 0x9b3   : > { %v9312_v53 = vmax.f32 %v9271_v45, 0.0  ;;  %v9272_v59 = vadd.f32 %v23035_v7, %v9224_v62  ;;  %17164 = vmatmul.mubr.bf16.gmra.mrb[104].mxu0 %v9592_v19 }
 0x9b4   : > { %17167 = vmatprep.mubr.msk.bf16.mxu0 %vm20358_vm0, %v22975_v24 }
 0x9b5   : > { %v9353_v11 = vmul.f32 %v9312_v53, %v22063_v18  ;;  %v9313_v8 = vmax.f32 %v9272_v59, 0.0 }
 0x9b6   : > { %v8971_v57 = vpop.f32.mrb[112].mxu1  ;;  %v9558_v28 = vld [vmem:[#allocation3 + $0x61] sm:$0xff] }
 0x9b7   : > { %9394 = vst [vmem:[#allocation3 + $0x74] sm:$0xff] %v9353_v11  ;;  %v9354_v35 = vmul.f32 %v9313_v8, %v22069_v34  ;;  %v9225_v22 = vmul.f32 %v23029_v52, %v8971_v57  ;;  %v17073_v43 = vpop.f32.mrb[113].mxu1 }
 0x9b8   : > { %v8974_v12 = vpop.f32.mrb[114].mxu1  ;;  %v9559_v39 = vld [vmem:[#allocation3 + $0x69] sm:$0xff] }
 0x9b9   : > { %9395 = vst [vmem:[#allocation3 + $0x7c] sm:$0xff] %v9354_v35  ;;  %v9273_v6 = vadd.f32 %v23035_v7, %v9225_v22  ;;  %v9226_v40 = vmul.f32 %v23029_v52, %v8974_v12  ;;  %v17074_v14 = vpop.f32.mrb[115].mxu1  ;;  %v9593_v1 = vpack.c.bf16 %v9559_v39, %v9558_v28 }
 0x9bb   : > { %v9314_v60 = vmax.f32 %v9273_v6, 0.0  ;;  %v9274_v47 = vadd.f32 %v23035_v7, %v9226_v40  ;;  %17168 = vmatmul.mubr.bf16.gmra.mrb[108].mxu0 %v9593_v1 }
 0x9bc   : > { %17171 = vmatprep.mubr.msk.bf16.mxu0 %vm20358_vm0, %v22975_v24 }
 0x9bd   : > { %v9355_v27 = vmul.f32 %v9314_v60, %v22077_v26  ;;  %v9315_v54 = vmax.f32 %v9274_v47, 0.0 }
 0x9be   : > { %v8979_v45 = vpop.f32.mrb[116].mxu1  ;;  %v9560_v59 = vld [vmem:[#allocation3 + $0x71] sm:$0xff] }
 0x9bf   : > { %9396 = vst [vmem:[#allocation3 + $0x84] sm:$0xff] %v9355_v27  ;;  %v9356_v62 = vmul.f32 %v9315_v54, %v22083_v33  ;;  %v9227_v25 = vmul.f32 %v23029_v52, %v8979_v45  ;;  %v17077_v19 = vpop.f32.mrb[117].mxu1 }
 0x9c0   : > { %v8982_v53 = vpop.f32.mrb[118].mxu1  ;;  %v9561_v11 = vld [vmem:[#allocation3 + $0x79] sm:$0xff] }
 0x9c1   : > { %9397 = vst [vmem:[#allocation3 + $0x8c] sm:$0xff] %v9356_v62  ;;  %v9275_v8 = vadd.f32 %v23035_v7, %v9227_v25  ;;  %v9228_v57 = vmul.f32 %v23029_v52, %v8982_v53  ;;  %v17078_v35 = vpop.f32.mrb[119].mxu1  ;;  %v9594_v22 = vpack.c.bf16 %v9561_v11, %v9560_v59 }
 0x9c3   : > { %v9316_v43 = vmax.f32 %v9275_v8, 0.0  ;;  %v9276_v12 = vadd.f32 %v23035_v7, %v9228_v57  ;;  %17172 = vmatmul.mubr.bf16.gmra.mrb[112].mxu0 %v9594_v22 }
 0x9c4   : > { %17175 = vmatprep.mubr.msk.bf16.mxu0 %vm20358_vm0, %v22975_v24 }
 0x9c5   : > { %v9357_v28 = vmul.f32 %v9316_v43, %v22091_v29  ;;  %v9317_v39 = vmax.f32 %v9276_v12, 0.0 }
 0x9c6   : > { %v8987_v6 = vpop.f32.mrb[120].mxu1  ;;  %v9562_v47 = vld [vmem:[#allocation3 + $0x81] sm:$0xff] }
 0x9c7   : > { %9398 = vst [vmem:[#allocation3 + $0x94] sm:$0xff] %v9357_v28  ;;  %v9358_v40 = vmul.f32 %v9317_v39, %v22095_v49  ;;  %v9229_v14 = vmul.f32 %v23029_v52, %v8987_v6  ;;  %v17081_v1 = vpop.f32.mrb[121].mxu1 }
 0x9c8   : > { %v8990_v60 = vpop.f32.mrb[122].mxu1  ;;  %v9563_v27 = vld [vmem:[#allocation3 + $0x89] sm:$0xff] }
 0x9c9   : > { %9399 = vst [vmem:[#allocation3 + $0x9c] sm:$0xff] %v9358_v40  ;;  %v9277_v54 = vadd.f32 %v23035_v7, %v9229_v14  ;;  %v9230_v45 = vmul.f32 %v23029_v52, %v8990_v60  ;;  %v17082_v62 = vpop.f32.mrb[123].mxu1  ;;  %v9595_v25 = vpack.c.bf16 %v9563_v27, %v9562_v47 }
 0x9cb   : > { %v9318_v19 = vmax.f32 %v9277_v54, 0.0  ;;  %v9278_v53 = vadd.f32 %v23035_v7, %v9230_v45  ;;  %17176 = vmatmul.mubr.bf16.gmra.mrb[116].mxu0 %v9595_v25 }
 0x9cc   : > { %17179 = vmatprep.mubr.msk.bf16.mxu0 %vm20358_vm0, %v22975_v24 }
 0x9cd   : > { %v9359_v59 = vmul.f32 %v9318_v19, %v22104_v58  ;;  %v9319_v11 = vmax.f32 %v9278_v53, 0.0 }
 0x9ce   : > { %v8995_v8 = vpop.f32.mrb[124].mxu1  ;;  %v9564_v12 = vld [vmem:[#allocation3 + $0x91] sm:$0xff] }
 0x9cf   : > { %9400 = vst [vmem:[#allocation3 + $0xa4] sm:$0xff] %v9359_v59  ;;  %v9360_v57 = vmul.f32 %v9319_v11, %v22106_v37  ;;  %v9231_v35 = vmul.f32 %v23029_v52, %v8995_v8  ;;  %v17085_v22 = vpop.f32.mrb[125].mxu1 }
 0x9d0   : > { %v8998_v43 = vpop.f32.mrb[126].mxu1  ;;  %v9565_v28 = vld [vmem:[#allocation3 + $0x99] sm:$0xff] }
 0x9d1   : > { %9401 = vst [vmem:[#allocation3 + $0xac] sm:$0xff] %v9360_v57  ;;  %v9279_v39 = vadd.f32 %v23035_v7, %v9231_v35  ;;  %v9232_v6 = vmul.f32 %v23029_v52, %v8998_v43  ;;  %v17086_v40 = vpop.f32.mrb[127].mxu1  ;;  %v9596_v14 = vpack.c.bf16 %v9565_v28, %v9564_v12 }
 0x9d3   : > { %v9320_v1 = vmax.f32 %v9279_v39, 0.0  ;;  %v9280_v60 = vadd.f32 %v23035_v7, %v9232_v6  ;;  %17180 = vmatmul.mubr.bf16.gmra.mrb[120].mxu0 %v9596_v14 }
 0x9d4   : > { %17183 = vmatprep.mubr.msk.bf16.mxu0 %vm20358_vm0, %v22975_v24 }
 0x9d5   : > { %v9361_v47 = vmul.f32 %v9320_v1, %v22118_v23  ;;  %v9321_v27 = vmax.f32 %v9280_v60, 0.0 }
 0x9d6   : > { %v9003_v54 = vpop.f32.mrb[128].mxu1  ;;  %v9566_v53 = vld [vmem:[#allocation3 + $0xa1] sm:$0xff] }
 0x9d7   : > { %9402 = vst [vmem:[#allocation3 + $0xb4] sm:$0xff] %v9361_v47  ;;  %v9362_v45 = vmul.f32 %v9321_v27, %v22120_v16  ;;  %v9233_v62 = vmul.f32 %v23029_v52, %v9003_v54  ;;  %v17089_v25 = vpop.f32.mrb[129].mxu1 }
 0x9d8   : > { %v9006_v19 = vpop.f32.mrb[130].mxu1  ;;  %v9567_v59 = vld [vmem:[#allocation3 + $0xa9] sm:$0xff] }
 0x9d9   : > { %9403 = vst [vmem:[#allocation3 + $0xbc] sm:$0xff] %v9362_v45  ;;  %v9281_v11 = vadd.f32 %v23035_v7, %v9233_v62  ;;  %v9234_v8 = vmul.f32 %v23029_v52, %v9006_v19  ;;  %v17090_v57 = vpop.f32.mrb[131].mxu1  ;;  %v9597_v35 = vpack.c.bf16 %v9567_v59, %v9566_v53 }
 0x9db   : > { %v9322_v22 = vmax.f32 %v9281_v11, 0.0  ;;  %v9282_v43 = vadd.f32 %v23035_v7, %v9234_v8  ;;  %17184 = vmatmul.mubr.bf16.gmra.mrb[124].mxu0 %v9597_v35 }
 0x9dc   : > { %17187 = vmatprep.mubr.msk.bf16.mxu0 %vm20358_vm0, %v22975_v24 }
 0x9dd   : > { %v9363_v12 = vmul.f32 %v9322_v22, %v22130_v32  ;;  %v9323_v28 = vmax.f32 %v9282_v43, 0.0 }
 0x9de   : > { %v9011_v39 = vpop.f32.mrb[132].mxu1  ;;  %v9568_v60 = vld [vmem:[#allocation3 + $0xb1] sm:$0xff] }
 0x9df   : > { %9404 = vst [vmem:[#allocation3 + $0xc4] sm:$0xff] %v9363_v12  ;;  %v9364_v6 = vmul.f32 %v9323_v28, %v22132_v38  ;;  %v9235_v40 = vmul.f32 %v23029_v52, %v9011_v39  ;;  %v17093_v14 = vpop.f32.mrb[133].mxu1 }
 0x9e0   : > { %v9014_v1 = vpop.f32.mrb[134].mxu1  ;;  %v9569_v47 = vld [vmem:[#allocation3 + $0xb9] sm:$0xff] }
 0x9e1   : > { %9405 = vst [vmem:[#allocation3 + $0xcc] sm:$0xff] %v9364_v6  ;;  %v9283_v27 = vadd.f32 %v23035_v7, %v9235_v40  ;;  %v9236_v54 = vmul.f32 %v23029_v52, %v9014_v1  ;;  %v17094_v45 = vpop.f32.mrb[135].mxu1  ;;  %v9598_v62 = vpack.c.bf16 %v9569_v47, %v9568_v60 }
 0x9e3   : > { %v9324_v25 = vmax.f32 %v9283_v27, 0.0  ;;  %v9284_v19 = vadd.f32 %v23035_v7, %v9236_v54  ;;  %17188 = vmatmul.mubr.bf16.gmra.mrb[128].mxu0 %v9598_v62 }
 0x9e4   : > { %17191 = vmatprep.mubr.msk.bf16.mxu0 %vm20358_vm0, %v22975_v24 }
 0x9e5   : > { %v9365_v53 = vmul.f32 %v9324_v25, %v22142_v30  ;;  %v9325_v59 = vmax.f32 %v9284_v19, 0.0 }
 0x9e6   : > { %v9019_v11 = vpop.f32.mrb[136].mxu1  ;;  %v9570_v43 = vld [vmem:[#allocation3 + $0xc1] sm:$0xff] }
 0x9e7   : > { %9406 = vst [vmem:[#allocation3 + $0xd4] sm:$0xff] %v9365_v53  ;;  %v9366_v8 = vmul.f32 %v9325_v59, %v22144_v31  ;;  %v9237_v57 = vmul.f32 %v23029_v52, %v9019_v11  ;;  %v17097_v35 = vpop.f32.mrb[137].mxu1 }
 0x9e8   : > { %v9022_v22 = vpop.f32.mrb[138].mxu1  ;;  %v9571_v12 = vld [vmem:[#allocation3 + $0xc9] sm:$0xff] }
 0x9e9   : > { %9407 = vst [vmem:[#allocation3 + $0xdc] sm:$0xff] %v9366_v8  ;;  %v9285_v28 = vadd.f32 %v23035_v7, %v9237_v57  ;;  %v9238_v39 = vmul.f32 %v23029_v52, %v9022_v22  ;;  %v17098_v6 = vpop.f32.mrb[139].mxu1  ;;  %v9599_v40 = vpack.c.bf16 %v9571_v12, %v9570_v43 }
 0x9eb   : > { %v9326_v14 = vmax.f32 %v9285_v28, 0.0  ;;  %v9286_v1 = vadd.f32 %v23035_v7, %v9238_v39  ;;  %17192 = vmatmul.mubr.bf16.gmra.mrb[132].mxu0 %v9599_v40 }
 0x9ec   : > { %17195 = vmatprep.mubr.msk.bf16.mxu0 %vm20358_vm0, %v22975_v24 }
 0x9ed   : > { %v9367_v60 = vmul.f32 %v9326_v14, %v22154_v20  ;;  %v9327_v47 = vmax.f32 %v9286_v1, 0.0 }
 0x9ee   : > { %v9027_v27 = vpop.f32.mrb[140].mxu1  ;;  %v9572_v19 = vld [vmem:[#allocation3 + $0xd1] sm:$0xff] }
 0x9ef   : > { %9408 = vst [vmem:[#allocation3 + $0xe4] sm:$0xff] %v9367_v60  ;;  %v9368_v54 = vmul.f32 %v9327_v47, %v22156_v13  ;;  %v9239_v45 = vmul.f32 %v23029_v52, %v9027_v27  ;;  %v17101_v62 = vpop.f32.mrb[141].mxu1 }
 0x9f0   : > { %v9030_v25 = vpop.f32.mrb[142].mxu1  ;;  %v9573_v53 = vld [vmem:[#allocation3 + $0xd9] sm:$0xff] }
 0x9f1   : > { %9409 = vst [vmem:[#allocation3 + $0xec] sm:$0xff] %v9368_v54  ;;  %v9287_v59 = vadd.f32 %v23035_v7, %v9239_v45  ;;  %v9240_v11 = vmul.f32 %v23029_v52, %v9030_v25  ;;  %v17102_v8 = vpop.f32.mrb[143].mxu1  ;;  %v9600_v57 = vpack.c.bf16 %v9573_v53, %v9572_v19 }
 0x9f3   : > { %v9328_v35 = vmax.f32 %v9287_v59, 0.0  ;;  %v9288_v22 = vadd.f32 %v23035_v7, %v9240_v11  ;;  %17196 = vmatmul.mubr.bf16.gmra.mrb[136].mxu0 %v9600_v57 }
 0x9f4   : > { %17199 = vmatprep.mubr.msk.bf16.mxu0 %vm20358_vm0, %v22975_v24 }
 0x9f5   : > { %v9369_v43 = vmul.f32 %v9328_v35, %v22168_v48  ;;  %v9329_v12 = vmax.f32 %v9288_v22, 0.0 }
 0x9f6   : > { %v9035_v28 = vpop.f32.mrb[144].mxu1  ;;  %v9574_v1 = vld [vmem:[#allocation3 + $0xe1] sm:$0xff] }
 0x9f7   : > { %9410 = vst [vmem:[#allocation3 + $0xf4] sm:$0xff] %v9369_v43  ;;  %v9370_v39 = vmul.f32 %v9329_v12, %v22170_v61  ;;  %v9241_v6 = vmul.f32 %v23029_v52, %v9035_v28  ;;  %v17105_v40 = vpop.f32.mrb[145].mxu1 }
 0x9f8   : > { %v9038_v14 = vpop.f32.mrb[146].mxu1  ;;  %v9575_v60 = vld [vmem:[#allocation3 + $0xe9] sm:$0xff] }
 0x9f9   : > { %9411 = vst [vmem:[#allocation3 + $0xfc] sm:$0xff] %v9370_v39  ;;  %v9289_v47 = vadd.f32 %v23035_v7, %v9241_v6  ;;  %v9242_v27 = vmul.f32 %v23029_v52, %v9038_v14  ;;  %v17106_v54 = vpop.f32.mrb[147].mxu1  ;;  %v9601_v45 = vpack.c.bf16 %v9575_v60, %v9574_v1 }
 0x9fb   : > { %v9330_v62 = vmax.f32 %v9289_v47, 0.0  ;;  %v9290_v25 = vadd.f32 %v23035_v7, %v9242_v27  ;;  %17200 = vmatmul.mubr.bf16.gmra.mrb[140].mxu0 %v9601_v45 }
 0x9fc   : > { %17203 = vmatprep.mubr.msk.bf16.mxu0 %vm20358_vm0, %v22975_v24 }
 0x9fd   : > { %v9371_v19 = vmul.f32 %v9330_v62, %v22180_v17  ;;  %v9331_v53 = vmax.f32 %v9290_v25, 0.0 }
 0x9fe   : > { %v9043_v59 = vpop.f32.mrb[148].mxu1  ;;  %v9576_v22 = vld [vmem:[#allocation3 + $0xf1] sm:$0xff] }
 0x9ff   : > { %9412 = vst [vmem:[#allocation3 + $0x104] sm:$0xff] %v9371_v19  ;;  %v9372_v11 = vmul.f32 %v9331_v53, %v22182_v10  ;;  %v9243_v8 = vmul.f32 %v23029_v52, %v9043_v59  ;;  %v17109_v57 = vpop.f32.mrb[149].mxu1 }
 0xa00   : > { %v9046_v35 = vpop.f32.mrb[150].mxu1  ;;  %v9577_v43 = vld [vmem:[#allocation3 + $0xf9] sm:$0xff] }
 0xa01   : > { %9413 = vst [vmem:[#allocation3 + $0x10c] sm:$0xff] %v9372_v11  ;;  %v9291_v12 = vadd.f32 %v23035_v7, %v9243_v8  ;;  %v9244_v28 = vmul.f32 %v23029_v52, %v9046_v35  ;;  %v17110_v39 = vpop.f32.mrb[151].mxu1  ;;  %v9602_v6 = vpack.c.bf16 %v9577_v43, %v9576_v22 }
 0xa03   : > { %v9332_v40 = vmax.f32 %v9291_v12, 0.0  ;;  %v9292_v14 = vadd.f32 %v23035_v7, %v9244_v28  ;;  %17204 = vmatmul.mubr.bf16.gmra.mrb[144].mxu0 %v9602_v6 }
 0xa04   : > { %17207 = vmatprep.mubr.msk.bf16.mxu0 %vm20358_vm0, %v22975_v24 }
 0xa05   : > { %v9373_v1 = vmul.f32 %v9332_v40, %v22192_v3  ;;  %v9333_v60 = vmax.f32 %v9292_v14, 0.0 }
 0xa06   : > { %v9051_v47 = vpop.f32.mrb[152].mxu1  ;;  %v9578_v25 = vld [vmem:[#allocation3 + $0x101] sm:$0xff] }
 0xa07   : > { %9414 = vst [vmem:[#allocation3 + $0x114] sm:$0xff] %v9373_v1  ;;  %v9374_v27 = vmul.f32 %v9333_v60, %v22194_v5  ;;  %v9245_v54 = vmul.f32 %v23029_v52, %v9051_v47  ;;  %v17113_v45 = vpop.f32.mrb[153].mxu1 }
 0xa08   : > { %v9054_v62 = vpop.f32.mrb[154].mxu1  ;;  %v9579_v19 = vld [vmem:[#allocation3 + $0x109] sm:$0xff] }
 0xa09   : > { %9415 = vst [vmem:[#allocation3 + $0x11c] sm:$0xff] %v9374_v27  ;;  %v9293_v53 = vadd.f32 %v23035_v7, %v9245_v54  ;;  %v9246_v59 = vmul.f32 %v23029_v52, %v9054_v62  ;;  %v17114_v11 = vpop.f32.mrb[155].mxu1  ;;  %v9603_v8 = vpack.c.bf16 %v9579_v19, %v9578_v25 }
 0xa0b   : > { %v9334_v57 = vmax.f32 %v9293_v53, 0.0  ;;  %v9294_v35 = vadd.f32 %v23035_v7, %v9246_v59  ;;  %17208 = vmatmul.mubr.bf16.gmra.mrb[148].mxu0 %v9603_v8 }
 0xa0c   : > { %17211 = vmatprep.mubr.msk.bf16.mxu0 %vm20358_vm0, %v22975_v24 }
 0xa0d   : > { %v9375_v22 = vmul.f32 %v9334_v57, %v22204_v42  ;;  %v9335_v43 = vmax.f32 %v9294_v35, 0.0 }
 0xa0e   : > { %v9059_v12 = vpop.f32.mrb[156].mxu1  ;;  %v9580_v14 = vld [vmem:[#allocation3 + $0x111] sm:$0xff] }
 0xa0f   : > { %9416 = vst [vmem:[#allocation3 + $0x124] sm:$0xff] %v9375_v22  ;;  %v9376_v28 = vmul.f32 %v9335_v43, %v22206_v15  ;;  %v9247_v39 = vmul.f32 %v23029_v52, %v9059_v12  ;;  %v17117_v6 = vpop.f32.mrb[157].mxu1 }
 0xa10   : > { %v9062_v40 = vpop.f32.mrb[158].mxu1  ;;  %v9581_v1 = vld [vmem:[#allocation3 + $0x119] sm:$0xff] }
 0xa11   : > { %9417 = vst [vmem:[#allocation3 + $0x12c] sm:$0xff] %v9376_v28  ;;  %v9295_v60 = vadd.f32 %v23035_v7, %v9247_v39  ;;  %v9248_v47 = vmul.f32 %v23029_v52, %v9062_v40  ;;  %v17118_v27 = vpop.f32.mrb[159].mxu1  ;;  %v9604_v54 = vpack.c.bf16 %v9581_v1, %v9580_v14  ;;  %v24136_v14 = vld [vmem:[#allocation8_spill] sm:$0xff] }
 0xa12   : > { %v24137_v27 = vld [vmem:[#allocation9_spill] sm:$0xff] }
 0xa13   : > { %v9336_v45 = vmax.f32 %v9295_v60, 0.0  ;;  %v9296_v62 = vadd.f32 %v23035_v7, %v9248_v47  ;;  %17212 = vmatmul.mubr.bf16.gmra.mrb[152].mxu0 %v9604_v54 }
 0xa14   : > { %17215 = vmatprep.mubr.msk.bf16.mxu0 %vm20358_vm0, %v22975_v24 }
 0xa15   : > { %v9377_v25 = vmul.f32 %v9336_v45, %v22216_v44  ;;  %v9337_v19 = vmax.f32 %v9296_v62, 0.0 }
 0xa16   : > { %v9067_v53 = vpop.f32.mrb[160].mxu1  ;;  %v9582_v35 = vld [vmem:[#allocation3 + $0x121] sm:$0xff] }
 0xa17   : > { %9418 = vst [vmem:[#allocation3 + $0x134] sm:$0xff] %v9377_v25  ;;  %v9378_v59 = vmul.f32 %v9337_v19, %v22218_v50  ;;  %v9249_v11 = vmul.f32 %v23029_v52, %v9067_v53  ;;  %v17121_v8 = vpop.f32.mrb[161].mxu1 }
 0xa18   : > { %v9070_v57 = vpop.f32.mrb[162].mxu1  ;;  %v9583_v22 = vld [vmem:[#allocation3 + $0x129] sm:$0xff] }
 0xa19   : > { %9419 = vst [vmem:[#allocation3 + $0x13c] sm:$0xff] %v9378_v59  ;;  %v9297_v43 = vadd.f32 %v23035_v7, %v9249_v11  ;;  %v9250_v12 = vmul.f32 %v23029_v52, %v9070_v57  ;;  %v17122_v28 = vpop.f32.mrb[163].mxu1  ;;  %v9605_v39 = vpack.c.bf16 %v9583_v22, %v9582_v35  ;;  %v24138_v35 = vld [vmem:[#allocation10_spill] sm:$0xff] }
 0xa1a   : > { %v9996_v28 = vld [vmem:[#allocation3 + $0xa] sm:$0xff] }
 0xa1b   : > { %v9338_v6 = vmax.f32 %v9297_v43, 0.0  ;;  %v9298_v40 = vadd.f32 %v23035_v7, %v9250_v12  ;;  %17216 = vmatmul.mubr.bf16.gmra.mrb[156].mxu0 %v9605_v39 }
 0xa1c   : > { %17219 = vmatprep.mubr.msk.bf16.mxu0 %vm20358_vm0, %v22975_v24 }
 0xa1d   : > { %v9379_v1 = vmul.f32 %v9338_v6, %v24136_v14  ;;  %v9339_v60 = vmax.f32 %v9298_v40, 0.0  ;;  %v20222_v6 = vld [vmem:[%s24118_s7 + $0x88] sm:$0xff]  }
 0xa1e   : > { %v9075_v47 = vpop.f32.mrb[164].mxu1  ;;  %v9584_v19 = vld [vmem:[#allocation3 + $0x131] sm:$0xff]  ;;  %v9998_v40 = vld [vmem:[#allocation3 + $0x1a] sm:$0xff] }
 0xa1f   : > { %9420 = vst [vmem:[#allocation3 + $0x144] sm:$0xff] %v9379_v1  ;;  %v9380_v54 = vmul.f32 %v9339_v60, %v24137_v27  ;;  %v9251_v45 = vmul.f32 %v23029_v52, %v9075_v47  ;;  %v17125_v62 = vpop.f32.mrb[165].mxu1  ;;  %v9995_v52 = vld [vmem:[#allocation3 + $0x2] sm:$0xff]  ;;  %v9997_v1 = vld [vmem:[#allocation3 + $0x12] sm:$0xff] }
 0xa20   : > { %v9078_v25 = vpop.f32.mrb[166].mxu1  ;;  %v9585_v53 = vld [vmem:[#allocation3 + $0x139] sm:$0xff]  ;;  %v10036_v39 = vpack.c.bf16 %v9996_v28, %v9995_v52  ;;  %v10037_v47 = vpack.c.bf16 %v9998_v40, %v9997_v1  ;;  %v9999_v62 = vld [vmem:[#allocation3 + $0x22] sm:$0xff] }
 0xa21   : > { %9421 = vst [vmem:[#allocation3 + $0x14c] sm:$0xff] %v9380_v54  ;;  %v9299_v59 = vadd.f32 %v23035_v7, %v9251_v45  ;;  %v17126_v11 = vpop.f32.mrb[167].mxu1  ;;  %v9606_v8 = vpack.c.bf16 %v9585_v53, %v9584_v19  ;;  %v20221_v7 = vld [vmem:[%s24118_s7 + $0x80] sm:$0xff]   ;;  %v20223_v60 = vld [vmem:[%s24118_s7 + $0x90] sm:$0xff]   ;;  %v20224_v54 = vld [vmem:[%s24118_s7 + $0x98] sm:$0xff]  }
 0xa22   : > { %v10000_v45 = vld [vmem:[#allocation3 + $0x2a] sm:$0xff]  ;;  %v20226_v53 = vld [vmem:[%s24118_s7 + $0xa8] sm:$0xff]   ;;  %v10007_v40 = vld [vmem:[#allocation3 + $0x62] sm:$0xff] }
 0xa23   : > { %v9340_v57 = vmax.f32 %v9299_v59, 0.0  ;;  %17220 = vmatmul.mubr.bf16.gmra.mrb[160].mxu0 %v9606_v8  ;;  %v20225_v25 = vld [vmem:[%s24118_s7 + $0xa0] sm:$0xff]   ;;  %v10038_v19 = vpack.c.bf16 %v10000_v45, %v9999_v62  ;;  %v10002_v59 = vld [vmem:[#allocation3 + $0x3a] sm:$0xff]  ;;  %v10011_v62 = vld [vmem:[#allocation3 + $0x82] sm:$0xff] }
 0xa24   : > { %17223 = vmatprep.mubr.msk.bf16.mxu0 %vm20358_vm0, %v22975_v24  ;;  %v10001_v11 = vld [vmem:[#allocation3 + $0x32] sm:$0xff]  ;;  %v20227_v8 = vld [vmem:[%s24118_s7 + $0xb0] sm:$0xff]   ;;  %v10012_v45 = vld [vmem:[#allocation3 + $0x8a] sm:$0xff] }
 0xa25   : > { %v9381_v22 = vmul.f32 %v9340_v57, %v24138_v35  ;;  %v10039_v57 = vpack.c.bf16 %v10002_v59, %v10001_v11  ;;  %v10006_v28 = vld [vmem:[#allocation3 + $0x5a] sm:$0xff]  ;;  %v10016_v11 = vld [vmem:[#allocation3 + $0xaa] sm:$0xff] }
 0xa26   : > { %v9586_v43 = vld [vmem:[#allocation3 + $0x141] sm:$0xff] }
 0xa27   : > { %9422 = vst [vmem:[#allocation3 + $0x154] sm:$0xff] %v9381_v22  ;;  %v9607_v12 = vpack.c.bf16 %v9586_v43, %v9586_v43  ;;  %v23240_v22 = vld [vmem:[#allocation2] sm:$0xff] }
 0xa28   : > { %v10004_v43 = vld [vmem:[#allocation3 + $0x4a] sm:$0xff] }
 0xa2b   : > { %17224 = vmatmul.mubr.bf16.gmra.mrb[164].mxu0 %v9607_v12  ;;  %v10003_v12 = vld [vmem:[#allocation3 + $0x42] sm:$0xff] }
 0xa2c   : > { %17243 = vmatprep.mubr.msk.bf16.mxu0 %vm20358_vm0, %v22975_v24  ;;  %v10040_v52 = vpack.c.bf16 %v10004_v43, %v10003_v12  ;;  %v10017_v43 = vld [vmem:[#allocation3 + $0xb2] sm:$0xff] }
 0xa33   : > { %17244 = vmatmul.mubr.bf16.vlgmr.msra.gmra.mrb[84].mxu0 %v10036_v39  ;;  %v10005_v39 = vld [vmem:[#allocation3 + $0x52] sm:$0xff] }
 0xa34   : > { %17328 = vmatpush3.bf16.msra.mxu0 %v20221_v7  ;;  %17247 = vmatprep.mubr.msk.bf16.mxu0 %vm20358_vm0, %v22975_v24  ;;  %v10041_v7 = vpack.c.bf16 %v10006_v28, %v10005_v39  ;;  %v10019_v28 = vld [vmem:[#allocation3 + $0xc2] sm:$0xff] }
 0xa35   : > { %17329 = vmatprep.subr.bf16.mxu0 %v22975_v24 }
 0xa38   : > { %17330 = vmatpush3.bf16.msra.mxu0 %v20222_v6  ;;  %v10008_v6 = vld [vmem:[#allocation3 + $0x6a] sm:$0xff] }
 0xa39   : > { %17331 = vmatprep.subr.bf16.mxu0 %v22975_v24  ;;  %v10042_v1 = vpack.c.bf16 %v10008_v6, %v10007_v40  ;;  %v10021_v6 = vld [vmem:[#allocation3 + $0xd2] sm:$0xff] }
 0xa3b   : > { %17248 = vmatmul.mubr.bf16.gmra.mrb[88].mxu0 %v10037_v47  ;;  %v10009_v47 = vld [vmem:[#allocation3 + $0x72] sm:$0xff] }
 0xa3c   : > { %17251 = vmatprep.mubr.msk.bf16.mxu0 %vm20358_vm0, %v22975_v24  ;;  %17332 = vmatpush3.bf16.msra.mxu0 %v20223_v60  ;;  %v10010_v60 = vld [vmem:[#allocation3 + $0x7a] sm:$0xff] }
 0xa3d   : > { %17333 = vmatprep.subr.bf16.mxu0 %v22975_v24 }
 0xa40   : > { %17334 = vmatpush3.bf16.msra.mxu0 %v20224_v54  ;;  %v10043_v54 = vpack.c.bf16 %v10010_v60, %v10009_v47  ;;  %v10023_v60 = vld [vmem:[#allocation3 + $0xe2] sm:$0xff] }
 0xa41   : > { %17335 = vmatprep.subr.bf16.mxu0 %v22975_v24 }
 0xa43   : > { %17252 = vmatmul.mubr.bf16.gmra.mrb[92].mxu0 %v10038_v19  ;;  %v10014_v19 = vld [vmem:[#allocation3 + $0x9a] sm:$0xff] }
 0xa44   : > { %17255 = vmatprep.mubr.msk.bf16.mxu0 %vm20358_vm0, %v22975_v24  ;;  %17336 = vmatpush3.bf16.msra.mxu0 %v20225_v25  ;;  %v10044_v25 = vpack.c.bf16 %v10012_v45, %v10011_v62  ;;  %v10025_v45 = vld [vmem:[#allocation3 + $0xf2] sm:$0xff] }
 0xa45   : > { %17337 = vmatprep.subr.bf16.mxu0 %v22975_v24  ;;  %v20228_v24 = vld [vmem:[%s24118_s7 + $0xb8] sm:$0xff]  }
 0xa48   : > { %17338 = vmatpush3.bf16.msra.mxu0 %v20226_v53  ;;  %v10013_v53 = vld [vmem:[#allocation3 + $0x92] sm:$0xff] }
 0xa49   : > { %17339 = vmatprep.subr.bf16.mxu0 %v23240_v22  ;;  %v10045_v59 = vpack.c.bf16 %v10014_v19, %v10013_v53  ;;  %v10027_v19 = vld [vmem:[#allocation3 + $0x102] sm:$0xff] }
 0xa4b   : > { %17256 = vmatmul.mubr.bf16.gmra.mrb[96].mxu0 %v10039_v57 }
 0xa4c   : > { %17259 = vmatprep.mubr.msk.bf16.mxu0 %vm20358_vm0, %v23240_v22  ;;  %17340 = vmatpush3.bf16.msra.mxu0 %v20227_v8  ;;  %v10015_v8 = vld [vmem:[#allocation3 + $0xa2] sm:$0xff] }
 0xa4d   : > { %17341 = vmatprep.subr.bf16.mxu0 %v23240_v22  ;;  %v10046_v57 = vpack.c.bf16 %v10016_v11, %v10015_v8  ;;  %v10029_v11 = vld [vmem:[#allocation3 + $0x112] sm:$0xff] }
 0xa50   : > { %17342 = vmatpush3.bf16.msra.mxu0 %v20228_v24  ;;  %v10018_v24 = vld [vmem:[#allocation3 + $0xba] sm:$0xff] }
 0xa51   : > { %17427 = vmatprep.subr.bf16.mxu0 %v23240_v22  ;;  %v10047_v12 = vpack.c.bf16 %v10018_v24, %v10017_v43  ;;  %v10031_v24 = vld [vmem:[#allocation3 + $0x122] sm:$0xff] }
 0xa53   : > { %17260 = vmatmul.mubr.bf16.gmra.mrb[100].mxu0 %v10040_v52  ;;  %v10020_v52 = vld [vmem:[#allocation3 + $0xca] sm:$0xff] }
 0xa54   : > { %17263 = vmatprep.mubr.msk.bf16.mxu0 %vm20358_vm0, %v23240_v22  ;;  %v10048_v39 = vpack.c.bf16 %v10020_v52, %v10019_v28  ;;  %v10033_v52 = vld [vmem:[#allocation3 + $0x132] sm:$0xff] }
 0xa5b   : > { %17264 = vmatmul.mubr.bf16.gmra.mrb[104].mxu0 %v10041_v7  ;;  %v10022_v7 = vld [vmem:[#allocation3 + $0xda] sm:$0xff] }
 0xa5c   : > { %17267 = vmatprep.mubr.msk.bf16.mxu0 %vm20358_vm0, %v23240_v22  ;;  %v10049_v40 = vpack.c.bf16 %v10022_v7, %v10021_v6  ;;  %v10445_v6 = vld [vmem:[#allocation3 + $0x3] sm:$0xff] }
 0xa63   : > { %17268 = vmatmul.mubr.bf16.gmra.mrb[108].mxu0 %v10042_v1  ;;  %v10024_v1 = vld [vmem:[#allocation3 + $0xea] sm:$0xff] }
 0xa64   : > { %17271 = vmatprep.mubr.msk.bf16.mxu0 %vm20358_vm0, %v23240_v22  ;;  %v10050_v47 = vpack.c.bf16 %v10024_v1, %v10023_v60  ;;  %v20229_v60 = vld [vmem:[%s24118_s7 + $0xc0] sm:$0xff]  }
 0xa6b   : > { %17272 = vmatmul.mubr.bf16.gmra.mrb[112].mxu0 %v10043_v54  ;;  %v10026_v54 = vld [vmem:[#allocation3 + $0xfa] sm:$0xff] }
 0xa6c   : > { %17275 = vmatprep.mubr.msk.bf16.mxu0 %vm20358_vm0, %v23240_v22  ;;  %v10051_v62 = vpack.c.bf16 %v10026_v54, %v10025_v45  ;;  %v10448_v54 = vld [vmem:[#allocation3 + $0x1b] sm:$0xff]  ;;  %v10447_v45 = vld [vmem:[#allocation3 + $0x13] sm:$0xff] }
 0xa73   : > { %17276 = vmatmul.mubr.bf16.gmra.mrb[116].mxu0 %v10044_v25  ;;  %v10028_v25 = vld [vmem:[#allocation3 + $0x10a] sm:$0xff] }
 0xa74   : > { %17279 = vmatprep.mubr.msk.bf16.mxu0 %vm20358_vm0, %v23240_v22  ;;  %v10052_v53 = vpack.c.bf16 %v10028_v25, %v10027_v19  ;;  %v23296_v25 = vpack.c.bf16 %v10448_v54, %v10447_v45  ;;  %v20232_v19 = vld [vmem:[%s24118_s7 + $0xd8] sm:$0xff]  }
 0xa75   : > { %v10457_v54 = vld [vmem:[#allocation3 + $0x63] sm:$0xff] }
 0xa7b   : > { %17280 = vmatmul.mubr.bf16.gmra.mrb[120].mxu0 %v10045_v59  ;;  %v10030_v59 = vld [vmem:[#allocation3 + $0x11a] sm:$0xff] }
 0xa7c   : > { %17283 = vmatprep.mubr.msk.bf16.mxu0 %vm20358_vm0, %v23240_v22  ;;  %v10053_v8 = vpack.c.bf16 %v10030_v59, %v10029_v11  ;;  %v10449_v59 = vld [vmem:[#allocation3 + $0x23] sm:$0xff]  ;;  %v20233_v11 = vld [vmem:[%s24118_s7 + $0xe0] sm:$0xff]  }
 0xa83   : > { %17284 = vmatmul.mubr.bf16.gmra.mrb[124].mxu0 %v10046_v57  ;;  %v10032_v57 = vld [vmem:[#allocation3 + $0x12a] sm:$0xff] }
 0xa84   : > { %17287 = vmatprep.mubr.msk.bf16.mxu0 %vm20358_vm0, %v23240_v22  ;;  %v10054_v43 = vpack.c.bf16 %v10032_v57, %v10031_v24  ;;  %v20234_v57 = vld [vmem:[%s24118_s7 + $0xe8] sm:$0xff]  }
 0xa85   : > { %v10452_v24 = vld [vmem:[#allocation3 + $0x3b] sm:$0xff] }
 0xa8b   : > { %17288 = vmatmul.mubr.bf16.gmra.mrb[128].mxu0 %v10047_v12  ;;  %v10034_v12 = vld [vmem:[#allocation3 + $0x13a] sm:$0xff] }
 0xa8c   : > { %17291 = vmatprep.mubr.msk.bf16.mxu0 %vm20358_vm0, %v23240_v22  ;;  %v10055_v28 = vpack.c.bf16 %v10034_v12, %v10033_v52  ;;  %v20235_v12 = vld [vmem:[%s24118_s7 + $0xf0] sm:$0xff]  }
 0xa93   : > { %17292 = vmatmul.mubr.bf16.gmra.mrb[132].mxu0 %v10048_v39  ;;  %v10035_v39 = vld [vmem:[#allocation3 + $0x142] sm:$0xff] }
 0xa94   : > { %17295 = vmatprep.mubr.msk.bf16.mxu0 %vm20358_vm0, %v23240_v22  ;;  %v10056_v7 = vpack.c.bf16 %v10035_v39, %v10035_v39  ;;  %v10454_v39 = vld [vmem:[#allocation3 + $0x4b] sm:$0xff] }
 0xa9b   : > { %17296 = vmatmul.mubr.bf16.gmra.mrb[136].mxu0 %v10049_v40  ;;  %v10446_v40 = vld [vmem:[#allocation3 + $0xb] sm:$0xff] }
 0xa9c   : > { %17299 = vmatprep.mubr.msk.bf16.mxu0 %vm20358_vm0, %v23240_v22  ;;  %v10486_v1 = vpack.c.bf16 %v10446_v40, %v10445_v6  ;;  %v10456_v40 = vld [vmem:[#allocation3 + $0x5b] sm:$0xff] }
 0xaa3   : > { %17300 = vmatmul.mubr.bf16.gmra.mrb[140].mxu0 %v10050_v47  ;;  %v20230_v47 = vld [vmem:[%s24118_s7 + $0xc8] sm:$0xff]  }
 0xaa4   : > { %17303 = vmatprep.mubr.msk.bf16.mxu0 %vm20358_vm0, %v23240_v22 }
 0xaab   : > { %17304 = vmatmul.mubr.bf16.gmra.mrb[144].mxu0 %v10051_v62  ;;  %v20231_v62 = vld [vmem:[%s24118_s7 + $0xd0] sm:$0xff]  }
 0xaac   : > { %17307 = vmatprep.mubr.msk.bf16.mxu0 %vm20358_vm0, %v23240_v22 }
 0xab3   : > { %17308 = vmatmul.mubr.bf16.gmra.mrb[148].mxu0 %v10052_v53  ;;  %v10450_v53 = vld [vmem:[#allocation3 + $0x2b] sm:$0xff] }
 0xab4   : > { %17311 = vmatprep.mubr.msk.bf16.mxu0 %vm20358_vm0, %v23240_v22 }
 0xabb   : > { %17312 = vmatmul.mubr.bf16.gmra.mrb[152].mxu0 %v10053_v8  ;;  %v23309_v8 = vpack.c.bf16 %v10450_v53, %v10449_v59  ;;  %v10462_v59 = vld [vmem:[#allocation3 + $0x8b] sm:$0xff] }
 0xabc   : > { %17315 = vmatprep.mubr.msk.bf16.mxu0 %vm20358_vm0, %v23240_v22 }
 0xac3   : > { %17316 = vmatmul.mubr.bf16.gmra.mrb[156].mxu0 %v10054_v43  ;;  %v10451_v43 = vld [vmem:[#allocation3 + $0x33] sm:$0xff] }
 0xac4   : > { %17319 = vmatprep.mubr.msk.bf16.mxu0 %vm20358_vm0, %v23240_v22  ;;  %v23322_v52 = vpack.c.bf16 %v10452_v24, %v10451_v43  ;;  %v10464_v24 = vld [vmem:[#allocation3 + $0x9b] sm:$0xff]  ;;  %v10463_v43 = vld [vmem:[#allocation3 + $0x93] sm:$0xff] }
 0xacb   : > { %17320 = vmatmul.mubr.bf16.gmra.mrb[160].mxu0 %v10055_v28  ;;  %v20236_v28 = vld [vmem:[%s24118_s7 + $0xf8] sm:$0xff]  }
 0xacc   : > { %17323 = vmatprep.mubr.msk.bf16.mxu0 %vm20358_vm0, %v23240_v22 }
 0xad3   : > { %17324 = vmatmul.mubr.bf16.gmra.mrb[164].mxu0 %v10056_v7  ;;  %v10453_v7 = vld [vmem:[#allocation3 + $0x43] sm:$0xff] }
 0xad4   : > { %17343 = vmatprep.mubr.msk.bf16.mxu0 %vm20358_vm0, %v23240_v22  ;;  %v23332_v6 = vpack.c.bf16 %v10454_v39, %v10453_v7  ;;  %v10465_v39 = vld [vmem:[#allocation3 + $0xa3] sm:$0xff] }
 0xadb   : > { %17344 = vmatmul.mubr.bf16.vlgmr.msra.gmra.mrb[84].mxu0 %v10486_v1  ;;  %v10455_v1 = vld [vmem:[#allocation3 + $0x53] sm:$0xff] }
 0xadc   : > { %17428 = vmatpush3.bf16.msra.mxu0 %v20229_v60  ;;  %17347 = vmatprep.mubr.msk.bf16.mxu0 %vm20358_vm0, %v23240_v22  ;;  %v23338_v60 = vpack.c.bf16 %v10456_v40, %v10455_v1  ;;  %v10468_v40 = vld [vmem:[#allocation3 + $0xbb] sm:$0xff]  ;;  %v10467_v1 = vld [vmem:[#allocation3 + $0xb3] sm:$0xff] }
 0xadd   : > { %17429 = vmatprep.subr.bf16.mxu0 %v23240_v22 }
 0xae0   : > { %17430 = vmatpush3.bf16.msra.mxu0 %v20230_v47  ;;  %v10458_v47 = vld [vmem:[#allocation3 + $0x6b] sm:$0xff] }
 0xae1   : > { %17431 = vmatprep.subr.bf16.mxu0 %v23240_v22  ;;  %v23343_v45 = vpack.c.bf16 %v10458_v47, %v10457_v54  ;;  %v23368_v47 = vpack.c.bf16 %v10468_v40, %v10467_v1  ;;  %v10470_v54 = vld [vmem:[#allocation3 + $0xcb] sm:$0xff]  ;;  %v10476_v40 = vld [vmem:[#allocation3 + $0xfb] sm:$0xff]  ;;  %v10475_v1 = vld [vmem:[#allocation3 + $0xf3] sm:$0xff] }
 0xae3   : > { %17348 = vmatmul.mubr.bf16.gmra.mrb[88].mxu0 %v23296_v25 }
 0xae4   : > { %17351 = vmatprep.mubr.msk.bf16.mxu0 %vm20358_vm0, %v23240_v22  ;;  %17432 = vmatpush3.bf16.msra.mxu0 %v20231_v62  ;;  %v10460_v62 = vld [vmem:[#allocation3 + $0x7b] sm:$0xff] }
 0xae5   : > { %17433 = vmatprep.subr.bf16.mxu0 %v23240_v22 }
 0xae8   : > { %17434 = vmatpush3.bf16.msra.mxu0 %v20232_v19  ;;  %v10459_v19 = vld [vmem:[#allocation3 + $0x73] sm:$0xff] }
 0xae9   : > { %17435 = vmatprep.subr.bf16.mxu0 %v23240_v22  ;;  %v23348_v53 = vpack.c.bf16 %v10460_v62, %v10459_v19  ;;  %v10469_v62 = vld [vmem:[#allocation3 + $0xc3] sm:$0xff] }
 0xaea   : > { %v23373_v19 = vpack.c.bf16 %v10470_v54, %v10469_v62  ;;  %v23388_v54 = vpack.c.bf16 %v10476_v40, %v10475_v1  ;;  %v10478_v62 = vld [vmem:[#allocation3 + $0x10b] sm:$0xff]  ;;  %v10481_v1 = vld [vmem:[#allocation3 + $0x123] sm:$0xff] }
 0xaeb   : > { %17352 = vmatmul.mubr.bf16.gmra.mrb[92].mxu0 %v23309_v8  ;;  %v10482_v40 = vld [vmem:[#allocation3 + $0x12b] sm:$0xff] }
 0xaec   : > { %17355 = vmatprep.mubr.msk.bf16.mxu0 %vm20358_vm0, %v23240_v22  ;;  %17436 = vmatpush3.bf16.msra.mxu0 %v20233_v11  ;;  %v10461_v11 = vld [vmem:[#allocation3 + $0x83] sm:$0xff]  ;;  %v23403_v27 = vpack.c.bf16 %v10482_v40, %v10481_v1  ;;  %v20237_v40 = vld [vmem:[%s24118_s7 + $0x100] sm:$0xff]   ;;  %v20238_v1 = vld [vmem:[%s24118_s7 + $0x108] sm:$0xff]  }
 0xaed   : > { %17437 = vmatprep.subr.bf16.mxu0 %v23240_v22 }
 0xaf0   : > { %17438 = vmatpush3.bf16.msra.mxu0 %v20234_v57  ;;  %v23353_v57 = vpack.c.bf16 %v10462_v59, %v10461_v11  ;;  %v10472_v59 = vld [vmem:[#allocation3 + $0xdb] sm:$0xff]  ;;  %v10471_v11 = vld [vmem:[#allocation3 + $0xd3] sm:$0xff] }
 0xaf1   : > { %17439 = vmatprep.subr.bf16.mxu0 %v23240_v22 }
 0xaf3   : > { %17356 = vmatmul.mubr.bf16.gmra.mrb[96].mxu0 %v23322_v52 }
 0xaf4   : > { %17359 = vmatprep.mubr.msk.bf16.mxu0 %vm20358_vm0, %v23240_v22  ;;  %17440 = vmatpush3.bf16.msra.mxu0 %v20235_v12  ;;  %v23358_v12 = vpack.c.bf16 %v10464_v24, %v10463_v43  ;;  %v23378_v24 = vpack.c.bf16 %v10472_v59, %v10471_v11  ;;  %v10474_v43 = vld [vmem:[#allocation3 + $0xeb] sm:$0xff]  ;;  %v10477_v59 = vld [vmem:[#allocation3 + $0x103] sm:$0xff] }
 0xaf5   : > { %17441 = vmatprep.subr.bf16.mxu0 %v23240_v22  ;;  %v23393_v11 = vpack.c.bf16 %v10478_v62, %v10477_v59  ;;  %v10484_v62 = vld [vmem:[#allocation3 + $0x13b] sm:$0xff]  ;;  %v10483_v59 = vld [vmem:[#allocation3 + $0x133] sm:$0xff] }
 0xaf6   : > { %v23408_v14 = vpack.c.bf16 %v10484_v62, %v10483_v59  ;;  %v20239_v62 = vld [vmem:[%s24118_s7 + $0x110] sm:$0xff]   ;;  %v20241_v59 = vld [vmem:[%s24118_s7 + $0x120] sm:$0xff]  }
 0xaf8   : > { %17442 = vmatpush3.bf16.msra.mxu0 %v20236_v28  ;;  %v10466_v28 = vld [vmem:[#allocation3 + $0xab] sm:$0xff] }
 0xaf9   : > { %17527 = vmatprep.subr.bf16.mxu0 %v23240_v22  ;;  %v23363_v7 = vpack.c.bf16 %v10466_v28, %v10465_v39  ;;  %v10473_v28 = vld [vmem:[#allocation3 + $0xe3] sm:$0xff] }
 0xafa   : > { %v23383_v39 = vpack.c.bf16 %v10474_v43, %v10473_v28  ;;  %v10480_v43 = vld [vmem:[#allocation3 + $0x11b] sm:$0xff]  ;;  %v10479_v28 = vld [vmem:[#allocation3 + $0x113] sm:$0xff] }
 0xafb   : > { %17360 = vmatmul.mubr.bf16.gmra.mrb[100].mxu0 %v23332_v6  ;;  %v23398_v35 = vpack.c.bf16 %v10480_v43, %v10479_v28  ;;  %v23413_v43 = vld [vmem:[#allocation3 + $0x143] sm:$0xff] }
 0xafc   : > { %17363 = vmatprep.mubr.msk.bf16.mxu0 %vm20358_vm0, %v23240_v22  ;;  %v10506_v28 = vpack.c.bf16 %v23413_v43, %v23413_v43 }
 0xb03   : > { %17364 = vmatmul.mubr.bf16.gmra.mrb[104].mxu0 %v23338_v60 }
 0xb04   : > { %17367 = vmatprep.mubr.msk.bf16.mxu0 %vm20358_vm0, %v23240_v22 }
 0xb0b   : > { %17368 = vmatmul.mubr.bf16.gmra.mrb[108].mxu0 %v23343_v45 }
 0xb0c   : > { %17371 = vmatprep.mubr.msk.bf16.mxu0 %vm20358_vm0, %v23240_v22 }
 0xb13   : > { %17372 = vmatmul.mubr.bf16.gmra.mrb[112].mxu0 %v23348_v53 }
 0xb14   : > { %17375 = vmatprep.mubr.msk.bf16.mxu0 %vm20358_vm0, %v23240_v22 }
 0xb1b   : > { %17376 = vmatmul.mubr.bf16.gmra.mrb[116].mxu0 %v23353_v57 }
 0xb1c   : > { %17379 = vmatprep.mubr.msk.bf16.mxu0 %vm20358_vm0, %v23240_v22 }
 0xb23   : > { %17380 = vmatmul.mubr.bf16.gmra.mrb[120].mxu0 %v23358_v12 }
 0xb24   : > { %17383 = vmatprep.mubr.msk.bf16.mxu0 %vm20358_vm0, %v23240_v22 }
 0xb2b   : > { %17384 = vmatmul.mubr.bf16.gmra.mrb[124].mxu0 %v23363_v7 }
 0xb2c   : > { %17387 = vmatprep.mubr.msk.bf16.mxu0 %vm20358_vm0, %v23240_v22 }
 0xb33   : > { %17388 = vmatmul.mubr.bf16.gmra.mrb[128].mxu0 %v23368_v47 }
 0xb34   : > { %17391 = vmatprep.mubr.msk.bf16.mxu0 %vm20358_vm0, %v23240_v22 }
 0xb3b   : > { %17392 = vmatmul.mubr.bf16.gmra.mrb[132].mxu0 %v23373_v19 }
 0xb3c   : > { %17395 = vmatprep.mubr.msk.bf16.mxu0 %vm20358_vm0, %v23240_v22 }
 0xb43   : > { %17396 = vmatmul.mubr.bf16.gmra.mrb[136].mxu0 %v23378_v24 }
 0xb44   : > { %17399 = vmatprep.mubr.msk.bf16.mxu0 %vm20358_vm0, %v23240_v22 }
 0xb4b   : > { %17400 = vmatmul.mubr.bf16.gmra.mrb[140].mxu0 %v23383_v39 }
 0xb4c   : > { %17403 = vmatprep.mubr.msk.bf16.mxu0 %vm20358_vm0, %v23240_v22 }
 0xb53   : > { %17404 = vmatmul.mubr.bf16.gmra.mrb[144].mxu0 %v23388_v54 }
 0xb54   : > { %17407 = vmatprep.mubr.msk.bf16.mxu0 %vm20358_vm0, %v23240_v22 }
 0xb5b   : > { %17408 = vmatmul.mubr.bf16.gmra.mrb[148].mxu0 %v23393_v11 }
 0xb5c   : > { %17411 = vmatprep.mubr.msk.bf16.mxu0 %vm20358_vm0, %v23240_v22 }
 0xb63   : > { %17412 = vmatmul.mubr.bf16.gmra.mrb[152].mxu0 %v23398_v35 }
 0xb64   : > { %17415 = vmatprep.mubr.msk.bf16.mxu0 %vm20358_vm0, %v23240_v22 }
 0xb6b   : > { %17416 = vmatmul.mubr.bf16.gmra.mrb[156].mxu0 %v23403_v27 }
 0xb6c   : > { %17419 = vmatprep.mubr.msk.bf16.mxu0 %vm20358_vm0, %v23240_v22 }
 0xb73   : > { %17420 = vmatmul.mubr.bf16.gmra.mrb[160].mxu0 %v23408_v14 }
 0xb74   : > { %17423 = vmatprep.mubr.msk.bf16.mxu0 %vm20358_vm0, %v23240_v22 }
 0xb7b   : > { %17424 = vmatmul.mubr.bf16.gmra.mrb[164].mxu0 %v10506_v28  ;;  %v20243_v28 = vld [vmem:[%s24118_s7 + $0x130] sm:$0xff]  }
 0xb7c   : > { %17443 = vmatprep.mubr.msk.bf16.mxu0 %vm20358_vm0, %v23240_v22 }
 0xb83   : > { %17444 = vmatmul.mubr.bf16.vlgmr.msra.gmra.mrb[84].mxu0 %v23296_v25  ;;  %v20240_v25 = vld [vmem:[%s24118_s7 + $0x118] sm:$0xff]  }
 0xb84   : > { %17528 = vmatpush3.bf16.msra.mxu0 %v20237_v40  ;;  %17447 = vmatprep.mubr.msk.bf16.mxu0 %vm20358_vm0, %v23240_v22 }
 0xb85   : > { %17529 = vmatprep.subr.bf16.mxu0 %v23240_v22 }
 0xb88   : > { %17530 = vmatpush3.bf16.msra.mxu0 %v20238_v1  ;;  %v20250_v1 = vld [vmem:[%s24118_s7 + $0x168] sm:$0xff]  }
 0xb89   : > { %17531 = vmatprep.subr.bf16.mxu0 %v23240_v22 }
 0xb8b   : > { %17448 = vmatmul.mubr.bf16.gmra.mrb[88].mxu0 %v23309_v8  ;;  %v20242_v8 = vld [vmem:[%s24118_s7 + $0x128] sm:$0xff]  }
 0xb8c   : > { %17451 = vmatprep.mubr.msk.bf16.mxu0 %vm20358_vm0, %v23240_v22  ;;  %17532 = vmatpush3.bf16.msra.mxu0 %v20239_v62  ;;  %v11352_v62 = vld [vmem:[#allocation3 + $0x4c] sm:$0xff] }
 0xb8d   : > { %17533 = vmatprep.subr.bf16.mxu0 %v23240_v22 }
 0xb90   : > { %17534 = vmatpush3.bf16.msra.mxu0 %v20240_v25  ;;  %v11351_v25 = vld [vmem:[#allocation3 + $0x44] sm:$0xff] }
 0xb91   : > { %17535 = vmatprep.subr.bf16.mxu0 %v23240_v22 }
 0xb93   : > { %17452 = vmatmul.mubr.bf16.gmra.mrb[92].mxu0 %v23322_v52  ;;  %v20244_v52 = vld [vmem:[%s24118_s7 + $0x138] sm:$0xff]  }
 0xb94   : > { %17455 = vmatprep.mubr.msk.bf16.mxu0 %vm20358_vm0, %v23240_v22  ;;  %17536 = vmatpush3.bf16.msra.mxu0 %v20241_v59  ;;  %v20251_v59 = vld [vmem:[%s24118_s7 + $0x170] sm:$0xff]  }
 0xb95   : > { %17537 = vmatprep.subr.bf16.mxu0 %v23240_v22 }
 0xb98   : > { %17538 = vmatpush3.bf16.msra.mxu0 %v20242_v8  ;;  %v11389_v8 = vpack.c.bf16 %v11352_v62, %v11351_v25  ;;  %v11368_v25 = vld [vmem:[#allocation3 + $0xcc] sm:$0xff] }
 0xb99   : > { %17539 = vmatprep.subr.bf16.mxu0 %v23240_v22 }
 0xb9b   : > { %17456 = vmatmul.mubr.bf16.gmra.mrb[96].mxu0 %v23332_v6  ;;  %v10934_v6 = vld [vmem:[#allocation3 + $0x14b] sm:$0xff] }
 0xb9c   : > { %17459 = vmatprep.mubr.msk.bf16.mxu0 %vm20358_vm0, %v23240_v22  ;;  %17540 = vmatpush3.bf16.msra.mxu0 %v20243_v28  ;;  %v20252_v28 = vld [vmem:[%s24118_s7 + $0x178] sm:$0xff]  }
 0xb9d   : > { %17541 = vmatprep.subr.bf16.mxu0 %v23240_v22 }
 0xba0   : > { %17542 = vmatpush3.bf16.msra.mxu0 %v20244_v52  ;;  %v11354_v52 = vld [vmem:[#allocation3 + $0x5c] sm:$0xff] }
 0xba1   : > { %17627 = vmatprep.subr.bf16.mxu0 %v23240_v22 }
 0xba3   : > { %17460 = vmatmul.mubr.bf16.gmra.mrb[100].mxu0 %v23338_v60  ;;  %v10955_v60 = vpack.c.bf16 %v10934_v6, %v23413_v43  ;;  %v20249_v43 = vld [vmem:[%s24118_s7 + $0x160] sm:$0xff]  }
 0xba4   : > { %17463 = vmatprep.mubr.msk.bf16.mxu0 %vm20358_vm0, %v23240_v22  ;;  %v11353_v6 = vld [vmem:[#allocation3 + $0x54] sm:$0xff] }
 0xbab   : > { %17464 = vmatmul.mubr.bf16.gmra.mrb[104].mxu0 %v23343_v45 }
 0xbac   : > { %17467 = vmatprep.mubr.msk.bf16.mxu0 %vm20358_vm0, %v23240_v22 }
 0xbb3   : > { %17468 = vmatmul.mubr.bf16.gmra.mrb[108].mxu0 %v23348_v53  ;;  %v11345_v53 = vld [vmem:[#allocation3 + $0x14] sm:$0xff] }
 0xbb4   : > { %17471 = vmatprep.mubr.msk.bf16.mxu0 %vm20358_vm0, %v23240_v22 }
 0xbbb   : > { %17472 = vmatmul.mubr.bf16.gmra.mrb[112].mxu0 %v23353_v57 }
 0xbbc   : > { %17475 = vmatprep.mubr.msk.bf16.mxu0 %vm20358_vm0, %v23240_v22 }
 0xbc3   : > { %17476 = vmatmul.mubr.bf16.gmra.mrb[116].mxu0 %v23358_v12  ;;  %v20246_v12 = vld [vmem:[%s24118_s7 + $0x148] sm:$0xff]  }
 0xbc4   : > { %17479 = vmatprep.mubr.msk.bf16.mxu0 %vm20358_vm0, %v23240_v22 }
 0xbcb   : > { %17480 = vmatmul.mubr.bf16.gmra.mrb[120].mxu0 %v23363_v7  ;;  %v11348_v7 = vld [vmem:[#allocation3 + $0x2c] sm:$0xff] }
 0xbcc   : > { %17483 = vmatprep.mubr.msk.bf16.mxu0 %vm20358_vm0, %v23240_v22 }
 0xbd3   : > { %17484 = vmatmul.mubr.bf16.gmra.mrb[124].mxu0 %v23368_v47  ;;  %v11347_v47 = vld [vmem:[#allocation3 + $0x24] sm:$0xff] }
 0xbd4   : > { %17487 = vmatprep.mubr.msk.bf16.mxu0 %vm20358_vm0, %v23240_v22 }
 0xbdb   : > { %17488 = vmatmul.mubr.bf16.gmra.mrb[128].mxu0 %v23373_v19  ;;  %v20247_v19 = vld [vmem:[%s24118_s7 + $0x150] sm:$0xff]  }
 0xbdc   : > { %17491 = vmatprep.mubr.msk.bf16.mxu0 %vm20358_vm0, %v23240_v22 }
 0xbe3   : > { %17492 = vmatmul.mubr.bf16.gmra.mrb[132].mxu0 %v23378_v24  ;;  %v11387_v24 = vpack.c.bf16 %v11348_v7, %v11347_v47  ;;  %v11359_v7 = vld [vmem:[#allocation3 + $0x84] sm:$0xff] }
 0xbe4   : > { %17495 = vmatprep.mubr.msk.bf16.mxu0 %vm20358_vm0, %v23240_v22 }
 0xbeb   : > { %17496 = vmatmul.mubr.bf16.gmra.mrb[136].mxu0 %v23383_v39  ;;  %v20248_v39 = vld [vmem:[%s24118_s7 + $0x158] sm:$0xff]  }
 0xbec   : > { %17499 = vmatprep.mubr.msk.bf16.mxu0 %vm20358_vm0, %v23240_v22 }
 0xbf3   : > { %17500 = vmatmul.mubr.bf16.gmra.mrb[140].mxu0 %v23388_v54  ;;  %v11350_v54 = vld [vmem:[#allocation3 + $0x3c] sm:$0xff] }
 0xbf4   : > { %17503 = vmatprep.mubr.msk.bf16.mxu0 %vm20358_vm0, %v23240_v22 }
 0xbfb   : > { %17504 = vmatmul.mubr.bf16.gmra.mrb[144].mxu0 %v23393_v11  ;;  %v11349_v11 = vld [vmem:[#allocation3 + $0x34] sm:$0xff] }
 0xbfc   : > { %17507 = vmatprep.mubr.msk.bf16.mxu0 %vm20358_vm0, %v23240_v22  ;;  %v11388_v40 = vpack.c.bf16 %v11350_v54, %v11349_v11  ;;  %v11364_v54 = vld [vmem:[#allocation3 + $0xac] sm:$0xff]  ;;  %v11363_v11 = vld [vmem:[#allocation3 + $0xa4] sm:$0xff] }
 0xc03   : > { %17508 = vmatmul.mubr.bf16.gmra.mrb[148].mxu0 %v23398_v35  ;;  %v10935_v35 = vld [vmem:[#allocation3 + $0x153] sm:$0xff] }
 0xc04   : > { %17511 = vmatprep.mubr.msk.bf16.mxu0 %vm20358_vm0, %v23240_v22  ;;  %v10956_v45 = vpack.c.bf16 %v10935_v35, %v10935_v35  ;;  %v11356_v35 = vld [vmem:[#allocation3 + $0x6c] sm:$0xff] }
 0xc0b   : > { %17512 = vmatmul.mubr.bf16.gmra.mrb[152].mxu0 %v23403_v27  ;;  %v11346_v27 = vld [vmem:[#allocation3 + $0x1c] sm:$0xff] }
 0xc0c   : > { %17515 = vmatprep.mubr.msk.bf16.mxu0 %vm20358_vm0, %v23240_v22  ;;  %v11386_v57 = vpack.c.bf16 %v11346_v27, %v11345_v53  ;;  %v11358_v53 = vld [vmem:[#allocation3 + $0x7c] sm:$0xff] }
 0xc13   : > { %17516 = vmatmul.mubr.bf16.gmra.mrb[156].mxu0 %v23408_v14  ;;  %v20245_v14 = vld [vmem:[%s24118_s7 + $0x140] sm:$0xff]  }
 0xc14   : > { %17519 = vmatprep.mubr.msk.bf16.mxu0 %vm20358_vm0, %v23240_v22 }
 0xc1b   : > { %17520 = vmatmul.mubr.bf16.gmra.mrb[160].mxu0 %v10955_v60  ;;  %v11390_v60 = vpack.c.bf16 %v11354_v52, %v11353_v6  ;;  %v11369_v52 = vld [vmem:[#allocation3 + $0xd4] sm:$0xff] }
 0xc1c   : > { %17523 = vmatprep.mubr.msk.bf16.mxu0 %vm20358_vm0, %v23240_v22 }
 0xc23   : > { %17524 = vmatmul.mubr.bf16.gmra.mrb[164].mxu0 %v10956_v45  ;;  %v11355_v45 = vld [vmem:[#allocation3 + $0x64] sm:$0xff] }
 0xc24   : > { %17543 = vmatprep.mubr.msk.bf16.mxu0 %vm20358_vm0, %v23240_v22  ;;  %v11391_v27 = vpack.c.bf16 %v11356_v35, %v11355_v45  ;;  %v11371_v35 = vld [vmem:[#allocation3 + $0xe4] sm:$0xff] }
 0xc2b   : > { %17544 = vmatmul.mubr.bf16.vlgmr.msra.gmra.mrb[84].mxu0 %v11386_v57 }
 0xc2c   : > { %17628 = vmatpush3.bf16.msra.mxu0 %v20245_v14  ;;  %17547 = vmatprep.mubr.msk.bf16.mxu0 %vm20358_vm0, %v23240_v22  ;;  %v11357_v14 = vld [vmem:[#allocation3 + $0x74] sm:$0xff] }
 0xc2d   : > { %17629 = vmatprep.subr.bf16.mxu0 %v23240_v22  ;;  %v11392_v57 = vpack.c.bf16 %v11358_v53, %v11357_v14  ;;  %v11373_v53 = vld [vmem:[#allocation3 + $0xf4] sm:$0xff] }
 0xc30   : > { %17630 = vmatpush3.bf16.msra.mxu0 %v20246_v12  ;;  %v11360_v12 = vld [vmem:[#allocation3 + $0x8c] sm:$0xff] }
 0xc31   : > { %17631 = vmatprep.subr.bf16.mxu0 %v23240_v22  ;;  %v11393_v47 = vpack.c.bf16 %v11360_v12, %v11359_v7  ;;  %v11375_v12 = vld [vmem:[#allocation3 + $0x104] sm:$0xff] }
 0xc33   : > { %17548 = vmatmul.mubr.bf16.gmra.mrb[88].mxu0 %v11387_v24  ;;  %v11361_v24 = vld [vmem:[#allocation3 + $0x94] sm:$0xff] }
 0xc34   : > { %17551 = vmatprep.mubr.msk.bf16.mxu0 %vm20358_vm0, %v23240_v22  ;;  %17632 = vmatpush3.bf16.msra.mxu0 %v20247_v19  ;;  %v11362_v19 = vld [vmem:[#allocation3 + $0x9c] sm:$0xff] }
 0xc35   : > { %17633 = vmatprep.subr.bf16.mxu0 %v23240_v22 }
 0xc38   : > { %17634 = vmatpush3.bf16.msra.mxu0 %v20248_v39  ;;  %v11394_v39 = vpack.c.bf16 %v11362_v19, %v11361_v24  ;;  %v11377_v19 = vld [vmem:[#allocation3 + $0x114] sm:$0xff] }
 0xc39   : > { %17635 = vmatprep.subr.bf16.mxu0 %v23240_v22 }
 0xc3b   : > { %17552 = vmatmul.mubr.bf16.gmra.mrb[92].mxu0 %v11388_v40  ;;  %v11366_v40 = vld [vmem:[#allocation3 + $0xbc] sm:$0xff] }
 0xc3c   : > { %17555 = vmatprep.mubr.msk.bf16.mxu0 %vm20358_vm0, %v23240_v22  ;;  %17636 = vmatpush3.bf16.msra.mxu0 %v20249_v43  ;;  %v11395_v43 = vpack.c.bf16 %v11364_v54, %v11363_v11  ;;  %v11379_v54 = vld [vmem:[#allocation3 + $0x124] sm:$0xff] }
 0xc3d   : > { %17637 = vmatprep.subr.bf16.mxu0 %v23240_v22 }
 0xc40   : > { %17638 = vmatpush3.bf16.msra.mxu0 %v20250_v1  ;;  %v11365_v1 = vld [vmem:[#allocation3 + $0xb4] sm:$0xff] }
 0xc41   : > { %17639 = vmatprep.subr.bf16.mxu0 %v23240_v22  ;;  %v11396_v62 = vpack.c.bf16 %v11366_v40, %v11365_v1  ;;  %v11381_v40 = vld [vmem:[#allocation3 + $0x134] sm:$0xff] }
 0xc43   : > { %17556 = vmatmul.mubr.bf16.gmra.mrb[96].mxu0 %v11389_v8 }
 0xc44   : > { %17559 = vmatprep.mubr.msk.bf16.mxu0 %vm20358_vm0, %v23240_v22  ;;  %17640 = vmatpush3.bf16.msra.mxu0 %v20251_v59  ;;  %v11367_v59 = vld [vmem:[#allocation3 + $0xc4] sm:$0xff] }
 0xc45   : > { %17641 = vmatprep.subr.bf16.mxu0 %v23240_v22  ;;  %v11397_v8 = vpack.c.bf16 %v11368_v25, %v11367_v59  ;;  %v11383_v25 = vld [vmem:[#allocation3 + $0x144] sm:$0xff] }
 0xc48   : > { %17642 = vmatpush3.bf16.msra.mxu0 %v20252_v28  ;;  %v11370_v28 = vld [vmem:[#allocation3 + $0xdc] sm:$0xff] }
 0xc49   : > { %17727 = vmatprep.subr.bf16.mxu0 %v23240_v22  ;;  %v11398_v6 = vpack.c.bf16 %v11370_v28, %v11369_v52  ;;  %v11796_v52 = vld [vmem:[#allocation3 + $0x1d] sm:$0xff] }
 0xc4b   : > { %17560 = vmatmul.mubr.bf16.gmra.mrb[100].mxu0 %v11390_v60  ;;  %v11372_v60 = vld [vmem:[#allocation3 + $0xec] sm:$0xff] }
 0xc4c   : > { %17563 = vmatprep.mubr.msk.bf16.mxu0 %vm20358_vm0, %v23240_v22  ;;  %v11399_v45 = vpack.c.bf16 %v11372_v60, %v11371_v35  ;;  %v20253_v60 = vld [vmem:[%s24118_s7 + $0x180] sm:$0xff]  }
 0xc53   : > { %17564 = vmatmul.mubr.bf16.gmra.mrb[104].mxu0 %v11391_v27  ;;  %v11374_v27 = vld [vmem:[#allocation3 + $0xfc] sm:$0xff] }
 0xc54   : > { %17567 = vmatprep.mubr.msk.bf16.mxu0 %vm20358_vm0, %v23240_v22  ;;  %v11400_v14 = vpack.c.bf16 %v11374_v27, %v11373_v53  ;;  %v11798_v27 = vld [vmem:[#allocation3 + $0x2d] sm:$0xff]  ;;  %v11797_v53 = vld [vmem:[#allocation3 + $0x25] sm:$0xff] }
 0xc5b   : > { %17568 = vmatmul.mubr.bf16.gmra.mrb[108].mxu0 %v11392_v57  ;;  %v11376_v57 = vld [vmem:[#allocation3 + $0x10c] sm:$0xff] }
 0xc5c   : > { %17571 = vmatprep.mubr.msk.bf16.mxu0 %vm20358_vm0, %v23240_v22  ;;  %v11401_v7 = vpack.c.bf16 %v11376_v57, %v11375_v12  ;;  %v23599_v57 = vpack.c.bf16 %v11798_v27, %v11797_v53  ;;  %v20256_v12 = vld [vmem:[%s24118_s7 + $0x198] sm:$0xff]  }
 0xc5d   : > { %v11809_v27 = vld [vmem:[#allocation3 + $0x85] sm:$0xff] }
 0xc63   : > { %17572 = vmatmul.mubr.bf16.gmra.mrb[112].mxu0 %v11393_v47  ;;  %v11378_v47 = vld [vmem:[#allocation3 + $0x11c] sm:$0xff] }
 0xc64   : > { %17575 = vmatprep.mubr.msk.bf16.mxu0 %vm20358_vm0, %v23240_v22  ;;  %v11402_v24 = vpack.c.bf16 %v11378_v47, %v11377_v19  ;;  %v11799_v47 = vld [vmem:[#allocation3 + $0x35] sm:$0xff] }
 0xc65   : > { %v20257_v19 = vld [vmem:[%s24118_s7 + $0x1a0] sm:$0xff]  }
 0xc6b   : > { %17576 = vmatmul.mubr.bf16.gmra.mrb[116].mxu0 %v11394_v39  ;;  %v11380_v39 = vld [vmem:[#allocation3 + $0x12c] sm:$0xff] }
 0xc6c   : > { %17579 = vmatprep.mubr.msk.bf16.mxu0 %vm20358_vm0, %v23240_v22  ;;  %v11403_v11 = vpack.c.bf16 %v11380_v39, %v11379_v54  ;;  %v20258_v39 = vld [vmem:[%s24118_s7 + $0x1a8] sm:$0xff]   ;;  %v11802_v54 = vld [vmem:[#allocation3 + $0x4d] sm:$0xff] }
 0xc73   : > { %17580 = vmatmul.mubr.bf16.gmra.mrb[120].mxu0 %v11395_v43  ;;  %v11382_v43 = vld [vmem:[#allocation3 + $0x13c] sm:$0xff] }
 0xc74   : > { %17583 = vmatprep.mubr.msk.bf16.mxu0 %vm20358_vm0, %v23240_v22  ;;  %v11404_v1 = vpack.c.bf16 %v11382_v43, %v11381_v40  ;;  %v20259_v43 = vld [vmem:[%s24118_s7 + $0x1b0] sm:$0xff]  }
 0xc7b   : > { %17584 = vmatmul.mubr.bf16.gmra.mrb[124].mxu0 %v11396_v62  ;;  %v11384_v62 = vld [vmem:[#allocation3 + $0x14c] sm:$0xff] }
 0xc7c   : > { %17587 = vmatprep.mubr.msk.bf16.mxu0 %vm20358_vm0, %v23240_v22  ;;  %v11405_v59 = vpack.c.bf16 %v11384_v62, %v11383_v25  ;;  %v11804_v62 = vld [vmem:[#allocation3 + $0x5d] sm:$0xff]  ;;  %v11803_v25 = vld [vmem:[#allocation3 + $0x55] sm:$0xff] }
 0xc83   : > { %17588 = vmatmul.mubr.bf16.gmra.mrb[128].mxu0 %v11397_v8  ;;  %v11385_v8 = vld [vmem:[#allocation3 + $0x154] sm:$0xff] }
 0xc84   : > { %17591 = vmatprep.mubr.msk.bf16.mxu0 %vm20358_vm0, %v23240_v22  ;;  %v11406_v28 = vpack.c.bf16 %v11385_v8, %v11385_v8  ;;  %v11806_v8 = vld [vmem:[#allocation3 + $0x6d] sm:$0xff] }
 0xc8b   : > { %17592 = vmatmul.mubr.bf16.gmra.mrb[132].mxu0 %v11398_v6  ;;  %v11795_v6 = vld [vmem:[#allocation3 + $0x15] sm:$0xff] }
 0xc8c   : > { %17595 = vmatprep.mubr.msk.bf16.mxu0 %vm20358_vm0, %v23240_v22  ;;  %v11836_v35 = vpack.c.bf16 %v11796_v52, %v11795_v6  ;;  %v11808_v6 = vld [vmem:[#allocation3 + $0x7d] sm:$0xff] }
 0xc93   : > { %17596 = vmatmul.mubr.bf16.gmra.mrb[136].mxu0 %v11399_v45  ;;  %v20254_v45 = vld [vmem:[%s24118_s7 + $0x188] sm:$0xff]  }
 0xc94   : > { %17599 = vmatprep.mubr.msk.bf16.mxu0 %vm20358_vm0, %v23240_v22 }
 0xc9b   : > { %17600 = vmatmul.mubr.bf16.gmra.mrb[140].mxu0 %v11400_v14  ;;  %v20255_v14 = vld [vmem:[%s24118_s7 + $0x190] sm:$0xff]  }
 0xc9c   : > { %17603 = vmatprep.mubr.msk.bf16.mxu0 %vm20358_vm0, %v23240_v22 }
 0xca3   : > { %17604 = vmatmul.mubr.bf16.gmra.mrb[144].mxu0 %v11401_v7  ;;  %v11800_v7 = vld [vmem:[#allocation3 + $0x3d] sm:$0xff] }
 0xca4   : > { %17607 = vmatprep.mubr.msk.bf16.mxu0 %vm20358_vm0, %v23240_v22 }
 0xcab   : > { %17608 = vmatmul.mubr.bf16.gmra.mrb[148].mxu0 %v11402_v24  ;;  %v23612_v24 = vpack.c.bf16 %v11800_v7, %v11799_v47  ;;  %v11814_v47 = vld [vmem:[#allocation3 + $0xad] sm:$0xff] }
 0xcac   : > { %17611 = vmatprep.mubr.msk.bf16.mxu0 %vm20358_vm0, %v23240_v22 }
 0xcb3   : > { %17612 = vmatmul.mubr.bf16.gmra.mrb[152].mxu0 %v11403_v11  ;;  %v11801_v11 = vld [vmem:[#allocation3 + $0x45] sm:$0xff] }
 0xcb4   : > { %17615 = vmatprep.mubr.msk.bf16.mxu0 %vm20358_vm0, %v23240_v22  ;;  %v23625_v40 = vpack.c.bf16 %v11802_v54, %v11801_v11  ;;  %v11816_v54 = vld [vmem:[#allocation3 + $0xbd] sm:$0xff]  ;;  %v11815_v11 = vld [vmem:[#allocation3 + $0xb5] sm:$0xff] }
 0xcbb   : > { %17616 = vmatmul.mubr.bf16.gmra.mrb[156].mxu0 %v11404_v1  ;;  %v20260_v1 = vld [vmem:[%s24118_s7 + $0x1b8] sm:$0xff]  }
 0xcbc   : > { %17619 = vmatprep.mubr.msk.bf16.mxu0 %vm20358_vm0, %v23240_v22 }
 0xcc3   : > { %17620 = vmatmul.mubr.bf16.gmra.mrb[160].mxu0 %v11405_v59  ;;  %v23635_v59 = vpack.c.bf16 %v11804_v62, %v11803_v25  ;;  %v11817_v62 = vld [vmem:[#allocation3 + $0xc5] sm:$0xff] }
 0xcc4   : > { %17623 = vmatprep.mubr.msk.bf16.mxu0 %vm20358_vm0, %v23240_v22 }
 0xccb   : > { %17624 = vmatmul.mubr.bf16.gmra.mrb[164].mxu0 %v11406_v28  ;;  %v11805_v28 = vld [vmem:[#allocation3 + $0x65] sm:$0xff] }
 0xccc   : > { %17643 = vmatprep.mubr.msk.bf16.mxu0 %vm20358_vm0, %v23240_v22  ;;  %v23641_v52 = vpack.c.bf16 %v11806_v8, %v11805_v28  ;;  %v11820_v8 = vld [vmem:[#allocation3 + $0xdd] sm:$0xff]  ;;  %v11819_v28 = vld [vmem:[#allocation3 + $0xd5] sm:$0xff] }
 0xcd3   : > { %17644 = vmatmul.mubr.bf16.vlgmr.msra.gmra.mrb[84].mxu0 %v11836_v35 }
 0xcd4   : > { %17728 = vmatpush3.bf16.msra.mxu0 %v20253_v60  ;;  %17647 = vmatprep.mubr.msk.bf16.mxu0 %vm20358_vm0, %v23240_v22  ;;  %v11807_v60 = vld [vmem:[#allocation3 + $0x75] sm:$0xff] }
 0xcd5   : > { %17729 = vmatprep.subr.bf16.mxu0 %v23240_v22  ;;  %v23646_v35 = vpack.c.bf16 %v11808_v6, %v11807_v60  ;;  %v23676_v6 = vpack.c.bf16 %v11820_v8, %v11819_v28  ;;  %v11822_v60 = vld [vmem:[#allocation3 + $0xed] sm:$0xff] }
 0xcd6   : > { %v11830_v28 = vld [vmem:[#allocation3 + $0x12d] sm:$0xff] }
 0xcd8   : > { %17730 = vmatpush3.bf16.msra.mxu0 %v20254_v45  ;;  %v11810_v45 = vld [vmem:[#allocation3 + $0x8d] sm:$0xff] }
 0xcd9   : > { %17731 = vmatprep.subr.bf16.mxu0 %v23240_v22  ;;  %v23651_v53 = vpack.c.bf16 %v11810_v45, %v11809_v27  ;;  %v11821_v45 = vld [vmem:[#allocation3 + $0xe5] sm:$0xff] }
 0xcda   : > { %v23681_v27 = vpack.c.bf16 %v11822_v60, %v11821_v45  ;;  %v11829_v60 = vld [vmem:[#allocation3 + $0x125] sm:$0xff] }
 0xcdb   : > { %17648 = vmatmul.mubr.bf16.gmra.mrb[88].mxu0 %v23599_v57  ;;  %v23703_v45 = vpack.c.bf16 %v11830_v28, %v11829_v60  ;;  %v23718_v28 = vld [vmem:[#allocation3 + $0x155] sm:$0xff] }
 0xcdc   : > { %17651 = vmatprep.mubr.msk.bf16.mxu0 %vm20358_vm0, %v23240_v22  ;;  %17732 = vmatpush3.bf16.msra.mxu0 %v20255_v14  ;;  %v11812_v14 = vld [vmem:[#allocation3 + $0x9d] sm:$0xff]  ;;  %v11856_v60 = vpack.c.bf16 %v23718_v28, %v23718_v28 }
 0xcdd   : > { %17733 = vmatprep.subr.bf16.mxu0 %v23240_v22 }
 0xce0   : > { %17734 = vmatpush3.bf16.msra.mxu0 %v20256_v12  ;;  %v11811_v12 = vld [vmem:[#allocation3 + $0x95] sm:$0xff] }
 0xce1   : > { %17735 = vmatprep.subr.bf16.mxu0 %v23240_v22  ;;  %v23656_v7 = vpack.c.bf16 %v11812_v14, %v11811_v12  ;;  %v11824_v14 = vld [vmem:[#allocation3 + $0xfd] sm:$0xff]  ;;  %v11823_v12 = vld [vmem:[#allocation3 + $0xf5] sm:$0xff] }
 0xce3   : > { %17652 = vmatmul.mubr.bf16.gmra.mrb[92].mxu0 %v23612_v24 }
 0xce4   : > { %17655 = vmatprep.mubr.msk.bf16.mxu0 %vm20358_vm0, %v23240_v22  ;;  %17736 = vmatpush3.bf16.msra.mxu0 %v20257_v19  ;;  %v11813_v19 = vld [vmem:[#allocation3 + $0xa5] sm:$0xff] }
 0xce5   : > { %17737 = vmatprep.subr.bf16.mxu0 %v23240_v22 }
 0xce8   : > { %17738 = vmatpush3.bf16.msra.mxu0 %v20258_v39  ;;  %v23661_v39 = vpack.c.bf16 %v11814_v47, %v11813_v19  ;;  %v23686_v47 = vpack.c.bf16 %v11824_v14, %v11823_v12  ;;  %v23689_v19 = vld [vmem:[#allocation2] sm:$0xff]  ;;  %v11832_v14 = vld [vmem:[#allocation3 + $0x13d] sm:$0xff] }
 0xce9   : > { %17739 = vmatprep.subr.bf16.mxu0 %v23240_v22  ;;  %v11831_v12 = vld [vmem:[#allocation3 + $0x135] sm:$0xff] }
 0xceb   : > { %17656 = vmatmul.mubr.bf16.gmra.mrb[96].mxu0 %v23625_v40 }
 0xcec   : > { %17659 = vmatprep.mubr.msk.bf16.mxu0 %vm20358_vm0, %v23240_v22  ;;  %17740 = vmatpush3.bf16.msra.mxu0 %v20259_v43  ;;  %v23666_v43 = vpack.c.bf16 %v11816_v54, %v11815_v11  ;;  %v11826_v54 = vld [vmem:[#allocation3 + $0x10d] sm:$0xff]  ;;  %v11825_v11 = vld [vmem:[#allocation3 + $0x105] sm:$0xff] }
 0xced   : > { %17741 = vmatprep.subr.bf16.mxu0 %v23240_v22 }
 0xcf0   : > { %17742 = vmatpush3.bf16.msra.mxu0 %v20260_v1  ;;  %v11818_v1 = vld [vmem:[#allocation3 + $0xcd] sm:$0xff] }
 0xcf1   : > { %17827 = vmatprep.subr.bf16.mxu0 %v23240_v22  ;;  %v23671_v25 = vpack.c.bf16 %v11818_v1, %v11817_v62  ;;  %v23693_v1 = vpack.c.bf16 %v11826_v54, %v11825_v11  ;;  %v11827_v62 = vld [vmem:[#allocation3 + $0x115] sm:$0xff]  ;;  %v23708_v54 = vpack.c.bf16 %v11832_v14, %v11831_v12  ;;  %v11834_v11 = vld [vmem:[#allocation3 + $0x14d] sm:$0xff] }
 0xcf2   : > { %v20261_v14 = vld [vmem:[%s24118_s7 + $0x1c0] sm:$0xff]   ;;  %v20262_v12 = vld [vmem:[%s24118_s7 + $0x1c8] sm:$0xff]  }
 0xcf3   : > { %17660 = vmatmul.mubr.bf16.gmra.mrb[100].mxu0 %v23635_v59 }
 0xcf4   : > { %17663 = vmatprep.mubr.msk.bf16.mxu0 %vm20358_vm0, %v23240_v22 }
 0xcfb   : > { %17664 = vmatmul.mubr.bf16.gmra.mrb[104].mxu0 %v23641_v52 }
 0xcfc   : > { %17667 = vmatprep.mubr.msk.bf16.mxu0 %vm20358_vm0, %v23240_v22 }
 0xd03   : > { %17668 = vmatmul.mubr.bf16.gmra.mrb[108].mxu0 %v23646_v35 }
 0xd04   : > { %17671 = vmatprep.mubr.msk.bf16.mxu0 %vm20358_vm0, %v23240_v22 }
 0xd0b   : > { %17672 = vmatmul.mubr.bf16.gmra.mrb[112].mxu0 %v23651_v53 }
 0xd0c   : > { %17675 = vmatprep.mubr.msk.bf16.mxu0 %vm20358_vm0, %v23240_v22 }
 0xd13   : > { %17676 = vmatmul.mubr.bf16.gmra.mrb[116].mxu0 %v23656_v7 }
 0xd14   : > { %17679 = vmatprep.mubr.msk.bf16.mxu0 %vm20358_vm0, %v23240_v22 }
 0xd1b   : > { %17680 = vmatmul.mubr.bf16.gmra.mrb[120].mxu0 %v23661_v39 }
 0xd1c   : > { %17683 = vmatprep.mubr.msk.bf16.mxu0 %vm20358_vm0, %v23240_v22 }
 0xd23   : > { %17684 = vmatmul.mubr.bf16.gmra.mrb[124].mxu0 %v23666_v43 }
 0xd24   : > { %17687 = vmatprep.mubr.msk.bf16.mxu0 %vm20358_vm0, %v23240_v22 }
 0xd2b   : > { %17688 = vmatmul.mubr.bf16.gmra.mrb[128].mxu0 %v23671_v25 }
 0xd2c   : > { %17691 = vmatprep.mubr.msk.bf16.mxu0 %vm20358_vm0, %v23240_v22 }
 0xd33   : > { %17692 = vmatmul.mubr.bf16.gmra.mrb[132].mxu0 %v23676_v6 }
 0xd34   : > { %17695 = vmatprep.mubr.msk.bf16.mxu0 %vm20358_vm0, %v23240_v22 }
 0xd3b   : > { %17696 = vmatmul.mubr.bf16.gmra.mrb[136].mxu0 %v23681_v27 }
 0xd3c   : > { %17699 = vmatprep.mubr.msk.bf16.mxu0 %vm20358_vm0, %v23240_v22  ;;  %v11828_v22 = vld [vmem:[#allocation3 + $0x11d] sm:$0xff] }
 0xd3d   : > { %v23698_v8 = vpack.c.bf16 %v11828_v22, %v11827_v62  ;;  %v11833_v22 = vld [vmem:[#allocation3 + $0x145] sm:$0xff] }
 0xd3e   : > { %v23713_v62 = vpack.c.bf16 %v11834_v11, %v11833_v22  ;;  %v20263_v11 = vld [vmem:[%s24118_s7 + $0x1d0] sm:$0xff]   ;;  %v20265_v22 = vld [vmem:[%s24118_s7 + $0x1e0] sm:$0xff]  }
 0xd43   : > { %17700 = vmatmul.mubr.bf16.gmra.mrb[140].mxu0 %v23686_v47 }
 0xd44   : > { %17703 = vmatprep.mubr.msk.bf16.mxu0 %vm20358_vm0, %v23689_v19 }
 0xd4b   : > { %17704 = vmatmul.mubr.bf16.gmra.mrb[144].mxu0 %v23693_v1 }
 0xd4c   : > { %17707 = vmatprep.mubr.msk.bf16.mxu0 %vm20358_vm0, %v23689_v19 }
 0xd53   : > { %17708 = vmatmul.mubr.bf16.gmra.mrb[148].mxu0 %v23698_v8 }
 0xd54   : > { %17711 = vmatprep.mubr.msk.bf16.mxu0 %vm20358_vm0, %v23689_v19 }
 0xd5b   : > { %17712 = vmatmul.mubr.bf16.gmra.mrb[152].mxu0 %v23703_v45 }
 0xd5c   : > { %17715 = vmatprep.mubr.msk.bf16.mxu0 %vm20358_vm0, %v23689_v19 }
 0xd63   : > { %17716 = vmatmul.mubr.bf16.gmra.mrb[156].mxu0 %v23708_v54 }
 0xd64   : > { %17719 = vmatprep.mubr.msk.bf16.mxu0 %vm20358_vm0, %v23689_v19 }
 0xd6b   : > { %17720 = vmatmul.mubr.bf16.gmra.mrb[160].mxu0 %v23713_v62 }
 0xd6c   : > { %17723 = vmatprep.mubr.msk.bf16.mxu0 %vm20358_vm0, %v23689_v19 }
 0xd73   : > { %17724 = vmatmul.mubr.bf16.gmra.mrb[164].mxu0 %v11856_v60  ;;  %v20267_v60 = vld [vmem:[%s24118_s7 + $0x1f0] sm:$0xff]  }
 0xd74   : > { %17743 = vmatprep.mubr.msk.bf16.mxu0 %vm20358_vm0, %v23689_v19 }
 0xd7b   : > { %17744 = vmatmul.mubr.bf16.vlgmr.msra.gmra.mrb[84].mxu0 %v23599_v57  ;;  %v20264_v57 = vld [vmem:[%s24118_s7 + $0x1d8] sm:$0xff]  }
 0xd7c   : > { %17828 = vmatpush3.bf16.msra.mxu0 %v20261_v14  ;;  %17747 = vmatprep.mubr.msk.bf16.mxu0 %vm20358_vm0, %v23689_v19 }
 0xd7d   : > { %17829 = vmatprep.subr.bf16.mxu0 %v23689_v19 }
 0xd80   : > { %17830 = vmatpush3.bf16.msra.mxu0 %v20262_v12  ;;  %v20274_v12 = vld [vmem:[%s24118_s7 + $0x228] sm:$0xff]  }
 0xd81   : > { %17831 = vmatprep.subr.bf16.mxu0 %v23689_v19 }
 0xd83   : > { %17748 = vmatmul.mubr.bf16.gmra.mrb[88].mxu0 %v23612_v24  ;;  %v20266_v24 = vld [vmem:[%s24118_s7 + $0x1e8] sm:$0xff]  }
 0xd84   : > { %17751 = vmatprep.mubr.msk.bf16.mxu0 %vm20358_vm0, %v23689_v19  ;;  %17832 = vmatpush3.bf16.msra.mxu0 %v20263_v11  ;;  %v12702_v11 = vld [vmem:[#allocation3 + $0x5e] sm:$0xff] }
 0xd85   : > { %17833 = vmatprep.subr.bf16.mxu0 %v23689_v19 }
 0xd88   : > { %17834 = vmatpush3.bf16.msra.mxu0 %v20264_v57  ;;  %v12701_v57 = vld [vmem:[#allocation3 + $0x56] sm:$0xff] }
 0xd89   : > { %17835 = vmatprep.subr.bf16.mxu0 %v23689_v19 }
 0xd8b   : > { %17752 = vmatmul.mubr.bf16.gmra.mrb[92].mxu0 %v23625_v40  ;;  %v20268_v40 = vld [vmem:[%s24118_s7 + $0x1f8] sm:$0xff]  }
 0xd8c   : > { %17755 = vmatprep.mubr.msk.bf16.mxu0 %vm20358_vm0, %v23689_v19  ;;  %17836 = vmatpush3.bf16.msra.mxu0 %v20265_v22  ;;  %v20275_v22 = vld [vmem:[%s24118_s7 + $0x230] sm:$0xff]  }
 0xd8d   : > { %17837 = vmatprep.subr.bf16.mxu0 %v23689_v19 }
 0xd90   : > { %17838 = vmatpush3.bf16.msra.mxu0 %v20266_v24  ;;  %v12739_v24 = vpack.c.bf16 %v12702_v11, %v12701_v57  ;;  %v12718_v57 = vld [vmem:[#allocation3 + $0xde] sm:$0xff] }
 0xd91   : > { %17839 = vmatprep.subr.bf16.mxu0 %v23689_v19 }
 0xd93   : > { %17756 = vmatmul.mubr.bf16.gmra.mrb[96].mxu0 %v23635_v59  ;;  %v12284_v59 = vld [vmem:[#allocation3 + $0x15d] sm:$0xff] }
 0xd94   : > { %17759 = vmatprep.mubr.msk.bf16.mxu0 %vm20358_vm0, %v23689_v19  ;;  %17840 = vmatpush3.bf16.msra.mxu0 %v20267_v60  ;;  %v20276_v60 = vld [vmem:[%s24118_s7 + $0x238] sm:$0xff]  }
 0xd95   : > { %17841 = vmatprep.subr.bf16.mxu0 %v23689_v19 }
 0xd98   : > { %17842 = vmatpush3.bf16.msra.mxu0 %v20268_v40  ;;  %v12704_v40 = vld [vmem:[#allocation3 + $0x6e] sm:$0xff] }
 0xd99   : > { %17927 = vmatprep.subr.bf16.mxu0 %v23689_v19 }
 0xd9b   : > { %17760 = vmatmul.mubr.bf16.gmra.mrb[100].mxu0 %v23641_v52  ;;  %v12305_v52 = vpack.c.bf16 %v12284_v59, %v23718_v28  ;;  %v20273_v28 = vld [vmem:[%s24118_s7 + $0x220] sm:$0xff]   ;;  %v12703_v59 = vld [vmem:[#allocation3 + $0x66] sm:$0xff] }
 0xd9c   : > { %17763 = vmatprep.mubr.msk.bf16.mxu0 %vm20358_vm0, %v23689_v19 }
 0xda3   : > { %17764 = vmatmul.mubr.bf16.gmra.mrb[104].mxu0 %v23646_v35  ;;  %v12285_v35 = vld [vmem:[#allocation3 + $0x165] sm:$0xff] }
 0xda4   : > { %17767 = vmatprep.mubr.msk.bf16.mxu0 %vm20358_vm0, %v23689_v19 }
 0xdab   : > { %17768 = vmatmul.mubr.bf16.gmra.mrb[108].mxu0 %v23651_v53  ;;  %v12306_v53 = vpack.c.bf16 %v12285_v35, %v12285_v35  ;;  %v12706_v35 = vld [vmem:[#allocation3 + $0x7e] sm:$0xff] }
 0xdac   : > { %17771 = vmatprep.mubr.msk.bf16.mxu0 %vm20358_vm0, %v23689_v19 }
 0xdb3   : > { %17772 = vmatmul.mubr.bf16.gmra.mrb[112].mxu0 %v23656_v7  ;;  %v12696_v7 = vld [vmem:[#allocation3 + $0x2e] sm:$0xff] }
 0xdb4   : > { %17775 = vmatprep.mubr.msk.bf16.mxu0 %vm20358_vm0, %v23689_v19 }
 0xdbb   : > { %17776 = vmatmul.mubr.bf16.gmra.mrb[116].mxu0 %v23661_v39  ;;  %v12695_v39 = vld [vmem:[#allocation3 + $0x26] sm:$0xff] }
 0xdbc   : > { %17779 = vmatprep.mubr.msk.bf16.mxu0 %vm20358_vm0, %v23689_v19 }
 0xdc3   : > { %17780 = vmatmul.mubr.bf16.gmra.mrb[120].mxu0 %v23666_v43  ;;  %v20269_v43 = vld [vmem:[%s24118_s7 + $0x200] sm:$0xff]  }
 0xdc4   : > { %17783 = vmatprep.mubr.msk.bf16.mxu0 %vm20358_vm0, %v23689_v19 }
 0xdcb   : > { %17784 = vmatmul.mubr.bf16.gmra.mrb[124].mxu0 %v23671_v25  ;;  %v12736_v25 = vpack.c.bf16 %v12696_v7, %v12695_v39  ;;  %v12708_v39 = vld [vmem:[#allocation3 + $0x8e] sm:$0xff] }
 0xdcc   : > { %17787 = vmatprep.mubr.msk.bf16.mxu0 %vm20358_vm0, %v23689_v19 }
 0xdd3   : > { %17788 = vmatmul.mubr.bf16.gmra.mrb[128].mxu0 %v23676_v6  ;;  %v20270_v6 = vld [vmem:[%s24118_s7 + $0x208] sm:$0xff]  }
 0xdd4   : > { %17791 = vmatprep.mubr.msk.bf16.mxu0 %vm20358_vm0, %v23689_v19 }
 0xddb   : > { %17792 = vmatmul.mubr.bf16.gmra.mrb[132].mxu0 %v23681_v27  ;;  %v12698_v27 = vld [vmem:[#allocation3 + $0x3e] sm:$0xff] }
 0xddc   : > { %17795 = vmatprep.mubr.msk.bf16.mxu0 %vm20358_vm0, %v23689_v19 }
 0xde3   : > { %17796 = vmatmul.mubr.bf16.gmra.mrb[136].mxu0 %v23686_v47  ;;  %v12697_v47 = vld [vmem:[#allocation3 + $0x36] sm:$0xff] }
 0xde4   : > { %17799 = vmatprep.mubr.msk.bf16.mxu0 %vm20358_vm0, %v23689_v19 }
 0xdeb   : > { %17800 = vmatmul.mubr.bf16.gmra.mrb[140].mxu0 %v23693_v1  ;;  %v20271_v1 = vld [vmem:[%s24118_s7 + $0x210] sm:$0xff]  }
 0xdec   : > { %17803 = vmatprep.mubr.msk.bf16.mxu0 %vm20358_vm0, %v23689_v19 }
 0xdf3   : > { %17804 = vmatmul.mubr.bf16.gmra.mrb[144].mxu0 %v23698_v8  ;;  %v12737_v8 = vpack.c.bf16 %v12698_v27, %v12697_v47  ;;  %v12709_v27 = vld [vmem:[#allocation3 + $0x96] sm:$0xff] }
 0xdf4   : > { %17807 = vmatprep.mubr.msk.bf16.mxu0 %vm20358_vm0, %v23689_v19 }
 0xdfb   : > { %17808 = vmatmul.mubr.bf16.gmra.mrb[148].mxu0 %v23703_v45  ;;  %v20272_v45 = vld [vmem:[%s24118_s7 + $0x218] sm:$0xff]  }
 0xdfc   : > { %17811 = vmatprep.mubr.msk.bf16.mxu0 %vm20358_vm0, %v23689_v19 }
 0xe03   : > { %17812 = vmatmul.mubr.bf16.gmra.mrb[152].mxu0 %v23708_v54  ;;  %v12700_v54 = vld [vmem:[#allocation3 + $0x4e] sm:$0xff] }
 0xe04   : > { %17815 = vmatprep.mubr.msk.bf16.mxu0 %vm20358_vm0, %v23689_v19 }
 0xe0b   : > { %17816 = vmatmul.mubr.bf16.gmra.mrb[156].mxu0 %v23713_v62  ;;  %v12699_v62 = vld [vmem:[#allocation3 + $0x46] sm:$0xff] }
 0xe0c   : > { %17819 = vmatprep.mubr.msk.bf16.mxu0 %vm20358_vm0, %v23689_v19  ;;  %v12738_v14 = vpack.c.bf16 %v12700_v54, %v12699_v62  ;;  %v12714_v54 = vld [vmem:[#allocation3 + $0xbe] sm:$0xff]  ;;  %v12713_v62 = vld [vmem:[#allocation3 + $0xb6] sm:$0xff] }
 0xe13   : > { %17820 = vmatmul.mubr.bf16.gmra.mrb[160].mxu0 %v12305_v52  ;;  %v12740_v52 = vpack.c.bf16 %v12704_v40, %v12703_v59  ;;  %v12719_v40 = vld [vmem:[#allocation3 + $0xe6] sm:$0xff] }
 0xe14   : > { %17823 = vmatprep.mubr.msk.bf16.mxu0 %vm20358_vm0, %v23689_v19 }
 0xe1b   : > { %17824 = vmatmul.mubr.bf16.gmra.mrb[164].mxu0 %v12306_v53  ;;  %v12705_v53 = vld [vmem:[#allocation3 + $0x76] sm:$0xff] }
 0xe1c   : > { %17843 = vmatprep.mubr.msk.bf16.mxu0 %vm20358_vm0, %v23689_v19  ;;  %v12741_v7 = vpack.c.bf16 %v12706_v35, %v12705_v53  ;;  %v12721_v35 = vld [vmem:[#allocation3 + $0xf6] sm:$0xff] }
 0xe23   : > { %17844 = vmatmul.mubr.bf16.vlgmr.msra.gmra.mrb[84].mxu0 %v12736_v25 }
 0xe24   : > { %17928 = vmatpush3.bf16.msra.mxu0 %v20269_v43  ;;  %17847 = vmatprep.mubr.msk.bf16.mxu0 %vm20358_vm0, %v23689_v19  ;;  %v12707_v43 = vld [vmem:[#allocation3 + $0x86] sm:$0xff] }
 0xe25   : > { %17929 = vmatprep.subr.bf16.mxu0 %v23689_v19  ;;  %v12742_v25 = vpack.c.bf16 %v12708_v39, %v12707_v43  ;;  %v12723_v39 = vld [vmem:[#allocation3 + $0x106] sm:$0xff] }
 0xe28   : > { %17930 = vmatpush3.bf16.msra.mxu0 %v20270_v6  ;;  %v12710_v6 = vld [vmem:[#allocation3 + $0x9e] sm:$0xff] }
 0xe29   : > { %17931 = vmatprep.subr.bf16.mxu0 %v23689_v19  ;;  %v12743_v47 = vpack.c.bf16 %v12710_v6, %v12709_v27  ;;  %v12725_v6 = vld [vmem:[#allocation3 + $0x116] sm:$0xff] }
 0xe2b   : > { %17848 = vmatmul.mubr.bf16.gmra.mrb[88].mxu0 %v12737_v8  ;;  %v12711_v8 = vld [vmem:[#allocation3 + $0xa6] sm:$0xff] }
 0xe2c   : > { %17851 = vmatprep.mubr.msk.bf16.mxu0 %vm20358_vm0, %v23689_v19  ;;  %17932 = vmatpush3.bf16.msra.mxu0 %v20271_v1  ;;  %v12712_v1 = vld [vmem:[#allocation3 + $0xae] sm:$0xff] }
 0xe2d   : > { %17933 = vmatprep.subr.bf16.mxu0 %v23689_v19 }
 0xe30   : > { %17934 = vmatpush3.bf16.msra.mxu0 %v20272_v45  ;;  %v12744_v45 = vpack.c.bf16 %v12712_v1, %v12711_v8  ;;  %v12727_v1 = vld [vmem:[#allocation3 + $0x126] sm:$0xff] }
 0xe31   : > { %17935 = vmatprep.subr.bf16.mxu0 %v23689_v19 }
 0xe33   : > { %17852 = vmatmul.mubr.bf16.gmra.mrb[92].mxu0 %v12738_v14  ;;  %v12716_v14 = vld [vmem:[#allocation3 + $0xce] sm:$0xff] }
 0xe34   : > { %17855 = vmatprep.mubr.msk.bf16.mxu0 %vm20358_vm0, %v23689_v19  ;;  %17936 = vmatpush3.bf16.msra.mxu0 %v20273_v28  ;;  %v12745_v28 = vpack.c.bf16 %v12714_v54, %v12713_v62  ;;  %v12729_v54 = vld [vmem:[#allocation3 + $0x136] sm:$0xff] }
 0xe35   : > { %17937 = vmatprep.subr.bf16.mxu0 %v23689_v19 }
 0xe38   : > { %17938 = vmatpush3.bf16.msra.mxu0 %v20274_v12  ;;  %v12715_v12 = vld [vmem:[#allocation3 + $0xc6] sm:$0xff] }
 0xe39   : > { %17939 = vmatprep.subr.bf16.mxu0 %v23689_v19  ;;  %v12746_v11 = vpack.c.bf16 %v12716_v14, %v12715_v12  ;;  %v12731_v14 = vld [vmem:[#allocation3 + $0x146] sm:$0xff] }
 0xe3b   : > { %17856 = vmatmul.mubr.bf16.gmra.mrb[96].mxu0 %v12739_v24 }
 0xe3c   : > { %17859 = vmatprep.mubr.msk.bf16.mxu0 %vm20358_vm0, %v23689_v19  ;;  %17940 = vmatpush3.bf16.msra.mxu0 %v20275_v22  ;;  %v12717_v22 = vld [vmem:[#allocation3 + $0xd6] sm:$0xff] }
 0xe3d   : > { %17941 = vmatprep.subr.bf16.mxu0 %v23689_v19  ;;  %v12747_v24 = vpack.c.bf16 %v12718_v57, %v12717_v22  ;;  %v12734_v57 = vld [vmem:[#allocation3 + $0x15e] sm:$0xff] }
 0xe40   : > { %17942 = vmatpush3.bf16.msra.mxu0 %v20276_v60  ;;  %v12720_v60 = vld [vmem:[#allocation3 + $0xee] sm:$0xff] }
 0xe41   : > { %v12748_v59 = vpack.c.bf16 %v12720_v60, %v12719_v40  ;;  %v13146_v40 = vld [vmem:[#allocation3 + $0x2f] sm:$0xff] }
 0xe43   : > { %17860 = vmatmul.mubr.bf16.gmra.mrb[100].mxu0 %v12740_v52  ;;  %v12722_v52 = vld [vmem:[#allocation3 + $0xfe] sm:$0xff] }
 0xe44   : > { %17863 = vmatprep.mubr.msk.bf16.mxu0 %vm20358_vm0, %v23689_v19  ;;  %v12749_v53 = vpack.c.bf16 %v12722_v52, %v12721_v35  ;;  %v13148_v35 = vld [vmem:[#allocation3 + $0x3f] sm:$0xff] }
 0xe4b   : > { %17864 = vmatmul.mubr.bf16.gmra.mrb[104].mxu0 %v12741_v7  ;;  %v12724_v7 = vld [vmem:[#allocation3 + $0x10e] sm:$0xff] }
 0xe4c   : > { %17867 = vmatprep.mubr.msk.bf16.mxu0 %vm20358_vm0, %v23689_v19  ;;  %v12750_v43 = vpack.c.bf16 %v12724_v7, %v12723_v39  ;;  %v13150_v39 = vld [vmem:[#allocation3 + $0x4f] sm:$0xff] }
 0xe53   : > { %17868 = vmatmul.mubr.bf16.gmra.mrb[108].mxu0 %v12742_v25  ;;  %v12726_v25 = vld [vmem:[#allocation3 + $0x11e] sm:$0xff] }
 0xe54   : > { %17871 = vmatprep.mubr.msk.bf16.mxu0 %vm20358_vm0, %v23689_v19  ;;  %v12751_v27 = vpack.c.bf16 %v12726_v25, %v12725_v6  ;;  %v13152_v6 = vld [vmem:[#allocation3 + $0x5f] sm:$0xff] }
 0xe5b   : > { %17872 = vmatmul.mubr.bf16.gmra.mrb[112].mxu0 %v12743_v47  ;;  %v12728_v47 = vld [vmem:[#allocation3 + $0x12e] sm:$0xff] }
 0xe5c   : > { %17875 = vmatprep.mubr.msk.bf16.mxu0 %vm20358_vm0, %v23689_v19  ;;  %v12752_v8 = vpack.c.bf16 %v12728_v47, %v12727_v1  ;;  %v13154_v1 = vld [vmem:[#allocation3 + $0x6f] sm:$0xff] }
 0xe63   : > { %17876 = vmatmul.mubr.bf16.gmra.mrb[116].mxu0 %v12744_v45  ;;  %v12730_v45 = vld [vmem:[#allocation3 + $0x13e] sm:$0xff] }
 0xe64   : > { %17879 = vmatprep.mubr.msk.bf16.mxu0 %vm20358_vm0, %v23689_v19  ;;  %v12753_v62 = vpack.c.bf16 %v12730_v45, %v12729_v54  ;;  %v13156_v54 = vld [vmem:[#allocation3 + $0x7f] sm:$0xff] }
 0xe6b   : > { %17880 = vmatmul.mubr.bf16.gmra.mrb[120].mxu0 %v12745_v28  ;;  %v12732_v28 = vld [vmem:[#allocation3 + $0x14e] sm:$0xff] }
 0xe6c   : > { %17883 = vmatprep.mubr.msk.bf16.mxu0 %vm20358_vm0, %v23689_v19  ;;  %v12754_v12 = vpack.c.bf16 %v12732_v28, %v12731_v14  ;;  %v13158_v14 = vld [vmem:[#allocation3 + $0x8f] sm:$0xff] }
 0xe73   : > { %17884 = vmatmul.mubr.bf16.gmra.mrb[124].mxu0 %v12746_v11  ;;  %v12733_v11 = vld [vmem:[#allocation3 + $0x156] sm:$0xff] }
 0xe74   : > { %17887 = vmatprep.mubr.msk.bf16.mxu0 %vm20358_vm0, %v23689_v19  ;;  %v12755_v22 = vpack.c.bf16 %v12734_v57, %v12733_v11  ;;  %v13160_v57 = vld [vmem:[#allocation3 + $0x9f] sm:$0xff] }
 0xe7b   : > { %17888 = vmatmul.mubr.bf16.gmra.mrb[128].mxu0 %v12747_v24  ;;  %v12735_v24 = vld [vmem:[#allocation3 + $0x166] sm:$0xff] }
 0xe7c   : > { %17891 = vmatprep.mubr.msk.bf16.mxu0 %vm20358_vm0, %v23689_v19  ;;  %v12756_v60 = vpack.c.bf16 %v12735_v24, %v12735_v24 }
 0xe83   : > { %17892 = vmatmul.mubr.bf16.gmra.mrb[132].mxu0 %v12748_v59  ;;  %v13145_v59 = vld [vmem:[#allocation3 + $0x27] sm:$0xff] }
 0xe84   : > { %17895 = vmatprep.mubr.msk.bf16.mxu0 %vm20358_vm0, %v23689_v19  ;;  %v13186_v52 = vpack.c.bf16 %v13146_v40, %v13145_v59  ;;  %v13161_v40 = vld [vmem:[#allocation3 + $0xa7] sm:$0xff] }
 0xe8b   : > { %17896 = vmatmul.mubr.bf16.gmra.mrb[136].mxu0 %v12749_v53  ;;  %v13147_v53 = vld [vmem:[#allocation3 + $0x37] sm:$0xff] }
 0xe8c   : > { %17899 = vmatprep.mubr.msk.bf16.mxu0 %vm20358_vm0, %v23689_v19  ;;  %v13187_v7 = vpack.c.bf16 %v13148_v35, %v13147_v53  ;;  %v13163_v35 = vld [vmem:[#allocation3 + $0xb7] sm:$0xff] }
 0xe93   : > { %17900 = vmatmul.mubr.bf16.gmra.mrb[140].mxu0 %v12750_v43  ;;  %v13149_v43 = vld [vmem:[#allocation3 + $0x47] sm:$0xff] }
 0xe94   : > { %17903 = vmatprep.mubr.msk.bf16.mxu0 %vm20358_vm0, %v23689_v19  ;;  %v13188_v25 = vpack.c.bf16 %v13150_v39, %v13149_v43  ;;  %v13165_v39 = vld [vmem:[#allocation3 + $0xc7] sm:$0xff] }
 0xe9b   : > { %17904 = vmatmul.mubr.bf16.gmra.mrb[144].mxu0 %v12751_v27  ;;  %v13151_v27 = vld [vmem:[#allocation3 + $0x57] sm:$0xff] }
 0xe9c   : > { %17907 = vmatprep.mubr.msk.bf16.mxu0 %vm20358_vm0, %v23689_v19  ;;  %v13189_v47 = vpack.c.bf16 %v13152_v6, %v13151_v27  ;;  %v13167_v6 = vld [vmem:[#allocation3 + $0xd7] sm:$0xff] }
 0xea3   : > { %17908 = vmatmul.mubr.bf16.gmra.mrb[148].mxu0 %v12752_v8  ;;  %v13153_v8 = vld [vmem:[#allocation3 + $0x67] sm:$0xff] }
 0xea4   : > { %17911 = vmatprep.mubr.msk.bf16.mxu0 %vm20358_vm0, %v23689_v19  ;;  %v13190_v45 = vpack.c.bf16 %v13154_v1, %v13153_v8  ;;  %v13169_v1 = vld [vmem:[#allocation3 + $0xe7] sm:$0xff] }
 0xeab   : > { %17912 = vmatmul.mubr.bf16.gmra.mrb[152].mxu0 %v12753_v62  ;;  %v13155_v62 = vld [vmem:[#allocation3 + $0x77] sm:$0xff] }
 0xeac   : > { %17915 = vmatprep.mubr.msk.bf16.mxu0 %vm20358_vm0, %v23689_v19  ;;  %v13191_v28 = vpack.c.bf16 %v13156_v54, %v13155_v62  ;;  %v13171_v54 = vld [vmem:[#allocation3 + $0xf7] sm:$0xff] }
 0xeb3   : > { %17916 = vmatmul.mubr.bf16.gmra.mrb[156].mxu0 %v12754_v12  ;;  %v13157_v12 = vld [vmem:[#allocation3 + $0x87] sm:$0xff] }
 0xeb4   : > { %17919 = vmatprep.mubr.msk.bf16.mxu0 %vm20358_vm0, %v23689_v19  ;;  %v13192_v11 = vpack.c.bf16 %v13158_v14, %v13157_v12  ;;  %v13173_v14 = vld [vmem:[#allocation3 + $0x107] sm:$0xff] }
 0xebb   : > { %17920 = vmatmul.mubr.bf16.gmra.mrb[160].mxu0 %v12755_v22  ;;  %v13159_v22 = vld [vmem:[#allocation3 + $0x97] sm:$0xff] }
 0xebc   : > { %17923 = vmatprep.mubr.msk.bf16.mxu0 %vm20358_vm0, %v23689_v19  ;;  %v13193_v24 = vpack.c.bf16 %v13160_v57, %v13159_v22  ;;  %v13175_v57 = vld [vmem:[#allocation3 + $0x117] sm:$0xff] }
 0xec3   : > { %17924 = vmatmul.mubr.bf16.gmra.mrb[164].mxu0 %v12756_v60  ;;  %v13162_v60 = vld [vmem:[#allocation3 + $0xaf] sm:$0xff] }
 0xec4   : > { %17943 = vmatprep.mubr.msk.bf16.mxu0 %vm20358_vm0, %v23689_v19  ;;  %v13194_v59 = vpack.c.bf16 %v13162_v60, %v13161_v40  ;;  %v13177_v60 = vld [vmem:[#allocation3 + $0x127] sm:$0xff] }
 0xecb   : > { %17944 = vmatmul.mubr.bf16.vlgmr.msra.gmra.mrb[84].mxu0 %v13186_v52  ;;  %v13164_v52 = vld [vmem:[#allocation3 + $0xbf] sm:$0xff] }
 0xecc   : > { %17947 = vmatprep.mubr.msk.bf16.mxu0 %vm20358_vm0, %v23689_v19  ;;  %v13195_v53 = vpack.c.bf16 %v13164_v52, %v13163_v35  ;;  %v13179_v52 = vld [vmem:[#allocation3 + $0x137] sm:$0xff] }
 0xed3   : > { %17948 = vmatmul.mubr.bf16.gmra.mrb[88].mxu0 %v13187_v7  ;;  %v13166_v7 = vld [vmem:[#allocation3 + $0xcf] sm:$0xff] }
 0xed4   : > { %17951 = vmatprep.mubr.msk.bf16.mxu0 %vm20358_vm0, %v23689_v19  ;;  %v13196_v43 = vpack.c.bf16 %v13166_v7, %v13165_v39  ;;  %v13181_v7 = vld [vmem:[#allocation3 + $0x147] sm:$0xff] }
 0xedb   : > { %17952 = vmatmul.mubr.bf16.gmra.mrb[92].mxu0 %v13188_v25  ;;  %v13168_v25 = vld [vmem:[#allocation3 + $0xdf] sm:$0xff] }
 0xedc   : > { %17955 = vmatprep.mubr.msk.bf16.mxu0 %vm20358_vm0, %v23689_v19  ;;  %v13197_v27 = vpack.c.bf16 %v13168_v25, %v13167_v6  ;;  %v13184_v25 = vld [vmem:[#allocation3 + $0x15f] sm:$0xff] }
 0xee3   : > { %17956 = vmatmul.mubr.bf16.gmra.mrb[96].mxu0 %v13189_v47  ;;  %v13170_v47 = vld [vmem:[#allocation3 + $0xef] sm:$0xff] }
 0xee4   : > { %17959 = vmatprep.mubr.msk.bf16.mxu0 %vm20358_vm0, %v23689_v19  ;;  %v13198_v8 = vpack.c.bf16 %v13170_v47, %v13169_v1  ;;  %v23934_v1 = vld [vmem:[%s24119_s8] ss:$0 sm:$0xff] }
 0xeeb   : > { %17960 = vmatmul.mubr.bf16.gmra.mrb[100].mxu0 %v13190_v45  ;;  %v13172_v45 = vld [vmem:[#allocation3 + $0xff] sm:$0xff] }
 0xeec   : > { %17963 = vmatprep.mubr.msk.bf16.mxu0 %vm20358_vm0, %v23689_v19  ;;  %v13199_v62 = vpack.c.bf16 %v13172_v45, %v13171_v54  ;;  %v23939_v45 = vld [vmem:[%s24120_s9] ss:$0 sm:$0xff] }
 0xef3   : > { %17964 = vmatmul.mubr.bf16.gmra.mrb[104].mxu0 %v13191_v28  ;;  %v13174_v28 = vld [vmem:[#allocation3 + $0x10f] sm:$0xff] }
 0xef4   : > { %17967 = vmatprep.mubr.msk.bf16.mxu0 %vm20358_vm0, %v23689_v19  ;;  %v13200_v12 = vpack.c.bf16 %v13174_v28, %v13173_v14 }
 0xefb   : > { %17968 = vmatmul.mubr.bf16.gmra.mrb[108].mxu0 %v13192_v11  ;;  %v13176_v11 = vld [vmem:[#allocation3 + $0x11f] sm:$0xff] }
 0xefc   : > { %17971 = vmatprep.mubr.msk.bf16.mxu0 %vm20358_vm0, %v23689_v19  ;;  %v13201_v22 = vpack.c.bf16 %v13176_v11, %v13175_v57  ;;  %v9423_v11 = vld [vmem:[#allocation2 + $0x14] sm:$0xff] }
 0xf03   : > { %17972 = vmatmul.mubr.bf16.gmra.mrb[112].mxu0 %v13193_v24  ;;  %v13178_v24 = vld [vmem:[#allocation3 + $0x12f] sm:$0xff] }
 0xf04   : > { %17975 = vmatprep.mubr.msk.bf16.mxu0 %vm20358_vm0, %v23689_v19  ;;  %v13202_v40 = vpack.c.bf16 %v13178_v24, %v13177_v60  ;;  %v9424_v24 = vld [vmem:[#allocation2 + $0x1c] sm:$0xff] }
 0xf0b   : > { %17976 = vmatmul.mubr.bf16.gmra.mrb[116].mxu0 %v13194_v59  ;;  %v13180_v59 = vld [vmem:[#allocation3 + $0x13f] sm:$0xff] }
 0xf0c   : > { %17979 = vmatprep.mubr.msk.bf16.mxu0 %vm20358_vm0, %v23689_v19  ;;  %v13203_v35 = vpack.c.bf16 %v13180_v59, %v13179_v52 }
 0xf13   : > { %17980 = vmatmul.mubr.bf16.gmra.mrb[120].mxu0 %v13195_v53  ;;  %v13182_v53 = vld [vmem:[#allocation3 + $0x14f] sm:$0xff] }
 0xf14   : > { %17983 = vmatprep.mubr.msk.bf16.mxu0 %vm20358_vm0, %v23689_v19  ;;  %v13204_v39 = vpack.c.bf16 %v13182_v53, %v13181_v7 }
 0xf1b   : > { %17984 = vmatmul.mubr.bf16.gmra.mrb[124].mxu0 %v13196_v43  ;;  %v13183_v43 = vld [vmem:[#allocation3 + $0x157] sm:$0xff] }
 0xf1c   : > { %17987 = vmatprep.mubr.msk.bf16.mxu0 %vm20358_vm0, %v23689_v19  ;;  %v13205_v6 = vpack.c.bf16 %v13184_v25, %v13183_v43 }
 0xf23   : > { %17988 = vmatmul.mubr.bf16.gmra.mrb[128].mxu0 %v13197_v27  ;;  %v13185_v27 = vld [vmem:[#allocation3 + $0x167] sm:$0xff] }
 0xf24   : > { %17991 = vmatprep.mubr.msk.bf16.mxu0 %vm20358_vm0, %v23689_v19  ;;  %v13206_v47 = vpack.c.bf16 %v13185_v27, %v13185_v27 }
 0xf2b   : > { %17992 = vmatmul.mubr.bf16.gmra.mrb[132].mxu0 %v13198_v8 }
 0xf2c   : > { %17995 = vmatprep.mubr.msk.bf16.mxu0 %vm20358_vm0, %v23689_v19 }
 0xf33   : > { %17996 = vmatmul.mubr.bf16.gmra.mrb[136].mxu0 %v13199_v62 }
 0xf34   : > { %17999 = vmatprep.mubr.msk.bf16.mxu0 %vm20358_vm0, %v23689_v19 }
 0xf3b   : > { %18000 = vmatmul.mubr.bf16.gmra.mrb[140].mxu0 %v13200_v12 }
 0xf3c   : > { %18003 = vmatprep.mubr.msk.bf16.mxu0 %vm20358_vm0, %v23689_v19 }
 0xf43   : > { %18004 = vmatmul.mubr.bf16.gmra.mrb[144].mxu0 %v13201_v22 }
 0xf44   : > { %18007 = vmatprep.mubr.msk.bf16.mxu0 %vm20358_vm0, %v23689_v19 }
 0xf4b   : > { %18008 = vmatmul.mubr.bf16.gmra.mrb[148].mxu0 %v13202_v40 }
 0xf4c   : > { %18011 = vmatprep.mubr.msk.bf16.mxu0 %vm20358_vm0, %v23689_v19 }
 0xf53   : > { %18012 = vmatmul.mubr.bf16.gmra.mrb[152].mxu0 %v13203_v35 }
 0xf54   : > { %18015 = vmatprep.mubr.msk.bf16.mxu0 %vm20358_vm0, %v23689_v19 }
 0xf5b   : > { %18016 = vmatmul.mubr.bf16.gmra.mrb[156].mxu0 %v13204_v39 }
 0xf5c   : > { %18019 = vmatprep.mubr.msk.bf16.mxu0 %vm20358_vm0, %v23689_v19 }
 0xf63   : > { %18020 = vmatmul.mubr.bf16.gmra.mrb[160].mxu0 %v13205_v6 }
 0xf64   : > { %18023 = vmatprep.mubr.msk.bf16.mxu0 %vm20358_vm0, %v23689_v19 }
 0xf6b   : > { %18024 = vmatmul.mubr.bf16.gmra.mrb[164].mxu0 %v13206_v47  ;;  %v9425_v47 = vld [vmem:[#allocation2 + $0x24] sm:$0xff] }
 0xf9e   : > { %v13306_v8 = vpop.f32.mrb[84].mxu0 }
 0xf9f   : > { %v13602_v54 = vmul.f32 %v23934_v1, %v13306_v8  ;;  %v17945_v62 = vpop.f32.mrb[85].mxu0 }
 0xfa0   : > { %v13309_v28 = vpop.f32.mrb[86].mxu0 }
 0xfa1   : > { %v13650_v19 = vadd.f32 %v23939_v45, %v13602_v54  ;;  %v13603_v14 = vmul.f32 %v23934_v1, %v13309_v28  ;;  %v17946_v12 = vpop.f32.mrb[87].mxu0  ;;  %v9426_v28 = vld [vmem:[#allocation2 + $0x2c] sm:$0xff] }
 0xfa3   : > { %v13691_v57 = vadd.f32 %v13650_v19, %v9423_v11  ;;  %v13651_v22 = vadd.f32 %v23939_v45, %v13603_v14 }
 0xfa5   : > { %v13732_v60 = vmax.f32 %v13691_v57, 0.0  ;;  %v13692_v40 = vadd.f32 %v13651_v22, %v9424_v24 }
 0xfa6   : > { %v13314_v59 = vpop.f32.mrb[88].mxu0 }
 0xfa7   : > { %v13733_v52 = vmax.f32 %v13692_v40, 0.0  ;;  %v13604_v35 = vmul.f32 %v23934_v1, %v13314_v59  ;;  %v17949_v53 = vpop.f32.mrb[89].mxu0  ;;  %v13773_v39 = vmul.f32 %v13732_v60, %v21971_v9 }
 0xfa8   : > { %v13317_v7 = vpop.f32.mrb[90].mxu0 }
 0xfa9   : > { %v13774_v43 = vmul.f32 %v13733_v52, %v21979_v41  ;;  %v13652_v25 = vadd.f32 %v23939_v45, %v13604_v35  ;;  %v13605_v6 = vmul.f32 %v23934_v1, %v13317_v7  ;;  %v17950_v27 = vpop.f32.mrb[91].mxu0  ;;  %v9427_v35 = vld [vmem:[#allocation2 + $0x34] sm:$0xff] }
 0xfab   : > { %v13814_v8 = vadd.f32 %v13774_v43, %v13773_v39  ;;  %v13693_v54 = vadd.f32 %v13652_v25, %v9425_v47  ;;  %v13653_v62 = vadd.f32 %v23939_v45, %v13605_v6  ;;  %v9428_v43 = vld [vmem:[#allocation2 + $0x3c] sm:$0xff] }
 0xfad   : > { %v13734_v19 = vmax.f32 %v13693_v54, 0.0  ;;  %v13694_v14 = vadd.f32 %v13653_v62, %v9426_v28 }
 0xfae   : > { %v13322_v12 = vpop.f32.mrb[92].mxu0 }
 0xfaf   : > { %v13775_v11 = vmul.f32 %v13734_v19, %v21984_v2  ;;  %v13735_v57 = vmax.f32 %v13694_v14, 0.0  ;;  %v13606_v9 = vmul.f32 %v23934_v1, %v13322_v12  ;;  %v17953_v41 = vpop.f32.mrb[93].mxu0 }
 0xfb0   : > { %v13325_v22 = vpop.f32.mrb[94].mxu0 }
 0xfb1   : > { %v13815_v24 = vadd.f32 %v13814_v8, %v13775_v11  ;;  %v13776_v60 = vmul.f32 %v13735_v57, %v21991_v4  ;;  %v13654_v40 = vadd.f32 %v23939_v45, %v13606_v9  ;;  %v13607_v59 = vmul.f32 %v23934_v1, %v13325_v22  ;;  %v17954_v52 = vpop.f32.mrb[95].mxu0  ;;  %v9429_v11 = vld [vmem:[#allocation2 + $0x44] sm:$0xff]  ;;  %v9430_v22 = vld [vmem:[#allocation2 + $0x4c] sm:$0xff] }
 0xfb3   : > { %v13816_v53 = vadd.f32 %v13815_v24, %v13776_v60  ;;  %v13695_v7 = vadd.f32 %v13654_v40, %v9427_v35  ;;  %v13655_v39 = vadd.f32 %v23939_v45, %v13607_v59 }
 0xfb5   : > { %v13736_v2 = vmax.f32 %v13695_v7, 0.0  ;;  %v13696_v25 = vadd.f32 %v13655_v39, %v9428_v43 }
 0xfb6   : > { %v13330_v6 = vpop.f32.mrb[96].mxu0 }
 0xfb7   : > { %v13777_v27 = vmul.f32 %v13736_v2, %v22002_v63  ;;  %v13737_v47 = vmax.f32 %v13696_v25, 0.0  ;;  %v13608_v8 = vmul.f32 %v23934_v1, %v13330_v6  ;;  %v17957_v4 = vpop.f32.mrb[97].mxu0  ;;  %v9431_v25 = vld [vmem:[#allocation2 + $0x54] sm:$0xff] }
 0xfb8   : > { %v13333_v54 = vpop.f32.mrb[98].mxu0 }
 0xfb9   : > { %v13817_v62 = vadd.f32 %v13816_v53, %v13777_v27  ;;  %v13778_v28 = vmul.f32 %v13737_v47, %v22009_v0  ;;  %v13656_v19 = vadd.f32 %v23939_v45, %v13608_v8  ;;  %v13609_v14 = vmul.f32 %v23934_v1, %v13333_v54  ;;  %v17958_v12 = vpop.f32.mrb[99].mxu0  ;;  %v9432_v8 = vld [vmem:[#allocation2 + $0x5c] sm:$0xff] }
 0xfbb   : > { %v13818_v57 = vadd.f32 %v13817_v62, %v13778_v28  ;;  %v13697_v9 = vadd.f32 %v13656_v19, %v9429_v11  ;;  %v13657_v41 = vadd.f32 %v23939_v45, %v13609_v14 }
 0xfbd   : > { %v13738_v63 = vmax.f32 %v13697_v9, 0.0  ;;  %v13698_v24 = vadd.f32 %v13657_v41, %v9430_v22  ;;  %v9433_v22 = vld [vmem:[#allocation2 + $0x64] sm:$0xff] }
 0xfbe   : > { %v13338_v60 = vpop.f32.mrb[100].mxu0 }
 0xfbf   : > { %v13779_v40 = vmul.f32 %v13738_v63, %v22017_v56  ;;  %v13739_v59 = vmax.f32 %v13698_v24, 0.0  ;;  %v13610_v52 = vmul.f32 %v23934_v1, %v13338_v60  ;;  %v17961_v0 = vpop.f32.mrb[101].mxu0 }
 0xfc0   : > { %v13341_v35 = vpop.f32.mrb[102].mxu0 }
 0xfc1   : > { %v13819_v53 = vadd.f32 %v13818_v57, %v13779_v40  ;;  %v13780_v7 = vmul.f32 %v13739_v59, %v22023_v36  ;;  %v13658_v39 = vadd.f32 %v23939_v45, %v13610_v52  ;;  %v13611_v43 = vmul.f32 %v23934_v1, %v13341_v35  ;;  %v17962_v2 = vpop.f32.mrb[103].mxu0  ;;  %v9434_v40 = vld [vmem:[#allocation2 + $0x6c] sm:$0xff] }
 0xfc3   : > { %v13820_v6 = vadd.f32 %v13819_v53, %v13780_v7  ;;  %v13699_v27 = vadd.f32 %v13658_v39, %v9431_v25  ;;  %v13659_v47 = vadd.f32 %v23939_v45, %v13611_v43 }
 0xfc5   : > { %v13740_v56 = vmax.f32 %v13699_v27, 0.0  ;;  %v13700_v4 = vadd.f32 %v13659_v47, %v9432_v8  ;;  %v9435_v27 = vld [vmem:[#allocation2 + $0x74] sm:$0xff] }
 0xfc6   : > { %v13346_v54 = vpop.f32.mrb[104].mxu0 }
 0xfc7   : > { %v13781_v62 = vmul.f32 %v13740_v56, %v22031_v46  ;;  %v13741_v28 = vmax.f32 %v13700_v4, 0.0  ;;  %v13612_v19 = vmul.f32 %v23934_v1, %v13346_v54  ;;  %v17965_v36 = vpop.f32.mrb[105].mxu0  ;;  %v9436_v4 = vld [vmem:[#allocation2 + $0x7c] sm:$0xff] }
 0xfc8   : > { %v13349_v14 = vpop.f32.mrb[106].mxu0 }
 0xfc9   : > { %v13821_v12 = vadd.f32 %v13820_v6, %v13781_v62  ;;  %v13782_v11 = vmul.f32 %v13741_v28, %v22037_v51  ;;  %v13660_v57 = vadd.f32 %v23939_v45, %v13612_v19  ;;  %v13613_v9 = vmul.f32 %v23934_v1, %v13349_v14  ;;  %v17966_v41 = vpop.f32.mrb[107].mxu0 }
 0xfcb   : > { %v13822_v63 = vadd.f32 %v13821_v12, %v13782_v11  ;;  %v13701_v24 = vadd.f32 %v13660_v57, %v9433_v22  ;;  %v13661_v60 = vadd.f32 %v23939_v45, %v13613_v9  ;;  %v9437_v22 = vld [vmem:[#allocation2 + $0x84] sm:$0xff] }
 0xfcd   : > { %v13742_v46 = vmax.f32 %v13701_v24, 0.0  ;;  %v13702_v59 = vadd.f32 %v13661_v60, %v9434_v40  ;;  %v9438_v40 = vld [vmem:[#allocation2 + $0x8c] sm:$0xff] }
 0xfce   : > { %v13354_v52 = vpop.f32.mrb[108].mxu0 }
 0xfcf   : > { %v13783_v0 = vmul.f32 %v13742_v46, %v22049_v21  ;;  %v13743_v35 = vmax.f32 %v13702_v59, 0.0  ;;  %v13614_v53 = vmul.f32 %v23934_v1, %v13354_v52  ;;  %v17969_v51 = vpop.f32.mrb[109].mxu0 }
 0xfd0   : > { %v13357_v7 = vpop.f32.mrb[110].mxu0 }
 0xfd1   : > { %v13823_v39 = vadd.f32 %v13822_v63, %v13783_v0  ;;  %v13784_v43 = vmul.f32 %v13743_v35, %v22055_v55  ;;  %v13662_v2 = vadd.f32 %v23939_v45, %v13614_v53  ;;  %v13615_v25 = vmul.f32 %v23934_v1, %v13357_v7  ;;  %v17970_v6 = vpop.f32.mrb[111].mxu0 }
 0xfd3   : > { %v13824_v47 = vadd.f32 %v13823_v39, %v13784_v43  ;;  %v13703_v8 = vadd.f32 %v13662_v2, %v9435_v27  ;;  %v13663_v56 = vadd.f32 %v23939_v45, %v13615_v25  ;;  %v9439_v25 = vld [vmem:[#allocation2 + $0x94] sm:$0xff] }
 0xfd5   : > { %v13744_v21 = vmax.f32 %v13703_v8, 0.0  ;;  %v13704_v54 = vadd.f32 %v13663_v56, %v9436_v4  ;;  %v9440_v8 = vld [vmem:[#allocation2 + $0x9c] sm:$0xff] }
 0xfd6   : > { %v13362_v62 = vpop.f32.mrb[112].mxu0 }
 0xfd7   : > { %v13785_v28 = vmul.f32 %v13744_v21, %v22063_v18  ;;  %v13745_v19 = vmax.f32 %v13704_v54, 0.0  ;;  %v13616_v36 = vmul.f32 %v23934_v1, %v13362_v62  ;;  %v17973_v55 = vpop.f32.mrb[113].mxu0 }
 0xfd8   : > { %v13365_v14 = vpop.f32.mrb[114].mxu0 }
 0xfd9   : > { %v13825_v12 = vadd.f32 %v13824_v47, %v13785_v28  ;;  %v13786_v11 = vmul.f32 %v13745_v19, %v22069_v34  ;;  %v13664_v57 = vadd.f32 %v23939_v45, %v13616_v36  ;;  %v13617_v9 = vmul.f32 %v23934_v1, %v13365_v14  ;;  %v17974_v41 = vpop.f32.mrb[115].mxu0 }
 0xfdb   : > { %v13826_v63 = vadd.f32 %v13825_v12, %v13786_v11  ;;  %v13705_v24 = vadd.f32 %v13664_v57, %v9437_v22  ;;  %v13665_v60 = vadd.f32 %v23939_v45, %v13617_v9  ;;  %v9441_v11 = vld [vmem:[#allocation2 + $0xa4] sm:$0xff]  ;;  %v9442_v22 = vld [vmem:[#allocation2 + $0xac] sm:$0xff] }
 0xfdd   : > { %v13746_v18 = vmax.f32 %v13705_v24, 0.0  ;;  %v13706_v46 = vadd.f32 %v13665_v60, %v9438_v40 }
 0xfde   : > { %v13370_v59 = vpop.f32.mrb[116].mxu0 }
 0xfdf   : > { %v13787_v52 = vmul.f32 %v13746_v18, %v22077_v26  ;;  %v13747_v0 = vmax.f32 %v13706_v46, 0.0  ;;  %v13618_v35 = vmul.f32 %v23934_v1, %v13370_v59  ;;  %v17977_v34 = vpop.f32.mrb[117].mxu0 }
 0xfe0   : > { %v13373_v53 = vpop.f32.mrb[118].mxu0 }
 0xfe1   : > { %v13827_v51 = vadd.f32 %v13826_v63, %v13787_v52  ;;  %v13788_v7 = vmul.f32 %v13747_v0, %v22083_v33  ;;  %v13666_v39 = vadd.f32 %v23939_v45, %v13618_v35  ;;  %v13619_v43 = vmul.f32 %v23934_v1, %v13373_v53  ;;  %v17978_v2 = vpop.f32.mrb[119].mxu0  ;;  %v9443_v53 = vld [vmem:[#allocation2 + $0xb4] sm:$0xff] }
 0xfe3   : > { %v13828_v6 = vadd.f32 %v13827_v51, %v13788_v7  ;;  %v13707_v27 = vadd.f32 %v13666_v39, %v9439_v25  ;;  %v13667_v47 = vadd.f32 %v23939_v45, %v13619_v43  ;;  %v9444_v43 = vld [vmem:[#allocation2 + $0xbc] sm:$0xff] }
 0xfe5   : > { %v13748_v26 = vmax.f32 %v13707_v27, 0.0  ;;  %v13708_v56 = vadd.f32 %v13667_v47, %v9440_v8 }
 0xfe6   : > { %v13378_v4 = vpop.f32.mrb[120].mxu0 }
 0xfe7   : > { %v13789_v21 = vmul.f32 %v13748_v26, %v22091_v29  ;;  %v13749_v54 = vmax.f32 %v13708_v56, 0.0  ;;  %v13620_v62 = vmul.f32 %v23934_v1, %v13378_v4  ;;  %v17981_v33 = vpop.f32.mrb[121].mxu0 }
 0xfe8   : > { %v13381_v28 = vpop.f32.mrb[122].mxu0 }
 0xfe9   : > { %v13829_v19 = vadd.f32 %v13828_v6, %v13789_v21  ;;  %v13790_v36 = vmul.f32 %v13749_v54, %v22095_v49  ;;  %v13668_v55 = vadd.f32 %v23939_v45, %v13620_v62  ;;  %v13621_v14 = vmul.f32 %v23934_v1, %v13381_v28  ;;  %v17982_v12 = vpop.f32.mrb[123].mxu0  ;;  %v9445_v62 = vld [vmem:[#allocation2 + $0xc4] sm:$0xff] }
 0xfeb   : > { %v13830_v57 = vadd.f32 %v13829_v19, %v13790_v36  ;;  %v13709_v9 = vadd.f32 %v13668_v55, %v9441_v11  ;;  %v13669_v41 = vadd.f32 %v23939_v45, %v13621_v14  ;;  %v9446_v36 = vld [vmem:[#allocation2 + $0xcc] sm:$0xff] }
 0xfed   : > { %v13750_v29 = vmax.f32 %v13709_v9, 0.0  ;;  %v13710_v63 = vadd.f32 %v13669_v41, %v9442_v22 }
 0xfee   : > { %v13386_v24 = vpop.f32.mrb[124].mxu0 }
 0xfef   : > { %v13791_v60 = vmul.f32 %v13750_v29, %v22104_v58  ;;  %v13751_v40 = vmax.f32 %v13710_v63, 0.0  ;;  %v13622_v18 = vmul.f32 %v23934_v1, %v13386_v24  ;;  %v17985_v49 = vpop.f32.mrb[125].mxu0 }
 0xff0   : > { %v13389_v46 = vpop.f32.mrb[126].mxu0 }
 0xff1   : > { %v13831_v59 = vadd.f32 %v13830_v57, %v13791_v60  ;;  %v13792_v52 = vmul.f32 %v13751_v40, %v22106_v37  ;;  %v13670_v0 = vadd.f32 %v23939_v45, %v13622_v18  ;;  %v13623_v35 = vmul.f32 %v23934_v1, %v13389_v46  ;;  %v17986_v34 = vpop.f32.mrb[127].mxu0  ;;  %v9447_v60 = vld [vmem:[#allocation2 + $0xd4] sm:$0xff]  ;;  %v9448_v46 = vld [vmem:[#allocation2 + $0xdc] sm:$0xff] }
 0xff3   : > { %v13832_v51 = vadd.f32 %v13831_v59, %v13792_v52  ;;  %v13711_v7 = vadd.f32 %v13670_v0, %v9443_v53  ;;  %v13671_v39 = vadd.f32 %v23939_v45, %v13623_v35 }
 0xff5   : > { %v13752_v58 = vmax.f32 %v13711_v7, 0.0  ;;  %v13712_v2 = vadd.f32 %v13671_v39, %v9444_v43 }
 0xff6   : > { %v13394_v25 = vpop.f32.mrb[128].mxu0 }
 0xff7   : > { %v13793_v6 = vmul.f32 %v13752_v58, %v22118_v23  ;;  %v13753_v27 = vmax.f32 %v13712_v2, 0.0  ;;  %v13624_v47 = vmul.f32 %v23934_v1, %v13394_v25  ;;  %v17989_v37 = vpop.f32.mrb[129].mxu0  ;;  %v9449_v2 = vld [vmem:[#allocation2 + $0xe4] sm:$0xff] }
 0xff8   : > { %v13397_v8 = vpop.f32.mrb[130].mxu0 }
 0xff9   : > { %v13833_v26 = vadd.f32 %v13832_v51, %v13793_v6  ;;  %v13794_v56 = vmul.f32 %v13753_v27, %v22120_v16  ;;  %v13672_v4 = vadd.f32 %v23939_v45, %v13624_v47  ;;  %v13625_v21 = vmul.f32 %v23934_v1, %v13397_v8  ;;  %v17990_v54 = vpop.f32.mrb[131].mxu0  ;;  %v9450_v47 = vld [vmem:[#allocation2 + $0xec] sm:$0xff] }
 0xffb   : > { %v13834_v33 = vadd.f32 %v13833_v26, %v13794_v56  ;;  %v13713_v28 = vadd.f32 %v13672_v4, %v9445_v62  ;;  %v13673_v19 = vadd.f32 %v23939_v45, %v13625_v21 }
 0xffd   : > { %v13754_v23 = vmax.f32 %v13713_v28, 0.0  ;;  %v13714_v55 = vadd.f32 %v13673_v19, %v9446_v36  ;;  %v9451_v36 = vld [vmem:[#allocation2 + $0xf4] sm:$0xff] }
 0xffe   : > { %v13402_v14 = vpop.f32.mrb[132].mxu0 }
 0xfff   : > { %v13795_v12 = vmul.f32 %v13754_v23, %v22130_v32  ;;  %v13755_v11 = vmax.f32 %v13714_v55, 0.0  ;;  %v13626_v57 = vmul.f32 %v23934_v1, %v13402_v14  ;;  %v17993_v16 = vpop.f32.mrb[133].mxu0 }
0x1000   : > { %v13405_v9 = vpop.f32.mrb[134].mxu0 }
0x1001   : > { %v13835_v41 = vadd.f32 %v13834_v33, %v13795_v12  ;;  %v13796_v22 = vmul.f32 %v13755_v11, %v22132_v38  ;;  %v13674_v29 = vadd.f32 %v23939_v45, %v13626_v57  ;;  %v13627_v63 = vmul.f32 %v23934_v1, %v13405_v9  ;;  %v17994_v24 = vpop.f32.mrb[135].mxu0  ;;  %v9452_v12 = vld [vmem:[#allocation2 + $0xfc] sm:$0xff] }
0x1003   : > { %v13836_v40 = vadd.f32 %v13835_v41, %v13796_v22  ;;  %v13715_v18 = vadd.f32 %v13674_v29, %v9447_v60  ;;  %v13675_v49 = vadd.f32 %v23939_v45, %v13627_v63 }
0x1005   : > { %v13756_v32 = vmax.f32 %v13715_v18, 0.0  ;;  %v13716_v59 = vadd.f32 %v13675_v49, %v9448_v46  ;;  %v9453_v18 = vld [vmem:[#allocation2 + $0x104] sm:$0xff] }
0x1006   : > { %v13410_v52 = vpop.f32.mrb[136].mxu0 }
0x1007   : > { %v13797_v0 = vmul.f32 %v13756_v32, %v22142_v30  ;;  %v13757_v35 = vmax.f32 %v13716_v59, 0.0  ;;  %v13628_v34 = vmul.f32 %v23934_v1, %v13410_v52  ;;  %v17997_v38 = vpop.f32.mrb[137].mxu0  ;;  %v9454_v59 = vld [vmem:[#allocation2 + $0x10c] sm:$0xff] }
0x1008   : > { %v13413_v53 = vpop.f32.mrb[138].mxu0 }
0x1009   : > { %v13837_v51 = vadd.f32 %v13836_v40, %v13797_v0  ;;  %v13798_v7 = vmul.f32 %v13757_v35, %v22144_v31  ;;  %v13676_v39 = vadd.f32 %v23939_v45, %v13628_v34  ;;  %v13629_v43 = vmul.f32 %v23934_v1, %v13413_v53  ;;  %v17998_v58 = vpop.f32.mrb[139].mxu0 }
0x100b   : > { %v13838_v25 = vadd.f32 %v13837_v51, %v13798_v7  ;;  %v13717_v6 = vadd.f32 %v13676_v39, %v9449_v2  ;;  %v13677_v27 = vadd.f32 %v23939_v45, %v13629_v43  ;;  %v9455_v2 = vld [vmem:[#allocation2 + $0x114] sm:$0xff] }
0x100d   : > { %v13758_v30 = vmax.f32 %v13717_v6, 0.0  ;;  %v13718_v37 = vadd.f32 %v13677_v27, %v9450_v47  ;;  %v9456_v47 = vld [vmem:[#allocation2 + $0x11c] sm:$0xff] }
0x100e   : > { %v13418_v8 = vpop.f32.mrb[140].mxu0 }
0x100f   : > { %v13799_v26 = vmul.f32 %v13758_v30, %v22154_v20  ;;  %v13759_v56 = vmax.f32 %v13718_v37, 0.0  ;;  %v13630_v4 = vmul.f32 %v23934_v1, %v13418_v8  ;;  %v18001_v31 = vpop.f32.mrb[141].mxu0 }
0x1010   : > { %v13421_v21 = vpop.f32.mrb[142].mxu0 }
0x1011   : > { %v13839_v54 = vadd.f32 %v13838_v25, %v13799_v26  ;;  %v13800_v62 = vmul.f32 %v13759_v56, %v22156_v13  ;;  %v13678_v33 = vadd.f32 %v23939_v45, %v13630_v4  ;;  %v13631_v28 = vmul.f32 %v23934_v1, %v13421_v21  ;;  %v18002_v19 = vpop.f32.mrb[143].mxu0 }
0x1013   : > { %v13840_v23 = vadd.f32 %v13839_v54, %v13800_v62  ;;  %v13719_v55 = vadd.f32 %v13678_v33, %v9451_v36  ;;  %v13679_v14 = vadd.f32 %v23939_v45, %v13631_v28  ;;  %v9457_v28 = vld [vmem:[#allocation2 + $0x124] sm:$0xff] }
0x1015   : > { %v13760_v20 = vmax.f32 %v13719_v55, 0.0  ;;  %v13720_v11 = vadd.f32 %v13679_v14, %v9452_v12  ;;  %v9458_v55 = vld [vmem:[#allocation2 + $0x12c] sm:$0xff] }
0x1016   : > { %v13426_v57 = vpop.f32.mrb[144].mxu0 }
0x1017   : > { %v13801_v16 = vmul.f32 %v13760_v20, %v22168_v48  ;;  %v13761_v9 = vmax.f32 %v13720_v11, 0.0  ;;  %v13632_v41 = vmul.f32 %v23934_v1, %v13426_v57  ;;  %v18005_v13 = vpop.f32.mrb[145].mxu0 }
0x1018   : > { %v13429_v22 = vpop.f32.mrb[146].mxu0 }
0x1019   : > { %v13841_v29 = vadd.f32 %v13840_v23, %v13801_v16  ;;  %v13802_v63 = vmul.f32 %v13761_v9, %v22170_v61  ;;  %v13680_v24 = vadd.f32 %v23939_v45, %v13632_v41  ;;  %v13633_v60 = vmul.f32 %v23934_v1, %v13429_v22  ;;  %v18006_v40 = vpop.f32.mrb[147].mxu0 }
0x101b   : > { %v13842_v49 = vadd.f32 %v13841_v29, %v13802_v63  ;;  %v13721_v46 = vadd.f32 %v13680_v24, %v9453_v18  ;;  %v13681_v32 = vadd.f32 %v23939_v45, %v13633_v60  ;;  %v9459_v63 = vld [vmem:[#allocation2 + $0x134] sm:$0xff]  ;;  %v9460_v18 = vld [vmem:[#allocation2 + $0x13c] sm:$0xff] }
0x101d   : > { %v13762_v48 = vmax.f32 %v13721_v46, 0.0  ;;  %v13722_v52 = vadd.f32 %v13681_v32, %v9454_v59 }
0x101e   : > { %v13434_v0 = vpop.f32.mrb[148].mxu0 }
0x101f   : > { %v13803_v35 = vmul.f32 %v13762_v48, %v22180_v17  ;;  %v13763_v34 = vmax.f32 %v13722_v52, 0.0  ;;  %v13634_v38 = vmul.f32 %v23934_v1, %v13434_v0  ;;  %v18009_v61 = vpop.f32.mrb[149].mxu0 }
0x1020   : > { %v13437_v53 = vpop.f32.mrb[150].mxu0 }
0x1021   : > { %v13843_v51 = vadd.f32 %v13842_v49, %v13803_v35  ;;  %v13804_v7 = vmul.f32 %v13763_v34, %v22182_v10  ;;  %v13682_v39 = vadd.f32 %v23939_v45, %v13634_v38  ;;  %v13635_v43 = vmul.f32 %v23934_v1, %v13437_v53  ;;  %v18010_v58 = vpop.f32.mrb[151].mxu0  ;;  %v9461_v53 = vld [vmem:[#allocation2 + $0x144] sm:$0xff] }
0x1023   : > { %v13844_v25 = vadd.f32 %v13843_v51, %v13804_v7  ;;  %v13723_v6 = vadd.f32 %v13682_v39, %v9455_v2  ;;  %v13683_v27 = vadd.f32 %v23939_v45, %v13635_v43  ;;  %v9462_v43 = vld [vmem:[#allocation2 + $0x14c] sm:$0xff] }
0x1025   : > { %v13764_v17 = vmax.f32 %v13723_v6, 0.0  ;;  %v13724_v30 = vadd.f32 %v13683_v27, %v9456_v47 }
0x1026   : > { %v13442_v37 = vpop.f32.mrb[152].mxu0 }
0x1027   : > { %v13805_v8 = vmul.f32 %v13764_v17, %v22192_v3  ;;  %v13765_v26 = vmax.f32 %v13724_v30, 0.0  ;;  %v13636_v56 = vmul.f32 %v23934_v1, %v13442_v37  ;;  %v18013_v10 = vpop.f32.mrb[153].mxu0  ;;  %v24140_v37 = vld [vmem:[#allocation9_spill] sm:$0xff] }
0x1028   : > { %v13445_v4 = vpop.f32.mrb[154].mxu0  ;;  %v9463_v10 = vld [vmem:[#allocation2 + $0x154] sm:$0xff] }
0x1029   : > { %v13845_v31 = vadd.f32 %v13844_v25, %v13805_v8  ;;  %v13806_v21 = vmul.f32 %v13765_v26, %v22194_v5  ;;  %v13684_v54 = vadd.f32 %v23939_v45, %v13636_v56  ;;  %v13637_v62 = vmul.f32 %v23934_v1, %v13445_v4  ;;  %v18014_v33 = vpop.f32.mrb[155].mxu0  ;;  %v24139_v25 = vld [vmem:[#allocation8_spill] sm:$0xff] }
0x102b   : > { %v13846_v19 = vadd.f32 %v13845_v31, %v13806_v21  ;;  %v13725_v36 = vadd.f32 %v13684_v54, %v9457_v28  ;;  %v13685_v23 = vadd.f32 %v23939_v45, %v13637_v62  ;;  %v24141_v54 = vld [vmem:[#allocation10_spill] sm:$0xff] }
0x102d   : > { %v13766_v3 = vmax.f32 %v13725_v36, 0.0  ;;  %v13726_v14 = vadd.f32 %v13685_v23, %v9458_v55 }
0x102e   : > { %v13450_v12 = vpop.f32.mrb[156].mxu0 }
0x102f   : > { %v13807_v20 = vmul.f32 %v13766_v3, %v22204_v42  ;;  %v13767_v11 = vmax.f32 %v13726_v14, 0.0  ;;  %v13638_v57 = vmul.f32 %v23934_v1, %v13450_v12  ;;  %v18017_v5 = vpop.f32.mrb[157].mxu0 }
0x1030   : > { %v13453_v16 = vpop.f32.mrb[158].mxu0 }
0x1031   : > { %v13847_v9 = vadd.f32 %v13846_v19, %v13807_v20  ;;  %v13808_v41 = vmul.f32 %v13767_v11, %v22206_v15  ;;  %v13686_v13 = vadd.f32 %v23939_v45, %v13638_v57  ;;  %v13639_v22 = vmul.f32 %v23934_v1, %v13453_v16  ;;  %v18018_v29 = vpop.f32.mrb[159].mxu0 }
0x1033   : > { %v13848_v24 = vadd.f32 %v13847_v9, %v13808_v41  ;;  %v13727_v60 = vadd.f32 %v13686_v13, %v9459_v63  ;;  %v13687_v40 = vadd.f32 %v23939_v45, %v13639_v22 }
0x1035   : > { %v13768_v42 = vmax.f32 %v13727_v60, 0.0  ;;  %v13728_v49 = vadd.f32 %v13687_v40, %v9460_v18 }
0x1036   : > { %v13458_v46 = vpop.f32.mrb[160].mxu0 }
0x1037   : > { %v13809_v32 = vmul.f32 %v13768_v42, %v22216_v44  ;;  %v13769_v59 = vmax.f32 %v13728_v49, 0.0  ;;  %v13640_v48 = vmul.f32 %v23934_v1, %v13458_v46  ;;  %v18021_v15 = vpop.f32.mrb[161].mxu0 }
0x1038   : > { %v13461_v52 = vpop.f32.mrb[162].mxu0 }
0x1039   : > { %v13849_v0 = vadd.f32 %v13848_v24, %v13809_v32  ;;  %v13810_v35 = vmul.f32 %v13769_v59, %v22218_v50  ;;  %v13688_v34 = vadd.f32 %v23939_v45, %v13640_v48  ;;  %v13641_v38 = vmul.f32 %v23934_v1, %v13461_v52  ;;  %v18022_v61 = vpop.f32.mrb[163].mxu0 }
0x103b   : > { %v13850_v51 = vadd.f32 %v13849_v0, %v13810_v35  ;;  %v13729_v7 = vadd.f32 %v13688_v34, %v9461_v53  ;;  %v13689_v39 = vadd.f32 %v23939_v45, %v13641_v38 }
0x103d   : > { %v13770_v44 = vmax.f32 %v13729_v7, 0.0  ;;  %v13730_v58 = vadd.f32 %v13689_v39, %v9462_v43 }
0x103e   : > { %v13466_v2 = vpop.f32.mrb[164].mxu0 }
0x103f   : > { %v13811_v6 = vmul.f32 %v13770_v44, %v24139_v25  ;;  %v13771_v27 = vmax.f32 %v13730_v58, 0.0  ;;  %v13642_v50 = vmul.f32 %v23934_v1, %v13466_v2  ;;  %v18025_v47 = vpop.f32.mrb[165].mxu0 }
0x1040   : > { %v13469_v17 = vpop.f32.mrb[166].mxu0 }
0x1041   : > { %v13851_v30 = vadd.f32 %v13850_v51, %v13811_v6  ;;  %v13812_v8 = vmul.f32 %v13771_v27, %v24140_v37  ;;  %v13690_v26 = vadd.f32 %v23939_v45, %v13642_v50  ;;  %v18026_v56 = vpop.f32.mrb[167].mxu0 }
0x1043   : > { %v13852_v4 = vadd.f32 %v13851_v30, %v13812_v8  ;;  %v13731_v31 = vadd.f32 %v13690_v26, %v9463_v10 }
0x1045   : > { %v13772_v21 = vmax.f32 %v13731_v31, 0.0 }
0x1047   : > { %v13813_v62 = vmul.f32 %v13772_v21, %v24141_v54 }
0x1049   : > { %v13853_v33 = vadd.f32 %v13852_v4, %v13813_v62 }
0x104b   : > { %v13854_v28 = vrot.slane %v13853_v33, 4 }
0x104d   : > { %v13855_v19 = vadd.f32 %v13854_v28, %v13853_v33 }
0x104f   : > { %v13856_v1 = vrot.slane %v13855_v19, 2 }
0x1051   : > { %v13857_v36 = vadd.f32 %v13856_v1, %v13855_v19 }
0x1053   : > { %v13858_v23 = vrot.slane %v13857_v36, 1 }
0x1055   : > { %v13859_v55 = vadd.f32 %v13858_v23, %v13857_v36 }
0x1057   : > { %v13860_v45 = vmul.f32 0.00390625, %v13859_v55 }
0x1059   : > { %13861 = vst [vmem:[%s378_s14] sm:$0x1] %v13860_v45 }
0x105a   : > { %20306 = shalt.err (!%p20303_p3)
}
0x105b   : > { %s20307_s13 = scalar_lea.hbm %s24069_s24, 16  ;;  %s20311_s22 = scalar_lea.hbm %s24122_s11, 32 }
0x105c   : > { %p20308_p4 = scmp.ne.s32.totalorder %s24069_s24, %s20307_s13  ;;  %p20312_p9 = scmp.lt.u32.totalorder %s24069_s24, %s24122_s11 }
0x105d   : > { %p20313_p10 = scmp.lt.u32.totalorder %s20311_s22, %s20307_s13  ;;  %p20315_p12 = scmp.lt.u32.totalorder %s20307_s13, %s24069_s24 }
0x105e   : > { %p20309_p7 = pnand %p20308_p4, %p20459_p5 }
0x105f   : > { %p20314_p11 = por %p20313_p10, %p20312_p9 }
0x1060   : > { %p20310_p8 = pneg %p20309_p7 }
0x1061   : > { %p20316_p13 = por %p20315_p12, %p20314_p11 }
0x1063   : > { %p20317_p0 = pnand %p20316_p13, %p20310_p8 }
0x1065   : > { %20320 = shalt.err (!%p20317_p0)
}
0x1066   : > { %20017 = dma.vmem_to_hbm [thread:$0]  (%p20459_p5), %s24071_s16, 16, %s24069_s24, %s13863_s25  }
0x1067 PF: > { %p20023_p1 = scmp.ge.s32.totalorder %s20355_s20, 2  ;;  %s13887_s0 = sand.u32 1, %s20343_s17  }
0x1068   : > { %s13888_s30 = scalar_lea.sflag [#allocation6], %s13887_s0 }
0x1069   : > { %p20020_p2 = pnand %p20023_p1, %p20463_p6 }
0x106b   : > { %20338 = dma.done.wait (!%p20020_p2), %s13888_s30, 16  }
0x106c   : > { %20340 = vsyncadd (!%p20020_p2), %s13888_s30, 4294967280  ;;  %p21_p3 = scmp.ge.s32.totalorder %s20446_s23, 4   ;;  %s24142_s17 = smov %s20347_s18 }
0x106d   : > { %s24143_s18 = smov %s20351_s19  ;;  %s24144_s19 = smov %s20457_s26 }
0x106e   : > { %s24145_s20 = smov %s20446_s23  ;;  %23 = sbr.rel (!%p21_p3) target bundleno = 5 (0x5), region = 123 }
0x1075   :  { %13892 = vsyncpa [#allocation6], 1 }
0x1076   :  { %13894 = vsyncpa [#allocation6 + $0x1], 1 }

</bundles_post_ra>
